<compile_context>
chip_gen: v5e
topology: v5e:2x2
jax: 0.10.0
libtpu: 0.0.40
codegen_flags: <defaults>
</compile_context>

<pallas_src>
import functools

import jax
import jax.numpy as jnp
from jax.experimental import pallas as pl
from jax.experimental.pallas import tpu as pltpu

_EPS = 1e-5
_VMEM_LIMIT_BYTES = 32 * 1024 * 1024


# --------------------------------------------------------------------------- #
# Kernels
# --------------------------------------------------------------------------- #
def _gemm_bn_stats_kernel(x_ref, w_ref, sc_ref, sh_ref,
                          y_ref, psum_ref, psq_ref, *, fuse_bnrelu):
    """y = (relu(x*sc+sh) if fuse_bnrelu else x) @ w  (bf16 MXU, f32 acc) + stats."""
    h = x_ref[...]
    if fuse_bnrelu:
        h = jnp.maximum(h.astype(jnp.float32) * sc_ref[...] + sh_ref[...], 0.0)
    h = h.astype(w_ref.dtype)                                   # bf16 for the MXU
    acc = jnp.dot(h, w_ref[...], preferred_element_type=jnp.float32)
    y_ref[...] = acc.astype(y_ref.dtype)                        # bf16 store
    s = jnp.sum(acc, axis=0, keepdims=True)                     # f32 stats from acc
    q = jnp.sum(acc * acc, axis=0, keepdims=True)
    psum_ref[...] = jnp.broadcast_to(s, psum_ref.shape)
    psq_ref[...] = jnp.broadcast_to(q, psq_ref.shape)


def _conv3x3_bn_stats_kernel(y1_ref, w2_ref, sc_ref, sh_ref,
                             y2_ref, psum_ref, psq_ref,
                             hpad_ref, col_ref, *, stride):
    """bn1+relu, then 3x3/stride-s/pad-1 conv as ONE deep-K im2col GEMM, + stats."""
    _, H, W, Cp = y1_ref.shape
    Hp = H + 2
    Ho = (H - 1) // stride + 1
    Wo = (W - 1) // stride + 1

    # Zero only the halo border that the tap windows actually read (the interior
    # is fully overwritten; columns beyond W+1 are never read).  Done every step
    # so it is safe under 'parallel' (megacore) semantics.
    Wp_pad = hpad_ref.shape[1]
    zrow = jnp.zeros((1, Wp_pad, Cp), jnp.float32)
    hpad_ref[0:1, :, :] = zrow
    hpad_ref[Hp - 1:Hp, :, :] = zrow
    zcol = jnp.zeros((Hp, 1, Cp), jnp.float32)
    hpad_ref[:, 0:1, :] = zcol
    hpad_ref[:, W + 1:W + 2, :] = zcol

    # bn1 + relu fused on the input tile (f32 math on bf16 input), halo interior.
    h1 = jnp.maximum(y1_ref[0].astype(jnp.float32) * sc_ref[...] + sh_ref[...], 0.0)
    hpad_ref[1:H + 1, 1:W + 1, :] = h1

    # Build the im2col LHS: col[:, t*Cp:(t+1)*Cp] = tap window (di, dj), bf16.
    hs = stride * (Ho - 1) + 1
    ws = stride * (Wo - 1) + 1
    for di in range(3):
        for dj in range(3):
            t = di * 3 + dj
            win = hpad_ref[di:di + hs, dj:dj + ws, :]
            if stride > 1:
                # TODO(synk): strided tap subsample; only stride=1 is exercised here.
                win = win[::stride, ::stride, :]
            col_ref[:, t * Cp:(t + 1) * Cp] = (
                win.reshape(Ho * Wo, Cp).astype(col_ref.dtype))

    # Single deep-K MXU GEMM: (Ho*Wo, 9*Cp) @ (9*Cp, Co), f32 accumulation.
    acc = jnp.dot(col_ref[...], w2_ref[...], preferred_element_type=jnp.float32)
    y2_ref[...] = acc.astype(y2_ref.dtype)
    s = jnp.sum(acc, axis=0, keepdims=True)
    q = jnp.sum(acc * acc, axis=0, keepdims=True)
    psum_ref[...] = jnp.broadcast_to(s, psum_ref.shape)
    psq_ref[...] = jnp.broadcast_to(q, psq_ref.shape)


def _bn3_shortcut_add_relu_kernel(y3_ref, sc3_ref, sh3_ref,
                                  xs_ref, wsc_ref, scs_ref, shs_ref, out_ref):
    """out = relu( bn3(y3) + bn_sc(xs @ wsc) ) — shortcut conv fused (tiny K)."""
    a = y3_ref[...].astype(jnp.float32) * sc3_ref[...] + sh3_ref[...]
    s = jnp.dot(xs_ref[...], wsc_ref[...], preferred_element_type=jnp.float32)
    b = s * scs_ref[...] + shs_ref[...]
    out_ref[...] = jnp.maximum(a + b, 0.0)


# --------------------------------------------------------------------------- #
# pallas_call builders
# --------------------------------------------------------------------------- #
def _compiler_params():
    return pltpu.CompilerParams(dimension_semantics=("parallel",),
                                vmem_limit_bytes=_VMEM_LIMIT_BYTES)


def _pick_tile(m, cap=1024):
    """Largest row-tile <= cap that divides m and is a multiple of 8 (else m)."""
    t = min(m, cap)
    t -= t % 8
    while t >= 8:
        if m % t == 0:
            return t
        t -= 8
    return m


def _run_gemm(x2d, w, scale, shift, *, fuse_bnrelu, tile):
    M, K = x2d.shape
    Co = w.shape[1]
    G = M // tile
    y, ps, pq = pl.pallas_call(
        functools.partial(_gemm_bn_stats_kernel, fuse_bnrelu=fuse_bnrelu),
        grid=(G,),
        in_specs=[
            pl.BlockSpec((tile, K), lambda i: (i, 0)),
            pl.BlockSpec((K, Co), lambda i: (0, 0)),
            pl.BlockSpec((1, K), lambda i: (0, 0)),
            pl.BlockSpec((1, K), lambda i: (0, 0)),
        ],
        out_specs=[
            pl.BlockSpec((tile, Co), lambda i: (i, 0)),
            pl.BlockSpec((1, 8, Co), lambda i: (i, 0, 0)),
            pl.BlockSpec((1, 8, Co), lambda i: (i, 0, 0)),
        ],
        out_shape=[
            jax.ShapeDtypeStruct((M, Co), jnp.bfloat16),
            jax.ShapeDtypeStruct((G, 8, Co), jnp.float32),
            jax.ShapeDtypeStruct((G, 8, Co), jnp.float32),
        ],
        compiler_params=_compiler_params(),
    )(x2d, w, scale, shift)
    return y, jnp.sum(ps[:, 0, :], axis=0), jnp.sum(pq[:, 0, :], axis=0)


def _run_conv3x3(y1_4d, w2p, scale, shift, *, stride):
    N, H, W, Cp = y1_4d.shape
    K9, Co = w2p.shape
    Ho = (H - 1) // stride + 1
    Wo = (W - 1) // stride + 1
    Mo = N * Ho * Wo
    Wp_pad = _rup(W + 2, 8)                       # sublane-aligned halo scratch rows
    y2, ps, pq = pl.pallas_call(
        functools.partial(_conv3x3_bn_stats_kernel, stride=stride),
        grid=(N,),
        in_specs=[
            pl.BlockSpec((1, H, W, Cp), lambda n: (n, 0, 0, 0)),
            pl.BlockSpec((K9, Co), lambda n: (0, 0)),
            pl.BlockSpec((1, Cp), lambda n: (0, 0)),
            pl.BlockSpec((1, Cp), lambda n: (0, 0)),
        ],
        out_specs=[
            pl.BlockSpec((Ho * Wo, Co), lambda n: (n, 0)),
            pl.BlockSpec((1, 8, Co), lambda n: (n, 0, 0)),
            pl.BlockSpec((1, 8, Co), lambda n: (n, 0, 0)),
        ],
        out_shape=[
            jax.ShapeDtypeStruct((Mo, Co), jnp.bfloat16),
            jax.ShapeDtypeStruct((N, 8, Co), jnp.float32),
            jax.ShapeDtypeStruct((N, 8, Co), jnp.float32),
        ],
        scratch_shapes=[
            pltpu.VMEM((H + 2, Wp_pad, Cp), jnp.float32),   # halo-padded bn1(y1)
            pltpu.VMEM((Ho * Wo, K9), jnp.bfloat16),        # im2col LHS (bf16)
        ],
        compiler_params=_compiler_params(),
    )(y1_4d, w2p, scale, shift)
    return y2, jnp.sum(ps[:, 0, :], axis=0), jnp.sum(pq[:, 0, :], axis=0), Ho, Wo


def _run_bn3_shortcut_add_relu(y3, sc3, sh3, xs, wsc, scs, shs, *, tile):
    M, C3p = y3.shape
    K = xs.shape[1]
    G = M // tile
    return pl.pallas_call(
        _bn3_shortcut_add_relu_kernel,
        grid=(G,),
        in_specs=[
            pl.BlockSpec((tile, C3p), lambda i: (i, 0)),
            pl.BlockSpec((1, C3p), lambda i: (0, 0)),
            pl.BlockSpec((1, C3p), lambda i: (0, 0)),
            pl.BlockSpec((tile, K), lambda i: (i, 0)),
            pl.BlockSpec((K, C3p), lambda i: (0, 0)),
            pl.BlockSpec((1, C3p), lambda i: (0, 0)),
            pl.BlockSpec((1, C3p), lambda i: (0, 0)),
        ],
        out_specs=pl.BlockSpec((tile, C3p), lambda i: (i, 0)),
        out_shape=jax.ShapeDtypeStruct((M, C3p), jnp.float32),
        compiler_params=_compiler_params(),
    )(y3, sc3, sh3, xs, wsc, scs, shs)


# --------------------------------------------------------------------------- #
# Parameter / BN glue
# --------------------------------------------------------------------------- #
def _rup(n, m=128):
    return ((n + m - 1) // m) * m


def _pad_vec(v, n):
    v = v.astype(jnp.float32)
    return jnp.pad(v, (0, n - v.shape[0]))


def _w1x1(w, rows, cols):
    """torch (Cout, Cin, 1, 1) -> (rows, cols) bf16, zero-padded."""
    w2 = jnp.transpose(w[:, :, 0, 0]).astype(jnp.float32)      # (Cin, Cout)
    w2 = jnp.pad(w2, ((0, rows - w2.shape[0]), (0, cols - w2.shape[1])))
    return w2.astype(jnp.bfloat16)


def _w3x3(w, rows, cols):
    """torch (Cout, Cin, 3, 3) -> (9*rows, cols) bf16, row = t*rows + ci, t=kh*3+kw."""
    t = jnp.transpose(w, (2, 3, 1, 0)).reshape(9, w.shape[1], w.shape[0])
    t = t.astype(jnp.float32)
    t = jnp.pad(t, ((0, 0), (0, rows - t.shape[1]), (0, cols - t.shape[2])))
    return t.reshape(9 * rows, cols).astype(jnp.bfloat16)


def _fold_bn(s, sq, count, gamma, beta):
    """Training-mode BN folded into per-channel (scale, shift); f32, single pass."""
    mean = s / count
    var = jnp.maximum(sq / count - mean * mean, 0.0)
    scale = gamma * jax.lax.rsqrt(var + _EPS)
    shift = beta - mean * scale
    return scale.reshape(1, -1), shift.reshape(1, -1)


# --------------------------------------------------------------------------- #
# Bottleneck forward
# --------------------------------------------------------------------------- #
def bottleneck_forward(x_nchw, params, stride):
    """NCHW in / NCHW out (PyTorch convention); Pallas kernels work in NHWC/2D."""
    N, Cin, H, W = x_nchw.shape
    planes = params["w1"].shape[0]
    C3 = params["w3"].shape[0]                     # expansion * planes
    has_sc = (stride != 1) or (Cin != C3)
    Pp = _rup(planes)                              # lane-dense padded channel dims
    C3p = _rup(C3)

    # TODO(synk): fold the NCHW<->NHWC layout changes into the first/last kernels.
    x = jnp.transpose(x_nchw, (0, 2, 3, 1)).astype(jnp.float32)        # NHWC f32
    M = N * H * W
    x2d_f32 = x.reshape(M, Cin)
    x2d = x2d_f32.astype(jnp.bfloat16)

    # ---- conv1 (1x1) as a row-tiled bf16 GEMM + bn1 stats ------------------ #
    w1p = _w1x1(params["w1"], Cin, Pp)
    dummy = jnp.zeros((1, Cin), jnp.float32)
    tm1 = _pick_tile(M)
    y1, s1, q1 = _run_gemm(x2d, w1p, dummy, dummy, fuse_bnrelu=False, tile=tm1)
    sc1, sh1 = _fold_bn(s1, q1, M, _pad_vec(params["g1"], Pp), _pad_vec(params["b1"], Pp))

    # ---- conv2 (3x3, stride s, pad 1): bn1+relu fused, im2col single GEMM --- #
    y1_4d = y1.reshape(N, H, W, Pp)
    w2p = _w3x3(params["w2"], Pp, Pp)
    y2, s2, q2, Ho, Wo = _run_conv3x3(y1_4d, w2p, sc1, sh1, stride=stride)
    Mo = N * Ho * Wo
    sc2, sh2 = _fold_bn(s2, q2, Mo, _pad_vec(params["g2"], Pp), _pad_vec(params["b2"], Pp))

    # ---- conv3 (1x1) with bn2+relu fused into the GEMM prologue ------------ #
    w3p = _w1x1(params["w3"], Pp, C3p)
    tm3 = _pick_tile(Mo)
    y3, s3, q3 = _run_gemm(y2, w3p, sc2, sh2, fuse_bnrelu=True, tile=tm3)
    sc3, sh3 = _fold_bn(s3, q3, Mo, _pad_vec(params["g3"], C3p), _pad_vec(params["b3"], C3p))

    # ---- shortcut branch: 1x1 conv fused into final kernel; stats via Gram -- #
    xs_f32 = x[:, ::stride, ::stride, :][:, :Ho, :Wo, :].reshape(Mo, Cin)
    xs = xs_f32.astype(jnp.bfloat16)
    if has_sc:
        wsc2 = jnp.transpose(params["wsc"][:, :, 0, 0]).astype(jnp.float32)  # (Cin, C3)
        hi = jax.lax.Precision.HIGHEST
        ssum = jnp.einsum("i,ic->c", jnp.sum(xs_f32, axis=0), wsc2, precision=hi)
        gram = jnp.einsum("mi,mj->ij", xs_f32, xs_f32, precision=hi)         # (Cin,Cin)
        ssq = jnp.einsum("ic,ij,jc->c", wsc2, gram, wsc2, precision=hi)
        scs, shs = _fold_bn(jnp.pad(ssum, (0, C3p - C3)),
                            jnp.pad(ssq, (0, C3p - C3)), Mo,
                            _pad_vec(params["gsc"], C3p), _pad_vec(params["bsc"], C3p))
        wscp = jnp.pad(wsc2, ((0, 0), (0, C3p - C3))).astype(jnp.bfloat16)
    else:
        # Identity shortcut (Cin == C3, stride == 1): identity projection, no BN.
        wscp = jnp.pad(jnp.eye(Cin, dtype=jnp.float32),
                       ((0, 0), (0, C3p - Cin))).astype(jnp.bfloat16)
        scs = jnp.ones((1, C3p), jnp.float32)
        shs = jnp.zeros((1, C3p), jnp.float32)

    # ---- bn3 + fused shortcut conv/BN + add + relu -------------------------- #
    out2d = _run_bn3_shortcut_add_relu(y3, sc3, sh3, xs, wscp, scs, shs, tile=tm3)
    out = out2d[:, :C3].reshape(N, Ho, Wo, C3)
    return jnp.transpose(out, (0, 3, 1, 2))                            # NCHW


# --------------------------------------------------------------------------- #
# Pure-JAX (XLA) reference, training-mode BatchNorm, f32 throughout
# --------------------------------------------------------------------------- #
def reference_forward(x, params, stride):
    def conv(inp, w, s, pad):
        return jax.lax.conv_general_dilated(
            inp, w, window_strides=(s, s), padding=[(pad, pad), (pad, pad)],
            dimension_numbers=("NCHW", "OIHW", "NCHW"),
            precision=jax.lax.Precision.HIGHEST)

    def bn(y, g, b):
        mean = jnp.mean(y, axis=(0, 2, 3), keepdims=True)
        var = jnp.mean((y - mean) ** 2, axis=(0, 2, 3), keepdims=True)
        return (g.reshape(1, -1, 1, 1) * (y - mean) / jnp.sqrt(var + _EPS)
                + b.reshape(1, -1, 1, 1))

    out = jax.nn.relu(bn(conv(x, params["w1"], 1, 0), params["g1"], params["b1"]))
    out = jax.nn.relu(bn(conv(out, params["w2"], stride, 1), params["g2"], params["b2"]))
    out = bn(conv(out, params["w3"], 1, 0), params["g3"], params["b3"])
    C3 = params["w3"].shape[0]
    if stride != 1 or x.shape[1] != C3:
        sc = bn(conv(x, params["wsc"], stride, 0), params["gsc"], params["bsc"])
    else:
        sc = x
    return jax.nn.relu(out + sc)


if __name__ == "__main__":
    # Bottleneck(in_planes=4, planes=8, stride=1) -> out channels 32, conv shortcut.
    N, Cin, H, W = 2, 4, 16, 16
    planes, stride = 8, 1
    C3 = 4 * planes                                # expansion = 4

    key = jax.random.PRNGKey(0)
    ks = jax.random.split(key, 5)
    x = jax.random.normal(ks[0], (N, Cin, H, W), jnp.float32)
    params = dict(
        w1=jax.random.normal(ks[1], (planes, Cin, 1, 1), jnp.float32) * 0.5,
        w2=jax.random.normal(ks[2], (planes, planes, 3, 3), jnp.float32) * 0.2,
        w3=jax.random.normal(ks[3], (C3, planes, 1, 1), jnp.float32) * 0.3,
        wsc=jax.random.normal(ks[4], (C3, Cin, 1, 1), jnp.float32) * 0.5,
        g1=jnp.ones((planes,), jnp.float32), b1=jnp.zeros((planes,), jnp.float32),
        g2=jnp.ones((planes,), jnp.float32), b2=jnp.zeros((planes,), jnp.float32),
        g3=jnp.ones((C3,), jnp.float32), b3=jnp.zeros((C3,), jnp.float32),
        gsc=jnp.ones((C3,), jnp.float32), bsc=jnp.zeros((C3,), jnp.float32),
    )

    fwd = jax.jit(functools.partial(bottleneck_forward, stride=stride))
    out = jax.block_until_ready(fwd(x, params))

    ref = reference_forward(x, params, stride)
    err = float(jnp.max(jnp.abs(out - ref)))
    ok = (out.shape == ref.shape) and bool(jnp.allclose(out, ref, rtol=5e-2, atol=5e-2))
    if not ok:
        raise SystemExit(
            f"Pallas/XLA mismatch: shape {out.shape} vs {ref.shape}, max|err|={err}")
    print("KERNEL_OK")
</pallas_src>

<mosaic_0001>
module attributes {stable_mosaic.version = 11 : i64} {
  func.func @_gemm_bn_stats_kernel(%arg0: i32, %arg1: memref<512x4xbf16, #tpu.memory_space<vmem>>, %arg2: memref<4x128xbf16, #tpu.memory_space<vmem>>, %arg3: memref<1x4xf32, #tpu.memory_space<vmem>>, %arg4: memref<1x4xf32, #tpu.memory_space<vmem>>, %arg5: memref<512x128xbf16, #tpu.memory_space<vmem>>, %arg6: memref<1x8x128xf32, #tpu.memory_space<vmem>>, %arg7: memref<1x8x128xf32, #tpu.memory_space<vmem>>) attributes {dimension_semantics = [#tpu.dimension_semantics<parallel>], iteration_bounds = array<i64: 1>, scalar_prefetch = 0 : i64, scratch_operands = 0 : i64, tpu.core_type = #tpu.core_type<tc>, window_params = [{transform_indices = @transform_0, window_bounds = array<i64: 512, 4>}, {pipeline_mode = #tpu.pipeline_mode<synchronous>, transform_indices = @transform_1, window_bounds = array<i64: 4, 128>}, {pipeline_mode = #tpu.pipeline_mode<synchronous>, transform_indices = @transform_2, window_bounds = array<i64: 1, 4>}, {pipeline_mode = #tpu.pipeline_mode<synchronous>, transform_indices = @transform_3, window_bounds = array<i64: 1, 4>}, {transform_indices = @transform_4, window_bounds = array<i64: 512, 128>}, {transform_indices = @transform_5, window_bounds = array<i64: 1, 8, 128>}, {transform_indices = @transform_6, window_bounds = array<i64: 1, 8, 128>}]} {
    %c0 = arith.constant 0 : index
    %c0_0 = arith.constant 0 : index
    %0 = vector.load %arg1[%c0, %c0_0] : memref<512x4xbf16, #tpu.memory_space<vmem>>, vector<512x4xbf16>
    %c0_1 = arith.constant 0 : index
    %c0_2 = arith.constant 0 : index
    %1 = vector.load %arg2[%c0_1, %c0_2] : memref<4x128xbf16, #tpu.memory_space<vmem>>, vector<4x128xbf16>
    %cst = arith.constant dense<0.000000e+00> : vector<512x128xf32>
    %2 = tpu.matmul %0, %1, %cst {dimension_numbers = #tpu.dot_dimension_numbers<[1], [0], [0], [1], [0, 0, 1, 1], [], []>} : vector<512x4xbf16>, vector<4x128xbf16>, vector<512x128xf32> -> vector<512x128xf32>
    %3 = arith.truncf %2 : vector<512x128xf32> to vector<512x128xbf16>
    %c0_3 = arith.constant 0 : index
    %c0_4 = arith.constant 0 : index
    %4 = vector.load %arg5[%c0_3, %c0_4] : memref<512x128xbf16, #tpu.memory_space<vmem>>, vector<512x128xbf16>
    tpu.vector_store %arg5[%c0_3, %c0_4], %3 {strides = array<i32>} : memref<512x128xbf16, #tpu.memory_space<vmem>>, vector<512x128xbf16>,
    %cst_5 = arith.constant dense<0.000000e+00> : vector<128xf32>
    %5 = vector.multi_reduction <add>, %2, %cst_5 [0] : vector<512x128xf32> to vector<128xf32>
    %6 = vector.shape_cast %5 : vector<128xf32> to vector<1x128xf32>
    %7 = arith.mulf %2, %2 : vector<512x128xf32>
    %cst_6 = arith.constant dense<0.000000e+00> : vector<128xf32>
    %8 = vector.multi_reduction <add>, %7, %cst_6 [0] : vector<512x128xf32> to vector<128xf32>
    %9 = vector.shape_cast %8 : vector<128xf32> to vector<1x128xf32>
    %10 = vector.shape_cast %6 : vector<1x128xf32> to vector<1x1x128xf32>
    %11 = vector.broadcast %10 : vector<1x1x128xf32> to vector<1x8x128xf32>
    %c0_7 = arith.constant 0 : index
    %c0_8 = arith.constant 0 : index
    %c0_9 = arith.constant 0 : index
    %12 = vector.load %arg6[%c0_7, %c0_8, %c0_9] : memref<1x8x128xf32, #tpu.memory_space<vmem>>, vector<1x8x128xf32>
    tpu.vector_store %arg6[%c0_7, %c0_8, %c0_9], %11 {strides = array<i32>} : memref<1x8x128xf32, #tpu.memory_space<vmem>>, vector<1x8x128xf32>,
    %13 = vector.shape_cast %9 : vector<1x128xf32> to vector<1x1x128xf32>
    %14 = vector.broadcast %13 : vector<1x1x128xf32> to vector<1x8x128xf32>
    %c0_10 = arith.constant 0 : index
    %c0_11 = arith.constant 0 : index
    %c0_12 = arith.constant 0 : index
    %15 = vector.load %arg7[%c0_10, %c0_11, %c0_12] : memref<1x8x128xf32, #tpu.memory_space<vmem>>, vector<1x8x128xf32>
    tpu.vector_store %arg7[%c0_10, %c0_11, %c0_12], %14 {strides = array<i32>} : memref<1x8x128xf32, #tpu.memory_space<vmem>>, vector<1x8x128xf32>,
    return
  }
  func.func @transform_0(%arg0: i32) -> (i32, i32) {
    %c0_i32 = arith.constant 0 : i32
    %c0_i32_0 = arith.constant 0 : i32
    return %arg0, %c0_i32 : i32, i32
  }
  func.func @transform_1(%arg0: i32) -> (i32, i32) {
    %c0_i32 = arith.constant 0 : i32
    %c0_i32_0 = arith.constant 0 : i32
    %c0_i32_1 = arith.constant 0 : i32
    return %c0_i32, %c0_i32_0 : i32, i32
  }
  func.func @transform_2(%arg0: i32) -> (i32, i32) {
    %c0_i32 = arith.constant 0 : i32
    %c0_i32_0 = arith.constant 0 : i32
    %c0_i32_1 = arith.constant 0 : i32
    return %c0_i32, %c0_i32_0 : i32, i32
  }
  func.func @transform_3(%arg0: i32) -> (i32, i32) {
    %c0_i32 = arith.constant 0 : i32
    %c0_i32_0 = arith.constant 0 : i32
    %c0_i32_1 = arith.constant 0 : i32
    return %c0_i32, %c0_i32_0 : i32, i32
  }
  func.func @transform_4(%arg0: i32) -> (i32, i32) {
    %c0_i32 = arith.constant 0 : i32
    %c0_i32_0 = arith.constant 0 : i32
    return %arg0, %c0_i32 : i32, i32
  }
  func.func @transform_5(%arg0: i32) -> (i32, i32, i32) {
    %c0_i32 = arith.constant 0 : i32
    %c0_i32_0 = arith.constant 0 : i32
    %c0_i32_1 = arith.constant 0 : i32
    return %arg0, %c0_i32, %c0_i32_0 : i32, i32, i32
  }
  func.func @transform_6(%arg0: i32) -> (i32, i32, i32) {
    %c0_i32 = arith.constant 0 : i32
    %c0_i32_0 = arith.constant 0 : i32
    %c0_i32_1 = arith.constant 0 : i32
    return %arg0, %c0_i32, %c0_i32_0 : i32, i32, i32
  }
}

module attributes {stable_mosaic.version = 11 : i64} {
  func.func @_conv3x3_bn_stats_kernel(%arg0: i32, %arg1: memref<1x16x16x128xbf16, #tpu.memory_space<vmem>>, %arg2: memref<1152x128xbf16, #tpu.memory_space<vmem>>, %arg3: memref<1x128xf32, #tpu.memory_space<vmem>>, %arg4: memref<1x128xf32, #tpu.memory_space<vmem>>, %arg5: memref<256x128xbf16, #tpu.memory_space<vmem>>, %arg6: memref<1x8x128xf32, #tpu.memory_space<vmem>>, %arg7: memref<1x8x128xf32, #tpu.memory_space<vmem>>, %arg8: memref<18x24x128xf32, #tpu.memory_space<vmem>>, %arg9: memref<256x1152xbf16, #tpu.memory_space<vmem>>) attributes {dimension_semantics = [#tpu.dimension_semantics<parallel>], iteration_bounds = array<i64: 2>, scalar_prefetch = 0 : i64, scratch_operands = 2 : i64, tpu.core_type = #tpu.core_type<tc>, window_params = [{transform_indices = @transform_0, window_bounds = array<i64: 1, 16, 16, 128>}, {pipeline_mode = #tpu.pipeline_mode<synchronous>, transform_indices = @transform_1, window_bounds = array<i64: 1152, 128>}, {pipeline_mode = #tpu.pipeline_mode<synchronous>, transform_indices = @transform_2, window_bounds = array<i64: 1, 128>}, {pipeline_mode = #tpu.pipeline_mode<synchronous>, transform_indices = @transform_3, window_bounds = array<i64: 1, 128>}, {transform_indices = @transform_4, window_bounds = array<i64: 256, 128>}, {transform_indices = @transform_5, window_bounds = array<i64: 1, 8, 128>}, {transform_indices = @transform_6, window_bounds = array<i64: 1, 8, 128>}]} {
    %cst = arith.constant 0.000000e+00 : f32
    %0 = vector.broadcast %cst : f32 to vector<1x24x128xf32>
    %c0 = arith.constant 0 : index
    %c0_0 = arith.constant 0 : index
    %c0_1 = arith.constant 0 : index
    %1 = vector.load %arg8[%c0, %c0_0, %c0_1] : memref<18x24x128xf32, #tpu.memory_space<vmem>>, vector<1x24x128xf32>
    tpu.vector_store %arg8[%c0, %c0_0, %c0_1], %0 {strides = array<i32>} : memref<18x24x128xf32, #tpu.memory_space<vmem>>, vector<1x24x128xf32>,
    %c17 = arith.constant 17 : index
    %c0_2 = arith.constant 0 : index
    %c0_3 = arith.constant 0 : index
    %2 = vector.load %arg8[%c17, %c0_2, %c0_3] : memref<18x24x128xf32, #tpu.memory_space<vmem>>, vector<1x24x128xf32>
    tpu.vector_store %arg8[%c17, %c0_2, %c0_3], %0 {strides = array<i32>} : memref<18x24x128xf32, #tpu.memory_space<vmem>>, vector<1x24x128xf32>,
    %cst_4 = arith.constant 0.000000e+00 : f32
    %3 = vector.broadcast %cst_4 : f32 to vector<18x1x128xf32>
    %c0_5 = arith.constant 0 : index
    %c0_6 = arith.constant 0 : index
    %c0_7 = arith.constant 0 : index
    %4 = vector.load %arg8[%c0_5, %c0_6, %c0_7] : memref<18x24x128xf32, #tpu.memory_space<vmem>>, vector<18x1x128xf32>
    tpu.vector_store %arg8[%c0_5, %c0_6, %c0_7], %3 {strides = array<i32>} : memref<18x24x128xf32, #tpu.memory_space<vmem>>, vector<18x1x128xf32>,
    %c0_8 = arith.constant 0 : index
    %c17_9 = arith.constant 17 : index
    %c0_10 = arith.constant 0 : index
    %5 = vector.load %arg8[%c0_8, %c17_9, %c0_10] : memref<18x24x128xf32, #tpu.memory_space<vmem>>, vector<18x1x128xf32>
    tpu.vector_store %arg8[%c0_8, %c17_9, %c0_10], %3 {strides = array<i32>} : memref<18x24x128xf32, #tpu.memory_space<vmem>>, vector<18x1x128xf32>,
    %c0_11 = arith.constant 0 : index
    %c0_12 = arith.constant 0 : index
    %c0_13 = arith.constant 0 : index
    %c0_14 = arith.constant 0 : index
    %6 = vector.load %arg1[%c0_11, %c0_12, %c0_13, %c0_14] : memref<1x16x16x128xbf16, #tpu.memory_space<vmem>>, vector<1x16x16x128xbf16>
    %7 = vector.shape_cast %6 : vector<1x16x16x128xbf16> to vector<16x16x128xbf16>
    %8 = arith.extf %7 : vector<16x16x128xbf16> to vector<16x16x128xf32>
    %c0_15 = arith.constant 0 : index
    %c0_16 = arith.constant 0 : index
    %9 = vector.load %arg3[%c0_15, %c0_16] : memref<1x128xf32, #tpu.memory_space<vmem>>, vector<1x128xf32>
    %10 = vector.shape_cast %9 : vector<1x128xf32> to vector<1x1x128xf32>
    %11 = vector.broadcast %10 : vector<1x1x128xf32> to vector<16x16x128xf32>
    %12 = arith.mulf %8, %11 : vector<16x16x128xf32>
    %c0_17 = arith.constant 0 : index
    %c0_18 = arith.constant 0 : index
    %13 = vector.load %arg4[%c0_17, %c0_18] : memref<1x128xf32, #tpu.memory_space<vmem>>, vector<1x128xf32>
    %14 = vector.shape_cast %13 : vector<1x128xf32> to vector<1x1x128xf32>
    %15 = vector.broadcast %14 : vector<1x1x128xf32> to vector<16x16x128xf32>
    %16 = arith.addf %12, %15 : vector<16x16x128xf32>
    %cst_19 = arith.constant 0.000000e+00 : f32
    %17 = vector.broadcast %cst_19 : f32 to vector<16x16x128xf32>
    %18 = arith.maximumf %16, %17 : vector<16x16x128xf32>
    %c1 = arith.constant 1 : index
    %c1_20 = arith.constant 1 : index
    %c0_21 = arith.constant 0 : index
    %19 = vector.load %arg8[%c1, %c1_20, %c0_21] : memref<18x24x128xf32, #tpu.memory_space<vmem>>, vector<16x16x128xf32>
    tpu.vector_store %arg8[%c1, %c1_20, %c0_21], %18 {strides = array<i32>} : memref<18x24x128xf32, #tpu.memory_space<vmem>>, vector<16x16x128xf32>,
    %c0_22 = arith.constant 0 : index
    %c0_23 = arith.constant 0 : index
    %c0_24 = arith.constant 0 : index
    %20 = vector.load %arg8[%c0_22, %c0_23, %c0_24] : memref<18x24x128xf32, #tpu.memory_space<vmem>>, vector<16x16x128xf32>
    %21 = vector.shape_cast %20 : vector<16x16x128xf32> to vector<256x128xf32>
    %22 = arith.truncf %21 : vector<256x128xf32> to vector<256x128xbf16>
    %c0_25 = arith.constant 0 : index
    %c0_26 = arith.constant 0 : index
    %23 = vector.load %arg9[%c0_25, %c0_26] : memref<256x1152xbf16, #tpu.memory_space<vmem>>, vector<256x128xbf16>
    tpu.vector_store %arg9[%c0_25, %c0_26], %22 {strides = array<i32>} : memref<256x1152xbf16, #tpu.memory_space<vmem>>, vector<256x128xbf16>,
    %c0_27 = arith.constant 0 : index
    %c1_28 = arith.constant 1 : index
    %c0_29 = arith.constant 0 : index
    %24 = vector.load %arg8[%c0_27, %c1_28, %c0_29] : memref<18x24x128xf32, #tpu.memory_space<vmem>>, vector<16x16x128xf32>
    %25 = vector.shape_cast %24 : vector<16x16x128xf32> to vector<256x128xf32>
    %26 = arith.truncf %25 : vector<256x128xf32> to vector<256x128xbf16>
    %c0_30 = arith.constant 0 : index
    %c128 = arith.constant 128 : index
    %27 = vector.load %arg9[%c0_30, %c128] : memref<256x1152xbf16, #tpu.memory_space<vmem>>, vector<256x128xbf16>
    tpu.vector_store %arg9[%c0_30, %c128], %26 {strides = array<i32>} : memref<256x1152xbf16, #tpu.memory_space<vmem>>, vector<256x128xbf16>,
    %c0_31 = arith.constant 0 : index
    %c2 = arith.constant 2 : index
    %c0_32 = arith.constant 0 : index
    %28 = vector.load %arg8[%c0_31, %c2, %c0_32] : memref<18x24x128xf32, #tpu.memory_space<vmem>>, vector<16x16x128xf32>
    %29 = vector.shape_cast %28 : vector<16x16x128xf32> to vector<256x128xf32>
    %30 = arith.truncf %29 : vector<256x128xf32> to vector<256x128xbf16>
    %c0_33 = arith.constant 0 : index
    %c256 = arith.constant 256 : index
    %31 = vector.load %arg9[%c0_33, %c256] : memref<256x1152xbf16, #tpu.memory_space<vmem>>, vector<256x128xbf16>
    tpu.vector_store %arg9[%c0_33, %c256], %30 {strides = array<i32>} : memref<256x1152xbf16, #tpu.memory_space<vmem>>, vector<256x128xbf16>,
    %c1_34 = arith.constant 1 : index
    %c0_35 = arith.constant 0 : index
    %c0_36 = arith.constant 0 : index
    %32 = vector.load %arg8[%c1_34, %c0_35, %c0_36] : memref<18x24x128xf32, #tpu.memory_space<vmem>>, vector<16x16x128xf32>
    %33 = vector.shape_cast %32 : vector<16x16x128xf32> to vector<256x128xf32>
    %34 = arith.truncf %33 : vector<256x128xf32> to vector<256x128xbf16>
    %c0_37 = arith.constant 0 : index
    %c384 = arith.constant 384 : index
    %35 = vector.load %arg9[%c0_37, %c384] : memref<256x1152xbf16, #tpu.memory_space<vmem>>, vector<256x128xbf16>
    tpu.vector_store %arg9[%c0_37, %c384], %34 {strides = array<i32>} : memref<256x1152xbf16, #tpu.memory_space<vmem>>, vector<256x128xbf16>,
    %c1_38 = arith.constant 1 : index
    %c1_39 = arith.constant 1 : index
    %c0_40 = arith.constant 0 : index
    %36 = vector.load %arg8[%c1_38, %c1_39, %c0_40] : memref<18x24x128xf32, #tpu.memory_space<vmem>>, vector<16x16x128xf32>
    %37 = vector.shape_cast %36 : vector<16x16x128xf32> to vector<256x128xf32>
    %38 = arith.truncf %37 : vector<256x128xf32> to vector<256x128xbf16>
    %c0_41 = arith.constant 0 : index
    %c512 = arith.constant 512 : index
    %39 = vector.load %arg9[%c0_41, %c512] : memref<256x1152xbf16, #tpu.memory_space<vmem>>, vector<256x128xbf16>
    tpu.vector_store %arg9[%c0_41, %c512], %38 {strides = array<i32>} : memref<256x1152xbf16, #tpu.memory_space<vmem>>, vector<256x128xbf16>,
    %c1_42 = arith.constant 1 : index
    %c2_43 = arith.constant 2 : index
    %c0_44 = arith.constant 0 : index
    %40 = vector.load %arg8[%c1_42, %c2_43, %c0_44] : memref<18x24x128xf32, #tpu.memory_space<vmem>>, vector<16x16x128xf32>
    %41 = vector.shape_cast %40 : vector<16x16x128xf32> to vector<256x128xf32>
    %42 = arith.truncf %41 : vector<256x128xf32> to vector<256x128xbf16>
    %c0_45 = arith.constant 0 : index
    %c640 = arith.constant 640 : index
    %43 = vector.load %arg9[%c0_45, %c640] : memref<256x1152xbf16, #tpu.memory_space<vmem>>, vector<256x128xbf16>
    tpu.vector_store %arg9[%c0_45, %c640], %42 {strides = array<i32>} : memref<256x1152xbf16, #tpu.memory_space<vmem>>, vector<256x128xbf16>,
    %c2_46 = arith.constant 2 : index
    %c0_47 = arith.constant 0 : index
    %c0_48 = arith.constant 0 : index
    %44 = vector.load %arg8[%c2_46, %c0_47, %c0_48] : memref<18x24x128xf32, #tpu.memory_space<vmem>>, vector<16x16x128xf32>
    %45 = vector.shape_cast %44 : vector<16x16x128xf32> to vector<256x128xf32>
    %46 = arith.truncf %45 : vector<256x128xf32> to vector<256x128xbf16>
    %c0_49 = arith.constant 0 : index
    %c768 = arith.constant 768 : index
    %47 = vector.load %arg9[%c0_49, %c768] : memref<256x1152xbf16, #tpu.memory_space<vmem>>, vector<256x128xbf16>
    tpu.vector_store %arg9[%c0_49, %c768], %46 {strides = array<i32>} : memref<256x1152xbf16, #tpu.memory_space<vmem>>, vector<256x128xbf16>,
    %c2_50 = arith.constant 2 : index
    %c1_51 = arith.constant 1 : index
    %c0_52 = arith.constant 0 : index
    %48 = vector.load %arg8[%c2_50, %c1_51, %c0_52] : memref<18x24x128xf32, #tpu.memory_space<vmem>>, vector<16x16x128xf32>
    %49 = vector.shape_cast %48 : vector<16x16x128xf32> to vector<256x128xf32>
    %50 = arith.truncf %49 : vector<256x128xf32> to vector<256x128xbf16>
    %c0_53 = arith.constant 0 : index
    %c896 = arith.constant 896 : index
    %51 = vector.load %arg9[%c0_53, %c896] : memref<256x1152xbf16, #tpu.memory_space<vmem>>, vector<256x128xbf16>
    tpu.vector_store %arg9[%c0_53, %c896], %50 {strides = array<i32>} : memref<256x1152xbf16, #tpu.memory_space<vmem>>, vector<256x128xbf16>,
    %c2_54 = arith.constant 2 : index
    %c2_55 = arith.constant 2 : index
    %c0_56 = arith.constant 0 : index
    %52 = vector.load %arg8[%c2_54, %c2_55, %c0_56] : memref<18x24x128xf32, #tpu.memory_space<vmem>>, vector<16x16x128xf32>
    %53 = vector.shape_cast %52 : vector<16x16x128xf32> to vector<256x128xf32>
    %54 = arith.truncf %53 : vector<256x128xf32> to vector<256x128xbf16>
    %c0_57 = arith.constant 0 : index
    %c1024 = arith.constant 1024 : index
    %55 = vector.load %arg9[%c0_57, %c1024] : memref<256x1152xbf16, #tpu.memory_space<vmem>>, vector<256x128xbf16>
    tpu.vector_store %arg9[%c0_57, %c1024], %54 {strides = array<i32>} : memref<256x1152xbf16, #tpu.memory_space<vmem>>, vector<256x128xbf16>,
    %c0_58 = arith.constant 0 : index
    %c0_59 = arith.constant 0 : index
    %56 = vector.load %arg9[%c0_58, %c0_59] : memref<256x1152xbf16, #tpu.memory_space<vmem>>, vector<256x1152xbf16>
    %c0_60 = arith.constant 0 : index
    %c0_61 = arith.constant 0 : index
    %57 = vector.load %arg2[%c0_60, %c0_61] : memref<1152x128xbf16, #tpu.memory_space<vmem>>, vector<1152x128xbf16>
    %cst_62 = arith.constant dense<0.000000e+00> : vector<256x128xf32>
    %58 = tpu.matmul %56, %57, %cst_62 {dimension_numbers = #tpu.dot_dimension_numbers<[1], [0], [0], [1], [0, 0, 1, 1], [], []>} : vector<256x1152xbf16>, vector<1152x128xbf16>, vector<256x128xf32> -> vector<256x128xf32>
    %59 = arith.truncf %58 : vector<256x128xf32> to vector<256x128xbf16>
    %c0_63 = arith.constant 0 : index
    %c0_64 = arith.constant 0 : index
    %60 = vector.load %arg5[%c0_63, %c0_64] : memref<256x128xbf16, #tpu.memory_space<vmem>>, vector<256x128xbf16>
    tpu.vector_store %arg5[%c0_63, %c0_64], %59 {strides = array<i32>} : memref<256x128xbf16, #tpu.memory_space<vmem>>, vector<256x128xbf16>,
    %cst_65 = arith.constant dense<0.000000e+00> : vector<128xf32>
    %61 = vector.multi_reduction <add>, %58, %cst_65 [0] : vector<256x128xf32> to vector<128xf32>
    %62 = vector.shape_cast %61 : vector<128xf32> to vector<1x128xf32>
    %63 = arith.mulf %58, %58 : vector<256x128xf32>
    %cst_66 = arith.constant dense<0.000000e+00> : vector<128xf32>
    %64 = vector.multi_reduction <add>, %63, %cst_66 [0] : vector<256x128xf32> to vector<128xf32>
    %65 = vector.shape_cast %64 : vector<128xf32> to vector<1x128xf32>
    %66 = vector.shape_cast %62 : vector<1x128xf32> to vector<1x1x128xf32>
    %67 = vector.broadcast %66 : vector<1x1x128xf32> to vector<1x8x128xf32>
    %c0_67 = arith.constant 0 : index
    %c0_68 = arith.constant 0 : index
    %c0_69 = arith.constant 0 : index
    %68 = vector.load %arg6[%c0_67, %c0_68, %c0_69] : memref<1x8x128xf32, #tpu.memory_space<vmem>>, vector<1x8x128xf32>
    tpu.vector_store %arg6[%c0_67, %c0_68, %c0_69], %67 {strides = array<i32>} : memref<1x8x128xf32, #tpu.memory_space<vmem>>, vector<1x8x128xf32>,
    %69 = vector.shape_cast %65 : vector<1x128xf32> to vector<1x1x128xf32>
    %70 = vector.broadcast %69 : vector<1x1x128xf32> to vector<1x8x128xf32>
    %c0_70 = arith.constant 0 : index
    %c0_71 = arith.constant 0 : index
    %c0_72 = arith.constant 0 : index
    %71 = vector.load %arg7[%c0_70, %c0_71, %c0_72] : memref<1x8x128xf32, #tpu.memory_space<vmem>>, vector<1x8x128xf32>
    tpu.vector_store %arg7[%c0_70, %c0_71, %c0_72], %70 {strides = array<i32>} : memref<1x8x128xf32, #tpu.memory_space<vmem>>, vector<1x8x128xf32>,
    return
  }
  func.func @transform_0(%arg0: i32) -> (i32, i32, i32, i32) {
    %c0_i32 = arith.constant 0 : i32
    %c0_i32_0 = arith.constant 0 : i32
    %c0_i32_1 = arith.constant 0 : i32
    %c0_i32_2 = arith.constant 0 : i32
    return %arg0, %c0_i32, %c0_i32_0, %c0_i32_1 : i32, i32, i32, i32
  }
  func.func @transform_1(%arg0: i32) -> (i32, i32) {
    %c0_i32 = arith.constant 0 : i32
    %c0_i32_0 = arith.constant 0 : i32
    %c0_i32_1 = arith.constant 0 : i32
    return %c0_i32, %c0_i32_0 : i32, i32
  }
  func.func @transform_2(%arg0: i32) -> (i32, i32) {
    %c0_i32 = arith.constant 0 : i32
    %c0_i32_0 = arith.constant 0 : i32
    %c0_i32_1 = arith.constant 0 : i32
    return %c0_i32, %c0_i32_0 : i32, i32
  }
  func.func @transform_3(%arg0: i32) -> (i32, i32) {
    %c0_i32 = arith.constant 0 : i32
    %c0_i32_0 = arith.constant 0 : i32
    %c0_i32_1 = arith.constant 0 : i32
    return %c0_i32, %c0_i32_0 : i32, i32
  }
  func.func @transform_4(%arg0: i32) -> (i32, i32) {
    %c0_i32 = arith.constant 0 : i32
    %c0_i32_0 = arith.constant 0 : i32
    return %arg0, %c0_i32 : i32, i32
  }
  func.func @transform_5(%arg0: i32) -> (i32, i32, i32) {
    %c0_i32 = arith.constant 0 : i32
    %c0_i32_0 = arith.constant 0 : i32
    %c0_i32_1 = arith.constant 0 : i32
    return %arg0, %c0_i32, %c0_i32_0 : i32, i32, i32
  }
  func.func @transform_6(%arg0: i32) -> (i32, i32, i32) {
    %c0_i32 = arith.constant 0 : i32
    %c0_i32_0 = arith.constant 0 : i32
    %c0_i32_1 = arith.constant 0 : i32
    return %arg0, %c0_i32, %c0_i32_0 : i32, i32, i32
  }
}

module attributes {stable_mosaic.version = 11 : i64} {
  func.func @_gemm_bn_stats_kernel(%arg0: i32, %arg1: memref<512x128xbf16, #tpu.memory_space<vmem>>, %arg2: memref<128x128xbf16, #tpu.memory_space<vmem>>, %arg3: memref<1x128xf32, #tpu.memory_space<vmem>>, %arg4: memref<1x128xf32, #tpu.memory_space<vmem>>, %arg5: memref<512x128xbf16, #tpu.memory_space<vmem>>, %arg6: memref<1x8x128xf32, #tpu.memory_space<vmem>>, %arg7: memref<1x8x128xf32, #tpu.memory_space<vmem>>) attributes {dimension_semantics = [#tpu.dimension_semantics<parallel>], iteration_bounds = array<i64: 1>, scalar_prefetch = 0 : i64, scratch_operands = 0 : i64, tpu.core_type = #tpu.core_type<tc>, window_params = [{transform_indices = @transform_0, window_bounds = array<i64: 512, 128>}, {pipeline_mode = #tpu.pipeline_mode<synchronous>, transform_indices = @transform_1, window_bounds = array<i64: 128, 128>}, {pipeline_mode = #tpu.pipeline_mode<synchronous>, transform_indices = @transform_2, window_bounds = array<i64: 1, 128>}, {pipeline_mode = #tpu.pipeline_mode<synchronous>, transform_indices = @transform_3, window_bounds = array<i64: 1, 128>}, {transform_indices = @transform_4, window_bounds = array<i64: 512, 128>}, {transform_indices = @transform_5, window_bounds = array<i64: 1, 8, 128>}, {transform_indices = @transform_6, window_bounds = array<i64: 1, 8, 128>}]} {
    %c0 = arith.constant 0 : index
    %c0_0 = arith.constant 0 : index
    %0 = vector.load %arg1[%c0, %c0_0] : memref<512x128xbf16, #tpu.memory_space<vmem>>, vector<512x128xbf16>
    %1 = arith.extf %0 : vector<512x128xbf16> to vector<512x128xf32>
    %c0_1 = arith.constant 0 : index
    %c0_2 = arith.constant 0 : index
    %2 = vector.load %arg3[%c0_1, %c0_2] : memref<1x128xf32, #tpu.memory_space<vmem>>, vector<1x128xf32>
    %3 = vector.broadcast %2 : vector<1x128xf32> to vector<512x128xf32>
    %4 = arith.mulf %1, %3 : vector<512x128xf32>
    %c0_3 = arith.constant 0 : index
    %c0_4 = arith.constant 0 : index
    %5 = vector.load %arg4[%c0_3, %c0_4] : memref<1x128xf32, #tpu.memory_space<vmem>>, vector<1x128xf32>
    %6 = vector.broadcast %5 : vector<1x128xf32> to vector<512x128xf32>
    %7 = arith.addf %4, %6 : vector<512x128xf32>
    %cst = arith.constant 0.000000e+00 : f32
    %8 = vector.broadcast %cst : f32 to vector<512x128xf32>
    %9 = arith.maximumf %7, %8 : vector<512x128xf32>
    %10 = arith.truncf %9 : vector<512x128xf32> to vector<512x128xbf16>
    %c0_5 = arith.constant 0 : index
    %c0_6 = arith.constant 0 : index
    %11 = vector.load %arg2[%c0_5, %c0_6] : memref<128x128xbf16, #tpu.memory_space<vmem>>, vector<128x128xbf16>
    %cst_7 = arith.constant dense<0.000000e+00> : vector<512x128xf32>
    %12 = tpu.matmul %10, %11, %cst_7 {dimension_numbers = #tpu.dot_dimension_numbers<[1], [0], [0], [1], [0, 0, 1, 1], [], []>} : vector<512x128xbf16>, vector<128x128xbf16>, vector<512x128xf32> -> vector<512x128xf32>
    %13 = arith.truncf %12 : vector<512x128xf32> to vector<512x128xbf16>
    %c0_8 = arith.constant 0 : index
    %c0_9 = arith.constant 0 : index
    %14 = vector.load %arg5[%c0_8, %c0_9] : memref<512x128xbf16, #tpu.memory_space<vmem>>, vector<512x128xbf16>
    tpu.vector_store %arg5[%c0_8, %c0_9], %13 {strides = array<i32>} : memref<512x128xbf16, #tpu.memory_space<vmem>>, vector<512x128xbf16>,
    %cst_10 = arith.constant dense<0.000000e+00> : vector<128xf32>
    %15 = vector.multi_reduction <add>, %12, %cst_10 [0] : vector<512x128xf32> to vector<128xf32>
    %16 = vector.shape_cast %15 : vector<128xf32> to vector<1x128xf32>
    %17 = arith.mulf %12, %12 : vector<512x128xf32>
    %cst_11 = arith.constant dense<0.000000e+00> : vector<128xf32>
    %18 = vector.multi_reduction <add>, %17, %cst_11 [0] : vector<512x128xf32> to vector<128xf32>
    %19 = vector.shape_cast %18 : vector<128xf32> to vector<1x128xf32>
    %20 = vector.shape_cast %16 : vector<1x128xf32> to vector<1x1x128xf32>
    %21 = vector.broadcast %20 : vector<1x1x128xf32> to vector<1x8x128xf32>
    %c0_12 = arith.constant 0 : index
    %c0_13 = arith.constant 0 : index
    %c0_14 = arith.constant 0 : index
    %22 = vector.load %arg6[%c0_12, %c0_13, %c0_14] : memref<1x8x128xf32, #tpu.memory_space<vmem>>, vector<1x8x128xf32>
    tpu.vector_store %arg6[%c0_12, %c0_13, %c0_14], %21 {strides = array<i32>} : memref<1x8x128xf32, #tpu.memory_space<vmem>>, vector<1x8x128xf32>,
    %23 = vector.shape_cast %19 : vector<1x128xf32> to vector<1x1x128xf32>
    %24 = vector.broadcast %23 : vector<1x1x128xf32> to vector<1x8x128xf32>
    %c0_15 = arith.constant 0 : index
    %c0_16 = arith.constant 0 : index
    %c0_17 = arith.constant 0 : index
    %25 = vector.load %arg7[%c0_15, %c0_16, %c0_17] : memref<1x8x128xf32, #tpu.memory_space<vmem>>, vector<1x8x128xf32>
    tpu.vector_store %arg7[%c0_15, %c0_16, %c0_17], %24 {strides = array<i32>} : memref<1x8x128xf32, #tpu.memory_space<vmem>>, vector<1x8x128xf32>,
    return
  }
  func.func @transform_0(%arg0: i32) -> (i32, i32) {
    %c0_i32 = arith.constant 0 : i32
    %c0_i32_0 = arith.constant 0 : i32
    return %arg0, %c0_i32 : i32, i32
  }
  func.func @transform_1(%arg0: i32) -> (i32, i32) {
    %c0_i32 = arith.constant 0 : i32
    %c0_i32_0 = arith.constant 0 : i32
    %c0_i32_1 = arith.constant 0 : i32
    return %c0_i32, %c0_i32_0 : i32, i32
  }
  func.func @transform_2(%arg0: i32) -> (i32, i32) {
    %c0_i32 = arith.constant 0 : i32
    %c0_i32_0 = arith.constant 0 : i32
    %c0_i32_1 = arith.constant 0 : i32
    return %c0_i32, %c0_i32_0 : i32, i32
  }
  func.func @transform_3(%arg0: i32) -> (i32, i32) {
    %c0_i32 = arith.constant 0 : i32
    %c0_i32_0 = arith.constant 0 : i32
    %c0_i32_1 = arith.constant 0 : i32
    return %c0_i32, %c0_i32_0 : i32, i32
  }
  func.func @transform_4(%arg0: i32) -> (i32, i32) {
    %c0_i32 = arith.constant 0 : i32
    %c0_i32_0 = arith.constant 0 : i32
    return %arg0, %c0_i32 : i32, i32
  }
  func.func @transform_5(%arg0: i32) -> (i32, i32, i32) {
    %c0_i32 = arith.constant 0 : i32
    %c0_i32_0 = arith.constant 0 : i32
    %c0_i32_1 = arith.constant 0 : i32
    return %arg0, %c0_i32, %c0_i32_0 : i32, i32, i32
  }
  func.func @transform_6(%arg0: i32) -> (i32, i32, i32) {
    %c0_i32 = arith.constant 0 : i32
    %c0_i32_0 = arith.constant 0 : i32
    %c0_i32_1 = arith.constant 0 : i32
    return %arg0, %c0_i32, %c0_i32_0 : i32, i32, i32
  }
}

module attributes {stable_mosaic.version = 11 : i64} {
  func.func @_bn3_shortcut_add_relu_kernel(%arg0: i32, %arg1: memref<512x128xbf16, #tpu.memory_space<vmem>>, %arg2: memref<1x128xf32, #tpu.memory_space<vmem>>, %arg3: memref<1x128xf32, #tpu.memory_space<vmem>>, %arg4: memref<512x4xbf16, #tpu.memory_space<vmem>>, %arg5: memref<4x128xbf16, #tpu.memory_space<vmem>>, %arg6: memref<1x128xf32, #tpu.memory_space<vmem>>, %arg7: memref<1x128xf32, #tpu.memory_space<vmem>>, %arg8: memref<512x128xf32, #tpu.memory_space<vmem>>) attributes {dimension_semantics = [#tpu.dimension_semantics<parallel>], iteration_bounds = array<i64: 1>, scalar_prefetch = 0 : i64, scratch_operands = 0 : i64, tpu.core_type = #tpu.core_type<tc>, window_params = [{transform_indices = @transform_0, window_bounds = array<i64: 512, 128>}, {pipeline_mode = #tpu.pipeline_mode<synchronous>, transform_indices = @transform_1, window_bounds = array<i64: 1, 128>}, {pipeline_mode = #tpu.pipeline_mode<synchronous>, transform_indices = @transform_2, window_bounds = array<i64: 1, 128>}, {transform_indices = @transform_3, window_bounds = array<i64: 512, 4>}, {pipeline_mode = #tpu.pipeline_mode<synchronous>, transform_indices = @transform_4, window_bounds = array<i64: 4, 128>}, {pipeline_mode = #tpu.pipeline_mode<synchronous>, transform_indices = @transform_5, window_bounds = array<i64: 1, 128>}, {pipeline_mode = #tpu.pipeline_mode<synchronous>, transform_indices = @transform_6, window_bounds = array<i64: 1, 128>}, {transform_indices = @transform_7, window_bounds = array<i64: 512, 128>}]} {
    %c0 = arith.constant 0 : index
    %c0_0 = arith.constant 0 : index
    %0 = vector.load %arg1[%c0, %c0_0] : memref<512x128xbf16, #tpu.memory_space<vmem>>, vector<512x128xbf16>
    %1 = arith.extf %0 : vector<512x128xbf16> to vector<512x128xf32>
    %c0_1 = arith.constant 0 : index
    %c0_2 = arith.constant 0 : index
    %2 = vector.load %arg2[%c0_1, %c0_2] : memref<1x128xf32, #tpu.memory_space<vmem>>, vector<1x128xf32>
    %3 = vector.broadcast %2 : vector<1x128xf32> to vector<512x128xf32>
    %4 = arith.mulf %1, %3 : vector<512x128xf32>
    %c0_3 = arith.constant 0 : index
    %c0_4 = arith.constant 0 : index
    %5 = vector.load %arg3[%c0_3, %c0_4] : memref<1x128xf32, #tpu.memory_space<vmem>>, vector<1x128xf32>
    %6 = vector.broadcast %5 : vector<1x128xf32> to vector<512x128xf32>
    %7 = arith.addf %4, %6 : vector<512x128xf32>
    %c0_5 = arith.constant 0 : index
    %c0_6 = arith.constant 0 : index
    %8 = vector.load %arg4[%c0_5, %c0_6] : memref<512x4xbf16, #tpu.memory_space<vmem>>, vector<512x4xbf16>
    %c0_7 = arith.constant 0 : index
    %c0_8 = arith.constant 0 : index
    %9 = vector.load %arg5[%c0_7, %c0_8] : memref<4x128xbf16, #tpu.memory_space<vmem>>, vector<4x128xbf16>
    %cst = arith.constant dense<0.000000e+00> : vector<512x128xf32>
    %10 = tpu.matmul %8, %9, %cst {dimension_numbers = #tpu.dot_dimension_numbers<[1], [0], [0], [1], [0, 0, 1, 1], [], []>} : vector<512x4xbf16>, vector<4x128xbf16>, vector<512x128xf32> -> vector<512x128xf32>
    %c0_9 = arith.constant 0 : index
    %c0_10 = arith.constant 0 : index
    %11 = vector.load %arg6[%c0_9, %c0_10] : memref<1x128xf32, #tpu.memory_space<vmem>>, vector<1x128xf32>
    %12 = vector.broadcast %11 : vector<1x128xf32> to vector<512x128xf32>
    %13 = arith.mulf %10, %12 : vector<512x128xf32>
    %c0_11 = arith.constant 0 : index
    %c0_12 = arith.constant 0 : index
    %14 = vector.load %arg7[%c0_11, %c0_12] : memref<1x128xf32, #tpu.memory_space<vmem>>, vector<1x128xf32>
    %15 = vector.broadcast %14 : vector<1x128xf32> to vector<512x128xf32>
    %16 = arith.addf %13, %15 : vector<512x128xf32>
    %17 = arith.addf %7, %16 : vector<512x128xf32>
    %cst_13 = arith.constant 0.000000e+00 : f32
    %18 = vector.broadcast %cst_13 : f32 to vector<512x128xf32>
    %19 = arith.maximumf %17, %18 : vector<512x128xf32>
    %c0_14 = arith.constant 0 : index
    %c0_15 = arith.constant 0 : index
    %20 = vector.load %arg8[%c0_14, %c0_15] : memref<512x128xf32, #tpu.memory_space<vmem>>, vector<512x128xf32>
    tpu.vector_store %arg8[%c0_14, %c0_15], %19 {strides = array<i32>} : memref<512x128xf32, #tpu.memory_space<vmem>>, vector<512x128xf32>,
    return
  }
  func.func @transform_0(%arg0: i32) -> (i32, i32) {
    %c0_i32 = arith.constant 0 : i32
    %c0_i32_0 = arith.constant 0 : i32
    return %arg0, %c0_i32 : i32, i32
  }
  func.func @transform_1(%arg0: i32) -> (i32, i32) {
    %c0_i32 = arith.constant 0 : i32
    %c0_i32_0 = arith.constant 0 : i32
    %c0_i32_1 = arith.constant 0 : i32
    return %c0_i32, %c0_i32_0 : i32, i32
  }
  func.func @transform_2(%arg0: i32) -> (i32, i32) {
    %c0_i32 = arith.constant 0 : i32
    %c0_i32_0 = arith.constant 0 : i32
    %c0_i32_1 = arith.constant 0 : i32
    return %c0_i32, %c0_i32_0 : i32, i32
  }
  func.func @transform_3(%arg0: i32) -> (i32, i32) {
    %c0_i32 = arith.constant 0 : i32
    %c0_i32_0 = arith.constant 0 : i32
    return %arg0, %c0_i32 : i32, i32
  }
  func.func @transform_4(%arg0: i32) -> (i32, i32) {
    %c0_i32 = arith.constant 0 : i32
    %c0_i32_0 = arith.constant 0 : i32
    %c0_i32_1 = arith.constant 0 : i32
    return %c0_i32, %c0_i32_0 : i32, i32
  }
  func.func @transform_5(%arg0: i32) -> (i32, i32) {
    %c0_i32 = arith.constant 0 : i32
    %c0_i32_0 = arith.constant 0 : i32
    %c0_i32_1 = arith.constant 0 : i32
    return %c0_i32, %c0_i32_0 : i32, i32
  }
  func.func @transform_6(%arg0: i32) -> (i32, i32) {
    %c0_i32 = arith.constant 0 : i32
    %c0_i32_0 = arith.constant 0 : i32
    %c0_i32_1 = arith.constant 0 : i32
    return %c0_i32, %c0_i32_0 : i32, i32
  }
  func.func @transform_7(%arg0: i32) -> (i32, i32) {
    %c0_i32 = arith.constant 0 : i32
    %c0_i32_0 = arith.constant 0 : i32
    return %arg0, %c0_i32 : i32, i32
  }
}

</mosaic_0001>

<bundles_post_ra>
// kernel: bottleneck_forward.4
= control target key start
LH: loop header
LB: loop body
LE: loop exit
PB: predicated region body
PF: predicated region fallthrough
CT: control target
= control target key end

     0   :  { %vm343_vm0 = vcmask 1041408   ;;  %vm246_vm1 = vcmask 31744   ;;  %s1802_s1 = inlined_call_operand.vmem [shape: bf16[4,128], index: 1, kind: input, shape index: {}]   ;;  %s1803_s2 = inlined_call_operand.vmem [shape: f32[1,4], index: 2, kind: input, shape index: {}, may-alias: {2,3}]   ;;  %s1804_s3 = inlined_call_operand.vmem [shape: f32[1,4], index: 3, kind: input, shape index: {}, may-alias: {2,3}]   ;;  %s1805_s0 = inlined_call_operand.vmem [shape: bf16[512,4], index: 0, kind: input, shape index: {}]   ;;  %s1806_s4 = inlined_call_operand.vmem [shape: bf16[512,128], index: 4, kind: output, shape index: {0}]   ;;  %s1807_s5 = inlined_call_operand.vmem [shape: f32[1,8,128], index: 5, kind: output, shape index: {1}]   ;;  %s1808_s6 = inlined_call_operand.vmem [shape: f32[1,8,128], index: 6, kind: output, shape index: {2}]  }
   0x1   :  { %v85_v0 = vld [vmem:[%s1802_s1] sm:$0x3]  ;;  %v1021_v4 = vld [vmem:[%s1805_s0 + $0x8] sm:$0xff]  ;;  %v1022_v7 = vld [vmem:[%s1805_s0 + $0x10] sm:$0xff] }
   0x2   :  { %v345_v1 = vsel %vm343_vm0, %v85_v0, 0  ;;  %v1020_v2 = vld [vmem:[%s1805_s0] sm:$0xff]  ;;  %v1029_v5 = vld [vmem:[%s1805_s0 + $0x48] sm:$0xff]  ;;  %v1030_v8 = vld [vmem:[%s1805_s0 + $0x50] sm:$0xff] }
   0x3   :  { %v1028_v3 = vld [vmem:[%s1805_s0 + $0x40] sm:$0xff]  ;;  %354 = vmatpush.bf16.msra.mxu0 %v345_v1  ;;  %1243 = vmatpush.bf16.msra.mxu1 %v345_v1  ;;  %v1037_v9 = vld [vmem:[%s1805_s0 + $0x88] sm:$0xff]  ;;  %v1023_v10 = vld [vmem:[%s1805_s0 + $0x18] sm:$0xff] }
   0x4   :  { %1244 = vmatpush.bf16.msra.mxu2 %v345_v1  ;;  %1245 = vmatpush.bf16.msra.mxu3 %v345_v1  ;;  %v1036_v6 = vld [vmem:[%s1805_s0 + $0x80] sm:$0xff]  ;;  %v1031_v11 = vld [vmem:[%s1805_s0 + $0x58] sm:$0xff]  ;;  %v1038_v12 = vld [vmem:[%s1805_s0 + $0x90] sm:$0xff] }
   0x5   :  { %v1044_v13 = vld [vmem:[%s1805_s0 + $0xc0] sm:$0xff]  ;;  %v1039_v16 = vld [vmem:[%s1805_s0 + $0x98] sm:$0xff]  ;;  %v1045_v17 = vld [vmem:[%s1805_s0 + $0xc8] sm:$0xff] }
   0x6   :  { %988 = vmatmul.msk.bf16.vlgmr.msra.gmra.mxu0 %vm246_vm1, %v1020_v2  ;;  %996 = vmatmul.msk.bf16.vlgmr.msra.gmra.mxu1 %vm246_vm1, %v1028_v3  ;;  %v1024_v14 = vld [vmem:[%s1805_s0 + $0x20] sm:$0xff]  ;;  %v1025_v18 = vld [vmem:[%s1805_s0 + $0x28] sm:$0xff]  ;;  %v1046_v21 = vld [vmem:[%s1805_s0 + $0xd0] sm:$0xff] }
   0x7   :  { %1004 = vmatmul.msk.bf16.vlgmr.msra.gmra.mxu2 %vm246_vm1, %v1036_v6  ;;  %1012 = vmatmul.msk.bf16.vlgmr.msra.gmra.mxu3 %vm246_vm1, %v1044_v13  ;;  %v1032_v15 = vld [vmem:[%s1805_s0 + $0x60] sm:$0xff]  ;;  %v1033_v19 = vld [vmem:[%s1805_s0 + $0x68] sm:$0xff]  ;;  %v1026_v22 = vld [vmem:[%s1805_s0 + $0x30] sm:$0xff] }
   0x8   :  { %v1040_v20 = vld [vmem:[%s1805_s0 + $0xa0] sm:$0xff]  ;;  %v1034_v23 = vld [vmem:[%s1805_s0 + $0x70] sm:$0xff]  ;;  %v1041_v24 = vld [vmem:[%s1805_s0 + $0xa8] sm:$0xff] }
   0x9   :  { %v1047_v25 = vld [vmem:[%s1805_s0 + $0xd8] sm:$0xff]  ;;  %v1042_v28 = vld [vmem:[%s1805_s0 + $0xb0] sm:$0xff]  ;;  %v1048_v29 = vld [vmem:[%s1805_s0 + $0xe0] sm:$0xff] }
   0xa   :  { %v1027_v26 = vld [vmem:[%s1805_s0 + $0x38] sm:$0xff]  ;;  %v1049_v33 = vld [vmem:[%s1805_s0 + $0xe8] sm:$0xff]  ;;  %v1050_v47 = vld [vmem:[%s1805_s0 + $0xf0] sm:$0xff] }
   0xb   :  { %v1035_v27 = vld [vmem:[%s1805_s0 + $0x78] sm:$0xff] }
   0xc   :  { %v1043_v32 = vld [vmem:[%s1805_s0 + $0xb8] sm:$0xff] }
   0xd   :  { %v1051_v63 = vld [vmem:[%s1805_s0 + $0xf8] sm:$0xff] }
  0x16   :  { %989 = vmatmul.msk.bf16.gmra.mxu0 %vm246_vm1, %v1021_v4  ;;  %997 = vmatmul.msk.bf16.gmra.mxu1 %vm246_vm1, %v1029_v5 }
  0x17   :  { %1005 = vmatmul.msk.bf16.gmra.mxu2 %vm246_vm1, %v1037_v9  ;;  %1013 = vmatmul.msk.bf16.gmra.mxu3 %vm246_vm1, %v1045_v17 }
  0x26   :  { %990 = vmatmul.msk.bf16.gmra.mxu0 %vm246_vm1, %v1022_v7  ;;  %998 = vmatmul.msk.bf16.gmra.mxu1 %vm246_vm1, %v1030_v8 }
  0x27   :  { %1006 = vmatmul.msk.bf16.gmra.mxu2 %vm246_vm1, %v1038_v12  ;;  %1014 = vmatmul.msk.bf16.gmra.mxu3 %vm246_vm1, %v1046_v21 }
  0x36   :  { %991 = vmatmul.msk.bf16.gmra.mxu0 %vm246_vm1, %v1023_v10  ;;  %999 = vmatmul.msk.bf16.gmra.mxu1 %vm246_vm1, %v1031_v11 }
  0x37   :  { %1007 = vmatmul.msk.bf16.gmra.mxu2 %vm246_vm1, %v1039_v16  ;;  %1015 = vmatmul.msk.bf16.gmra.mxu3 %vm246_vm1, %v1047_v25 }
  0x46   :  { %992 = vmatmul.msk.bf16.gmra.mxu0 %vm246_vm1, %v1024_v14  ;;  %1000 = vmatmul.msk.bf16.gmra.mxu1 %vm246_vm1, %v1032_v15 }
  0x47   :  { %1008 = vmatmul.msk.bf16.gmra.mxu2 %vm246_vm1, %v1040_v20  ;;  %1016 = vmatmul.msk.bf16.gmra.mxu3 %vm246_vm1, %v1048_v29 }
  0x56   :  { %993 = vmatmul.msk.bf16.gmra.mxu0 %vm246_vm1, %v1025_v18  ;;  %1001 = vmatmul.msk.bf16.gmra.mxu1 %vm246_vm1, %v1033_v19 }
  0x57   :  { %1009 = vmatmul.msk.bf16.gmra.mxu2 %vm246_vm1, %v1041_v24  ;;  %1017 = vmatmul.msk.bf16.gmra.mxu3 %vm246_vm1, %v1049_v33 }
  0x66   :  { %994 = vmatmul.msk.bf16.gmra.mxu0 %vm246_vm1, %v1026_v22  ;;  %1002 = vmatmul.msk.bf16.gmra.mxu1 %vm246_vm1, %v1034_v23 }
  0x67   :  { %1010 = vmatmul.msk.bf16.gmra.mxu2 %vm246_vm1, %v1042_v28  ;;  %1018 = vmatmul.msk.bf16.gmra.mxu3 %vm246_vm1, %v1050_v47 }
  0x76   :  { %995 = vmatmul.msk.bf16.gmra.mxu0 %vm246_vm1, %v1027_v26  ;;  %1003 = vmatmul.msk.bf16.gmra.mxu1 %vm246_vm1, %v1035_v27 }
  0x77   :  { %1011 = vmatmul.msk.bf16.gmra.mxu2 %vm246_vm1, %v1043_v32  ;;  %1019 = vmatmul.msk.bf16.gmra.mxu3 %vm246_vm1, %v1051_v63 }
  0x83   :  { %v356_v30 = vpop.f32.mrf.mxu0  ;;  %v1396_v31 = vpop.f32.mrf.mxu1 }
  0x84   :  { %v713_v34 = vmul.f32 %v356_v30, %v356_v30 }
  0x8a   :  { %v1426_v54 = vpop.f32.mrf.mxu2  ;;  %v1478_v14 = vpop.f32.mrf.mxu3 }
  0x8b   :  { %v358_v35 = vpop.f32.mrf.mxu0  ;;  %v1406_v36 = vpop.f32.mrf.mxu1 }
  0x8c   :  { %v1055_v37 = vpack.c.bf16 %v358_v35, %v356_v30  ;;  %v644_v38 = vadd.f32 %v358_v35, %v356_v30  ;;  %v714_v39 = vmul.f32 %v358_v35, %v358_v35  ;;  %v1095_v40 = vpack.c.bf16 %v1406_v36, %v1396_v31 }
  0x8e   :  { %1056 = vst [vmem:[%s1806_s4] sm:$0xff] %v1055_v37   ;;  %v777_v41 = vadd.f32 %v714_v39, %v713_v34 }
  0x8f   :  { %1219 = vst [vmem:[%s1806_s4 + $0x40] sm:$0xff] %v1095_v40  }
  0x92   :  { %v1438_v60 = vpop.f32.mrf.mxu2  ;;  %v1490_v18 = vpop.f32.mrf.mxu3 }
  0x93   :  { %v361_v42 = vpop.f32.mrf.mxu0  ;;  %v1416_v43 = vpop.f32.mrf.mxu1  ;;  %v1135_v61 = vpack.c.bf16 %v1438_v60, %v1426_v54  ;;  %v1175_v20 = vpack.c.bf16 %v1490_v18, %v1478_v14 }
  0x94   :  { %v645_v44 = vadd.f32 %v644_v38, %v361_v42  ;;  %v715_v45 = vmul.f32 %v361_v42, %v361_v42 }
  0x95   :  { %1227 = vst [vmem:[%s1806_s4 + $0x80] sm:$0xff] %v1135_v61  }
  0x96   :  { %v778_v46 = vadd.f32 %v777_v41, %v715_v45  ;;  %1235 = vst [vmem:[%s1806_s4 + $0xc0] sm:$0xff] %v1175_v20  }
  0x9a   :  { %v1455_v4 = vpop.f32.mrf.mxu2  ;;  %v1508_v26 = vpop.f32.mrf.mxu3 }
  0x9b   :  { %v363_v48 = vpop.f32.mrf.mxu0  ;;  %v1422_v49 = vpop.f32.mrf.mxu1 }
  0x9c   :  { %v1060_v50 = vpack.c.bf16 %v363_v48, %v361_v42  ;;  %v646_v51 = vadd.f32 %v645_v44, %v363_v48  ;;  %v716_v52 = vmul.f32 %v363_v48, %v363_v48  ;;  %v1100_v53 = vpack.c.bf16 %v1422_v49, %v1416_v43 }
  0x9e   :  { %1212 = vst [vmem:[%s1806_s4 + $0x8] sm:$0xff] %v1060_v50   ;;  %v779_v55 = vadd.f32 %v778_v46, %v716_v52 }
  0x9f   :  { %1220 = vst [vmem:[%s1806_s4 + $0x48] sm:$0xff] %v1100_v53  }
  0xa2   :  { %v1465_v7 = vpop.f32.mrf.mxu2  ;;  %v1520_v30 = vpop.f32.mrf.mxu3 }
  0xa3   :  { %v366_v56 = vpop.f32.mrf.mxu0  ;;  %v1434_v57 = vpop.f32.mrf.mxu1  ;;  %v1140_v8 = vpack.c.bf16 %v1465_v7, %v1455_v4  ;;  %v1180_v33 = vpack.c.bf16 %v1520_v30, %v1508_v26 }
  0xa4   :  { %v1436_v58 = vadd.f32 %v646_v51, %v366_v56  ;;  %v717_v59 = vmul.f32 %v366_v56, %v366_v56 }
  0xa5   :  { %1228 = vst [vmem:[%s1806_s4 + $0x88] sm:$0xff] %v1140_v8  }
  0xa6   :  { %v1442_v62 = vadd.f32 %v779_v55, %v717_v59  ;;  %1236 = vst [vmem:[%s1806_s4 + $0xc8] sm:$0xff] %v1180_v33  }
  0xaa   :  { %v1476_v13 = vpop.f32.mrf.mxu2  ;;  %v1538_v40 = vpop.f32.mrf.mxu3 }
  0xab   :  { %v368_v0 = vpop.f32.mrf.mxu0  ;;  %v1451_v1 = vpop.f32.mrf.mxu1 }
  0xac   :  { %v1065_v2 = vpack.c.bf16 %v368_v0, %v366_v56  ;;  %v1105_v3 = vpack.c.bf16 %v1451_v1, %v1434_v57  ;;  %v718_v46 = vmul.f32 %v368_v0, %v368_v0  ;;  %v648_v51 = vadd.f32 %v1436_v58, %v368_v0 }
  0xae   :  { %1213 = vst [vmem:[%s1806_s4 + $0x10] sm:$0xff] %v1065_v2   ;;  %v781_v52 = vadd.f32 %v1442_v62, %v718_v46 }
  0xaf   :  { %1221 = vst [vmem:[%s1806_s4 + $0x50] sm:$0xff] %v1105_v3  }
  0xb2   :  { %v1488_v17 = vpop.f32.mrf.mxu2  ;;  %v1550_v45 = vpop.f32.mrf.mxu3 }
  0xb3   :  { %v371_v5 = vpop.f32.mrf.mxu0  ;;  %v1463_v6 = vpop.f32.mrf.mxu1  ;;  %v1145_v19 = vpack.c.bf16 %v1488_v17, %v1476_v13  ;;  %v1185_v48 = vpack.c.bf16 %v1550_v45, %v1538_v40 }
  0xb4   :  { %v719_v50 = vmul.f32 %v371_v5, %v371_v5  ;;  %v649_v55 = vadd.f32 %v648_v51, %v371_v5 }
  0xb5   :  { %1229 = vst [vmem:[%s1806_s4 + $0x90] sm:$0xff] %v1145_v19  }
  0xb6   :  { %1237 = vst [vmem:[%s1806_s4 + $0xd0] sm:$0xff] %v1185_v48   ;;  %v782_v56 = vadd.f32 %v781_v52, %v719_v50 }
  0xba   :  { %v1506_v25 = vpop.f32.mrf.mxu2  ;;  %v1570_v58 = vpop.f32.mrf.mxu3 }
  0xbb   :  { %v373_v9 = vpop.f32.mrf.mxu0  ;;  %v1472_v10 = vpop.f32.mrf.mxu1 }
  0xbc   :  { %v1070_v11 = vpack.c.bf16 %v373_v9, %v371_v5  ;;  %v1110_v12 = vpack.c.bf16 %v1472_v10, %v1463_v6  ;;  %v720_v53 = vmul.f32 %v373_v9, %v373_v9  ;;  %v650_v2 = vadd.f32 %v649_v55, %v373_v9 }
  0xbe   :  { %1214 = vst [vmem:[%s1806_s4 + $0x18] sm:$0xff] %v1070_v11   ;;  %v783_v0 = vadd.f32 %v782_v56, %v720_v53 }
  0xbf   :  { %1222 = vst [vmem:[%s1806_s4 + $0x58] sm:$0xff] %v1110_v12  }
  0xc2   :  { %v1518_v29 = vpop.f32.mrf.mxu2 }
  0xc3   :  { %v376_v15 = vpop.f32.mrf.mxu0  ;;  %v1486_v16 = vpop.f32.mrf.mxu1  ;;  %v1150_v32 = vpack.c.bf16 %v1518_v29, %v1506_v25 }
  0xc4   :  { %v721_v59 = vmul.f32 %v376_v15, %v376_v15  ;;  %v651_v19 = vadd.f32 %v650_v2, %v376_v15 }
  0xc5   :  { %1230 = vst [vmem:[%s1806_s4 + $0x98] sm:$0xff] %v1150_v32  }
  0xc6   :  { %v784_v62 = vadd.f32 %v783_v0, %v721_v59 }
  0xca   :  { %v1536_v39 = vpop.f32.mrf.mxu2 }
  0xcb   :  { %v378_v21 = vpop.f32.mrf.mxu0  ;;  %v1502_v22 = vpop.f32.mrf.mxu1 }
  0xcc   :  { %v1075_v23 = vpack.c.bf16 %v378_v21, %v376_v15  ;;  %v1115_v24 = vpack.c.bf16 %v1502_v22, %v1486_v16  ;;  %v722_v12 = vmul.f32 %v378_v21, %v378_v21  ;;  %v652_v9 = vadd.f32 %v651_v19, %v378_v21 }
  0xce   :  { %1215 = vst [vmem:[%s1806_s4 + $0x20] sm:$0xff] %v1075_v23   ;;  %v785_v20 = vadd.f32 %v784_v62, %v722_v12 }
  0xcf   :  { %1223 = vst [vmem:[%s1806_s4 + $0x60] sm:$0xff] %v1115_v24  }
  0xd2   :  { %v1548_v44 = vpop.f32.mrf.mxu2 }
  0xd3   :  { %v381_v27 = vpop.f32.mrf.mxu0  ;;  %v1516_v28 = vpop.f32.mrf.mxu1  ;;  %v1155_v47 = vpack.c.bf16 %v1548_v44, %v1536_v39 }
  0xd4   :  { %v723_v5 = vmul.f32 %v381_v27, %v381_v27  ;;  %v653_v24 = vadd.f32 %v652_v9, %v381_v27 }
  0xd5   :  { %1231 = vst [vmem:[%s1806_s4 + $0xa0] sm:$0xff] %v1155_v47   ;;  %v1582_v47 = vpop.f32.mrf.mxu3 }
  0xd6   :  { %v786_v32 = vadd.f32 %v785_v20, %v723_v5  ;;  %v1190_v21 = vpack.c.bf16 %v1582_v47, %v1570_v58  ;;  %v730_v20 = vmul.f32 %v1406_v36, %v1406_v36 }
  0xd8   :  { %1238 = vst [vmem:[%s1806_s4 + $0xd8] sm:$0xff] %v1190_v21  }
  0xda   :  { %v1568_v11 = vpop.f32.mrf.mxu2 }
  0xdb   :  { %v383_v34 = vpop.f32.mrf.mxu0  ;;  %v1532_v35 = vpop.f32.mrf.mxu1 }
  0xdc   :  { %v1080_v37 = vpack.c.bf16 %v383_v34, %v381_v27  ;;  %v1120_v38 = vpack.c.bf16 %v1532_v35, %v1516_v28  ;;  %v724_v23 = vmul.f32 %v383_v34, %v383_v34  ;;  %v654_v15 = vadd.f32 %v653_v24, %v383_v34 }
  0xdd   :  { %v1600_v62 = vpop.f32.mrf.mxu3 }
  0xde   :  { %1216 = vst [vmem:[%s1806_s4 + $0x28] sm:$0xff] %v1080_v37   ;;  %v787_v48 = vadd.f32 %v786_v32, %v724_v23  ;;  %v731_v32 = vmul.f32 %v1416_v43, %v1416_v43 }
  0xdf   :  { %1224 = vst [vmem:[%s1806_s4 + $0x68] sm:$0xff] %v1120_v38  }
  0xe2   :  { %v1580_v46 = vpop.f32.mrf.mxu2 }
  0xe3   :  { %v386_v41 = vpop.f32.mrf.mxu0  ;;  %v1546_v42 = vpop.f32.mrf.mxu1  ;;  %v1160_v51 = vpack.c.bf16 %v1580_v46, %v1568_v11 }
  0xe4   :  { %v725_v33 = vmul.f32 %v386_v41, %v386_v41  ;;  %v655_v52 = vadd.f32 %v654_v15, %v386_v41 }
  0xe5   :  { %1232 = vst [vmem:[%s1806_s4 + $0xa8] sm:$0xff] %v1160_v51   ;;  %v1622_v51 = vpop.f32.mrf.mxu3 }
  0xe6   :  { %v788_v27 = vadd.f32 %v787_v48, %v725_v33  ;;  %v1195_v21 = vpack.c.bf16 %v1622_v51, %v1600_v62 }
  0xe8   :  { %1239 = vst [vmem:[%s1806_s4 + $0xe0] sm:$0xff] %v1195_v21  }
  0xea   :  { %v1598_v19 = vpop.f32.mrf.mxu2 }
  0xeb   :  { %v388_v61 = vpop.f32.mrf.mxu0  ;;  %v1564_v63 = vpop.f32.mrf.mxu1 }
  0xec   :  { %v1085_v3 = vpack.c.bf16 %v388_v61, %v386_v41  ;;  %v1125_v8 = vpack.c.bf16 %v1564_v63, %v1546_v42  ;;  %v726_v50 = vmul.f32 %v388_v61, %v388_v61  ;;  %v656_v34 = vadd.f32 %v655_v52, %v388_v61 }
  0xed   :  { %v729_v61 = vmul.f32 %v1396_v31, %v1396_v31  ;;  %v742_v21 = vmul.f32 %v1564_v63, %v1564_v63 }
  0xee   :  { %1217 = vst [vmem:[%s1806_s4 + $0x30] sm:$0xff] %v1085_v3   ;;  %v789_v55 = vadd.f32 %v788_v27, %v726_v50 }
  0xef   :  { %1225 = vst [vmem:[%s1806_s4 + $0x70] sm:$0xff] %v1125_v8  }
  0xf2   :  { %v1620_v50 = vpop.f32.mrf.mxu2 }
  0xf3   :  { %v391_v37 = vpop.f32.mrf.mxu0  ;;  %v1578_v38 = vpop.f32.mrf.mxu1 }
  0xf4   :  { %v727_v53 = vmul.f32 %v391_v37, %v391_v37  ;;  %v657_v56 = vadd.f32 %v656_v34, %v391_v37 }
  0xf6   :  { %v790_v59 = vadd.f32 %v789_v55, %v727_v53  ;;  %v735_v55 = vmul.f32 %v1463_v6, %v1463_v6 }
  0xfb   :  { %v393_v2 = vpop.f32.mrf.mxu0  ;;  %v1594_v3 = vpop.f32.mrf.mxu1 }
  0xfc   :  { %v1090_v8 = vpack.c.bf16 %v393_v2, %v391_v37  ;;  %v658_v0 = vadd.f32 %v657_v56, %v393_v2  ;;  %v728_v41 = vmul.f32 %v393_v2, %v393_v2  ;;  %v1130_v12 = vpack.c.bf16 %v1594_v3, %v1578_v38 }
  0xfe   :  { %1218 = vst [vmem:[%s1806_s4 + $0x38] sm:$0xff] %v1090_v8   ;;  %v659_v5 = vadd.f32 %v658_v0, %v1396_v31  ;;  %v791_v9 = vadd.f32 %v790_v59, %v728_v41  ;;  %v732_v31 = vmul.f32 %v1422_v49, %v1422_v49  ;;  %v736_v59 = vmul.f32 %v1472_v10, %v1472_v10  ;;  %v1646_v0 = vpop.f32.mrf.mxu2 }
  0xff   :  { %1226 = vst [vmem:[%s1806_s4 + $0x78] sm:$0xff] %v1130_v12   ;;  %v737_v41 = vmul.f32 %v1486_v16, %v1486_v16 }
 0x100   :  { %v660_v23 = vadd.f32 %v659_v5, %v1406_v36  ;;  %v792_v24 = vadd.f32 %v791_v9, %v729_v61  ;;  %v1165_v36 = vpack.c.bf16 %v1620_v50, %v1598_v19  ;;  %v738_v5 = vmul.f32 %v1502_v22, %v1502_v22 }
 0x102   :  { %v661_v33 = vadd.f32 %v660_v23, %v1416_v43  ;;  %v793_v37 = vadd.f32 %v792_v24, %v730_v20  ;;  %v733_v43 = vmul.f32 %v1434_v57, %v1434_v57  ;;  %1233 = vst [vmem:[%s1806_s4 + $0xb0] sm:$0xff] %v1165_v36   ;;  %v740_v24 = vmul.f32 %v1532_v35, %v1532_v35 }
 0x104   :  { %v662_v15 = vadd.f32 %v661_v33, %v1422_v49  ;;  %v794_v48 = vadd.f32 %v793_v37, %v731_v32  ;;  %v734_v49 = vmul.f32 %v1451_v1, %v1451_v1 }
 0x106   :  { %v663_v52 = vadd.f32 %v662_v15, %v1434_v57  ;;  %v795_v27 = vadd.f32 %v794_v48, %v732_v31 }
 0x108   :  { %v664_v53 = vadd.f32 %v663_v52, %v1451_v1  ;;  %v796_v34 = vadd.f32 %v795_v27, %v733_v43  ;;  %v1648_v1 = vpop.f32.mrf.mxu3 }
 0x10a   :  { %v797_v56 = vadd.f32 %v796_v34, %v734_v49  ;;  %v665_v57 = vadd.f32 %v664_v53, %v1463_v6  ;;  %v744_v53 = vmul.f32 %v1594_v3, %v1594_v3 }
 0x10c   :  { %v666_v2 = vadd.f32 %v665_v57, %v1472_v10  ;;  %v798_v8 = vadd.f32 %v797_v56, %v735_v55  ;;  %v739_v10 = vmul.f32 %v1516_v28, %v1516_v28  ;;  %v746_v57 = vmul.f32 %v1438_v60, %v1438_v60 }
 0x10e   :  { %v667_v12 = vadd.f32 %v666_v2, %v1486_v16  ;;  %v799_v61 = vadd.f32 %v798_v8, %v736_v59  ;;  %v1662_v16 = vpop.f32.mrf.mxu2  ;;  %v747_v2 = vmul.f32 %v1455_v4, %v1455_v4 }
 0x110   :  { %v668_v6 = vadd.f32 %v667_v12, %v1502_v22  ;;  %v800_v9 = vadd.f32 %v799_v61, %v737_v41  ;;  %v1664_v37 = vpop.f32.mrf.mxu3  ;;  %v1170_v22 = vpack.c.bf16 %v1662_v16, %v1646_v0  ;;  %v748_v41 = vmul.f32 %v1465_v7, %v1465_v7 }
 0x111   :  { %v1200_v31 = vpack.c.bf16 %v1664_v37, %v1648_v1 }
 0x112   :  { %v669_v20 = vadd.f32 %v668_v6, %v1516_v28  ;;  %v801_v23 = vadd.f32 %v800_v9, %v738_v5  ;;  %v741_v28 = vmul.f32 %v1546_v42, %v1546_v42  ;;  %1234 = vst [vmem:[%s1806_s4 + $0xb8] sm:$0xff] %v1170_v22  }
 0x113   :  { %1240 = vst [vmem:[%s1806_s4 + $0xe8] sm:$0xff] %v1200_v31   ;;  %v753_v31 = vmul.f32 %v1536_v39, %v1536_v39 }
 0x114   :  { %v670_v32 = vadd.f32 %v669_v20, %v1532_v35  ;;  %v802_v33 = vadd.f32 %v801_v23, %v739_v10  ;;  %v751_v20 = vmul.f32 %v1506_v25, %v1506_v25 }
 0x116   :  { %v671_v15 = vadd.f32 %v670_v32, %v1546_v42  ;;  %v803_v48 = vadd.f32 %v802_v33, %v740_v24  ;;  %v743_v42 = vmul.f32 %v1578_v38, %v1578_v38 }
 0x118   :  { %v804_v35 = vadd.f32 %v803_v48, %v741_v28  ;;  %v672_v36 = vadd.f32 %v671_v15, %v1564_v63  ;;  %v1688_v34 = vpop.f32.mrf.mxu3  ;;  %v745_v63 = vmul.f32 %v1426_v54, %v1426_v54  ;;  %v754_v28 = vmul.f32 %v1548_v44, %v1548_v44 }
 0x11a   :  { %v805_v43 = vadd.f32 %v804_v35, %v742_v21  ;;  %v673_v52 = vadd.f32 %v672_v36, %v1578_v38  ;;  %v755_v35 = vmul.f32 %v1568_v11, %v1568_v11 }
 0x11c   :  { %v806_v27 = vadd.f32 %v805_v43, %v743_v42  ;;  %v674_v49 = vadd.f32 %v673_v52, %v1594_v3  ;;  %v756_v43 = vmul.f32 %v1580_v46, %v1580_v46 }
 0x11e   :  { %v675_v55 = vadd.f32 %v674_v49, %v1426_v54  ;;  %v807_v56 = vadd.f32 %v806_v27, %v744_v53 }
 0x120   :  { %v676_v59 = vadd.f32 %v675_v55, %v1438_v60  ;;  %v808_v38 = vadd.f32 %v807_v56, %v745_v63  ;;  %v1702_v54 = vpop.f32.mrf.mxu3  ;;  %v749_v60 = vmul.f32 %v1476_v13, %v1476_v13  ;;  %v759_v56 = vmul.f32 %v1646_v0, %v1646_v0 }
 0x121   :  { %v1205_v5 = vpack.c.bf16 %v1702_v54, %v1688_v34 }
 0x122   :  { %v677_v8 = vadd.f32 %v676_v59, %v1455_v4  ;;  %v809_v3 = vadd.f32 %v808_v38, %v746_v57  ;;  %v750_v4 = vmul.f32 %v1488_v17, %v1488_v17  ;;  %v761_v38 = vmul.f32 %v1478_v14, %v1478_v14 }
 0x123   :  { %1241 = vst [vmem:[%s1806_s4 + $0xf0] sm:$0xff] %v1205_v5  }
 0x124   :  { %v678_v12 = vadd.f32 %v677_v8, %v1465_v7  ;;  %v810_v61 = vadd.f32 %v809_v3, %v747_v2 }
 0x126   :  { %v679_v6 = vadd.f32 %v678_v12, %v1476_v13  ;;  %v811_v9 = vadd.f32 %v810_v61, %v748_v41  ;;  %v752_v13 = vmul.f32 %v1518_v29, %v1518_v29 }
 0x128   :  { %v680_v7 = vadd.f32 %v679_v6, %v1488_v17  ;;  %v812_v10 = vadd.f32 %v811_v9, %v749_v60  ;;  %v1721_v22 = vpop.f32.mrf.mxu3 }
 0x12a   :  { %v813_v23 = vadd.f32 %v812_v10, %v750_v4  ;;  %v681_v24 = vadd.f32 %v680_v7, %v1506_v25 }
 0x12c   :  { %v682_v32 = vadd.f32 %v681_v24, %v1518_v29  ;;  %v814_v33 = vadd.f32 %v813_v23, %v751_v20 }
 0x12e   :  { %v683_v17 = vadd.f32 %v682_v32, %v1536_v39  ;;  %v815_v15 = vadd.f32 %v814_v33, %v752_v13 }
 0x130   :  { %v684_v48 = vadd.f32 %v683_v17, %v1548_v44  ;;  %v816_v25 = vadd.f32 %v815_v15, %v753_v31  ;;  %v513_v39 = vpop.f32.mrf.mxu3  ;;  %v757_v44 = vmul.f32 %v1598_v19, %v1598_v19 }
 0x131   :  { %v1210_v42 = vpack.c.bf16 %v513_v39, %v1721_v22 }
 0x132   :  { %v685_v29 = vadd.f32 %v684_v48, %v1568_v11  ;;  %v817_v36 = vadd.f32 %v816_v25, %v754_v28  ;;  %v772_v28 = vmul.f32 %v1664_v37, %v1664_v37 }
 0x133   :  { %1242 = vst [vmem:[%s1806_s4 + $0xf8] sm:$0xff] %v1210_v42   ;;  %v776_v42 = vmul.f32 %v513_v39, %v513_v39 }
 0x134   :  { %v686_v21 = vadd.f32 %v685_v29, %v1580_v46  ;;  %v818_v52 = vadd.f32 %v817_v36, %v755_v35  ;;  %v758_v46 = vmul.f32 %v1620_v50, %v1620_v50  ;;  %v773_v35 = vmul.f32 %v1688_v34, %v1688_v34 }
 0x135   :  { %v774_v36 = vmul.f32 %v1702_v54, %v1702_v54 }
 0x136   :  { %v819_v27 = vadd.f32 %v818_v52, %v756_v43  ;;  %v687_v49 = vadd.f32 %v686_v21, %v1598_v19  ;;  %v760_v19 = vmul.f32 %v1662_v16, %v1662_v16  ;;  %v775_v43 = vmul.f32 %v1721_v22, %v1721_v22 }
 0x138   :  { %v820_v11 = vadd.f32 %v819_v27, %v757_v44  ;;  %v688_v53 = vadd.f32 %v687_v49, %v1620_v50  ;;  %v762_v50 = vmul.f32 %v1490_v18, %v1490_v18 }
 0x13a   :  { %v821_v63 = vadd.f32 %v820_v11, %v758_v46  ;;  %v689_v55 = vadd.f32 %v688_v53, %v1646_v0  ;;  %v763_v0 = vmul.f32 %v1508_v26, %v1508_v26 }
 0x13c   :  { %v822_v57 = vadd.f32 %v821_v63, %v759_v56  ;;  %v690_v59 = vadd.f32 %v689_v55, %v1662_v16  ;;  %v764_v16 = vmul.f32 %v1520_v30, %v1520_v30 }
 0x13e   :  { %v691_v2 = vadd.f32 %v690_v59, %v1478_v14  ;;  %v823_v8 = vadd.f32 %v822_v57, %v760_v19  ;;  %v765_v14 = vmul.f32 %v1538_v40, %v1538_v40 }
 0x140   :  { %v692_v3 = vadd.f32 %v691_v2, %v1490_v18  ;;  %v824_v41 = vadd.f32 %v823_v8, %v761_v38  ;;  %v766_v18 = vmul.f32 %v1550_v45, %v1550_v45 }
 0x142   :  { %v693_v12 = vadd.f32 %v692_v3, %v1508_v26  ;;  %v825_v61 = vadd.f32 %v824_v41, %v762_v50  ;;  %v767_v26 = vmul.f32 %v1570_v58, %v1570_v58 }
 0x144   :  { %v694_v5 = vadd.f32 %v693_v12, %v1520_v30  ;;  %v826_v60 = vadd.f32 %v825_v61, %v763_v0  ;;  %v768_v30 = vmul.f32 %v1582_v47, %v1582_v47 }
 0x146   :  { %v695_v6 = vadd.f32 %v694_v5, %v1538_v40  ;;  %v827_v9 = vadd.f32 %v826_v60, %v764_v16  ;;  %v769_v40 = vmul.f32 %v1600_v62, %v1600_v62 }
 0x148   :  { %v696_v4 = vadd.f32 %v695_v6, %v1550_v45  ;;  %v828_v7 = vadd.f32 %v827_v9, %v765_v14  ;;  %v770_v45 = vmul.f32 %v1622_v51, %v1622_v51 }
 0x14a   :  { %v829_v10 = vadd.f32 %v828_v7, %v766_v18  ;;  %v697_v20 = vadd.f32 %v696_v4, %v1570_v58  ;;  %v771_v58 = vmul.f32 %v1648_v1, %v1648_v1 }
 0x14c   :  { %v698_v23 = vadd.f32 %v697_v20, %v1582_v47  ;;  %v830_v24 = vadd.f32 %v829_v10, %v767_v26 }
 0x14e   :  { %v699_v13 = vadd.f32 %v698_v23, %v1600_v62  ;;  %v831_v32 = vadd.f32 %v830_v24, %v768_v30 }
 0x150   :  { %v700_v33 = vadd.f32 %v699_v13, %v1622_v51  ;;  %v832_v31 = vadd.f32 %v831_v32, %v769_v40 }
 0x152   :  { %v701_v17 = vadd.f32 %v700_v33, %v1648_v1  ;;  %v833_v15 = vadd.f32 %v832_v31, %v770_v45 }
 0x154   :  { %v702_v47 = vadd.f32 %v701_v17, %v1664_v37  ;;  %v834_v48 = vadd.f32 %v833_v15, %v771_v58 }
 0x156   :  { %v835_v62 = vadd.f32 %v834_v48, %v772_v28  ;;  %v703_v25 = vadd.f32 %v702_v47, %v1688_v34 }
 0x158   :  { %v836_v51 = vadd.f32 %v835_v62, %v773_v35  ;;  %v704_v29 = vadd.f32 %v703_v25, %v1702_v54 }
 0x15a   :  { %v837_v1 = vadd.f32 %v836_v51, %v774_v36  ;;  %v705_v21 = vadd.f32 %v704_v29, %v1721_v22 }
 0x15c   :  { %v838_v37 = vadd.f32 %v837_v1, %v775_v43  ;;  %v706_v52 = vadd.f32 %v705_v21, %v513_v39 }
 0x15e   :  { %v707_v27 = vrot.slane %v706_v52, 4  ;;  %v839_v49 = vadd.f32 %v838_v37, %v776_v42 }
 0x160   :  { %v708_v44 = vadd.f32 %v707_v27, %v706_v52  ;;  %v840_v11 = vrot.slane %v839_v49, 4 }
 0x162   :  { %v709_v34 = vrot.slane %v708_v44, 2  ;;  %v841_v53 = vadd.f32 %v840_v11, %v839_v49 }
 0x164   :  { %v710_v46 = vadd.f32 %v709_v34, %v708_v44  ;;  %v842_v63 = vrot.slane %v841_v53, 2 }
 0x166   :  { %v711_v55 = vrot.slane %v710_v46, 1  ;;  %v843_v56 = vadd.f32 %v842_v63, %v841_v53 }
 0x168   :  { %v712_v54 = vadd.f32 %v711_v55, %v710_v46  ;;  %v844_v57 = vrot.slane %v843_v56, 1 }
 0x16a   :  { %v845_v59 = vadd.f32 %v844_v57, %v843_v56  ;;  %846 = vst [vmem:[%s1807_s5] sm:$0xff] %v712_v54 }
 0x16c   :  { %847 = vst [vmem:[%s1808_s6] sm:$0xff] %v845_v59 }

// kernel: bottleneck_forward.6
= control target key start
LH: loop header
LB: loop body
LE: loop exit
PB: predicated region body
PF: predicated region fallthrough
CT: control target
= control target key end

     0   :  { %s2056_s1 = inlined_call_operand.vmem [shape: bf16[128,128], index: 1, kind: input, shape index: {}]   ;;  %s2057_s2 = inlined_call_operand.vmem [shape: f32[1,128], index: 2, kind: input, shape index: {}]   ;;  %s2058_s3 = inlined_call_operand.vmem [shape: f32[1,128], index: 3, kind: input, shape index: {}]   ;;  %s2059_s0 = inlined_call_operand.vmem [shape: bf16[512,128], index: 0, kind: input, shape index: {}]   ;;  %s2060_s4 = inlined_call_operand.vmem [shape: bf16[512,128], index: 4, kind: output, shape index: {0}]   ;;  %s2061_s5 = inlined_call_operand.vmem [shape: f32[1,8,128], index: 5, kind: output, shape index: {1}]   ;;  %s2062_s6 = inlined_call_operand.vmem [shape: f32[1,8,128], index: 6, kind: output, shape index: {2}]  }
   0x1   :  { %v996_v0 = vld [vmem:[%s2056_s1 + $0x38] sm:$0xff]  ;;  %v995_v1 = vld [vmem:[%s2056_s1 + $0x30] sm:$0xff]  ;;  %v994_v2 = vld [vmem:[%s2056_s1 + $0x28] sm:$0xff] }
   0x2   :  { %444 = vmatpush.bf16.msra.mxu0 %v996_v0  ;;  %1347 = vmatpush.bf16.msra.mxu1 %v996_v0  ;;  %v993_v3 = vld [vmem:[%s2056_s1 + $0x20] sm:$0xff]  ;;  %v992_v8 = vld [vmem:[%s2056_s1 + $0x18] sm:$0xff]  ;;  %v991_v17 = vld [vmem:[%s2056_s1 + $0x10] sm:$0xff] }
   0x3   :  { %1348 = vmatpush.bf16.msra.mxu2 %v996_v0  ;;  %1349 = vmatpush.bf16.msra.mxu3 %v996_v0  ;;  %v998_v4 = vld [vmem:[%s2059_s0] sm:$0xff]   ;;  %v990_v22 = vld [vmem:[%s2056_s1 + $0x8] sm:$0xff]  ;;  %v1286_v47 = vld [vmem:[%s2059_s0 + $0x10] sm:$0xff]  }
   0x4   :  { %v999_v5 = vunpack.c.l.bf16 %v998_v4  ;;  %v1000_v6 = vunpack.c.h.bf16 %v998_v4  ;;  %v1426_v7 = vld [vmem:[%s2057_s2] ss:$0 sm:$0xff]  ;;  %v1285_v25 = vld [vmem:[%s2059_s0 + $0x8] sm:$0xff]   ;;  %v1007_v54 = vunpack.c.l.bf16 %v1286_v47  ;;  %v1008_v55 = vunpack.c.h.bf16 %v1286_v47  ;;  %v1294_v60 = vld [vmem:[%s2059_s0 + $0x50] sm:$0xff]  }
   0x5   :  { %v1292_v9 = vld [vmem:[%s2059_s0 + $0x40] sm:$0xff]   ;;  %v1003_v29 = vunpack.c.l.bf16 %v1285_v25  ;;  %v1004_v30 = vunpack.c.h.bf16 %v1285_v25  ;;  %v1293_v33 = vld [vmem:[%s2059_s0 + $0x48] sm:$0xff]   ;;  %v1039_v63 = vunpack.c.l.bf16 %v1294_v60  ;;  %v1040_v0 = vunpack.c.h.bf16 %v1294_v60 }
   0x6   :  { %445 = vmatpush.bf16.msra.mxu0 %v995_v1  ;;  %1350 = vmatpush.bf16.msra.mxu1 %v995_v1  ;;  %v1031_v10 = vunpack.c.l.bf16 %v1292_v9  ;;  %v1032_v11 = vunpack.c.h.bf16 %v1292_v9  ;;  %v152_v12 = vmul.f32 %v1426_v7, %v999_v5  ;;  %v153_v13 = vmul.f32 %v1426_v7, %v1000_v6  ;;  %v1439_v14 = vld [vmem:[%s2058_s3] ss:$0 sm:$0xff] }
   0x7   :  { %1351 = vmatpush.bf16.msra.mxu2 %v995_v1  ;;  %1352 = vmatpush.bf16.msra.mxu3 %v995_v1  ;;  %v989_v28 = vld [vmem:[%s2056_s1] sm:$0xff]  ;;  %v1035_v34 = vunpack.c.l.bf16 %v1293_v33  ;;  %v1036_v35 = vunpack.c.h.bf16 %v1293_v33  ;;  %v154_v36 = vmul.f32 %v1426_v7, %v1003_v29  ;;  %v155_v37 = vmul.f32 %v1426_v7, %v1004_v30 }
   0x8   :  { %v168_v15 = vmul.f32 %v1426_v7, %v1031_v10  ;;  %v169_v16 = vmul.f32 %v1426_v7, %v1032_v11  ;;  %v220_v18 = vadd.f32 %v1439_v14, %v152_v12  ;;  %v221_v19 = vadd.f32 %v1439_v14, %v153_v13  ;;  %v1300_v46 = vld [vmem:[%s2059_s0 + $0x80] sm:$0xff]   ;;  %v1301_v13 = vld [vmem:[%s2059_s0 + $0x88] sm:$0xff]  }
   0x9   :  { %v170_v38 = vmul.f32 %v1426_v7, %v1035_v34  ;;  %v171_v39 = vmul.f32 %v1426_v7, %v1036_v35  ;;  %v222_v40 = vadd.f32 %v1439_v14, %v154_v36  ;;  %v223_v41 = vadd.f32 %v1439_v14, %v155_v37  ;;  %v1308_v47 = vld [vmem:[%s2059_s0 + $0xc0] sm:$0xff]  }
   0xa   :  { %446 = vmatpush.bf16.msra.mxu0 %v994_v2  ;;  %1353 = vmatpush.bf16.msra.mxu1 %v994_v2  ;;  %v236_v20 = vadd.f32 %v1439_v14, %v168_v15  ;;  %v237_v21 = vadd.f32 %v1439_v14, %v169_v16  ;;  %v284_v23 = vmax.f32 %v220_v18, 0.0  ;;  %v285_v24 = vmax.f32 %v221_v19, 0.0  ;;  %v1287_v15 = vld [vmem:[%s2059_s0 + $0x18] sm:$0xff]  }
   0xb   :  { %1354 = vmatpush.bf16.msra.mxu2 %v994_v2  ;;  %1355 = vmatpush.bf16.msra.mxu3 %v994_v2  ;;  %v238_v42 = vadd.f32 %v1439_v14, %v170_v38  ;;  %v239_v43 = vadd.f32 %v1439_v14, %v171_v39  ;;  %v286_v44 = vmax.f32 %v222_v40, 0.0  ;;  %v287_v45 = vmax.f32 %v223_v41, 0.0 }
   0xc   :  { %v300_v26 = vmax.f32 %v236_v20, 0.0  ;;  %v301_v27 = vmax.f32 %v237_v21, 0.0  ;;  %v348_v31 = vpack.c.bf16 %v285_v24, %v284_v23  ;;  %v1063_v50 = vunpack.c.l.bf16 %v1300_v46 }
   0xd   :  { %v302_v48 = vmax.f32 %v238_v42, 0.0  ;;  %v303_v49 = vmax.f32 %v239_v43, 0.0  ;;  %v1064_v51 = vunpack.c.h.bf16 %v1300_v46  ;;  %v349_v56 = vpack.c.bf16 %v287_v45, %v286_v44  ;;  %v1302_v46 = vld [vmem:[%s2059_s0 + $0x90] sm:$0xff]  }
   0xe   :  { %447 = vmatpush.bf16.msra.mxu0 %v993_v3  ;;  %1356 = vmatpush.bf16.msra.mxu1 %v993_v3  ;;  %v356_v32 = vpack.c.bf16 %v301_v27, %v300_v26  ;;  %v184_v52 = vmul.f32 %v1426_v7, %v1063_v50  ;;  %v156_v1 = vmul.f32 %v1426_v7, %v1007_v54  ;;  %v1067_v18 = vunpack.c.l.bf16 %v1301_v13 }
   0xf   :  { %1357 = vmatpush.bf16.msra.mxu2 %v993_v3  ;;  %1358 = vmatpush.bf16.msra.mxu3 %v993_v3  ;;  %v185_v53 = vmul.f32 %v1426_v7, %v1064_v51  ;;  %v357_v57 = vpack.c.bf16 %v303_v49, %v302_v48  ;;  %v157_v2 = vmul.f32 %v1426_v7, %v1008_v55  ;;  %v1068_v19 = vunpack.c.h.bf16 %v1301_v13  ;;  %v1288_v48 = vld [vmem:[%s2059_s0 + $0x20] sm:$0xff]  }
  0x10   :  { %v252_v58 = vadd.f32 %v1439_v14, %v184_v52  ;;  %v172_v4 = vmul.f32 %v1426_v7, %v1039_v63  ;;  %v173_v5 = vmul.f32 %v1426_v7, %v1040_v0  ;;  %v224_v6 = vadd.f32 %v1439_v14, %v156_v1  ;;  %v1296_v1 = vld [vmem:[%s2059_s0 + $0x60] sm:$0xff]  }
  0x11   :  { %v253_v59 = vadd.f32 %v1439_v14, %v185_v53  ;;  %v186_v20 = vmul.f32 %v1426_v7, %v1067_v18  ;;  %v187_v21 = vmul.f32 %v1426_v7, %v1068_v19  ;;  %v1012_v23 = vunpack.c.h.bf16 %v1287_v15 }
  0x12   :  { %448 = vmatpush.bf16.msra.mxu0 %v992_v8  ;;  %1359 = vmatpush.bf16.msra.mxu1 %v992_v8  ;;  %v316_v61 = vmax.f32 %v252_v58, 0.0  ;;  %v240_v9 = vadd.f32 %v1439_v14, %v172_v4  ;;  %v241_v10 = vadd.f32 %v1439_v14, %v173_v5  ;;  %v288_v11 = vmax.f32 %v224_v6, 0.0 }
  0x13   :  { %1360 = vmatpush.bf16.msra.mxu2 %v992_v8  ;;  %1361 = vmatpush.bf16.msra.mxu3 %v992_v8  ;;  %v317_v62 = vmax.f32 %v253_v59, 0.0  ;;  %v225_v8 = vadd.f32 %v1439_v14, %v157_v2  ;;  %v254_v26 = vadd.f32 %v1439_v14, %v186_v20  ;;  %v255_v27 = vadd.f32 %v1439_v14, %v187_v21 }
  0x14   :  { %v304_v16 = vmax.f32 %v240_v9, 0.0  ;;  %v159_v34 = vmul.f32 %v1426_v7, %v1012_v23  ;;  %v1071_v49 = vunpack.c.l.bf16 %v1302_v46  ;;  %v1072_v50 = vunpack.c.h.bf16 %v1302_v46 }
  0x15   :  { %v364_v3 = vpack.c.bf16 %v317_v62, %v316_v61  ;;  %v289_v12 = vmax.f32 %v225_v8, 0.0  ;;  %v318_v29 = vmax.f32 %v254_v26, 0.0  ;;  %v319_v30 = vmax.f32 %v255_v27, 0.0  ;;  %v1289_v26 = vld [vmem:[%s2059_s0 + $0x28] sm:$0xff]  }
  0x16   :  { %449 = vmatpush.bf16.msra.mxu0 %v991_v17  ;;  %1362 = vmatpush.bf16.msra.mxu1 %v991_v17  ;;  %v227_v39 = vadd.f32 %v1439_v14, %v159_v34  ;;  %v1095_v51 = vunpack.c.l.bf16 %v1308_v47  ;;  %v1096_v52 = vunpack.c.h.bf16 %v1308_v47  ;;  %v188_v53 = vmul.f32 %v1426_v7, %v1071_v49 }
  0x17   :  { %1363 = vmatpush.bf16.msra.mxu2 %v991_v17  ;;  %1364 = vmatpush.bf16.msra.mxu3 %v991_v17  ;;  %v305_v17 = vmax.f32 %v241_v10, 0.0  ;;  %v350_v24 = vpack.c.bf16 %v289_v12, %v288_v11  ;;  %v365_v35 = vpack.c.bf16 %v319_v30, %v318_v29  ;;  %v189_v54 = vmul.f32 %v1426_v7, %v1072_v50 }
  0x18   :  { %v291_v43 = vmax.f32 %v227_v39, 0.0  ;;  %v200_v55 = vmul.f32 %v1426_v7, %v1095_v51  ;;  %v1015_v58 = vunpack.c.l.bf16 %v1288_v48  ;;  %v1016_v59 = vunpack.c.h.bf16 %v1288_v48 }
  0x19   :  { %v358_v25 = vpack.c.bf16 %v305_v17, %v304_v16  ;;  %v256_v61 = vadd.f32 %v1439_v14, %v188_v53  ;;  %v257_v62 = vadd.f32 %v1439_v14, %v189_v54  ;;  %v1047_v9 = vunpack.c.l.bf16 %v1296_v1 }
  0x1a   :  { %450 = vmatpush.bf16.msra.mxu0 %v990_v22  ;;  %1365 = vmatpush.bf16.msra.mxu1 %v990_v22  ;;  %v268_v63 = vadd.f32 %v1439_v14, %v200_v55  ;;  %v160_v6 = vmul.f32 %v1426_v7, %v1015_v58  ;;  %v161_v8 = vmul.f32 %v1426_v7, %v1016_v59  ;;  %v1048_v10 = vunpack.c.h.bf16 %v1296_v1  ;;  %v1310_v1 = vld [vmem:[%s2059_s0 + $0xd0] sm:$0xff]  }
  0x1b   :  { %1366 = vmatpush.bf16.msra.mxu2 %v990_v22  ;;  %1367 = vmatpush.bf16.msra.mxu3 %v990_v22  ;;  %v1011_v22 = vunpack.c.l.bf16 %v1287_v15  ;;  %v320_v2 = vmax.f32 %v256_v61, 0.0  ;;  %v176_v13 = vmul.f32 %v1426_v7, %v1047_v9 }
  0x1c   :  { %v332_v4 = vmax.f32 %v268_v63, 0.0  ;;  %v177_v15 = vmul.f32 %v1426_v7, %v1048_v10  ;;  %v228_v16 = vadd.f32 %v1439_v14, %v160_v6  ;;  %v229_v17 = vadd.f32 %v1439_v14, %v161_v8 }
  0x1d   :  { %v158_v33 = vmul.f32 %v1426_v7, %v1011_v22  ;;  %v244_v18 = vadd.f32 %v1439_v14, %v176_v13  ;;  %v1104_v6 = vunpack.c.h.bf16 %v1310_v1 }
  0x1e   :  { %451 = vmatpush.bf16.msra.mxu0 %v989_v28  ;;  %1368 = vmatpush.bf16.msra.mxu1 %v989_v28  ;;  %v245_v19 = vadd.f32 %v1439_v14, %v177_v15  ;;  %v292_v20 = vmax.f32 %v228_v16, 0.0  ;;  %v293_v21 = vmax.f32 %v229_v17, 0.0 }
  0x1f   :  { %1369 = vmatpush.bf16.msra.mxu2 %v989_v28  ;;  %1370 = vmatpush.bf16.msra.mxu3 %v989_v28  ;;  %v1295_v28 = vld [vmem:[%s2059_s0 + $0x58] sm:$0xff]   ;;  %v226_v38 = vadd.f32 %v1439_v14, %v158_v33  ;;  %v308_v22 = vmax.f32 %v244_v18, 0.0 }
  0x20   :  { %v309_v23 = vmax.f32 %v245_v19, 0.0 }
  0x21   :  { %452 = vmatmul.bf16.vlgmr.msra.gmra.mxu0 %v348_v31  ;;  %492 = vmatmul.bf16.vlgmr.msra.gmra.mxu1 %v356_v32  ;;  %v1043_v31 = vunpack.c.l.bf16 %v1295_v28  ;;  %v1044_v32 = vunpack.c.h.bf16 %v1295_v28  ;;  %v290_v42 = vmax.f32 %v226_v38, 0.0 }
  0x22   :  { %532 = vmatmul.bf16.vlgmr.msra.gmra.mxu2 %v364_v3  ;;  %v321_v3 = vmax.f32 %v257_v62, 0.0  ;;  %v360_v38 = vpack.c.bf16 %v309_v23, %v308_v22 }
  0x23   :  { %v174_v36 = vmul.f32 %v1426_v7, %v1043_v31  ;;  %v175_v37 = vmul.f32 %v1426_v7, %v1044_v32 }
  0x24   :  { %v366_v11 = vpack.c.bf16 %v321_v3, %v320_v2  ;;  %v1290_v2 = vld [vmem:[%s2059_s0 + $0x30] sm:$0xff]  }
  0x25   :  { %v242_v40 = vadd.f32 %v1439_v14, %v174_v36  ;;  %v243_v41 = vadd.f32 %v1439_v14, %v175_v37  ;;  %v1019_v36 = vunpack.c.l.bf16 %v1289_v26  ;;  %v1020_v37 = vunpack.c.h.bf16 %v1289_v26 }
  0x26   :  { %v1023_v13 = vunpack.c.l.bf16 %v1290_v2  ;;  %v1024_v15 = vunpack.c.h.bf16 %v1290_v2 }
  0x27   :  { %v306_v44 = vmax.f32 %v242_v40, 0.0  ;;  %v307_v45 = vmax.f32 %v243_v41, 0.0  ;;  %v162_v48 = vmul.f32 %v1426_v7, %v1019_v36  ;;  %v163_v49 = vmul.f32 %v1426_v7, %v1020_v37 }
  0x28   :  { %v164_v26 = vmul.f32 %v1426_v7, %v1023_v13 }
  0x29   :  { %v359_v60 = vpack.c.bf16 %v307_v45, %v306_v44 }
  0x31   :  { %457 = vmatmul.bf16.gmra.mxu0 %v349_v56  ;;  %497 = vmatmul.bf16.gmra.mxu1 %v357_v57  ;;  %v201_v56 = vmul.f32 %v1426_v7, %v1096_v52  ;;  %v351_v57 = vpack.c.bf16 %v291_v43, %v290_v42  ;;  %v1297_v43 = vld [vmem:[%s2059_s0 + $0x68] sm:$0xff]  }
  0x32   :  { %537 = vmatmul.bf16.gmra.mxu2 %v365_v35  ;;  %v352_v35 = vpack.c.bf16 %v293_v21, %v292_v20  ;;  %v1051_v50 = vunpack.c.l.bf16 %v1297_v43  ;;  %v1052_v51 = vunpack.c.h.bf16 %v1297_v43  ;;  %v1298_v21 = vld [vmem:[%s2059_s0 + $0x70] sm:$0xff]   ;;  %v1311_v43 = vld [vmem:[%s2059_s0 + $0xd8] sm:$0xff]  }
  0x33   :  { %v269_v0 = vadd.f32 %v1439_v14, %v201_v56  ;;  %v230_v56 = vadd.f32 %v1439_v14, %v162_v48  ;;  %v1108_v48 = vunpack.c.h.bf16 %v1311_v43 }
  0x34   :  { %v178_v54 = vmul.f32 %v1426_v7, %v1051_v50  ;;  %v179_v55 = vmul.f32 %v1426_v7, %v1052_v51 }
  0x35   :  { %v333_v5 = vmax.f32 %v269_v0, 0.0  ;;  %v1304_v0 = vld [vmem:[%s2059_s0 + $0xa0] sm:$0xff]  }
  0x36   :  { %v246_v58 = vadd.f32 %v1439_v14, %v178_v54  ;;  %v247_v59 = vadd.f32 %v1439_v14, %v179_v55  ;;  %v1079_v3 = vunpack.c.l.bf16 %v1304_v0 }
  0x37   :  { %v372_v12 = vpack.c.bf16 %v333_v5, %v332_v4  ;;  %v1080_v4 = vunpack.c.h.bf16 %v1304_v0  ;;  %v1103_v5 = vunpack.c.l.bf16 %v1310_v1 }
  0x38   :  { %v310_v62 = vmax.f32 %v246_v58, 0.0  ;;  %v311_v63 = vmax.f32 %v247_v59, 0.0  ;;  %v192_v8 = vmul.f32 %v1426_v7, %v1079_v3 }
  0x39   :  { %572 = vmatmul.bf16.vlgmr.msra.gmra.mxu3 %v372_v12  ;;  %v193_v9 = vmul.f32 %v1426_v7, %v1080_v4  ;;  %v204_v10 = vmul.f32 %v1426_v7, %v1103_v5 }
  0x3a   :  { %v361_v16 = vpack.c.bf16 %v311_v63, %v310_v62  ;;  %v260_v17 = vadd.f32 %v1439_v14, %v192_v8 }
  0x3b   :  { %v261_v18 = vadd.f32 %v1439_v14, %v193_v9  ;;  %v272_v19 = vadd.f32 %v1439_v14, %v204_v10 }
  0x3c   :  { %v324_v22 = vmax.f32 %v260_v17, 0.0 }
  0x3d   :  { %v325_v23 = vmax.f32 %v261_v18, 0.0 }
  0x41   :  { %462 = vmatmul.bf16.gmra.mxu0 %v350_v24  ;;  %502 = vmatmul.bf16.gmra.mxu1 %v358_v25  ;;  %v1303_v24 = vld [vmem:[%s2059_s0 + $0x98] sm:$0xff]   ;;  %v1309_v25 = vld [vmem:[%s2059_s0 + $0xc8] sm:$0xff]  }
  0x42   :  { %542 = vmatmul.bf16.gmra.mxu2 %v366_v11  ;;  %v1075_v27 = vunpack.c.l.bf16 %v1303_v24  ;;  %v1076_v28 = vunpack.c.h.bf16 %v1303_v24  ;;  %v1099_v29 = vunpack.c.l.bf16 %v1309_v25  ;;  %v1100_v30 = vunpack.c.h.bf16 %v1309_v25 }
  0x43   :  { %v205_v11 = vmul.f32 %v1426_v7, %v1104_v6  ;;  %v336_v24 = vmax.f32 %v272_v19, 0.0 }
  0x44   :  { %v190_v31 = vmul.f32 %v1426_v7, %v1075_v27  ;;  %v191_v32 = vmul.f32 %v1426_v7, %v1076_v28  ;;  %v202_v33 = vmul.f32 %v1426_v7, %v1099_v29  ;;  %v203_v34 = vmul.f32 %v1426_v7, %v1100_v30 }
  0x45   :  { %v273_v20 = vadd.f32 %v1439_v14, %v205_v11  ;;  %v165_v27 = vmul.f32 %v1426_v7, %v1024_v15  ;;  %v1055_v28 = vunpack.c.l.bf16 %v1298_v21  ;;  %v1056_v29 = vunpack.c.h.bf16 %v1298_v21  ;;  %v1312_v21 = vld [vmem:[%s2059_s0 + $0xe0] sm:$0xff]  }
  0x46   :  { %v258_v39 = vadd.f32 %v1439_v14, %v190_v31  ;;  %v259_v40 = vadd.f32 %v1439_v14, %v191_v32  ;;  %v270_v41 = vadd.f32 %v1439_v14, %v202_v33  ;;  %v271_v42 = vadd.f32 %v1439_v14, %v203_v34 }
  0x47   :  { %v337_v25 = vmax.f32 %v273_v20, 0.0  ;;  %v368_v30 = vpack.c.bf16 %v325_v23, %v324_v22  ;;  %v180_v32 = vmul.f32 %v1426_v7, %v1055_v28  ;;  %v181_v33 = vmul.f32 %v1426_v7, %v1056_v29  ;;  %v1306_v20 = vld [vmem:[%s2059_s0 + $0xb0] sm:$0xff]  }
  0x48   :  { %v322_v44 = vmax.f32 %v258_v39, 0.0  ;;  %v323_v45 = vmax.f32 %v259_v40, 0.0  ;;  %v334_v46 = vmax.f32 %v270_v41, 0.0  ;;  %v335_v47 = vmax.f32 %v271_v42, 0.0  ;;  %v1305_v42 = vld [vmem:[%s2059_s0 + $0xa8] sm:$0xff]  }
  0x49   :  { %v374_v31 = vpack.c.bf16 %v337_v25, %v336_v24  ;;  %v232_v34 = vadd.f32 %v1439_v14, %v164_v26  ;;  %v248_v36 = vadd.f32 %v1439_v14, %v180_v32  ;;  %v249_v37 = vadd.f32 %v1439_v14, %v181_v33 }
  0x4a   :  { %v367_v52 = vpack.c.bf16 %v323_v45, %v322_v44  ;;  %v373_v53 = vpack.c.bf16 %v335_v47, %v334_v46  ;;  %v1291_v44 = vld [vmem:[%s2059_s0 + $0x38] sm:$0xff]   ;;  %v1083_v45 = vunpack.c.l.bf16 %v1305_v42  ;;  %v1084_v46 = vunpack.c.h.bf16 %v1305_v42 }
  0x4b   :  { %v312_v40 = vmax.f32 %v248_v36, 0.0  ;;  %v313_v41 = vmax.f32 %v249_v37, 0.0  ;;  %v1107_v47 = vunpack.c.l.bf16 %v1311_v43  ;;  %v1027_v54 = vunpack.c.l.bf16 %v1291_v44  ;;  %v1307_v42 = vld [vmem:[%s2059_s0 + $0xb8] sm:$0xff]   ;;  %v1313_v43 = vld [vmem:[%s2059_s0 + $0xe8] sm:$0xff]  }
  0x4c   :  { %577 = vmatmul.bf16.gmra.mxu3 %v373_v53  ;;  %v195_v50 = vmul.f32 %v1426_v7, %v1084_v46  ;;  %v1028_v55 = vunpack.c.h.bf16 %v1291_v44  ;;  %v1087_v22 = vunpack.c.l.bf16 %v1306_v20  ;;  %v1088_v23 = vunpack.c.h.bf16 %v1306_v20 }
  0x4d   :  { %v206_v51 = vmul.f32 %v1426_v7, %v1107_v47  ;;  %v166_v2 = vmul.f32 %v1426_v7, %v1027_v54  ;;  %v1111_v24 = vunpack.c.l.bf16 %v1312_v21  ;;  %v1112_v25 = vunpack.c.h.bf16 %v1312_v21 }
  0x4e   :  { %v263_v58 = vadd.f32 %v1439_v14, %v195_v50  ;;  %v167_v3 = vmul.f32 %v1426_v7, %v1028_v55  ;;  %v196_v26 = vmul.f32 %v1426_v7, %v1087_v22  ;;  %v1091_v44 = vunpack.c.l.bf16 %v1307_v42 }
  0x4f   :  { %v274_v59 = vadd.f32 %v1439_v14, %v206_v51  ;;  %v234_v11 = vadd.f32 %v1439_v14, %v166_v2  ;;  %v208_v28 = vmul.f32 %v1426_v7, %v1111_v24  ;;  %v209_v29 = vmul.f32 %v1426_v7, %v1112_v25 }
  0x50   :  { %v327_v63 = vmax.f32 %v263_v58, 0.0  ;;  %v264_v32 = vadd.f32 %v1439_v14, %v196_v26  ;;  %v1115_v46 = vunpack.c.l.bf16 %v1313_v43  ;;  %v1116_v47 = vunpack.c.h.bf16 %v1313_v43 }
  0x51   :  { %467 = vmatmul.bf16.gmra.mxu0 %v351_v57  ;;  %507 = vmatmul.bf16.gmra.mxu1 %v359_v60  ;;  %v231_v57 = vadd.f32 %v1439_v14, %v163_v49  ;;  %v294_v60 = vmax.f32 %v230_v56, 0.0  ;;  %v194_v49 = vmul.f32 %v1426_v7, %v1083_v45  ;;  %v362_v56 = vpack.c.bf16 %v313_v41, %v312_v40 }
  0x52   :  { %547 = vmatmul.bf16.gmra.mxu2 %v367_v52  ;;  %v207_v52 = vmul.f32 %v1426_v7, %v1108_v48  ;;  %v338_v0 = vmax.f32 %v274_v59, 0.0  ;;  %v328_v36 = vmax.f32 %v264_v32, 0.0  ;;  %v1092_v45 = vunpack.c.h.bf16 %v1307_v42  ;;  %v1315_v32 = vld [vmem:[%s2059_s0 + $0xf8] sm:$0xff]  }
  0x53   :  { %v295_v61 = vmax.f32 %v231_v57, 0.0  ;;  %v262_v57 = vadd.f32 %v1439_v14, %v194_v49  ;;  %v198_v48 = vmul.f32 %v1426_v7, %v1091_v44  ;;  %v210_v50 = vmul.f32 %v1426_v7, %v1115_v46 }
  0x54   :  { %v199_v49 = vmul.f32 %v1426_v7, %v1092_v45  ;;  %v211_v51 = vmul.f32 %v1426_v7, %v1116_v47 }
  0x55   :  { %v353_v12 = vpack.c.bf16 %v295_v61, %v294_v60  ;;  %v275_v60 = vadd.f32 %v1439_v14, %v207_v52  ;;  %v1299_v61 = vld [vmem:[%s2059_s0 + $0x78] sm:$0xff]   ;;  %v326_v62 = vmax.f32 %v262_v57, 0.0  ;;  %v266_v52 = vadd.f32 %v1439_v14, %v198_v48 }
  0x56   :  { %v1059_v4 = vunpack.c.l.bf16 %v1299_v61  ;;  %v1060_v5 = vunpack.c.h.bf16 %v1299_v61  ;;  %v278_v54 = vadd.f32 %v1439_v14, %v210_v50  ;;  %v279_v55 = vadd.f32 %v1439_v14, %v211_v51 }
  0x57   :  { %v339_v1 = vmax.f32 %v275_v60, 0.0  ;;  %v369_v6 = vpack.c.bf16 %v327_v63, %v326_v62  ;;  %v330_v58 = vmax.f32 %v266_v52, 0.0 }
  0x58   :  { %v182_v9 = vmul.f32 %v1426_v7, %v1059_v4  ;;  %v183_v10 = vmul.f32 %v1426_v7, %v1060_v5  ;;  %v342_v60 = vmax.f32 %v278_v54, 0.0  ;;  %v343_v61 = vmax.f32 %v279_v55, 0.0 }
  0x59   :  { %v375_v8 = vpack.c.bf16 %v339_v1, %v338_v0 }
  0x5a   :  { %v250_v13 = vadd.f32 %v1439_v14, %v182_v9  ;;  %v251_v15 = vadd.f32 %v1439_v14, %v183_v10  ;;  %v377_v63 = vpack.c.bf16 %v343_v61, %v342_v60 }
  0x5c   :  { %582 = vmatmul.bf16.gmra.mxu3 %v374_v31  ;;  %v314_v18 = vmax.f32 %v250_v13, 0.0  ;;  %v315_v19 = vmax.f32 %v251_v15, 0.0 }
  0x5e   :  { %v363_v31 = vpack.c.bf16 %v315_v19, %v314_v18 }
  0x61   :  { %472 = vmatmul.bf16.gmra.mxu0 %v352_v35  ;;  %512 = vmatmul.bf16.gmra.mxu1 %v360_v38  ;;  %v233_v35 = vadd.f32 %v1439_v14, %v165_v27  ;;  %v296_v38 = vmax.f32 %v232_v34, 0.0  ;;  %v197_v27 = vmul.f32 %v1426_v7, %v1088_v23  ;;  %v276_v34 = vadd.f32 %v1439_v14, %v208_v28 }
  0x62   :  { %552 = vmatmul.bf16.gmra.mxu2 %v368_v30 }
  0x63   :  { %v297_v39 = vmax.f32 %v233_v35, 0.0  ;;  %v265_v33 = vadd.f32 %v1439_v14, %v197_v27  ;;  %v277_v35 = vadd.f32 %v1439_v14, %v209_v29 }
  0x65   :  { %v354_v53 = vpack.c.bf16 %v297_v39, %v296_v38  ;;  %v329_v37 = vmax.f32 %v265_v33, 0.0  ;;  %v340_v38 = vmax.f32 %v276_v34, 0.0  ;;  %v341_v39 = vmax.f32 %v277_v35, 0.0 }
  0x66   :  { %v1123_v34 = vunpack.c.l.bf16 %v1315_v32  ;;  %v1124_v35 = vunpack.c.h.bf16 %v1315_v32 }
  0x67   :  { %v370_v40 = vpack.c.bf16 %v329_v37, %v328_v36  ;;  %v376_v41 = vpack.c.bf16 %v341_v39, %v340_v38 }
  0x68   :  { %v214_v36 = vmul.f32 %v1426_v7, %v1123_v34  ;;  %v215_v37 = vmul.f32 %v1426_v7, %v1124_v35 }
  0x6a   :  { %v282_v38 = vadd.f32 %v1439_v14, %v214_v36  ;;  %v283_v39 = vadd.f32 %v1439_v14, %v215_v37 }
  0x6c   :  { %587 = vmatmul.bf16.gmra.mxu3 %v375_v8  ;;  %v1314_v8 = vld [vmem:[%s2059_s0 + $0xf0] sm:$0xff]   ;;  %v346_v45 = vmax.f32 %v282_v38, 0.0  ;;  %v347_v47 = vmax.f32 %v283_v39, 0.0 }
  0x6d   :  { %v1119_v10 = vunpack.c.l.bf16 %v1314_v8 }
  0x71   :  { %477 = vmatmul.bf16.gmra.mxu0 %v353_v12  ;;  %517 = vmatmul.bf16.gmra.mxu1 %v361_v16  ;;  %v235_v12 = vadd.f32 %v1439_v14, %v167_v3  ;;  %v298_v16 = vmax.f32 %v234_v11, 0.0  ;;  %v1120_v11 = vunpack.c.h.bf16 %v1314_v8 }
  0x72   :  { %557 = vmatmul.bf16.gmra.mxu2 %v369_v6 }
  0x73   :  { %v299_v17 = vmax.f32 %v235_v12, 0.0  ;;  %v212_v12 = vmul.f32 %v1426_v7, %v1119_v10  ;;  %v213_v13 = vmul.f32 %v1426_v7, %v1120_v11  ;;  %v379_v7 = vpack.c.bf16 %v347_v47, %v346_v45 }
  0x75   :  { %v355_v30 = vpack.c.bf16 %v299_v17, %v298_v16  ;;  %v280_v15 = vadd.f32 %v1439_v14, %v212_v12  ;;  %v281_v16 = vadd.f32 %v1439_v14, %v213_v13 }
  0x77   :  { %v344_v21 = vmax.f32 %v280_v15, 0.0  ;;  %v345_v22 = vmax.f32 %v281_v16, 0.0 }
  0x79   :  { %v378_v24 = vpack.c.bf16 %v345_v22, %v344_v21 }
  0x7c   :  { %592 = vmatmul.bf16.gmra.mxu3 %v376_v41 }
  0x81   :  { %482 = vmatmul.bf16.gmra.mxu0 %v354_v53  ;;  %522 = vmatmul.bf16.gmra.mxu1 %v362_v56  ;;  %v267_v53 = vadd.f32 %v1439_v14, %v199_v49 }
  0x82   :  { %562 = vmatmul.bf16.gmra.mxu2 %v370_v40 }
  0x83   :  { %v331_v59 = vmax.f32 %v267_v53, 0.0 }
  0x85   :  { %v371_v62 = vpack.c.bf16 %v331_v59, %v330_v58 }
  0x8c   :  { %597 = vmatmul.bf16.gmra.mxu3 %v377_v63 }
  0x91   :  { %487 = vmatmul.bf16.gmra.mxu0 %v355_v30  ;;  %527 = vmatmul.bf16.gmra.mxu1 %v363_v31 }
  0x92   :  { %567 = vmatmul.bf16.gmra.mxu2 %v371_v62 }
  0x9c   :  { %602 = vmatmul.bf16.gmra.mxu3 %v378_v24 }
  0x9e   :  { %v453_v56 = vpop.f32.mrf.mxu0  ;;  %v1652_v57 = vpop.f32.mrf.mxu1 }
  0x9f   :  { %v810_v0 = vmul.f32 %v453_v56, %v453_v56 }
  0xa5   :  { %v1677_v31 = vpop.f32.mrf.mxu2 }
  0xa6   :  { %v455_v1 = vpop.f32.mrf.mxu0  ;;  %v1654_v2 = vpop.f32.mrf.mxu1 }
  0xa7   :  { %v1128_v3 = vpack.c.bf16 %v455_v1, %v453_v56  ;;  %v741_v4 = vadd.f32 %v455_v1, %v453_v56  ;;  %v811_v5 = vmul.f32 %v455_v1, %v455_v1  ;;  %v1168_v6 = vpack.c.bf16 %v1654_v2, %v1652_v57 }
  0xa9   :  { %1129 = vst [vmem:[%s2060_s4] sm:$0xff] %v1128_v3   ;;  %v874_v9 = vadd.f32 %v811_v5, %v810_v0 }
  0xaa   :  { %1323 = vst [vmem:[%s2060_s4 + $0x40] sm:$0xff] %v1168_v6  }
  0xac   :  { %607 = vmatmul.bf16.gmra.mxu3 %v379_v7 }
  0xad   :  { %v1696_v44 = vpop.f32.mrf.mxu2 }
  0xae   :  { %v458_v17 = vpop.f32.mrf.mxu0  ;;  %v1671_v18 = vpop.f32.mrf.mxu1  ;;  %v1208_v46 = vpack.c.bf16 %v1696_v44, %v1677_v31 }
  0xaf   :  { %v742_v19 = vadd.f32 %v741_v4, %v458_v17  ;;  %v812_v20 = vmul.f32 %v458_v17, %v458_v17 }
  0xb0   :  { %1331 = vst [vmem:[%s2060_s4 + $0x80] sm:$0xff] %v1208_v46  }
  0xb1   :  { %v875_v23 = vadd.f32 %v874_v9, %v812_v20 }
  0xb5   :  { %v1709_v52 = vpop.f32.mrf.mxu2 }
  0xb6   :  { %v460_v25 = vpop.f32.mrf.mxu0  ;;  %v1673_v26 = vpop.f32.mrf.mxu1 }
  0xb7   :  { %v1133_v27 = vpack.c.bf16 %v460_v25, %v458_v17  ;;  %v743_v28 = vadd.f32 %v742_v19, %v460_v25  ;;  %v813_v29 = vmul.f32 %v460_v25, %v460_v25  ;;  %v1173_v30 = vpack.c.bf16 %v1673_v26, %v1671_v18 }
  0xb9   :  { %1316 = vst [vmem:[%s2060_s4 + $0x8] sm:$0xff] %v1133_v27   ;;  %v876_v33 = vadd.f32 %v875_v23, %v813_v29 }
  0xba   :  { %1324 = vst [vmem:[%s2060_s4 + $0x48] sm:$0xff] %v1173_v30  }
  0xbc   :  { %v1732_v63 = vpop.f32.mrf.mxu3 }
  0xbd   :  { %v1719_v55 = vpop.f32.mrf.mxu2 }
  0xbe   :  { %v463_v40 = vpop.f32.mrf.mxu0  ;;  %v1692_v41 = vpop.f32.mrf.mxu1  ;;  %v1213_v56 = vpack.c.bf16 %v1719_v55, %v1709_v52 }
  0xbf   :  { %v1694_v42 = vadd.f32 %v743_v28, %v463_v40  ;;  %v814_v43 = vmul.f32 %v463_v40, %v463_v40 }
  0xc0   :  { %1332 = vst [vmem:[%s2060_s4 + $0x88] sm:$0xff] %v1213_v56  }
  0xc1   :  { %v1700_v48 = vadd.f32 %v876_v33, %v814_v43 }
  0xc4   :  { %v1744_v4 = vpop.f32.mrf.mxu3 }
  0xc5   :  { %v1730_v62 = vpop.f32.mrf.mxu2  ;;  %v1248_v6 = vpack.c.bf16 %v1744_v4, %v1732_v63 }
  0xc6   :  { %v465_v14 = vpop.f32.mrf.mxu0  ;;  %v1705_v49 = vpop.f32.mrf.mxu1 }
  0xc7   :  { %v1138_v50 = vpack.c.bf16 %v465_v14, %v463_v40  ;;  %v1178_v51 = vpack.c.bf16 %v1705_v49, %v1692_v41  ;;  %1339 = vst [vmem:[%s2060_s4 + $0xc0] sm:$0xff] %v1248_v6   ;;  %v815_v34 = vmul.f32 %v465_v14, %v465_v14  ;;  %v745_v38 = vadd.f32 %v1694_v42, %v465_v14 }
  0xc9   :  { %1317 = vst [vmem:[%s2060_s4 + $0x10] sm:$0xff] %v1138_v50   ;;  %v878_v39 = vadd.f32 %v1700_v48, %v815_v34 }
  0xca   :  { %1325 = vst [vmem:[%s2060_s4 + $0x50] sm:$0xff] %v1178_v51  }
  0xcd   :  { %v1742_v3 = vpop.f32.mrf.mxu2 }
  0xce   :  { %v468_v53 = vpop.f32.mrf.mxu0  ;;  %v1717_v54 = vpop.f32.mrf.mxu1  ;;  %v1218_v5 = vpack.c.bf16 %v1742_v3, %v1730_v62 }
  0xcf   :  { %v1762_v13 = vpop.f32.mrf.mxu3  ;;  %v816_v37 = vmul.f32 %v468_v53, %v468_v53  ;;  %v746_v43 = vadd.f32 %v745_v38, %v468_v53 }
  0xd0   :  { %1333 = vst [vmem:[%s2060_s4 + $0x90] sm:$0xff] %v1218_v5  }
  0xd1   :  { %v879_v45 = vadd.f32 %v878_v39, %v816_v37 }
  0xd5   :  { %v1760_v12 = vpop.f32.mrf.mxu2 }
  0xd6   :  { %v470_v58 = vpop.f32.mrf.mxu0  ;;  %v1726_v59 = vpop.f32.mrf.mxu1 }
  0xd7   :  { %v1143_v60 = vpack.c.bf16 %v470_v58, %v468_v53  ;;  %v1183_v61 = vpack.c.bf16 %v1726_v59, %v1717_v54  ;;  %v1774_v19 = vpop.f32.mrf.mxu3  ;;  %v817_v40 = vmul.f32 %v470_v58, %v470_v58  ;;  %v747_v50 = vadd.f32 %v746_v43, %v470_v58 }
  0xd8   :  { %v1253_v21 = vpack.c.bf16 %v1774_v19, %v1762_v13 }
  0xd9   :  { %1318 = vst [vmem:[%s2060_s4 + $0x18] sm:$0xff] %v1143_v60   ;;  %v880_v14 = vadd.f32 %v879_v45, %v817_v40 }
  0xda   :  { %1326 = vst [vmem:[%s2060_s4 + $0x58] sm:$0xff] %v1183_v61  }
  0xdb   :  { %1340 = vst [vmem:[%s2060_s4 + $0xc8] sm:$0xff] %v1253_v21  }
  0xdd   :  { %v1772_v17 = vpop.f32.mrf.mxu2 }
  0xde   :  { %v473_v0 = vpop.f32.mrf.mxu0  ;;  %v1740_v1 = vpop.f32.mrf.mxu1  ;;  %v1223_v20 = vpack.c.bf16 %v1772_v17, %v1760_v12 }
  0xdf   :  { %v1792_v28 = vpop.f32.mrf.mxu3  ;;  %v818_v46 = vmul.f32 %v473_v0, %v473_v0  ;;  %v748_v5 = vadd.f32 %v747_v50, %v473_v0 }
  0xe0   :  { %1334 = vst [vmem:[%s2060_s4 + $0x98] sm:$0xff] %v1223_v20  }
  0xe1   :  { %v881_v48 = vadd.f32 %v880_v14, %v818_v46 }
  0xe5   :  { %v1790_v27 = vpop.f32.mrf.mxu2 }
  0xe6   :  { %v475_v8 = vpop.f32.mrf.mxu0  ;;  %v1756_v9 = vpop.f32.mrf.mxu1 }
  0xe7   :  { %v1148_v10 = vpack.c.bf16 %v475_v8, %v473_v0  ;;  %v1188_v11 = vpack.c.bf16 %v1756_v9, %v1740_v1  ;;  %v1804_v33 = vpop.f32.mrf.mxu3  ;;  %v819_v61 = vmul.f32 %v475_v8, %v475_v8  ;;  %v749_v58 = vadd.f32 %v748_v5, %v475_v8 }
  0xe8   :  { %v1258_v36 = vpack.c.bf16 %v1804_v33, %v1792_v28 }
  0xe9   :  { %1319 = vst [vmem:[%s2060_s4 + $0x20] sm:$0xff] %v1148_v10   ;;  %v882_v6 = vadd.f32 %v881_v48, %v819_v61 }
  0xea   :  { %1327 = vst [vmem:[%s2060_s4 + $0x60] sm:$0xff] %v1188_v11  }
  0xeb   :  { %1341 = vst [vmem:[%s2060_s4 + $0xd0] sm:$0xff] %v1258_v36  }
  0xed   :  { %v1802_v32 = vpop.f32.mrf.mxu2 }
  0xee   :  { %v478_v15 = vpop.f32.mrf.mxu0  ;;  %v1770_v16 = vpop.f32.mrf.mxu1  ;;  %v1228_v35 = vpack.c.bf16 %v1802_v32, %v1790_v27 }
  0xef   :  { %v1824_v42 = vpop.f32.mrf.mxu3  ;;  %v820_v53 = vmul.f32 %v478_v15, %v478_v15  ;;  %v750_v11 = vadd.f32 %v749_v58, %v478_v15 }
  0xf0   :  { %1335 = vst [vmem:[%s2060_s4 + $0xa0] sm:$0xff] %v1228_v35  }
  0xf1   :  { %v883_v20 = vadd.f32 %v882_v6, %v820_v53  ;;  %v827_v6 = vmul.f32 %v1654_v2, %v1654_v2 }
  0xf5   :  { %v1822_v60 = vpop.f32.mrf.mxu2 }
  0xf6   :  { %v480_v22 = vpop.f32.mrf.mxu0  ;;  %v1786_v23 = vpop.f32.mrf.mxu1 }
  0xf7   :  { %v1153_v24 = vpack.c.bf16 %v480_v22, %v478_v15  ;;  %v1193_v25 = vpack.c.bf16 %v1786_v23, %v1770_v16  ;;  %v821_v10 = vmul.f32 %v480_v22, %v480_v22  ;;  %v751_v0 = vadd.f32 %v750_v11, %v480_v22  ;;  %v1836_v35 = vpop.f32.mrf.mxu3 }
  0xf8   :  { %v1263_v8 = vpack.c.bf16 %v1836_v35, %v1824_v42 }
  0xf9   :  { %1320 = vst [vmem:[%s2060_s4 + $0x28] sm:$0xff] %v1153_v24   ;;  %v884_v36 = vadd.f32 %v883_v20, %v821_v10  ;;  %v828_v20 = vmul.f32 %v1671_v18, %v1671_v18 }
  0xfa   :  { %1328 = vst [vmem:[%s2060_s4 + $0x68] sm:$0xff] %v1193_v25  }
  0xfb   :  { %1342 = vst [vmem:[%s2060_s4 + $0xd8] sm:$0xff] %v1263_v8  }
  0xfd   :  { %v1834_v34 = vpop.f32.mrf.mxu2 }
  0xfe   :  { %v483_v29 = vpop.f32.mrf.mxu0  ;;  %v1800_v30 = vpop.f32.mrf.mxu1  ;;  %v1233_v38 = vpack.c.bf16 %v1834_v34, %v1822_v60 }
  0xff   :  { %v822_v21 = vmul.f32 %v483_v29, %v483_v29  ;;  %v752_v39 = vadd.f32 %v751_v0, %v483_v29  ;;  %v1854_v48 = vpop.f32.mrf.mxu3 }
 0x100   :  { %1336 = vst [vmem:[%s2060_s4 + $0xa8] sm:$0xff] %v1233_v38  }
 0x101   :  { %v885_v15 = vadd.f32 %v884_v36, %v822_v21 }
 0x105   :  { %v1852_v5 = vpop.f32.mrf.mxu2 }
 0x106   :  { %v485_v47 = vpop.f32.mrf.mxu0  ;;  %v1818_v7 = vpop.f32.mrf.mxu1 }
 0x107   :  { %v1158_v51 = vpack.c.bf16 %v485_v47, %v483_v29  ;;  %v1198_v56 = vpack.c.bf16 %v1818_v7, %v1800_v30  ;;  %v823_v37 = vmul.f32 %v485_v47, %v485_v47  ;;  %v753_v22 = vadd.f32 %v752_v39, %v485_v47  ;;  %v1876_v38 = vpop.f32.mrf.mxu3 }
 0x108   :  { %v826_v47 = vmul.f32 %v1652_v57, %v1652_v57  ;;  %v1268_v8 = vpack.c.bf16 %v1876_v38, %v1854_v48 }
 0x109   :  { %1321 = vst [vmem:[%s2060_s4 + $0x30] sm:$0xff] %v1158_v51   ;;  %v886_v43 = vadd.f32 %v885_v15, %v823_v37 }
 0x10a   :  { %1329 = vst [vmem:[%s2060_s4 + $0x70] sm:$0xff] %v1198_v56  }
 0x10b   :  { %1343 = vst [vmem:[%s2060_s4 + $0xe0] sm:$0xff] %v1268_v8   ;;  %v839_v8 = vmul.f32 %v1818_v7, %v1818_v7 }
 0x10d   :  { %v1874_v37 = vpop.f32.mrf.mxu2 }
 0x10e   :  { %v488_v24 = vpop.f32.mrf.mxu0  ;;  %v1832_v25 = vpop.f32.mrf.mxu1 }
 0x10f   :  { %v824_v40 = vmul.f32 %v488_v24, %v488_v24  ;;  %v754_v45 = vadd.f32 %v753_v22, %v488_v24 }
 0x111   :  { %v887_v46 = vadd.f32 %v886_v43, %v824_v40  ;;  %v832_v43 = vmul.f32 %v1717_v54, %v1717_v54 }
 0x116   :  { %v490_v50 = vpop.f32.mrf.mxu0  ;;  %v1848_v51 = vpop.f32.mrf.mxu1 }
 0x117   :  { %v1163_v56 = vpack.c.bf16 %v490_v50, %v488_v24  ;;  %v755_v14 = vadd.f32 %v754_v45, %v490_v50  ;;  %v825_v29 = vmul.f32 %v490_v50, %v490_v50  ;;  %v1203_v61 = vpack.c.bf16 %v1848_v51, %v1832_v25 }
 0x119   :  { %1322 = vst [vmem:[%s2060_s4 + $0x38] sm:$0xff] %v1163_v56   ;;  %v756_v53 = vadd.f32 %v755_v14, %v1652_v57  ;;  %v888_v58 = vadd.f32 %v887_v46, %v825_v29  ;;  %v829_v57 = vmul.f32 %v1673_v26, %v1673_v26  ;;  %v833_v46 = vmul.f32 %v1726_v59, %v1726_v59  ;;  %v1900_v14 = vpop.f32.mrf.mxu2 }
 0x11a   :  { %1330 = vst [vmem:[%s2060_s4 + $0x78] sm:$0xff] %v1203_v61   ;;  %v834_v29 = vmul.f32 %v1740_v1, %v1740_v1 }
 0x11b   :  { %v757_v10 = vadd.f32 %v756_v53, %v1654_v2  ;;  %v889_v11 = vadd.f32 %v888_v58, %v826_v47  ;;  %v1238_v2 = vpack.c.bf16 %v1874_v37, %v1852_v5  ;;  %v835_v53 = vmul.f32 %v1756_v9, %v1756_v9 }
 0x11d   :  { %v758_v21 = vadd.f32 %v757_v10, %v1671_v18  ;;  %v890_v24 = vadd.f32 %v889_v11, %v827_v6  ;;  %v830_v18 = vmul.f32 %v1692_v41, %v1692_v41  ;;  %1337 = vst [vmem:[%s2060_s4 + $0xb0] sm:$0xff] %v1238_v2   ;;  %v837_v11 = vmul.f32 %v1786_v23, %v1786_v23 }
 0x11f   :  { %v759_v0 = vadd.f32 %v758_v21, %v1673_v26  ;;  %v891_v36 = vadd.f32 %v890_v24, %v828_v20  ;;  %v831_v26 = vmul.f32 %v1705_v49, %v1705_v49 }
 0x121   :  { %v760_v39 = vadd.f32 %v759_v0, %v1692_v41  ;;  %v892_v15 = vadd.f32 %v891_v36, %v829_v57 }
 0x123   :  { %v761_v40 = vadd.f32 %v760_v39, %v1705_v49  ;;  %v893_v22 = vadd.f32 %v892_v15, %v830_v18  ;;  %v1902_v49 = vpop.f32.mrf.mxu3 }
 0x125   :  { %v894_v45 = vadd.f32 %v893_v22, %v831_v26  ;;  %v762_v41 = vadd.f32 %v761_v40, %v1717_v54  ;;  %v841_v40 = vmul.f32 %v1848_v51, %v1848_v51 }
 0x127   :  { %v763_v50 = vadd.f32 %v762_v41, %v1726_v59  ;;  %v895_v56 = vadd.f32 %v894_v45, %v832_v43  ;;  %v836_v59 = vmul.f32 %v1770_v16, %v1770_v16  ;;  %v843_v41 = vmul.f32 %v1696_v44, %v1696_v44 }
 0x129   :  { %v764_v61 = vadd.f32 %v763_v50, %v1740_v1  ;;  %v896_v47 = vadd.f32 %v895_v56, %v833_v46  ;;  %v1916_v1 = vpop.f32.mrf.mxu2  ;;  %v844_v50 = vmul.f32 %v1709_v52, %v1709_v52 }
 0x12b   :  { %v765_v54 = vadd.f32 %v764_v61, %v1756_v9  ;;  %v897_v58 = vadd.f32 %v896_v47, %v834_v29  ;;  %v1918_v24 = vpop.f32.mrf.mxu3  ;;  %v1243_v9 = vpack.c.bf16 %v1916_v1, %v1900_v14  ;;  %v845_v29 = vmul.f32 %v1719_v55, %v1719_v55 }
 0x12c   :  { %v1273_v57 = vpack.c.bf16 %v1918_v24, %v1902_v49 }
 0x12d   :  { %v766_v6 = vadd.f32 %v765_v54, %v1770_v16  ;;  %v898_v10 = vadd.f32 %v897_v58, %v835_v53  ;;  %v838_v16 = vmul.f32 %v1800_v30, %v1800_v30  ;;  %1338 = vst [vmem:[%s2060_s4 + $0xb8] sm:$0xff] %v1243_v9  }
 0x12e   :  { %1344 = vst [vmem:[%s2060_s4 + $0xe8] sm:$0xff] %v1273_v57   ;;  %v850_v57 = vmul.f32 %v1790_v27, %v1790_v27 }
 0x12f   :  { %v767_v20 = vadd.f32 %v766_v6, %v1786_v23  ;;  %v899_v21 = vadd.f32 %v898_v10, %v836_v59  ;;  %v848_v6 = vmul.f32 %v1760_v12, %v1760_v12 }
 0x131   :  { %v768_v0 = vadd.f32 %v767_v20, %v1800_v30  ;;  %v900_v36 = vadd.f32 %v899_v21, %v837_v11  ;;  %v840_v30 = vmul.f32 %v1832_v25, %v1832_v25 }
 0x133   :  { %v901_v23 = vadd.f32 %v900_v36, %v838_v16  ;;  %v769_v2 = vadd.f32 %v768_v0, %v1818_v7  ;;  %v1942_v22 = vpop.f32.mrf.mxu3  ;;  %v842_v7 = vmul.f32 %v1677_v31, %v1677_v31  ;;  %v851_v16 = vmul.f32 %v1802_v32, %v1802_v32 }
 0x135   :  { %v902_v18 = vadd.f32 %v901_v23, %v839_v8  ;;  %v770_v39 = vadd.f32 %v769_v2, %v1832_v25  ;;  %v852_v23 = vmul.f32 %v1822_v60, %v1822_v60 }
 0x137   :  { %v903_v15 = vadd.f32 %v902_v18, %v840_v30  ;;  %v771_v26 = vadd.f32 %v770_v39, %v1848_v51  ;;  %v853_v18 = vmul.f32 %v1834_v34, %v1834_v34 }
 0x139   :  { %v772_v43 = vadd.f32 %v771_v26, %v1677_v31  ;;  %v904_v45 = vadd.f32 %v903_v15, %v841_v40 }
 0x13b   :  { %v773_v46 = vadd.f32 %v772_v43, %v1696_v44  ;;  %v905_v25 = vadd.f32 %v904_v45, %v842_v7  ;;  %v1956_v31 = vpop.f32.mrf.mxu3  ;;  %v846_v44 = vmul.f32 %v1730_v62, %v1730_v62  ;;  %v856_v45 = vmul.f32 %v1900_v14, %v1900_v14 }
 0x13c   :  { %v1278_v53 = vpack.c.bf16 %v1956_v31, %v1942_v22 }
 0x13d   :  { %v774_v56 = vadd.f32 %v773_v46, %v1709_v52  ;;  %v906_v51 = vadd.f32 %v905_v25, %v843_v41  ;;  %v847_v52 = vmul.f32 %v1742_v3, %v1742_v3  ;;  %v858_v25 = vmul.f32 %v1732_v63, %v1732_v63 }
 0x13e   :  { %1345 = vst [vmem:[%s2060_s4 + $0xf0] sm:$0xff] %v1278_v53  }
 0x13f   :  { %v775_v61 = vadd.f32 %v774_v56, %v1719_v55  ;;  %v907_v47 = vadd.f32 %v906_v51, %v844_v50 }
 0x141   :  { %v776_v54 = vadd.f32 %v775_v61, %v1730_v62  ;;  %v908_v58 = vadd.f32 %v907_v47, %v845_v29  ;;  %v849_v62 = vmul.f32 %v1772_v17, %v1772_v17 }
 0x143   :  { %v777_v55 = vadd.f32 %v776_v54, %v1742_v3  ;;  %v909_v59 = vadd.f32 %v908_v58, %v846_v44  ;;  %v1975_v9 = vpop.f32.mrf.mxu3 }
 0x145   :  { %v910_v10 = vadd.f32 %v909_v59, %v847_v52  ;;  %v778_v11 = vadd.f32 %v777_v55, %v1760_v12 }
 0x147   :  { %v779_v20 = vadd.f32 %v778_v11, %v1772_v17  ;;  %v911_v21 = vadd.f32 %v910_v10, %v848_v6 }
 0x149   :  { %v780_v3 = vadd.f32 %v779_v20, %v1790_v27  ;;  %v912_v0 = vadd.f32 %v911_v21, %v849_v62 }
 0x14b   :  { %v781_v36 = vadd.f32 %v780_v3, %v1802_v32  ;;  %v913_v12 = vadd.f32 %v912_v0, %v850_v57  ;;  %v610_v27 = vpop.f32.mrf.mxu3  ;;  %v854_v32 = vmul.f32 %v1852_v5, %v1852_v5 }
 0x14c   :  { %v1283_v30 = vpack.c.bf16 %v610_v27, %v1975_v9 }
 0x14d   :  { %v782_v17 = vadd.f32 %v781_v36, %v1822_v60  ;;  %v914_v2 = vadd.f32 %v913_v12, %v851_v16  ;;  %v869_v16 = vmul.f32 %v1918_v24, %v1918_v24 }
 0x14e   :  { %1346 = vst [vmem:[%s2060_s4 + $0xf8] sm:$0xff] %v1283_v30   ;;  %v873_v30 = vmul.f32 %v610_v27, %v610_v27 }
 0x14f   :  { %v783_v8 = vadd.f32 %v782_v17, %v1834_v34  ;;  %v915_v39 = vadd.f32 %v914_v2, %v852_v23  ;;  %v855_v34 = vmul.f32 %v1874_v37, %v1874_v37  ;;  %v870_v23 = vmul.f32 %v1942_v22, %v1942_v22 }
 0x150   :  { %v871_v2 = vmul.f32 %v1956_v31, %v1956_v31 }
 0x151   :  { %v916_v15 = vadd.f32 %v915_v39, %v853_v18  ;;  %v784_v26 = vadd.f32 %v783_v8, %v1852_v5  ;;  %v857_v5 = vmul.f32 %v1916_v1, %v1916_v1  ;;  %v872_v18 = vmul.f32 %v1975_v9, %v1975_v9 }
 0x153   :  { %v917_v60 = vadd.f32 %v916_v15, %v854_v32  ;;  %v785_v40 = vadd.f32 %v784_v26, %v1874_v37  ;;  %v859_v37 = vmul.f32 %v1744_v4, %v1744_v4 }
 0x155   :  { %v918_v7 = vadd.f32 %v917_v60, %v855_v34  ;;  %v786_v43 = vadd.f32 %v785_v40, %v1900_v14  ;;  %v860_v14 = vmul.f32 %v1762_v13, %v1762_v13 }
 0x157   :  { %v919_v41 = vadd.f32 %v918_v7, %v856_v45  ;;  %v787_v46 = vadd.f32 %v786_v43, %v1916_v1  ;;  %v861_v1 = vmul.f32 %v1774_v19, %v1774_v19 }
 0x159   :  { %v788_v50 = vadd.f32 %v787_v46, %v1732_v63  ;;  %v920_v56 = vadd.f32 %v919_v41, %v857_v5  ;;  %v862_v63 = vmul.f32 %v1792_v28, %v1792_v28 }
 0x15b   :  { %v789_v51 = vadd.f32 %v788_v50, %v1744_v4  ;;  %v921_v29 = vadd.f32 %v920_v56, %v858_v25  ;;  %v863_v4 = vmul.f32 %v1804_v33, %v1804_v33 }
 0x15d   :  { %v790_v61 = vadd.f32 %v789_v51, %v1762_v13  ;;  %v922_v47 = vadd.f32 %v921_v29, %v859_v37  ;;  %v864_v13 = vmul.f32 %v1824_v42, %v1824_v42 }
 0x15f   :  { %v791_v53 = vadd.f32 %v790_v61, %v1774_v19  ;;  %v923_v44 = vadd.f32 %v922_v47, %v860_v14  ;;  %v865_v19 = vmul.f32 %v1836_v35, %v1836_v35 }
 0x161   :  { %v792_v54 = vadd.f32 %v791_v53, %v1792_v28  ;;  %v924_v58 = vadd.f32 %v923_v44, %v861_v1  ;;  %v866_v28 = vmul.f32 %v1854_v48, %v1854_v48 }
 0x163   :  { %v793_v52 = vadd.f32 %v792_v54, %v1804_v33  ;;  %v925_v55 = vadd.f32 %v924_v58, %v862_v63  ;;  %v867_v33 = vmul.f32 %v1876_v38, %v1876_v38 }
 0x165   :  { %v926_v59 = vadd.f32 %v925_v55, %v863_v4  ;;  %v794_v6 = vadd.f32 %v793_v52, %v1824_v42  ;;  %v868_v42 = vmul.f32 %v1902_v49, %v1902_v49 }
 0x167   :  { %v795_v10 = vadd.f32 %v794_v6, %v1836_v35  ;;  %v927_v11 = vadd.f32 %v926_v59, %v864_v13 }
 0x169   :  { %v796_v62 = vadd.f32 %v795_v10, %v1854_v48  ;;  %v928_v20 = vadd.f32 %v927_v11, %v865_v19 }
 0x16b   :  { %v797_v21 = vadd.f32 %v796_v62, %v1876_v38  ;;  %v929_v57 = vadd.f32 %v928_v20, %v866_v28 }
 0x16d   :  { %v798_v3 = vadd.f32 %v797_v21, %v1902_v49  ;;  %v930_v0 = vadd.f32 %v929_v57, %v867_v33 }
 0x16f   :  { %v799_v35 = vadd.f32 %v798_v3, %v1918_v24  ;;  %v931_v36 = vadd.f32 %v930_v0, %v868_v42 }
 0x171   :  { %v932_v48 = vadd.f32 %v931_v36, %v869_v16  ;;  %v800_v12 = vadd.f32 %v799_v35, %v1942_v22 }
 0x173   :  { %v933_v38 = vadd.f32 %v932_v48, %v870_v23  ;;  %v801_v17 = vadd.f32 %v800_v12, %v1956_v31 }
 0x175   :  { %v934_v49 = vadd.f32 %v933_v38, %v871_v2  ;;  %v802_v8 = vadd.f32 %v801_v17, %v1975_v9 }
 0x177   :  { %v935_v24 = vadd.f32 %v934_v49, %v872_v18  ;;  %v803_v39 = vadd.f32 %v802_v8, %v610_v27 }
 0x179   :  { %v804_v15 = vrot.slane %v803_v39, 4  ;;  %v936_v26 = vadd.f32 %v935_v24, %v873_v30 }
 0x17b   :  { %v805_v32 = vadd.f32 %v804_v15, %v803_v39  ;;  %v937_v60 = vrot.slane %v936_v26, 4 }
 0x17d   :  { %v806_v22 = vrot.slane %v805_v32, 2  ;;  %v938_v40 = vadd.f32 %v937_v60, %v936_v26 }
 0x17f   :  { %v807_v34 = vadd.f32 %v806_v22, %v805_v32  ;;  %v939_v7 = vrot.slane %v938_v40, 2 }
 0x181   :  { %v808_v43 = vrot.slane %v807_v34, 1  ;;  %v940_v45 = vadd.f32 %v939_v7, %v938_v40 }
 0x183   :  { %v809_v31 = vadd.f32 %v808_v43, %v807_v34  ;;  %v941_v41 = vrot.slane %v940_v45, 1 }
 0x185   :  { %v942_v46 = vadd.f32 %v941_v41, %v940_v45  ;;  %943 = vst [vmem:[%s2061_s5] sm:$0xff] %v809_v31 }
 0x187   :  { %944 = vst [vmem:[%s2062_s6] sm:$0xff] %v942_v46 }

// kernel: bottleneck_forward.7
= control target key start
LH: loop header
LB: loop body
LE: loop exit
PB: predicated region body
PF: predicated region fallthrough
CT: control target
= control target key end

     0   :  { %vm614_vm0 = vcmask 1041408   ;;  %vm517_vm1 = vcmask 31744   ;;  %s2193_s0 = inlined_call_operand.vmem [shape: bf16[512,128], index: 0, kind: input, shape index: {}]   ;;  %s2194_s1 = inlined_call_operand.vmem [shape: f32[1,128], index: 1, kind: input, shape index: {}]   ;;  %s2195_s2 = inlined_call_operand.vmem [shape: f32[1,128], index: 2, kind: input, shape index: {}]   ;;  %s2196_s3 = inlined_call_operand.vmem [shape: bf16[512,4], index: 3, kind: input, shape index: {}]   ;;  %s2197_s4 = inlined_call_operand.vmem [shape: bf16[4,128], index: 4, kind: input, shape index: {}]   ;;  %s2198_s5 = inlined_call_operand.vmem [shape: f32[1,128], index: 5, kind: input, shape index: {}]   ;;  %s2199_s6 = inlined_call_operand.vmem [shape: f32[1,128], index: 6, kind: input, shape index: {}]   ;;  %s2200_s7 = inlined_call_operand.hbm [shape: f32[512,128], index: 7, kind: output, shape index: {}]  }
   0x1   :  { %v356_v0 = vld [vmem:[%s2197_s4] sm:$0x3] }
   0x2   :  { %v616_v1 = vsel %vm614_vm0, %v356_v0, 0  ;;  %v1293_v2 = vld [vmem:[%s2196_s3] sm:$0xff] }
   0x3   :  { %v1301_v3 = vld [vmem:[%s2196_s3 + $0x40] sm:$0xff]  ;;  %625 = vmatpush.bf16.msra.mxu0 %v616_v1  ;;  %1484 = vmatpush.bf16.msra.mxu1 %v616_v1 }
   0x4   :  { %v1309_v4 = vld [vmem:[%s2196_s3 + $0x80] sm:$0xff]  ;;  %1485 = vmatpush.bf16.msra.mxu2 %v616_v1  ;;  %1486 = vmatpush.bf16.msra.mxu3 %v616_v1 }
   0x5   :  { %v1317_v5 = vld [vmem:[%s2196_s3 + $0xc0] sm:$0xff] }
   0x6   :  { %1261 = vmatmul.msk.bf16.vlgmr.msra.gmra.mxu0 %vm517_vm1, %v1293_v2  ;;  %1269 = vmatmul.msk.bf16.vlgmr.msra.gmra.mxu1 %vm517_vm1, %v1301_v3 }
   0x7   :  { %12 = vsyncpa [#allocation3], 0  ;;  %1277 = vmatmul.msk.bf16.vlgmr.msra.gmra.mxu2 %vm517_vm1, %v1309_v4  ;;  %1285 = vmatmul.msk.bf16.vlgmr.msra.gmra.mxu3 %vm517_vm1, %v1317_v5  ;;  %v1294_v6 = vld [vmem:[%s2196_s3 + $0x8] sm:$0xff]  ;;  %v1295_v10 = vld [vmem:[%s2196_s3 + $0x10] sm:$0xff]  ;;  %s1121_s22 = sshll.u32 %s2200_s7, 4  ;;  %s1525_s23 = smov 128   ;;  %s1122_s22 = int_to_ptr.hbm [resolvable:$true] %s1121_s22 }
   0x8   :  { %v1302_v7 = vld [vmem:[%s2196_s3 + $0x48] sm:$0xff]  ;;  %v1303_v11 = vld [vmem:[%s2196_s3 + $0x50] sm:$0xff]  ;;  %v1296_v14 = vld [vmem:[%s2196_s3 + $0x18] sm:$0xff] }
   0x9   :  { %v1310_v8 = vld [vmem:[%s2196_s3 + $0x88] sm:$0xff]  ;;  %v1311_v12 = vld [vmem:[%s2196_s3 + $0x90] sm:$0xff]  ;;  %v1304_v15 = vld [vmem:[%s2196_s3 + $0x58] sm:$0xff] }
   0xa   :  { %v1318_v9 = vld [vmem:[%s2196_s3 + $0xc8] sm:$0xff]  ;;  %v1319_v13 = vld [vmem:[%s2196_s3 + $0xd0] sm:$0xff]  ;;  %v1312_v16 = vld [vmem:[%s2196_s3 + $0x98] sm:$0xff] }
   0xb   :  { %v1320_v17 = vld [vmem:[%s2196_s3 + $0xd8] sm:$0xff]  ;;  %v1297_v18 = vld [vmem:[%s2196_s3 + $0x20] sm:$0xff]  ;;  %v1298_v22 = vld [vmem:[%s2196_s3 + $0x28] sm:$0xff] }
   0xc   :  { %v1305_v19 = vld [vmem:[%s2196_s3 + $0x60] sm:$0xff]  ;;  %v1306_v23 = vld [vmem:[%s2196_s3 + $0x68] sm:$0xff]  ;;  %v1299_v26 = vld [vmem:[%s2196_s3 + $0x30] sm:$0xff] }
   0xd   :  { %v1313_v20 = vld [vmem:[%s2196_s3 + $0xa0] sm:$0xff]  ;;  %v1314_v24 = vld [vmem:[%s2196_s3 + $0xa8] sm:$0xff]  ;;  %v1307_v27 = vld [vmem:[%s2196_s3 + $0x70] sm:$0xff] }
   0xe   :  { %v1321_v21 = vld [vmem:[%s2196_s3 + $0xe0] sm:$0xff]  ;;  %v1322_v25 = vld [vmem:[%s2196_s3 + $0xe8] sm:$0xff]  ;;  %v1315_v28 = vld [vmem:[%s2196_s3 + $0xb0] sm:$0xff] }
   0xf   :  { %v1323_v29 = vld [vmem:[%s2196_s3 + $0xf0] sm:$0xff]  ;;  %v1300_v30 = vld [vmem:[%s2196_s3 + $0x38] sm:$0xff]  ;;  %v1326_v34 = vld [vmem:[%s2193_s0] sm:$0xff]  }
  0x10   :  { %v1308_v31 = vld [vmem:[%s2196_s3 + $0x78] sm:$0xff]  ;;  %v1460_v35 = vld [vmem:[%s2193_s0 + $0x40] sm:$0xff]   ;;  %v1327_v36 = vunpack.c.l.bf16 %v1326_v34  ;;  %v1328_v50 = vunpack.c.h.bf16 %v1326_v34  ;;  %v1745_v2 = vld [vmem:[%s2193_s0 + $0x8] sm:$0xff]  }
  0x11   :  { %v1316_v32 = vld [vmem:[%s2196_s3 + $0xb8] sm:$0xff]  ;;  %v1707_v37 = vld [vmem:[%s2194_s1] ss:$0 sm:$0xff]  ;;  %v1359_v38 = vunpack.c.l.bf16 %v1460_v35  ;;  %v1360_v51 = vunpack.c.h.bf16 %v1460_v35  ;;  %v1750_v3 = vld [vmem:[%s2193_s0 + $0x48] sm:$0xff]  }
  0x12   :  { %v1324_v33 = vld [vmem:[%s2196_s3 + $0xf8] sm:$0xff]  ;;  %v1468_v39 = vld [vmem:[%s2193_s0 + $0x80] sm:$0xff]   ;;  %v160_v41 = vmul.f32 %v1707_v37, %v1327_v36  ;;  %v161_v60 = vmul.f32 %v1707_v37, %v1328_v50  ;;  %s1526_s3 = smov 8  }
  0x13   :  { %v1476_v40 = vld [vmem:[%s2193_s0 + $0xc0] sm:$0xff]   ;;  %v176_v44 = vmul.f32 %v1707_v37, %v1359_v38  ;;  %v1391_v46 = vunpack.c.l.bf16 %v1468_v39  ;;  %v177_v61 = vmul.f32 %v1707_v37, %v1360_v51  ;;  %v1392_v0 = vunpack.c.h.bf16 %v1468_v39 }
  0x14   :  { %v1719_v42 = vld [vmem:[%s2195_s2] ss:$0 sm:$0xff]  ;;  %v1423_v47 = vunpack.c.l.bf16 %v1476_v40  ;;  %v1424_v1 = vunpack.c.h.bf16 %v1476_v40 }
  0x15   :  { %v1724_v43 = vld [vmem:[%s2198_s5] ss:$0 sm:$0xff]  ;;  %v228_v52 = vadd.f32 %v1719_v42, %v160_v41  ;;  %v244_v54 = vadd.f32 %v1719_v42, %v176_v44  ;;  %v192_v58 = vmul.f32 %v1707_v37, %v1391_v46 }
  0x16   :  { %1262 = vmatmul.msk.bf16.gmra.mxu0 %vm517_vm1, %v1294_v6  ;;  %1270 = vmatmul.msk.bf16.gmra.mxu1 %vm517_vm1, %v1302_v7  ;;  %v1730_v45 = vld [vmem:[%s2199_s6] ss:$0 sm:$0xff]  ;;  %v208_v59 = vmul.f32 %v1707_v37, %v1423_v47 }
  0x17   :  { %1278 = vmatmul.msk.bf16.gmra.mxu2 %vm517_vm1, %v1310_v8  ;;  %1286 = vmatmul.msk.bf16.gmra.mxu3 %vm517_vm1, %v1318_v9  ;;  %v260_v6 = vadd.f32 %v1719_v42, %v192_v58 }
  0x18   :  { %v276_v8 = vadd.f32 %v1719_v42, %v208_v59 }
  0x26   :  { %1263 = vmatmul.msk.bf16.gmra.mxu0 %vm517_vm1, %v1295_v10  ;;  %1271 = vmatmul.msk.bf16.gmra.mxu1 %vm517_vm1, %v1303_v11 }
  0x27   :  { %1279 = vmatmul.msk.bf16.gmra.mxu2 %vm517_vm1, %v1311_v12  ;;  %1287 = vmatmul.msk.bf16.gmra.mxu3 %vm517_vm1, %v1319_v13  ;;  %v229_v12 = vadd.f32 %v1719_v42, %v161_v60 }
  0x36   :  { %1264 = vmatmul.msk.bf16.gmra.mxu0 %vm517_vm1, %v1296_v14  ;;  %1272 = vmatmul.msk.bf16.gmra.mxu1 %vm517_vm1, %v1304_v15  ;;  %v245_v14 = vadd.f32 %v1719_v42, %v177_v61 }
  0x37   :  { %1280 = vmatmul.msk.bf16.gmra.mxu2 %vm517_vm1, %v1312_v16  ;;  %1288 = vmatmul.msk.bf16.gmra.mxu3 %vm517_vm1, %v1320_v17 }
  0x46   :  { %1265 = vmatmul.msk.bf16.gmra.mxu0 %vm517_vm1, %v1297_v18  ;;  %1273 = vmatmul.msk.bf16.gmra.mxu1 %vm517_vm1, %v1305_v19  ;;  %v1331_v18 = vunpack.c.l.bf16 %v1745_v2  ;;  %v1363_v19 = vunpack.c.l.bf16 %v1750_v3 }
  0x47   :  { %1281 = vmatmul.msk.bf16.gmra.mxu2 %vm517_vm1, %v1313_v20  ;;  %1289 = vmatmul.msk.bf16.gmra.mxu3 %vm517_vm1, %v1321_v21 }
  0x56   :  { %1266 = vmatmul.msk.bf16.gmra.mxu0 %vm517_vm1, %v1298_v22  ;;  %1274 = vmatmul.msk.bf16.gmra.mxu1 %vm517_vm1, %v1306_v23  ;;  %v193_v22 = vmul.f32 %v1707_v37, %v1392_v0  ;;  %v209_v23 = vmul.f32 %v1707_v37, %v1424_v1 }
  0x57   :  { %1282 = vmatmul.msk.bf16.gmra.mxu2 %vm517_vm1, %v1314_v24  ;;  %1290 = vmatmul.msk.bf16.gmra.mxu3 %vm517_vm1, %v1322_v25 }
  0x58   :  { %v261_v36 = vadd.f32 %v1719_v42, %v193_v22  ;;  %v277_v38 = vadd.f32 %v1719_v42, %v209_v23 }
  0x66   :  { %1267 = vmatmul.msk.bf16.gmra.mxu0 %vm517_vm1, %v1299_v26  ;;  %1275 = vmatmul.msk.bf16.gmra.mxu1 %vm517_vm1, %v1307_v27 }
  0x67   :  { %1283 = vmatmul.msk.bf16.gmra.mxu2 %vm517_vm1, %v1315_v28  ;;  %1291 = vmatmul.msk.bf16.gmra.mxu3 %vm517_vm1, %v1323_v29  ;;  %v1771_v28 = vld [vmem:[%s2193_s0 + $0x88] sm:$0xff]  }
  0x68   :  { %v1776_v29 = vld [vmem:[%s2193_s0 + $0xc8] sm:$0xff]   ;;  %v1395_v46 = vunpack.c.l.bf16 %v1771_v28 }
  0x69   :  { %v1427_v47 = vunpack.c.l.bf16 %v1776_v29 }
  0x76   :  { %1268 = vmatmul.msk.bf16.gmra.mxu0 %vm517_vm1, %v1300_v30  ;;  %1276 = vmatmul.msk.bf16.gmra.mxu1 %vm517_vm1, %v1308_v31 }
  0x77   :  { %1284 = vmatmul.msk.bf16.gmra.mxu2 %vm517_vm1, %v1316_v32  ;;  %1292 = vmatmul.msk.bf16.gmra.mxu3 %vm517_vm1, %v1324_v33  ;;  %v162_v32 = vmul.f32 %v1707_v37, %v1331_v18  ;;  %v178_v33 = vmul.f32 %v1707_v37, %v1363_v19 }
  0x83   :  { %v627_v48 = vpop.f32.mrf.mxu0  ;;  %v667_v49 = vpop.f32.mrf.mxu1 }
  0x84   :  { %v791_v53 = vmul.f32 %v1724_v43, %v627_v48  ;;  %v807_v55 = vmul.f32 %v1724_v43, %v667_v49 }
  0x86   :  { %v859_v56 = vadd.f32 %v1730_v45, %v791_v53  ;;  %v875_v57 = vadd.f32 %v1730_v45, %v807_v55  ;;  %v1364_v53 = vunpack.c.h.bf16 %v1750_v3 }
  0x88   :  { %v923_v62 = vadd.f32 %v859_v56, %v228_v52  ;;  %v939_v63 = vadd.f32 %v875_v57, %v244_v54  ;;  %v1332_v52 = vunpack.c.h.bf16 %v1745_v2  ;;  %v230_v54 = vadd.f32 %v1719_v42, %v162_v32 }
  0x89   :  { %v246_v56 = vadd.f32 %v1719_v42, %v178_v33 }
  0x8a   :  { %v987_v4 = vmax.f32 %v923_v62, 0.0  ;;  %v1003_v5 = vmax.f32 %v939_v63, 0.0  ;;  %v707_v7 = vpop.f32.mrf.mxu2  ;;  %v747_v9 = vpop.f32.mrf.mxu3  ;;  %v194_v62 = vmul.f32 %v1707_v37, %v1395_v46  ;;  %v210_v63 = vmul.f32 %v1707_v37, %v1427_v47 }
  0x8b   :  { %v823_v10 = vmul.f32 %v1724_v43, %v707_v7  ;;  %v839_v11 = vmul.f32 %v1724_v43, %v747_v9  ;;  %v629_v13 = vpop.f32.mrf.mxu0  ;;  %v669_v15 = vpop.f32.mrf.mxu1  ;;  %v1808_v7 = vld [vmem:[%s2193_s0 + $0x50] sm:$0xff]  }
  0x8c   :  { %1051 = vst [vmem:[#allocation2] sm:$0xff] %v987_v4  ;;  %v792_v16 = vmul.f32 %v1724_v43, %v629_v13  ;;  %v808_v17 = vmul.f32 %v1724_v43, %v669_v15  ;;  %v163_v4 = vmul.f32 %v1707_v37, %v1332_v52  ;;  %v1367_v23 = vunpack.c.l.bf16 %v1808_v7 }
  0x8d   :  { %1067 = vst [vmem:[#allocation2 + $0x80] sm:$0xff] %v1003_v5  ;;  %v891_v20 = vadd.f32 %v1730_v45, %v823_v10  ;;  %v907_v21 = vadd.f32 %v1730_v45, %v839_v11  ;;  %v179_v5 = vmul.f32 %v1707_v37, %v1364_v53  ;;  %v1396_v10 = vunpack.c.h.bf16 %v1771_v28 }
  0x8e   :  { %v860_v24 = vadd.f32 %v1730_v45, %v792_v16  ;;  %v876_v25 = vadd.f32 %v1730_v45, %v808_v17  ;;  %v1428_v11 = vunpack.c.h.bf16 %v1776_v29  ;;  %v278_v16 = vadd.f32 %v1719_v42, %v210_v63 }
  0x8f   :  { %v955_v26 = vadd.f32 %v891_v20, %v260_v6  ;;  %v971_v27 = vadd.f32 %v907_v21, %v276_v8  ;;  %v1803_v6 = vld [vmem:[%s2193_s0 + $0x10] sm:$0xff]  }
  0x90   :  { %v924_v30 = vadd.f32 %v860_v24, %v229_v12  ;;  %v940_v31 = vadd.f32 %v876_v25, %v245_v14  ;;  %v262_v14 = vadd.f32 %v1719_v42, %v194_v62  ;;  %v1335_v22 = vunpack.c.l.bf16 %v1803_v6 }
  0x91   :  { %v1019_v34 = vmax.f32 %v955_v26, 0.0  ;;  %v1035_v35 = vmax.f32 %v971_v27, 0.0  ;;  %v231_v24 = vadd.f32 %v1719_v42, %v163_v4  ;;  %v247_v26 = vadd.f32 %v1719_v42, %v179_v5 }
  0x92   :  { %v988_v39 = vmax.f32 %v924_v30, 0.0  ;;  %v1004_v40 = vmax.f32 %v940_v31, 0.0  ;;  %v709_v41 = vpop.f32.mrf.mxu2  ;;  %v749_v44 = vpop.f32.mrf.mxu3  ;;  %v195_v30 = vmul.f32 %v1707_v37, %v1396_v10  ;;  %v211_v31 = vmul.f32 %v1707_v37, %v1428_v11 }
  0x93   :  { %1083 = vst [vmem:[#allocation2 + $0x100] sm:$0xff] %v1019_v34  ;;  %v824_v48 = vmul.f32 %v1724_v43, %v709_v41  ;;  %v840_v49 = vmul.f32 %v1724_v43, %v749_v44  ;;  %v632_v50 = vpop.f32.mrf.mxu0  ;;  %v672_v51 = vpop.f32.mrf.mxu1 }
  0x94   :  { %1099 = vst [vmem:[#allocation2 + $0x180] sm:$0xff] %v1035_v35  ;;  %v793_v55 = vmul.f32 %v1724_v43, %v632_v50  ;;  %v809_v57 = vmul.f32 %v1724_v43, %v672_v51 }
  0x95   :  { %1052 = vst [vmem:[#allocation2 + $0x8] sm:$0xff] %v988_v39  ;;  %v892_v58 = vadd.f32 %v1730_v45, %v824_v48  ;;  %v908_v59 = vadd.f32 %v1730_v45, %v840_v49  ;;  %v1833_v39 = vld [vmem:[%s2193_s0 + $0x90] sm:$0xff]   ;;  %v263_v48 = vadd.f32 %v1719_v42, %v195_v30  ;;  %v279_v49 = vadd.f32 %v1719_v42, %v211_v31 }
  0x96   :  { %1068 = vst [vmem:[#allocation2 + $0x88] sm:$0xff] %v1004_v40  ;;  %v861_v60 = vadd.f32 %v1730_v45, %v793_v55  ;;  %v877_v61 = vadd.f32 %v1730_v45, %v809_v57  ;;  %v1838_v40 = vld [vmem:[%s2193_s0 + $0xd0] sm:$0xff]  }
  0x97   :  { %v956_v0 = vadd.f32 %v892_v58, %v261_v36  ;;  %v972_v1 = vadd.f32 %v908_v59, %v277_v38  ;;  %v164_v36 = vmul.f32 %v1707_v37, %v1335_v22  ;;  %v180_v38 = vmul.f32 %v1707_v37, %v1367_v23 }
  0x98   :  { %v925_v2 = vadd.f32 %v861_v60, %v230_v54  ;;  %v941_v3 = vadd.f32 %v877_v61, %v246_v56  ;;  %v1399_v54 = vunpack.c.l.bf16 %v1833_v39  ;;  %v1431_v55 = vunpack.c.l.bf16 %v1838_v40 }
  0x99   :  { %v1020_v8 = vmax.f32 %v956_v0, 0.0  ;;  %v1036_v9 = vmax.f32 %v972_v1, 0.0  ;;  %v232_v58 = vadd.f32 %v1719_v42, %v164_v36  ;;  %v248_v60 = vadd.f32 %v1719_v42, %v180_v38 }
  0x9a   :  { %v989_v12 = vmax.f32 %v925_v2, 0.0  ;;  %v1005_v13 = vmax.f32 %v941_v3, 0.0  ;;  %v712_v15 = vpop.f32.mrf.mxu2  ;;  %v752_v17 = vpop.f32.mrf.mxu3  ;;  %v1336_v0 = vunpack.c.h.bf16 %v1803_v6  ;;  %v1368_v1 = vunpack.c.h.bf16 %v1808_v7 }
  0x9b   :  { %1084 = vst [vmem:[#allocation2 + $0x108] sm:$0xff] %v1020_v8  ;;  %v825_v18 = vmul.f32 %v1724_v43, %v712_v15  ;;  %v841_v19 = vmul.f32 %v1724_v43, %v752_v17  ;;  %v634_v20 = vpop.f32.mrf.mxu0  ;;  %v674_v21 = vpop.f32.mrf.mxu1  ;;  %v196_v8 = vmul.f32 %v1707_v37, %v1399_v54  ;;  %v1868_v15 = vld [vmem:[%s2193_s0 + $0x58] sm:$0xff]  }
  0x9c   :  { %1100 = vst [vmem:[#allocation2 + $0x188] sm:$0xff] %v1036_v9  ;;  %v794_v25 = vmul.f32 %v1724_v43, %v634_v20  ;;  %v810_v27 = vmul.f32 %v1724_v43, %v674_v21  ;;  %v212_v9 = vmul.f32 %v1707_v37, %v1431_v55  ;;  %v165_v7 = vmul.f32 %v1707_v37, %v1336_v0 }
  0x9d   :  { %1053 = vst [vmem:[#allocation2 + $0x10] sm:$0xff] %v989_v12  ;;  %v893_v28 = vadd.f32 %v1730_v45, %v825_v18  ;;  %v909_v29 = vadd.f32 %v1730_v45, %v841_v19  ;;  %v1400_v18 = vunpack.c.h.bf16 %v1833_v39  ;;  %v1432_v19 = vunpack.c.h.bf16 %v1838_v40 }
  0x9e   :  { %1069 = vst [vmem:[#allocation2 + $0x90] sm:$0xff] %v1005_v13  ;;  %v862_v32 = vadd.f32 %v1730_v45, %v794_v25  ;;  %v878_v33 = vadd.f32 %v1730_v45, %v810_v27  ;;  %v181_v13 = vmul.f32 %v1707_v37, %v1368_v1  ;;  %v264_v22 = vadd.f32 %v1719_v42, %v196_v8 }
  0x9f   :  { %v957_v34 = vadd.f32 %v893_v28, %v262_v14  ;;  %v973_v35 = vadd.f32 %v909_v29, %v278_v16  ;;  %v1863_v14 = vld [vmem:[%s2193_s0 + $0x18] sm:$0xff]   ;;  %v1371_v31 = vunpack.c.l.bf16 %v1868_v15  ;;  %v197_v39 = vmul.f32 %v1707_v37, %v1400_v18 }
  0xa0   :  { %v926_v41 = vadd.f32 %v862_v32, %v231_v24  ;;  %v942_v44 = vadd.f32 %v878_v33, %v247_v26  ;;  %v280_v24 = vadd.f32 %v1719_v42, %v212_v9  ;;  %v1339_v30 = vunpack.c.l.bf16 %v1863_v14 }
  0xa1   :  { %v1021_v46 = vmax.f32 %v957_v34, 0.0  ;;  %v1037_v47 = vmax.f32 %v973_v35, 0.0  ;;  %v233_v32 = vadd.f32 %v1719_v42, %v165_v7  ;;  %v249_v34 = vadd.f32 %v1719_v42, %v181_v13 }
  0xa2   :  { %v990_v50 = vmax.f32 %v926_v41, 0.0  ;;  %v1006_v51 = vmax.f32 %v942_v44, 0.0  ;;  %v714_v52 = vpop.f32.mrf.mxu2  ;;  %v754_v53 = vpop.f32.mrf.mxu3  ;;  %v213_v40 = vmul.f32 %v1707_v37, %v1432_v19 }
  0xa3   :  { %1085 = vst [vmem:[#allocation2 + $0x110] sm:$0xff] %v1021_v46  ;;  %v826_v56 = vmul.f32 %v1724_v43, %v714_v52  ;;  %v842_v57 = vmul.f32 %v1724_v43, %v754_v53  ;;  %v637_v59 = vpop.f32.mrf.mxu0  ;;  %v677_v61 = vpop.f32.mrf.mxu1 }
  0xa4   :  { %1101 = vst [vmem:[#allocation2 + $0x190] sm:$0xff] %v1037_v47  ;;  %v795_v62 = vmul.f32 %v1724_v43, %v637_v59  ;;  %v811_v63 = vmul.f32 %v1724_v43, %v677_v61 }
  0xa5   :  { %1054 = vst [vmem:[#allocation2 + $0x18] sm:$0xff] %v990_v50  ;;  %v894_v2 = vadd.f32 %v1730_v45, %v826_v56  ;;  %v910_v3 = vadd.f32 %v1730_v45, %v842_v57  ;;  %v1893_v50 = vld [vmem:[%s2193_s0 + $0x98] sm:$0xff]   ;;  %v265_v56 = vadd.f32 %v1719_v42, %v197_v39  ;;  %v281_v57 = vadd.f32 %v1719_v42, %v213_v40 }
  0xa6   :  { %1070 = vst [vmem:[#allocation2 + $0x98] sm:$0xff] %v1006_v51  ;;  %v863_v4 = vadd.f32 %v1730_v45, %v795_v62  ;;  %v879_v5 = vadd.f32 %v1730_v45, %v811_v63  ;;  %v1898_v51 = vld [vmem:[%s2193_s0 + $0xd8] sm:$0xff]   ;;  %v1403_v62 = vunpack.c.l.bf16 %v1893_v50 }
  0xa7   :  { %v958_v10 = vadd.f32 %v894_v2, %v263_v48  ;;  %v974_v11 = vadd.f32 %v910_v3, %v279_v49  ;;  %v166_v48 = vmul.f32 %v1707_v37, %v1339_v30  ;;  %v182_v49 = vmul.f32 %v1707_v37, %v1371_v31 }
  0xa8   :  { %v927_v12 = vadd.f32 %v863_v4, %v232_v58  ;;  %v943_v6 = vadd.f32 %v879_v5, %v248_v60  ;;  %v1435_v63 = vunpack.c.l.bf16 %v1898_v51 }
  0xa9   :  { %v1022_v16 = vmax.f32 %v958_v10, 0.0  ;;  %v1038_v17 = vmax.f32 %v974_v11, 0.0  ;;  %v234_v2 = vadd.f32 %v1719_v42, %v166_v48  ;;  %v250_v4 = vadd.f32 %v1719_v42, %v182_v49 }
  0xaa   :  { %v991_v20 = vmax.f32 %v927_v12, 0.0  ;;  %v1007_v21 = vmax.f32 %v943_v6, 0.0  ;;  %v717_v23 = vpop.f32.mrf.mxu2  ;;  %v757_v25 = vpop.f32.mrf.mxu3  ;;  %v1340_v10 = vunpack.c.h.bf16 %v1863_v14  ;;  %v1372_v11 = vunpack.c.h.bf16 %v1868_v15 }
  0xab   :  { %1086 = vst [vmem:[#allocation2 + $0x118] sm:$0xff] %v1022_v16  ;;  %v827_v26 = vmul.f32 %v1724_v43, %v717_v23  ;;  %v843_v27 = vmul.f32 %v1724_v43, %v757_v25  ;;  %v639_v28 = vpop.f32.mrf.mxu0  ;;  %v679_v29 = vpop.f32.mrf.mxu1  ;;  %v198_v16 = vmul.f32 %v1707_v37, %v1403_v62  ;;  %v1928_v23 = vld [vmem:[%s2193_s0 + $0x60] sm:$0xff]  }
  0xac   :  { %1102 = vst [vmem:[#allocation2 + $0x198] sm:$0xff] %v1038_v17  ;;  %v796_v33 = vmul.f32 %v1724_v43, %v639_v28  ;;  %v812_v35 = vmul.f32 %v1724_v43, %v679_v29  ;;  %v214_v17 = vmul.f32 %v1707_v37, %v1435_v63  ;;  %v167_v15 = vmul.f32 %v1707_v37, %v1340_v10 }
  0xad   :  { %1055 = vst [vmem:[#allocation2 + $0x20] sm:$0xff] %v991_v20  ;;  %v895_v36 = vadd.f32 %v1730_v45, %v827_v26  ;;  %v911_v38 = vadd.f32 %v1730_v45, %v843_v27  ;;  %v1404_v26 = vunpack.c.h.bf16 %v1893_v50  ;;  %v1436_v27 = vunpack.c.h.bf16 %v1898_v51 }
  0xae   :  { %1071 = vst [vmem:[#allocation2 + $0xa0] sm:$0xff] %v1007_v21  ;;  %v864_v41 = vadd.f32 %v1730_v45, %v796_v33  ;;  %v880_v44 = vadd.f32 %v1730_v45, %v812_v35  ;;  %v183_v21 = vmul.f32 %v1707_v37, %v1372_v11  ;;  %v266_v30 = vadd.f32 %v1719_v42, %v198_v16 }
  0xaf   :  { %v959_v46 = vadd.f32 %v895_v36, %v264_v22  ;;  %v975_v47 = vadd.f32 %v911_v38, %v280_v24  ;;  %v1923_v22 = vld [vmem:[%s2193_s0 + $0x20] sm:$0xff]   ;;  %v1375_v40 = vunpack.c.l.bf16 %v1928_v23  ;;  %v199_v50 = vmul.f32 %v1707_v37, %v1404_v26 }
  0xb0   :  { %v928_v52 = vadd.f32 %v864_v41, %v233_v32  ;;  %v944_v53 = vadd.f32 %v880_v44, %v249_v34  ;;  %v282_v32 = vadd.f32 %v1719_v42, %v214_v17  ;;  %v1343_v39 = vunpack.c.l.bf16 %v1923_v22 }
  0xb1   :  { %v1023_v54 = vmax.f32 %v959_v46, 0.0  ;;  %v1039_v55 = vmax.f32 %v975_v47, 0.0  ;;  %v235_v41 = vadd.f32 %v1719_v42, %v167_v15  ;;  %v251_v46 = vadd.f32 %v1719_v42, %v183_v21 }
  0xb2   :  { %v992_v58 = vmax.f32 %v928_v52, 0.0  ;;  %v1008_v59 = vmax.f32 %v944_v53, 0.0  ;;  %v719_v60 = vpop.f32.mrf.mxu2  ;;  %v759_v61 = vpop.f32.mrf.mxu3  ;;  %v215_v51 = vmul.f32 %v1707_v37, %v1436_v27 }
  0xb3   :  { %1087 = vst [vmem:[#allocation2 + $0x120] sm:$0xff] %v1023_v54  ;;  %v828_v0 = vmul.f32 %v1724_v43, %v719_v60  ;;  %v844_v1 = vmul.f32 %v1724_v43, %v759_v61  ;;  %v642_v3 = vpop.f32.mrf.mxu0  ;;  %v682_v5 = vpop.f32.mrf.mxu1 }
  0xb4   :  { %1103 = vst [vmem:[#allocation2 + $0x1a0] sm:$0xff] %v1039_v55  ;;  %v797_v8 = vmul.f32 %v1724_v43, %v642_v3  ;;  %v813_v9 = vmul.f32 %v1724_v43, %v682_v5 }
  0xb5   :  { %1056 = vst [vmem:[#allocation2 + $0x28] sm:$0xff] %v992_v58  ;;  %v896_v12 = vadd.f32 %v1730_v45, %v828_v0  ;;  %v912_v6 = vadd.f32 %v1730_v45, %v844_v1  ;;  %v1953_v58 = vld [vmem:[%s2193_s0 + $0xa0] sm:$0xff]   ;;  %v267_v0 = vadd.f32 %v1719_v42, %v199_v50  ;;  %v283_v1 = vadd.f32 %v1719_v42, %v215_v51 }
  0xb6   :  { %1072 = vst [vmem:[#allocation2 + $0xa8] sm:$0xff] %v1008_v59  ;;  %v865_v7 = vadd.f32 %v1730_v45, %v797_v8  ;;  %v881_v13 = vadd.f32 %v1730_v45, %v813_v9  ;;  %v1958_v59 = vld [vmem:[%s2193_s0 + $0xe0] sm:$0xff]   ;;  %v1407_v8 = vunpack.c.l.bf16 %v1953_v58 }
  0xb7   :  { %v960_v18 = vadd.f32 %v896_v12, %v265_v56  ;;  %v976_v19 = vadd.f32 %v912_v6, %v281_v57  ;;  %v168_v56 = vmul.f32 %v1707_v37, %v1343_v39  ;;  %v184_v57 = vmul.f32 %v1707_v37, %v1375_v40 }
  0xb8   :  { %v929_v20 = vadd.f32 %v865_v7, %v234_v2  ;;  %v945_v14 = vadd.f32 %v881_v13, %v250_v4  ;;  %v1439_v9 = vunpack.c.l.bf16 %v1958_v59 }
  0xb9   :  { %v1024_v24 = vmax.f32 %v960_v18, 0.0  ;;  %v1040_v25 = vmax.f32 %v976_v19, 0.0  ;;  %v236_v12 = vadd.f32 %v1719_v42, %v168_v56  ;;  %v252_v7 = vadd.f32 %v1719_v42, %v184_v57 }
  0xba   :  { %v993_v28 = vmax.f32 %v929_v20, 0.0  ;;  %v1009_v29 = vmax.f32 %v945_v14, 0.0  ;;  %v722_v31 = vpop.f32.mrf.mxu2  ;;  %v762_v33 = vpop.f32.mrf.mxu3  ;;  %v1344_v18 = vunpack.c.h.bf16 %v1923_v22  ;;  %v1376_v19 = vunpack.c.h.bf16 %v1928_v23 }
  0xbb   :  { %1088 = vst [vmem:[#allocation2 + $0x128] sm:$0xff] %v1024_v24  ;;  %v829_v34 = vmul.f32 %v1724_v43, %v722_v31  ;;  %v845_v35 = vmul.f32 %v1724_v43, %v762_v33  ;;  %v644_v36 = vpop.f32.mrf.mxu0  ;;  %v684_v38 = vpop.f32.mrf.mxu1  ;;  %v200_v24 = vmul.f32 %v1707_v37, %v1407_v8  ;;  %v1988_v31 = vld [vmem:[%s2193_s0 + $0x68] sm:$0xff]  }
  0xbc   :  { %1104 = vst [vmem:[#allocation2 + $0x1a8] sm:$0xff] %v1040_v25  ;;  %v798_v44 = vmul.f32 %v1724_v43, %v644_v36  ;;  %v814_v47 = vmul.f32 %v1724_v43, %v684_v38  ;;  %v216_v25 = vmul.f32 %v1707_v37, %v1439_v9  ;;  %v169_v23 = vmul.f32 %v1707_v37, %v1344_v18 }
  0xbd   :  { %1057 = vst [vmem:[#allocation2 + $0x30] sm:$0xff] %v993_v28  ;;  %v897_v48 = vadd.f32 %v1730_v45, %v829_v34  ;;  %v913_v49 = vadd.f32 %v1730_v45, %v845_v35  ;;  %v1408_v34 = vunpack.c.h.bf16 %v1953_v58  ;;  %v1440_v35 = vunpack.c.h.bf16 %v1958_v59 }
  0xbe   :  { %1073 = vst [vmem:[#allocation2 + $0xb0] sm:$0xff] %v1009_v29  ;;  %v866_v52 = vadd.f32 %v1730_v45, %v798_v44  ;;  %v882_v53 = vadd.f32 %v1730_v45, %v814_v47  ;;  %v185_v29 = vmul.f32 %v1707_v37, %v1376_v19  ;;  %v268_v39 = vadd.f32 %v1719_v42, %v200_v24 }
  0xbf   :  { %v961_v54 = vadd.f32 %v897_v48, %v266_v30  ;;  %v977_v55 = vadd.f32 %v913_v49, %v282_v32  ;;  %v1983_v30 = vld [vmem:[%s2193_s0 + $0x28] sm:$0xff]   ;;  %v1379_v51 = vunpack.c.l.bf16 %v1988_v31  ;;  %v201_v58 = vmul.f32 %v1707_v37, %v1408_v34 }
  0xc0   :  { %v930_v60 = vadd.f32 %v866_v52, %v235_v41  ;;  %v946_v61 = vadd.f32 %v882_v53, %v251_v46  ;;  %v284_v41 = vadd.f32 %v1719_v42, %v216_v25  ;;  %v1347_v50 = vunpack.c.l.bf16 %v1983_v30 }
  0xc1   :  { %v1025_v62 = vmax.f32 %v961_v54, 0.0  ;;  %v1041_v63 = vmax.f32 %v977_v55, 0.0  ;;  %v237_v52 = vadd.f32 %v1719_v42, %v169_v23  ;;  %v253_v54 = vadd.f32 %v1719_v42, %v185_v29 }
  0xc2   :  { %v994_v2 = vmax.f32 %v930_v60, 0.0  ;;  %v1010_v3 = vmax.f32 %v946_v61, 0.0  ;;  %v724_v4 = vpop.f32.mrf.mxu2  ;;  %v764_v5 = vpop.f32.mrf.mxu3  ;;  %v217_v59 = vmul.f32 %v1707_v37, %v1440_v35 }
  0xc3   :  { %1089 = vst [vmem:[#allocation2 + $0x130] sm:$0xff] %v1025_v62  ;;  %v830_v10 = vmul.f32 %v1724_v43, %v724_v4  ;;  %v846_v11 = vmul.f32 %v1724_v43, %v764_v5  ;;  %v647_v6 = vpop.f32.mrf.mxu0  ;;  %v687_v13 = vpop.f32.mrf.mxu1 }
  0xc4   :  { %1105 = vst [vmem:[#allocation2 + $0x1b0] sm:$0xff] %v1041_v63  ;;  %v799_v16 = vmul.f32 %v1724_v43, %v647_v6  ;;  %v815_v17 = vmul.f32 %v1724_v43, %v687_v13 }
  0xc5   :  { %1058 = vst [vmem:[#allocation2 + $0x38] sm:$0xff] %v994_v2  ;;  %v898_v20 = vadd.f32 %v1730_v45, %v830_v10  ;;  %v914_v14 = vadd.f32 %v1730_v45, %v846_v11  ;;  %v2013_v2 = vld [vmem:[%s2193_s0 + $0xa8] sm:$0xff]   ;;  %v269_v10 = vadd.f32 %v1719_v42, %v201_v58  ;;  %v285_v11 = vadd.f32 %v1719_v42, %v217_v59 }
  0xc6   :  { %1074 = vst [vmem:[#allocation2 + $0xb8] sm:$0xff] %v1010_v3  ;;  %v867_v15 = vadd.f32 %v1730_v45, %v799_v16  ;;  %v883_v21 = vadd.f32 %v1730_v45, %v815_v17  ;;  %v2018_v3 = vld [vmem:[%s2193_s0 + $0xe8] sm:$0xff]   ;;  %v1411_v16 = vunpack.c.l.bf16 %v2013_v2 }
  0xc7   :  { %v962_v26 = vadd.f32 %v898_v20, %v267_v0  ;;  %v978_v27 = vadd.f32 %v914_v14, %v283_v1  ;;  %v170_v0 = vmul.f32 %v1707_v37, %v1347_v50  ;;  %v186_v1 = vmul.f32 %v1707_v37, %v1379_v51 }
  0xc8   :  { %v931_v28 = vadd.f32 %v867_v15, %v236_v12  ;;  %v947_v22 = vadd.f32 %v883_v21, %v252_v7  ;;  %v1443_v17 = vunpack.c.l.bf16 %v2018_v3 }
  0xc9   :  { %v1026_v32 = vmax.f32 %v962_v26, 0.0  ;;  %v1042_v33 = vmax.f32 %v978_v27, 0.0  ;;  %v238_v20 = vadd.f32 %v1719_v42, %v170_v0  ;;  %v254_v15 = vadd.f32 %v1719_v42, %v186_v1 }
  0xca   :  { %v995_v36 = vmax.f32 %v931_v28, 0.0  ;;  %v1011_v38 = vmax.f32 %v947_v22, 0.0  ;;  %v727_v40 = vpop.f32.mrf.mxu2  ;;  %v767_v44 = vpop.f32.mrf.mxu3  ;;  %v1348_v26 = vunpack.c.h.bf16 %v1983_v30  ;;  %v1380_v27 = vunpack.c.h.bf16 %v1988_v31 }
  0xcb   :  { %1090 = vst [vmem:[#allocation2 + $0x138] sm:$0xff] %v1026_v32  ;;  %v831_v46 = vmul.f32 %v1724_v43, %v727_v40  ;;  %v847_v47 = vmul.f32 %v1724_v43, %v767_v44  ;;  %v649_v48 = vpop.f32.mrf.mxu0  ;;  %v689_v49 = vpop.f32.mrf.mxu1  ;;  %v202_v32 = vmul.f32 %v1707_v37, %v1411_v16  ;;  %v2048_v40 = vld [vmem:[%s2193_s0 + $0x70] sm:$0xff]  }
  0xcc   :  { %1106 = vst [vmem:[#allocation2 + $0x1b8] sm:$0xff] %v1042_v33  ;;  %v800_v53 = vmul.f32 %v1724_v43, %v649_v48  ;;  %v816_v55 = vmul.f32 %v1724_v43, %v689_v49  ;;  %v218_v33 = vmul.f32 %v1707_v37, %v1443_v17  ;;  %v171_v31 = vmul.f32 %v1707_v37, %v1348_v26 }
  0xcd   :  { %1059 = vst [vmem:[#allocation2 + $0x40] sm:$0xff] %v995_v36  ;;  %v899_v56 = vadd.f32 %v1730_v45, %v831_v46  ;;  %v915_v57 = vadd.f32 %v1730_v45, %v847_v47  ;;  %v1412_v46 = vunpack.c.h.bf16 %v2013_v2  ;;  %v1444_v47 = vunpack.c.h.bf16 %v2018_v3 }
  0xce   :  { %1075 = vst [vmem:[#allocation2 + $0xc0] sm:$0xff] %v1011_v38  ;;  %v868_v60 = vadd.f32 %v1730_v45, %v800_v53  ;;  %v884_v61 = vadd.f32 %v1730_v45, %v816_v55  ;;  %v187_v38 = vmul.f32 %v1707_v37, %v1380_v27  ;;  %v270_v50 = vadd.f32 %v1719_v42, %v202_v32 }
  0xcf   :  { %v963_v62 = vadd.f32 %v899_v56, %v268_v39  ;;  %v979_v63 = vadd.f32 %v915_v57, %v284_v41  ;;  %v2043_v39 = vld [vmem:[%s2193_s0 + $0x30] sm:$0xff]   ;;  %v1383_v59 = vunpack.c.l.bf16 %v2048_v40  ;;  %v203_v2 = vmul.f32 %v1707_v37, %v1412_v46 }
  0xd0   :  { %v932_v4 = vadd.f32 %v868_v60, %v237_v52  ;;  %v948_v5 = vadd.f32 %v884_v61, %v253_v54  ;;  %v286_v52 = vadd.f32 %v1719_v42, %v218_v33  ;;  %v1351_v58 = vunpack.c.l.bf16 %v2043_v39 }
  0xd1   :  { %v1027_v8 = vmax.f32 %v963_v62, 0.0  ;;  %v1043_v9 = vmax.f32 %v979_v63, 0.0  ;;  %v239_v60 = vadd.f32 %v1719_v42, %v171_v31  ;;  %v255_v62 = vadd.f32 %v1719_v42, %v187_v38 }
  0xd2   :  { %v996_v12 = vmax.f32 %v932_v4, 0.0  ;;  %v1012_v6 = vmax.f32 %v948_v5, 0.0  ;;  %v729_v7 = vpop.f32.mrf.mxu2  ;;  %v769_v13 = vpop.f32.mrf.mxu3  ;;  %v219_v3 = vmul.f32 %v1707_v37, %v1444_v47 }
  0xd3   :  { %1091 = vst [vmem:[#allocation2 + $0x140] sm:$0xff] %v1027_v8  ;;  %v832_v18 = vmul.f32 %v1724_v43, %v729_v7  ;;  %v848_v19 = vmul.f32 %v1724_v43, %v769_v13  ;;  %v652_v14 = vpop.f32.mrf.mxu0  ;;  %v692_v21 = vpop.f32.mrf.mxu1 }
  0xd4   :  { %1107 = vst [vmem:[#allocation2 + $0x1c0] sm:$0xff] %v1043_v9  ;;  %v801_v24 = vmul.f32 %v1724_v43, %v652_v14  ;;  %v817_v25 = vmul.f32 %v1724_v43, %v692_v21 }
  0xd5   :  { %1060 = vst [vmem:[#allocation2 + $0x48] sm:$0xff] %v996_v12  ;;  %v900_v28 = vadd.f32 %v1730_v45, %v832_v18  ;;  %v916_v22 = vadd.f32 %v1730_v45, %v848_v19  ;;  %v2073_v12 = vld [vmem:[%s2193_s0 + $0xb0] sm:$0xff]   ;;  %v271_v18 = vadd.f32 %v1719_v42, %v203_v2  ;;  %v287_v19 = vadd.f32 %v1719_v42, %v219_v3 }
  0xd6   :  { %1076 = vst [vmem:[#allocation2 + $0xc8] sm:$0xff] %v1012_v6  ;;  %v869_v23 = vadd.f32 %v1730_v45, %v801_v24  ;;  %v885_v29 = vadd.f32 %v1730_v45, %v817_v25  ;;  %v2078_v6 = vld [vmem:[%s2193_s0 + $0xf0] sm:$0xff]   ;;  %v1415_v24 = vunpack.c.l.bf16 %v2073_v12 }
  0xd7   :  { %v964_v34 = vadd.f32 %v900_v28, %v269_v10  ;;  %v980_v35 = vadd.f32 %v916_v22, %v285_v11  ;;  %v172_v10 = vmul.f32 %v1707_v37, %v1351_v58  ;;  %v188_v11 = vmul.f32 %v1707_v37, %v1383_v59 }
  0xd8   :  { %v933_v36 = vadd.f32 %v869_v23, %v238_v20  ;;  %v949_v30 = vadd.f32 %v885_v29, %v254_v15  ;;  %v1447_v25 = vunpack.c.l.bf16 %v2078_v6 }
  0xd9   :  { %v1028_v41 = vmax.f32 %v964_v34, 0.0  ;;  %v1044_v44 = vmax.f32 %v980_v35, 0.0  ;;  %v240_v28 = vadd.f32 %v1719_v42, %v172_v10  ;;  %v256_v23 = vadd.f32 %v1719_v42, %v188_v11 }
  0xda   :  { %v997_v48 = vmax.f32 %v933_v36, 0.0  ;;  %v1013_v49 = vmax.f32 %v949_v30, 0.0  ;;  %v732_v51 = vpop.f32.mrf.mxu2  ;;  %v772_v53 = vpop.f32.mrf.mxu3  ;;  %v1352_v34 = vunpack.c.h.bf16 %v2043_v39  ;;  %v1384_v35 = vunpack.c.h.bf16 %v2048_v40 }
  0xdb   :  { %1092 = vst [vmem:[#allocation2 + $0x148] sm:$0xff] %v1028_v41  ;;  %v833_v54 = vmul.f32 %v1724_v43, %v732_v51  ;;  %v849_v55 = vmul.f32 %v1724_v43, %v772_v53  ;;  %v654_v56 = vpop.f32.mrf.mxu0  ;;  %v694_v57 = vpop.f32.mrf.mxu1  ;;  %v204_v41 = vmul.f32 %v1707_v37, %v1415_v24  ;;  %v2108_v51 = vld [vmem:[%s2193_s0 + $0x78] sm:$0xff]  }
  0xdc   :  { %1108 = vst [vmem:[#allocation2 + $0x1c8] sm:$0xff] %v1044_v44  ;;  %v802_v61 = vmul.f32 %v1724_v43, %v654_v56  ;;  %v818_v63 = vmul.f32 %v1724_v43, %v694_v57  ;;  %v220_v44 = vmul.f32 %v1707_v37, %v1447_v25  ;;  %v173_v40 = vmul.f32 %v1707_v37, %v1352_v34 }
  0xdd   :  { %1061 = vst [vmem:[#allocation2 + $0x50] sm:$0xff] %v997_v48  ;;  %v901_v0 = vadd.f32 %v1730_v45, %v833_v54  ;;  %v917_v1 = vadd.f32 %v1730_v45, %v849_v55  ;;  %v1416_v54 = vunpack.c.h.bf16 %v2073_v12  ;;  %v1448_v55 = vunpack.c.h.bf16 %v2078_v6 }
  0xde   :  { %1077 = vst [vmem:[#allocation2 + $0xd0] sm:$0xff] %v1013_v49  ;;  %v870_v4 = vadd.f32 %v1730_v45, %v802_v61  ;;  %v886_v5 = vadd.f32 %v1730_v45, %v818_v63  ;;  %v189_v49 = vmul.f32 %v1707_v37, %v1384_v35  ;;  %v272_v58 = vadd.f32 %v1719_v42, %v204_v41 }
  0xdf   :  { %v965_v8 = vadd.f32 %v901_v0, %v270_v50  ;;  %v981_v9 = vadd.f32 %v917_v1, %v286_v52  ;;  %v2103_v50 = vld [vmem:[%s2193_s0 + $0x38] sm:$0xff]   ;;  %v1387_v3 = vunpack.c.l.bf16 %v2108_v51  ;;  %v205_v12 = vmul.f32 %v1707_v37, %v1416_v54 }
  0xe0   :  { %v934_v7 = vadd.f32 %v870_v4, %v239_v60  ;;  %v950_v13 = vadd.f32 %v886_v5, %v255_v62  ;;  %v288_v60 = vadd.f32 %v1719_v42, %v220_v44  ;;  %v1355_v2 = vunpack.c.l.bf16 %v2103_v50 }
  0xe1   :  { %v1029_v16 = vmax.f32 %v965_v8, 0.0  ;;  %v1045_v17 = vmax.f32 %v981_v9, 0.0  ;;  %v241_v4 = vadd.f32 %v1719_v42, %v173_v40  ;;  %v257_v8 = vadd.f32 %v1719_v42, %v189_v49  ;;  %v2131_v42 = vld [vmem:[%s2194_s1] ss:$0 sm:$0xff] }
  0xe2   :  { %v998_v20 = vmax.f32 %v934_v7, 0.0  ;;  %v1014_v14 = vmax.f32 %v950_v13, 0.0  ;;  %v734_v15 = vpop.f32.mrf.mxu2  ;;  %v774_v21 = vpop.f32.mrf.mxu3  ;;  %v221_v6 = vmul.f32 %v1707_v37, %v1448_v55  ;;  %v2138_v37 = vld [vmem:[%s2193_s0 + $0xb8] sm:$0xff]   ;;  %v1356_v44 = vunpack.c.h.bf16 %v2103_v50 }
  0xe3   :  { %1093 = vst [vmem:[#allocation2 + $0x150] sm:$0xff] %v1029_v16  ;;  %v834_v26 = vmul.f32 %v1724_v43, %v734_v15  ;;  %v850_v27 = vmul.f32 %v1724_v43, %v774_v21  ;;  %v657_v22 = vpop.f32.mrf.mxu0  ;;  %v697_v29 = vpop.f32.mrf.mxu1  ;;  %v2148_v21 = vld [vmem:[%s2195_s2] ss:$0 sm:$0xff] }
  0xe4   :  { %1109 = vst [vmem:[#allocation2 + $0x1d0] sm:$0xff] %v1045_v17  ;;  %v803_v32 = vmul.f32 %v1724_v43, %v657_v22  ;;  %v819_v33 = vmul.f32 %v1724_v43, %v697_v29  ;;  %v273_v24 = vadd.f32 %v2148_v21, %v205_v12  ;;  %v289_v25 = vadd.f32 %v2148_v21, %v221_v6 }
  0xe5   :  { %1062 = vst [vmem:[#allocation2 + $0x58] sm:$0xff] %v998_v20  ;;  %v902_v36 = vadd.f32 %v1730_v45, %v834_v26  ;;  %v918_v30 = vadd.f32 %v1730_v45, %v850_v27 }
  0xe6   :  { %1078 = vst [vmem:[#allocation2 + $0xd8] sm:$0xff] %v1014_v14  ;;  %v871_v31 = vadd.f32 %v1730_v45, %v803_v32  ;;  %v887_v38 = vadd.f32 %v1730_v45, %v819_v33  ;;  %v2157_v32 = vld [vmem:[%s2198_s5] ss:$0 sm:$0xff] }
  0xe7   :  { %v966_v46 = vadd.f32 %v902_v36, %v271_v18  ;;  %v982_v47 = vadd.f32 %v918_v30, %v287_v19  ;;  %v190_v18 = vmul.f32 %v2131_v42, %v1387_v3 }
  0xe8   :  { %v935_v48 = vadd.f32 %v871_v31, %v240_v28  ;;  %v951_v39 = vadd.f32 %v887_v38, %v256_v23  ;;  %v1419_v23 = vunpack.c.l.bf16 %v2138_v37 }
  0xe9   :  { %v1030_v52 = vmax.f32 %v966_v46, 0.0  ;;  %v1046_v53 = vmax.f32 %v982_v47, 0.0  ;;  %v258_v30 = vadd.f32 %v2148_v21, %v190_v18  ;;  %v1388_v46 = vunpack.c.h.bf16 %v2108_v51  ;;  %v1497_v47 = vld [vmem:[%s2199_s6] ss:$0 sm:$0xff]  ;;  %s1524_s6 = smov [#allocation2]  }
  0xea   :  { %v999_v56 = vmax.f32 %v935_v48, 0.0  ;;  %v1015_v57 = vmax.f32 %v951_v39, 0.0  ;;  %v737_v59 = vpop.f32.mrf.mxu2  ;;  %v777_v61 = vpop.f32.mrf.mxu3  ;;  %v175_v51 = vmul.f32 %v2131_v42, %v1356_v44  ;;  %s1119_s19 = sshll.u32 %s1524_s6, 4  ;;  %s1120_s19 = int_to_ptr.vmem [resolvable:$true] %s1119_s19 }
  0xeb   :  { %1094 = vst [vmem:[#allocation2 + $0x158] sm:$0xff] %v1030_v52  ;;  %v835_v62 = vmul.f32 %v1724_v43, %v737_v59  ;;  %v851_v63 = vmul.f32 %v1724_v43, %v777_v61  ;;  %v659_v0 = vpop.f32.mrf.mxu0  ;;  %v699_v1 = vpop.f32.mrf.mxu1  ;;  %v206_v52 = vmul.f32 %v2131_v42, %v1419_v23 }
  0xec   :  { %1110 = vst [vmem:[#allocation2 + $0x1d8] sm:$0xff] %v1046_v53  ;;  %v804_v5 = vmul.f32 %v1724_v43, %v659_v0  ;;  %v820_v9 = vmul.f32 %v1724_v43, %v699_v1  ;;  %v174_v43 = vmul.f32 %v2131_v42, %v1355_v2 }
  0xed   :  { %1063 = vst [vmem:[#allocation2 + $0x60] sm:$0xff] %v999_v56  ;;  %v903_v10 = vadd.f32 %v1730_v45, %v835_v62  ;;  %v919_v11 = vadd.f32 %v1730_v45, %v851_v63  ;;  %v274_v62 = vadd.f32 %v2148_v21, %v206_v52 }
  0xee   :  { %1079 = vst [vmem:[#allocation2 + $0xe0] sm:$0xff] %v1015_v57  ;;  %v872_v7 = vadd.f32 %v1730_v45, %v804_v5  ;;  %v888_v13 = vadd.f32 %v1730_v45, %v820_v9  ;;  %v2143_v45 = vld [vmem:[%s2193_s0 + $0xf8] sm:$0xff]   ;;  %v242_v35 = vadd.f32 %v2148_v21, %v174_v43  ;;  %v191_v57 = vmul.f32 %v2131_v42, %v1388_v46 }
  0xef   :  { %v967_v16 = vadd.f32 %v903_v10, %v272_v58  ;;  %v983_v17 = vadd.f32 %v919_v11, %v288_v60  ;;  %v1451_v29 = vunpack.c.l.bf16 %v2143_v45  ;;  %v1452_v9 = vunpack.c.h.bf16 %v2143_v45 }
  0xf0   :  { %v936_v19 = vadd.f32 %v872_v7, %v241_v4  ;;  %v952_v20 = vadd.f32 %v888_v13, %v257_v8  ;;  %v1420_v8 = vunpack.c.h.bf16 %v2138_v37  ;;  %v243_v10 = vadd.f32 %v2148_v21, %v175_v51 }
  0xf1   :  { %v1031_v14 = vmax.f32 %v967_v16, 0.0  ;;  %v1047_v15 = vmax.f32 %v983_v17, 0.0  ;;  %v222_v53 = vmul.f32 %v2131_v42, %v1451_v29  ;;  %v259_v12 = vadd.f32 %v2148_v21, %v191_v57 }
  0xf2   :  { %v1000_v26 = vmax.f32 %v936_v19, 0.0  ;;  %v1016_v27 = vmax.f32 %v952_v20, 0.0  ;;  %v739_v28 = vpop.f32.mrf.mxu2  ;;  %v779_v22 = vpop.f32.mrf.mxu3  ;;  %v207_v37 = vmul.f32 %v2131_v42, %v1420_v8  ;;  %v223_v45 = vmul.f32 %v2131_v42, %v1452_v9 }
  0xf3   :  { %1095 = vst [vmem:[#allocation2 + $0x160] sm:$0xff] %v1031_v14  ;;  %v836_v33 = vmul.f32 %v2157_v32, %v739_v28  ;;  %v852_v34 = vmul.f32 %v2157_v32, %v779_v22  ;;  %v662_v36 = vpop.f32.mrf.mxu0  ;;  %v702_v31 = vpop.f32.mrf.mxu1  ;;  %v290_v0 = vadd.f32 %v2148_v21, %v222_v53 }
  0xf4   :  { %1111 = vst [vmem:[#allocation2 + $0x1e0] sm:$0xff] %v1047_v15  ;;  %v805_v38 = vmul.f32 %v2157_v32, %v662_v36  ;;  %v821_v41 = vmul.f32 %v2157_v32, %v702_v31  ;;  %v275_v28 = vadd.f32 %v2148_v21, %v207_v37  ;;  %v291_v23 = vadd.f32 %v2148_v21, %v223_v45 }
  0xf5   :  { %1064 = vst [vmem:[#allocation2 + $0x68] sm:$0xff] %v1000_v26  ;;  %v904_v48 = vadd.f32 %v1497_v47, %v836_v33  ;;  %v920_v39 = vadd.f32 %v1497_v47, %v852_v34 }
  0xf6   :  { %1080 = vst [vmem:[#allocation2 + $0xe8] sm:$0xff] %v1016_v27  ;;  %v873_v40 = vadd.f32 %v1497_v47, %v805_v38  ;;  %v889_v49 = vadd.f32 %v1497_v47, %v821_v41 }
  0xf7   :  { %v968_v54 = vadd.f32 %v904_v48, %v273_v24  ;;  %v984_v55 = vadd.f32 %v920_v39, %v289_v25 }
  0xf8   :  { %v937_v56 = vadd.f32 %v873_v40, %v242_v35  ;;  %v953_v50 = vadd.f32 %v889_v49, %v258_v30 }
  0xf9   :  { %v1032_v58 = vmax.f32 %v968_v54, 0.0  ;;  %v1048_v59 = vmax.f32 %v984_v55, 0.0 }
  0xfa   :  { %v1001_v60 = vmax.f32 %v937_v56, 0.0  ;;  %v1017_v61 = vmax.f32 %v953_v50, 0.0  ;;  %v742_v63 = vpop.f32.mrf.mxu2  ;;  %v782_v1 = vpop.f32.mrf.mxu3 }
  0xfb   :  { %1096 = vst [vmem:[#allocation2 + $0x168] sm:$0xff] %v1032_v58  ;;  %v837_v2 = vmul.f32 %v2157_v32, %v742_v63  ;;  %v853_v3 = vmul.f32 %v2157_v32, %v782_v1  ;;  %v664_v4 = vpop.f32.mrf.mxu0  ;;  %v704_v5 = vpop.f32.mrf.mxu1 }
  0xfc   :  { %1112 = vst [vmem:[#allocation2 + $0x1e8] sm:$0xff] %v1048_v59  ;;  %v806_v11 = vmul.f32 %v2157_v32, %v664_v4  ;;  %v822_v6 = vmul.f32 %v2157_v32, %v704_v5 }
  0xfd   :  { %1065 = vst [vmem:[#allocation2 + $0x70] sm:$0xff] %v1001_v60  ;;  %v905_v7 = vadd.f32 %v1497_v47, %v837_v2  ;;  %v921_v13 = vadd.f32 %v1497_v47, %v853_v3 }
  0xfe   :  { %1081 = vst [vmem:[#allocation2 + $0xf0] sm:$0xff] %v1017_v61  ;;  %v874_v16 = vadd.f32 %v1497_v47, %v806_v11  ;;  %v890_v17 = vadd.f32 %v1497_v47, %v822_v6 }
  0xff   :  { %v969_v43 = vadd.f32 %v905_v7, %v274_v62  ;;  %v985_v18 = vadd.f32 %v921_v13, %v290_v0 }
 0x100   :  { %v938_v19 = vadd.f32 %v874_v16, %v243_v10  ;;  %v954_v20 = vadd.f32 %v890_v17, %v259_v12 }
 0x101   :  { %v1033_v14 = vmax.f32 %v969_v43, 0.0  ;;  %v1049_v15 = vmax.f32 %v985_v18, 0.0 }
 0x102   :  { %v1002_v24 = vmax.f32 %v938_v19, 0.0  ;;  %v1018_v25 = vmax.f32 %v954_v20, 0.0  ;;  %v744_v26 = vpop.f32.mrf.mxu2  ;;  %v784_v27 = vpop.f32.mrf.mxu3 }
 0x103   :  { %1097 = vst [vmem:[#allocation2 + $0x170] sm:$0xff] %v1033_v14  ;;  %v838_v22 = vmul.f32 %v2157_v32, %v744_v26  ;;  %v854_v29 = vmul.f32 %v2157_v32, %v784_v27 }
 0x104   :  { %1113 = vst [vmem:[#allocation2 + $0x1f0] sm:$0xff] %v1049_v15 }
 0x105   :  { %1066 = vst [vmem:[#allocation2 + $0x78] sm:$0xff] %v1002_v24  ;;  %v906_v42 = vadd.f32 %v1497_v47, %v838_v22  ;;  %v922_v33 = vadd.f32 %v1497_v47, %v854_v29 }
 0x106   :  { %1082 = vst [vmem:[#allocation2 + $0xf8] sm:$0xff] %v1018_v25 }
 0x107   :  { %v970_v34 = vadd.f32 %v906_v42, %v275_v28  ;;  %v986_v35 = vadd.f32 %v922_v33, %v291_v23 }
 0x109   :  { %v1034_v36 = vmax.f32 %v970_v34, 0.0  ;;  %v1050_v30 = vmax.f32 %v986_v35, 0.0 }
 0x10b   :  { %1098 = vst [vmem:[#allocation2 + $0x178] sm:$0xff] %v1034_v36 }
 0x10c   :  { %1114 = vst [vmem:[#allocation2 + $0x1f8] sm:$0xff] %v1050_v30 }
 0x10d   :  { %1127 = dma.vmem_to_hbm [thread:$0]  %s1120_s19, 8192, %s1122_s22, [#allocation3], %s1525_s23, %s1525_s23, %s1526_s3  }
 0x10e   :  { %1522 = dma.done.wait [#allocation3], 8192  }
 0x10f   :  { %1523 = vsyncadd [#allocation3], 4294959104 }
 0x110   :  { %1132 = vsyncpa [#allocation3], 1 }

// kernel: bottleneck_forward.5
= control target key start
LH: loop header
LB: loop body
LE: loop exit
PB: predicated region body
PF: predicated region fallthrough
CT: control target
= control target key end

     0   :  { %s5297_s21 = smov 0   ;;  %s5980_s0 = inlined_call_operand.vmem [shape: bf16[2,16,16,128], index: 0, kind: input, shape index: {}]   ;;  %s5981_s1 = inlined_call_operand.vmem [shape: bf16[1152,128], index: 1, kind: input, shape index: {}]   ;;  %s5982_s2 = inlined_call_operand.vmem [shape: f32[1,128], index: 2, kind: input, shape index: {}]   ;;  %s5983_s3 = inlined_call_operand.vmem [shape: f32[1,128], index: 3, kind: input, shape index: {}]   ;;  %s5984_s4 = inlined_call_operand.vmem [shape: bf16[512,128], index: 4, kind: output, shape index: {0}]   ;;  %s5985_s5 = inlined_call_operand.vmem [shape: f32[2,8,128], index: 5, kind: output, shape index: {1}]   ;;  %s5986_s6 = inlined_call_operand.vmem [shape: f32[2,8,128], index: 6, kind: output, shape index: {2}]  }
   0x1 LB: > { %s5303_s22 = sadd.s32 4294967295, %s5258_s21   ;;  %p3950_p0 = scmp.ge.s32.totalorder %s5258_s21, 1  ;;  %s5258_s21 = sphi %s5297_s21, %s17_s21  }
   0x2   : > { %p217_p1 = scmp.lt.s32.totalorder %s5258_s21, 3 }
   0x4   : > { %p218_p2 = pnand %p3950_p0, %p217_p1 }
   0x5   : > { %p255_p3 = scmp.lt.s32.totalorder (!%p218_p2), %s5303_s22, 1  ;;  %s3953_s15 = sshll.u32 (!%p218_p2), %s5303_s22, 5 }
   0x6   : > { %221 = sbr.rel (%p218_p2) target bundleno = 802 (0x322), region = 36  ;;  %p5912_p4 = scmp.lt.s32.totalorder (!%p218_p2), %s3953_s15, 63 }
   0xb   : > { %v4975_v0 = vld [vmem:[%s5981_s1 + $0x38] sm:$0xff]  ;;  %v5260_v1 = vmov 0.0   ;;  %v4974_v2 = vld [vmem:[%s5981_s1 + $0x30] sm:$0xff]  ;;  %s5316_s27 = scalar_select %p255_p3, %s5303_s22, 1  ;;  %v5329_v3 = vld [vmem:[%s5982_s2] ss:$0 sm:$0xff] }
   0xc   : > { %285 = vst [vmem:[#allocation2 + $0x60] sm:$0x1] %v5260_v1  ;;  %5214 = vmatpush.bf16.msra.mxu1 %v4975_v0  ;;  %5215 = vmatpush.bf16.msra.mxu2 %v4975_v0  ;;  %v4973_v4 = vld [vmem:[%s5981_s1 + $0x28] sm:$0xff]  ;;  %v5340_v8 = vld [vmem:[%s5983_s3] ss:$0 sm:$0xff]  ;;  %v4971_v16 = vld [vmem:[%s5981_s1 + $0x18] sm:$0xff] }
   0xd   : > { %274 = vst [vmem:[#allocation2] sm:$0xff] %v5260_v1  ;;  %5216 = vmatpush.bf16.msra.mxu3 %v4975_v0  ;;  %2855 = vmatpush.bf16.msra.mxu0 %v4975_v0  ;;  %s4823_s28 = sshll.u32 %s5316_s27, 7  ;;  %v4972_v11 = vld [vmem:[%s5981_s1 + $0x20] sm:$0xff]  ;;  %v4970_v17 = vld [vmem:[%s5981_s1 + $0x10] sm:$0xff]  ;;  %v4969_v18 = vld [vmem:[%s5981_s1 + $0x8] sm:$0xff]  ;;  %s5989_s15 = smov (!%p5912_p4, %s3953_s15), 63 }
   0xe   : > { %275 = vst [vmem:[#allocation2 + $0x8] sm:$0xff] %v5260_v1  ;;  %s5324_s7 = scalar_lea.vmem %s5980_s0, %s4823_s28  ;;  %v4968_v24 = vld [vmem:[%s5981_s1] sm:$0xff]  ;;  %v4991_v42 = vld [vmem:[%s5981_s1 + $0xb8] sm:$0xff]  ;;  %v4990_v48 = vld [vmem:[%s5981_s1 + $0xb0] sm:$0xff]  ;;  %s3954_s22 = sshll.u32 %s5989_s15, 2 }
   0xf   : > { %276 = vst [vmem:[#allocation2 + $0x10] sm:$0xff] %v5260_v1  ;;  %v5186_v5 = vld [vmem:[%s5324_s7 + $0x18] sm:$0xff]   ;;  %v5187_v34 = vld [vmem:[%s5324_s7 + $0x20] sm:$0xff]   ;;  %v4998_v49 = vld [vmem:[%s5981_s1 + $0xf0] sm:$0xff]  ;;  %s5923_s19 = scalar_lea.vmem %s5984_s4, %s3954_s22  ;;  %s3955_s20 = sshll.u32 %s5316_s27, 3 }
  0x10   : > { %5217 = vmatpush.bf16.msra.mxu1 %v4974_v2  ;;  %5218 = vmatpush.bf16.msra.mxu2 %v4974_v2  ;;  %278 = vst [vmem:[#allocation2 + $0x198] sm:$0xff] %v5260_v1  ;;  %v5054_v6 = vunpack.c.l.bf16 %v5186_v5  ;;  %v5055_v7 = vunpack.c.h.bf16 %v5186_v5  ;;  %v5190_v23 = vld [vmem:[%s5324_s7 + $0x38] sm:$0xff]   ;;  %v5058_v38 = vunpack.c.l.bf16 %v5187_v34  ;;  %v5191_v40 = vld [vmem:[%s5324_s7 + $0x40] sm:$0xff]   ;;  %v5059_v50 = vunpack.c.h.bf16 %v5187_v34  ;;  %v4982_v53 = vld [vmem:[%s5981_s1 + $0x70] sm:$0xff]  ;;  %s269_s25 = scalar_lea.vmem %s5985_s5, %s3955_s20 }
  0x11   : > { %5219 = vmatpush.bf16.msra.mxu3 %v4974_v2  ;;  %2856 = vmatpush.bf16.msra.mxu0 %v4974_v2  ;;  %279 = vst [vmem:[#allocation2 + $0x1a0] sm:$0xff] %v5260_v1  ;;  %v5070_v25 = vunpack.c.l.bf16 %v5190_v23  ;;  %v5071_v26 = vunpack.c.h.bf16 %v5190_v23  ;;  %v5194_v27 = vld [vmem:[%s5324_s7 + $0x58] sm:$0xff]   ;;  %v5074_v54 = vunpack.c.l.bf16 %v5191_v40  ;;  %v5195_v55 = vld [vmem:[%s5324_s7 + $0x60] sm:$0xff]   ;;  %v5075_v57 = vunpack.c.h.bf16 %v5191_v40 }
  0x12   : > { %280 = vst [vmem:[#allocation2 + $0x1a8] sm:$0xff] %v5260_v1  ;;  %v391_v9 = vmul.f32 %v5329_v3, %v5054_v6  ;;  %v392_v10 = vmul.f32 %v5329_v3, %v5055_v7  ;;  %v5086_v33 = vunpack.c.l.bf16 %v5194_v27  ;;  %v5087_v35 = vunpack.c.h.bf16 %v5194_v27  ;;  %v4999_v43 = vld [vmem:[%s5981_s1 + $0xf8] sm:$0xff]  ;;  %v5041_v61 = vld [vmem:[%s5324_s7] sm:$0xff]   ;;  %v5192_v27 = vld [vmem:[%s5324_s7 + $0x48] sm:$0xff]  }
  0x13   : > { %282 = vst [vmem:[#allocation2 + $0x18] sm:$0x1] %v5260_v1  ;;  %v399_v29 = vmul.f32 %v5329_v3, %v5070_v25  ;;  %v400_v31 = vmul.f32 %v5329_v3, %v5071_v26  ;;  %v4983_v44 = vld [vmem:[%s5981_s1 + $0x78] sm:$0xff]  ;;  %v393_v51 = vmul.f32 %v5329_v3, %v5058_v38  ;;  %v394_v58 = vmul.f32 %v5329_v3, %v5059_v50  ;;  %v4996_v40 = vld [vmem:[%s5981_s1 + $0xe0] sm:$0xff] }
  0x14   : > { %5220 = vmatpush.bf16.msra.mxu1 %v4973_v4  ;;  %5221 = vmatpush.bf16.msra.mxu2 %v4973_v4  ;;  %283 = vst [vmem:[#allocation2 + $0x30] sm:$0x1] %v5260_v1  ;;  %v427_v12 = vadd.f32 %v5340_v8, %v391_v9  ;;  %v428_v13 = vadd.f32 %v5340_v8, %v392_v10  ;;  %v5007_v46 = vld [vmem:[%s5981_s1 + $0x138] sm:$0xff]  ;;  %v5090_v60 = vunpack.c.l.bf16 %v5195_v55  ;;  %v5042_v5 = vunpack.c.l.bf16 %v5041_v61 }
  0x15   : > { %5222 = vmatpush.bf16.msra.mxu3 %v4973_v4  ;;  %2857 = vmatpush.bf16.msra.mxu0 %v4973_v4  ;;  %284 = vst [vmem:[#allocation2 + $0x48] sm:$0x1] %v5260_v1  ;;  %v435_v36 = vadd.f32 %v5340_v8, %v399_v29  ;;  %v436_v37 = vadd.f32 %v5340_v8, %v400_v31  ;;  %v5091_v4 = vunpack.c.h.bf16 %v5195_v55  ;;  %v4989_v29 = vld [vmem:[%s5981_s1 + $0xa8] sm:$0xff]  ;;  %v5006_v31 = vld [vmem:[%s5981_s1 + $0x130] sm:$0xff] }
  0x16   : > { %286 = vst [vmem:[#allocation2 + $0x78] sm:$0x1] %v5260_v1  ;;  %v459_v14 = vmax.f32 %v427_v12, 0.0  ;;  %v460_v15 = vmax.f32 %v428_v13, 0.0  ;;  %v407_v39 = vmul.f32 %v5329_v3, %v5086_v33  ;;  %v408_v41 = vmul.f32 %v5329_v3, %v5087_v35  ;;  %v4981_v35 = vld [vmem:[%s5981_s1 + $0x68] sm:$0xff] }
  0x17   : > { %287 = vst [vmem:[#allocation2 + $0x90] sm:$0x1] %v5260_v1  ;;  %v467_v45 = vmax.f32 %v435_v36, 0.0  ;;  %v468_v47 = vmax.f32 %v436_v37, 0.0  ;;  %v429_v59 = vadd.f32 %v5340_v8, %v393_v51  ;;  %v401_v63 = vmul.f32 %v5329_v3, %v5074_v54  ;;  %v5463_v36 = vld [vmem:[%s5324_s7 + $0x68] sm:$0xff]  }
  0x18   : > { %5223 = vmatpush.bf16.msra.mxu1 %v4972_v11  ;;  %5224 = vmatpush.bf16.msra.mxu2 %v4972_v11  ;;  %288 = vst [vmem:[#allocation2 + $0xa8] sm:$0x1] %v5260_v1  ;;  %v443_v52 = vadd.f32 %v5340_v8, %v407_v39  ;;  %v444_v56 = vadd.f32 %v5340_v8, %v408_v41  ;;  %v4988_v39 = vld [vmem:[%s5981_s1 + $0xa0] sm:$0xff]  ;;  %v5078_v41 = vunpack.c.l.bf16 %v5192_v27  ;;  %v5094_v54 = vunpack.c.l.bf16 %v5463_v36 }
  0x19   : > { %5225 = vmatpush.bf16.msra.mxu3 %v4972_v11  ;;  %2858 = vmatpush.bf16.msra.mxu0 %v4972_v11  ;;  %492 = vst [vmem:[#allocation2 + $0x61] sm:$0xff] %v459_v14  ;;  %v402_v2 = vmul.f32 %v5329_v3, %v5075_v57  ;;  %v430_v6 = vadd.f32 %v5340_v8, %v394_v58  ;;  %v461_v7 = vmax.f32 %v429_v59, 0.0  ;;  %v5043_v11 = vunpack.c.h.bf16 %v5041_v61  ;;  %v5188_v14 = vld [vmem:[%s5324_s7 + $0x28] sm:$0xff]  }
  0x1a   : > { %493 = vst [vmem:[#allocation2 + $0x69] sm:$0xff] %v460_v15  ;;  %v475_v62 = vmax.f32 %v443_v52, 0.0  ;;  %v476_v0 = vmax.f32 %v444_v56, 0.0  ;;  %v409_v9 = vmul.f32 %v5329_v3, %v5090_v60  ;;  %v437_v10 = vadd.f32 %v5340_v8, %v401_v63 }
  0x1b   : > { %289 = vst [vmem:[#allocation2 + $0xc0] sm:$0x1] %v5260_v1  ;;  %v438_v13 = vadd.f32 %v5340_v8, %v402_v2  ;;  %v386_v25 = vmul.f32 %v5329_v3, %v5043_v11  ;;  %v5062_v26 = vunpack.c.l.bf16 %v5188_v14  ;;  %v403_v58 = vmul.f32 %v5329_v3, %v5078_v41  ;;  %v4995_v41 = vld [vmem:[%s5981_s1 + $0xd8] sm:$0xff] }
  0x1c   : > { %5226 = vmatpush.bf16.msra.mxu1 %v4971_v16  ;;  %5227 = vmatpush.bf16.msra.mxu2 %v4971_v16  ;;  %290 = vst [vmem:[#allocation2 + $0xd8] sm:$0x1] %v5260_v1 }
  0x1d   : > { %5228 = vmatpush.bf16.msra.mxu3 %v4971_v16  ;;  %2859 = vmatpush.bf16.msra.mxu0 %v4971_v16  ;;  %291 = vst [vmem:[#allocation2 + $0xf0] sm:$0x1] %v5260_v1 }
  0x1e   : > { %292 = vst [vmem:[#allocation2 + $0x108] sm:$0x1] %v5260_v1 }
  0x1f   : > { %293 = vst [vmem:[#allocation2 + $0x120] sm:$0x1] %v5260_v1 }
  0x20   : > { %5229 = vmatpush.bf16.msra.mxu1 %v4970_v17  ;;  %5230 = vmatpush.bf16.msra.mxu2 %v4970_v17  ;;  %v526_v19 = vld [vmem:[#allocation2 + $0x60] sm:$0xff]  ;;  %294 = vst [vmem:[#allocation2 + $0x138] sm:$0x1] %v5260_v1 }
  0x21   : > { %5231 = vmatpush.bf16.msra.mxu3 %v4970_v17  ;;  %2860 = vmatpush.bf16.msra.mxu0 %v4970_v17  ;;  %v527_v20 = vld [vmem:[#allocation2 + $0x68] sm:$0xff]  ;;  %v558_v21 = vpack.c.bf16 %v526_v19, %v526_v19  ;;  %295 = vst [vmem:[#allocation2 + $0x150] sm:$0x1] %v5260_v1  ;;  %v5261_v17 = vmov 0.0|0.0  }
  0x22   : > { %v559_v22 = vpack.c.bf16 %v527_v20, %v527_v20  ;;  %296 = vst [vmem:[#allocation2 + $0x168] sm:$0x1] %v5260_v1 }
  0x23   : > { %590 = vst [vmem:[#allocation3 + $0x120] sm:$0xf] %v558_v21  ;;  %v462_v21 = vmax.f32 %v430_v6, 0.0 }
  0x24   : > { %5232 = vmatpush.bf16.msra.mxu1 %v4969_v18  ;;  %5233 = vmatpush.bf16.msra.mxu2 %v4969_v18  ;;  %591 = vst [vmem:[#allocation3 + $0x144] sm:$0xf] %v559_v22  ;;  %v445_v22 = vadd.f32 %v5340_v8, %v409_v9  ;;  %v411_v9 = vmul.f32 %v5329_v3, %v5094_v54  ;;  %v4994_v54 = vld [vmem:[%s5981_s1 + $0xd0] sm:$0xff] }
  0x25   : > { %5234 = vmatpush.bf16.msra.mxu3 %v4969_v18  ;;  %2861 = vmatpush.bf16.msra.mxu0 %v4969_v18  ;;  %297 = vst [vmem:[#allocation2 + $0x180] sm:$0x1] %v5260_v1  ;;  %v385_v18 = vmul.f32 %v5329_v3, %v5042_v5 }
  0x26   : > { %300 = vst [vmem:[#allocation2 + $0x29] sm:$0x1] %v5260_v1  ;;  %v477_v38 = vmax.f32 %v445_v22, 0.0 }
  0x27   : > { %301 = vst [vmem:[#allocation2 + $0x41] sm:$0x1] %v5260_v1  ;;  %v421_v34 = vadd.f32 %v5340_v8, %v385_v18 }
  0x28   : > { %5235 = vmatpush.bf16.msra.mxu1 %v4968_v24  ;;  %5236 = vmatpush.bf16.msra.mxu2 %v4968_v24  ;;  %302 = vst [vmem:[#allocation2 + $0x59] sm:$0x1] %v5260_v1 }
  0x29   : > { %5237 = vmatpush.bf16.msra.mxu3 %v4968_v24  ;;  %2862 = vmatpush.bf16.msra.mxu0 %v4968_v24  ;;  %303 = vst [vmem:[#allocation2 + $0x71] sm:$0x1] %v5260_v1  ;;  %v469_v24 = vmax.f32 %v437_v10, 0.0  ;;  %v5480_v52 = vmax.f32 %v421_v34, 0.0 }
  0x2a   : > { %v4103_v28 = vld [vmem:[#allocation3 + $0x120] sm:$0xf]  ;;  %304 = vst [vmem:[#allocation2 + $0x89] sm:$0x1] %v5260_v1 }
  0x2b   : > { %v4864_v30 = vld [vmem:[#allocation3 + $0x140] sm:$0xf0]  ;;  %305 = vst [vmem:[#allocation2 + $0xa1] sm:$0x1] %v5260_v1 }
  0x2c   : > { %v4104_v32 = vor.u32 %v4864_v30, %v4103_v28  ;;  %306 = vst [vmem:[#allocation2 + $0xb9] sm:$0x1] %v5260_v1  ;;  %3033 = vmatpush.bf16.msrb.mxu2 %v4991_v42  ;;  %2944 = vmatpush.bf16.msrb.mxu1 %v4983_v44  ;;  %v470_v28 = vmax.f32 %v438_v13, 0.0  ;;  %v4997_v30 = vld [vmem:[%s5981_s1 + $0xe8] sm:$0xff]  ;;  %v422_v44 = vadd.f32 %v5340_v8, %v386_v25 }
  0x2d   : > { %307 = vst [vmem:[#allocation2 + $0xd1] sm:$0x1] %v5260_v1  ;;  %3122 = vmatpush.bf16.msrb.mxu3 %v4999_v43  ;;  %3211 = vmatpush.bf16.msrb.mxu0 %v5007_v46  ;;  %v4980_v46 = vld [vmem:[%s5981_s1 + $0x60] sm:$0xff] }
  0x2e   : > { %2883 = vmatmul.bf16.vlgmr.msra.gmra.mxu1 %v4104_v32  ;;  %308 = vst [vmem:[#allocation2 + $0xe9] sm:$0x1] %v5260_v1  ;;  %v5063_v32 = vunpack.c.h.bf16 %v5188_v14  ;;  %v5484_v60 = vmax.f32 %v422_v44, 0.0 }
  0x2f   : > { %309 = vst [vmem:[#allocation2 + $0x101] sm:$0x1] %v5260_v1 }
  0x30   : > { %310 = vst [vmem:[#allocation2 + $0x119] sm:$0x1] %v5260_v1  ;;  %3034 = vmatpush.bf16.msrb.mxu2 %v4990_v48  ;;  %2945 = vmatpush.bf16.msrb.mxu1 %v4982_v53  ;;  %v5079_v53 = vunpack.c.h.bf16 %v5192_v27 }
  0x31   : > { %311 = vst [vmem:[#allocation2 + $0x131] sm:$0x1] %v5260_v1  ;;  %3123 = vmatpush.bf16.msrb.mxu3 %v4998_v49  ;;  %3212 = vmatpush.bf16.msrb.mxu0 %v5006_v31  ;;  %v396_v49 = vmul.f32 %v5329_v3, %v5063_v32  ;;  %v5193_v32 = vld [vmem:[%s5324_s7 + $0x50] sm:$0xff]  }
  0x32   : > { %312 = vst [vmem:[#allocation2 + $0x149] sm:$0x1] %v5260_v1 }
  0x33   : > { %313 = vst [vmem:[#allocation2 + $0x161] sm:$0x1] %v5260_v1  ;;  %v432_v2 = vadd.f32 %v5340_v8, %v396_v49  ;;  %v4986_v49 = vld [vmem:[%s5981_s1 + $0x90] sm:$0xff] }
  0x34   : > { %314 = vst [vmem:[#allocation2 + $0x179] sm:$0x1] %v5260_v1  ;;  %3035 = vmatpush.bf16.msrb.mxu2 %v4989_v29  ;;  %2946 = vmatpush.bf16.msrb.mxu1 %v4981_v35 }
  0x35   : > { %315 = vst [vmem:[#allocation2 + $0x191] sm:$0x1] %v5260_v1  ;;  %3124 = vmatpush.bf16.msrb.mxu3 %v4997_v30 }
  0x36   : > { %500 = vst [vmem:[#allocation2 + $0xc1] sm:$0xff] %v467_v45  ;;  %v5005_v45 = vld [vmem:[%s5981_s1 + $0x128] sm:$0xff] }
  0x37   : > { %501 = vst [vmem:[#allocation2 + $0xc9] sm:$0xff] %v468_v47  ;;  %v395_v47 = vmul.f32 %v5329_v3, %v5062_v26  ;;  %3213 = vmatpush.bf16.msrb.mxu0 %v5005_v45 }
  0x38   : > { %281 = vst [vmem:[#allocation2] sm:$0x1] %v5260_v1  ;;  %3036 = vmatpush.bf16.msrb.mxu2 %v4988_v39  ;;  %2947 = vmatpush.bf16.msrb.mxu1 %v4980_v46 }
  0x39   : > { %298 = vst [vmem:[#allocation2 + $0x198] sm:$0x1] %v5260_v1  ;;  %3125 = vmatpush.bf16.msrb.mxu3 %v4996_v40  ;;  %v431_v61 = vadd.f32 %v5340_v8, %v395_v47 }
  0x3a   : > { %299 = vst [vmem:[#allocation2 + $0x11] sm:$0x1] %v5260_v1 }
  0x3b   : > { %316 = vst [vmem:[#allocation2 + $0x1a9] sm:$0x1] %v5260_v1  ;;  %v410_v1 = vmul.f32 %v5329_v3, %v5091_v4  ;;  %v5095_v4 = vunpack.c.h.bf16 %v5463_v36  ;;  %v4987_v36 = vld [vmem:[%s5981_s1 + $0x98] sm:$0xff] }
  0x3c   : > { %508 = vst [vmem:[#allocation2 + $0x121] sm:$0xff] %v475_v62  ;;  %v5184_v62 = vld [vmem:[%s5324_s7 + $0x8] sm:$0xff]   ;;  %3037 = vmatpush.bf16.msrb.mxu2 %v4987_v36 }
  0x3d   : > { %v534_v12 = vld [vmem:[#allocation2 + $0xc0] sm:$0xff]  ;;  %509 = vst [vmem:[#allocation2 + $0x129] sm:$0xff] %v476_v0  ;;  %v446_v33 = vadd.f32 %v5340_v8, %v410_v1  ;;  %v5046_v13 = vunpack.c.l.bf16 %v5184_v62  ;;  %3126 = vmatpush.bf16.msrb.mxu3 %v4995_v41 }
  0x3e   : > { %v535_v15 = vld [vmem:[#allocation2 + $0xc8] sm:$0xff]  ;;  %v566_v16 = vpack.c.bf16 %v534_v12, %v534_v12  ;;  %583 = vst [vmem:[#allocation3 + $0x24] sm:$0xf] %v5261_v17  ;;  %v439_v12 = vadd.f32 %v5340_v8, %v403_v58  ;;  %v5189_v17 = vld [vmem:[%s5324_s7 + $0x30] sm:$0xff]  }
  0x3f   : > { %v567_v19 = vpack.c.bf16 %v535_v15, %v535_v15  ;;  %v518_v20 = vld [vmem:[#allocation2] sm:$0xff]  ;;  %494 = vst [vmem:[#allocation2 + $0x79] sm:$0xff] %v461_v7  ;;  %v478_v51 = vmax.f32 %v446_v33, 0.0  ;;  %v404_v7 = vmul.f32 %v5329_v3, %v5079_v53  ;;  %v5066_v29 = vunpack.c.l.bf16 %v5189_v17 }
  0x40   : > { %598 = vst [vmem:[#allocation3 + $0x240] sm:$0xf] %v566_v16  ;;  %v550_v23 = vpack.c.bf16 %v518_v20, %v518_v20  ;;  %v463_v16 = vmax.f32 %v431_v61, 0.0  ;;  %v412_v20 = vmul.f32 %v5329_v3, %v5095_v4  ;;  %v471_v27 = vmax.f32 %v439_v12, 0.0  ;;  %3038 = vmatpush.bf16.msrb.mxu2 %v4986_v49  ;;  %v4993_v49 = vld [vmem:[%s5981_s1 + $0xc8] sm:$0xff] }
  0x41   : > { %599 = vst [vmem:[#allocation3 + $0x264] sm:$0xf] %v567_v19  ;;  %v464_v19 = vmax.f32 %v432_v2, 0.0  ;;  %v440_v22 = vadd.f32 %v5340_v8, %v404_v7  ;;  %v5067_v31 = vunpack.c.h.bf16 %v5189_v17  ;;  %3127 = vmatpush.bf16.msrb.mxu3 %v4994_v54 }
  0x42   : > { %582 = vst [vmem:[#allocation3] sm:$0xf] %v550_v23  ;;  %v5499_v23 = vadd.f32 %v5340_v8, %v411_v9  ;;  %v448_v35 = vadd.f32 %v5340_v8, %v412_v20 }
  0x43   : > { %v542_v37 = vld [vmem:[#allocation2 + $0x120] sm:$0xff]  ;;  %495 = vst [vmem:[#allocation2 + $0x81] sm:$0xff] %v462_v21  ;;  %v472_v39 = vmax.f32 %v440_v22, 0.0 }
  0x44   : > { %v543_v42 = vld [vmem:[#allocation2 + $0x128] sm:$0xff]  ;;  %v574_v43 = vpack.c.bf16 %v542_v37, %v542_v37  ;;  %502 = vst [vmem:[#allocation2 + $0xd9] sm:$0xff] %v469_v24  ;;  %v5047_v24 = vunpack.c.h.bf16 %v5184_v62  ;;  %v479_v46 = vmax.f32 %v5499_v23, 0.0  ;;  %v480_v61 = vmax.f32 %v448_v35, 0.0  ;;  %v4978_v62 = vld [vmem:[%s5981_s1 + $0x50] sm:$0xff] }
  0x45   : > { %v575_v48 = vpack.c.bf16 %v543_v42, %v543_v42  ;;  %503 = vst [vmem:[#allocation2 + $0xe1] sm:$0xff] %v470_v28  ;;  %v4828_v56 = vld [vmem:[#allocation3 + $0x20] sm:$0xf0]  ;;  %v387_v28 = vmul.f32 %v5329_v3, %v5046_v13  ;;  %v5004_v42 = vld [vmem:[%s5981_s1 + $0x120] sm:$0xff]  ;;  %3128 = vmatpush.bf16.msrb.mxu3 %v4993_v49 }
  0x46   : > { %606 = vst [vmem:[#allocation3 + $0x360] sm:$0xf] %v574_v43  ;;  %v528_v50 = vld [vmem:[#allocation2 + $0x78] sm:$0xff]  ;;  %v388_v40 = vmul.f32 %v5329_v3, %v5047_v24  ;;  %v5515_v43 = vld [vmem:[%s5324_s7 + $0x70] sm:$0xff]   ;;  %3214 = vmatpush.bf16.msrb.mxu0 %v5004_v42 }
  0x47   : > { %v4247_v55 = vld [vmem:[#allocation3 + $0x240] sm:$0xf]  ;;  %607 = vst [vmem:[#allocation3 + $0x384] sm:$0xf] %v575_v48  ;;  %v560_v57 = vpack.c.bf16 %v528_v50, %v528_v50  ;;  %v423_v47 = vadd.f32 %v5340_v8, %v387_v28  ;;  %v4979_v48 = vld [vmem:[%s5981_s1 + $0x58] sm:$0xff]  ;;  %v397_v50 = vmul.f32 %v5329_v3, %v5066_v29  ;;  %v5098_v9 = vunpack.c.l.bf16 %v5515_v43 }
  0x48   : > { %v4900_v59 = vld [vmem:[#allocation3 + $0x260] sm:$0xf0]  ;;  %510 = vst [vmem:[#allocation2 + $0x139] sm:$0xff] %v477_v38  ;;  %2948 = vmatpush.bf16.msrb.mxu1 %v4979_v48  ;;  %v424_v2 = vadd.f32 %v5340_v8, %v388_v40  ;;  %v5099_v22 = vunpack.c.h.bf16 %v5515_v43 }
  0x49   : > { %v4248_v63 = vor.u32 %v4900_v59, %v4247_v55  ;;  %v3959_v0 = vld [vmem:[#allocation3] sm:$0xf]  ;;  %592 = vst [vmem:[#allocation3 + $0x168] sm:$0xf] %v560_v57  ;;  %v5003_v55 = vld [vmem:[%s5981_s1 + $0x118] sm:$0xff]  ;;  %v5082_v57 = vunpack.c.l.bf16 %v5193_v32  ;;  %v433_v7 = vadd.f32 %v5340_v8, %v397_v50  ;;  %v413_v23 = vmul.f32 %v5329_v3, %v5098_v9 }
  0x4a   : > { %v3960_v5 = vor.u32 %v4828_v56, %v3959_v0  ;;  %v529_v6 = vld [vmem:[#allocation2 + $0x80] sm:$0xff]  ;;  %511 = vst [vmem:[#allocation2 + $0x141] sm:$0xff] %v478_v51  ;;  %v398_v56 = vmul.f32 %v5329_v3, %v5067_v31  ;;  %3215 = vmatpush.bf16.msrb.mxu0 %v5003_v55  ;;  %v414_v36 = vmul.f32 %v5329_v3, %v5099_v22  ;;  %v5002_v50 = vld [vmem:[%s5981_s1 + $0x110] sm:$0xff] }
  0x4b   : > { %2903 = vmatmul.bf16.vlgmr.msra.gmra.mxu2 %v4248_v63  ;;  %v561_v10 = vpack.c.bf16 %v529_v6, %v529_v6  ;;  %v536_v11 = vld [vmem:[#allocation2 + $0xd8] sm:$0xff]  ;;  %486 = vst [vmem:[#allocation2 + $0x19] sm:$0xff] %v5480_v52  ;;  %v5083_v63 = vunpack.c.h.bf16 %v5193_v32  ;;  %v5543_v6 = vmax.f32 %v423_v47, 0.0  ;;  %v405_v13 = vmul.f32 %v5329_v3, %v5082_v57  ;;  %v4984_v57 = vld [vmem:[%s5981_s1 + $0x80] sm:$0xff] }
  0x4c   : > { %2863 = vmatmul.bf16.vlgmr.msra.gmra.mxu0 %v3960_v5  ;;  %v537_v14 = vld [vmem:[#allocation2 + $0xe0] sm:$0xff]  ;;  %v568_v15 = vpack.c.bf16 %v536_v11, %v536_v11  ;;  %487 = vst [vmem:[#allocation2 + $0x21] sm:$0xff] %v5484_v60  ;;  %v434_v12 = vadd.f32 %v5340_v8, %v398_v56  ;;  %2949 = vmatpush.bf16.msrb.mxu1 %v4978_v62  ;;  %v5001_v62 = vld [vmem:[%s5981_s1 + $0x108] sm:$0xff] }
  0x4d   : > { %v4391_v1 = vld [vmem:[#allocation3 + $0x360] sm:$0xf]  ;;  %593 = vst [vmem:[#allocation3 + $0x18c] sm:$0xf] %v561_v10  ;;  %v569_v18 = vpack.c.bf16 %v537_v14, %v537_v14  ;;  %v450_v55 = vadd.f32 %v5340_v8, %v414_v36 }
  0x4e   : > { %v4936_v21 = vld [vmem:[#allocation3 + $0x380] sm:$0xf0]  ;;  %600 = vst [vmem:[#allocation3 + $0x288] sm:$0xf] %v568_v15  ;;  %v406_v15 = vmul.f32 %v5329_v3, %v5083_v63  ;;  %3216 = vmatpush.bf16.msrb.mxu0 %v5002_v50 }
  0x4f   : > { %v4392_v25 = vor.u32 %v4936_v21, %v4391_v1  ;;  %601 = vst [vmem:[#allocation3 + $0x2ac] sm:$0xf] %v569_v18  ;;  %v544_v26 = vld [vmem:[#allocation2 + $0x138] sm:$0xff]  ;;  %v5556_v18 = vmax.f32 %v424_v2, 0.0  ;;  %v5559_v21 = vmax.f32 %v433_v7, 0.0  ;;  %v4976_v2 = vld [vmem:[%s5981_s1 + $0x40] sm:$0xff] }
  0x50   : > { %v576_v30 = vpack.c.bf16 %v544_v26, %v544_v26  ;;  %496 = vst [vmem:[#allocation2 + $0x91] sm:$0xff] %v463_v16  ;;  %v4139_v33 = vld [vmem:[#allocation3 + $0x168] sm:$0xf]  ;;  %v5185_v16 = vld [vmem:[%s5324_s7 + $0x10] sm:$0xff]   ;;  %v441_v26 = vadd.f32 %v5340_v8, %v405_v13 }
  0x51   : > { %2923 = vmatmul.bf16.vlgmr.msra.gmra.mxu3 %v4392_v25  ;;  %v545_v34 = vld [vmem:[#allocation2 + $0x140] sm:$0xff]  ;;  %497 = vst [vmem:[#allocation2 + $0x99] sm:$0xff] %v464_v19  ;;  %v5564_v25 = vmax.f32 %v434_v12, 0.0  ;;  %v5051_v31 = vunpack.c.h.bf16 %v5185_v16  ;;  %v482_v12 = vmax.f32 %v450_v55, 0.0 }
  0x52   : > { %v577_v37 = vpack.c.bf16 %v545_v34, %v545_v34  ;;  %608 = vst [vmem:[#allocation3 + $0x3a8] sm:$0xf] %v576_v30  ;;  %v520_v38 = vld [vmem:[#allocation2 + $0x18] sm:$0xff]  ;;  %v442_v30 = vadd.f32 %v5340_v8, %v406_v15  ;;  %v473_v40 = vmax.f32 %v441_v26, 0.0  ;;  %3217 = vmatpush.bf16.msrb.mxu0 %v5001_v62  ;;  %v935_v62 = vpack.c.bf16 %v5484_v60, %v5484_v60 }
  0x53   : > { %v521_v44 = vld [vmem:[#allocation2 + $0x20] sm:$0xff]  ;;  %v5517_v45 = vpack.c.bf16 %v520_v38, %v520_v38  ;;  %504 = vst [vmem:[#allocation2 + $0xf1] sm:$0xff] %v471_v27  ;;  %v5050_v27 = vunpack.c.l.bf16 %v5185_v16  ;;  %v390_v47 = vmul.f32 %v5329_v3, %v5051_v31  ;;  %v936_v60 = vpack.c.bf16 %v5543_v6, %v5543_v6 }
  0x54   : > { %v4873_v51 = vld [vmem:[#allocation3 + $0x188] sm:$0xf0]  ;;  %609 = vst [vmem:[#allocation3 + $0x3cc] sm:$0xf] %v577_v37  ;;  %v5528_v53 = vpack.c.bf16 %v521_v44, %v521_v44  ;;  %v449_v37 = vadd.f32 %v5340_v8, %v413_v23  ;;  %v474_v44 = vmax.f32 %v442_v30, 0.0  ;;  %v5000_v16 = vld [vmem:[%s5981_s1 + $0x100] sm:$0xff] }
  0x55   : > { %v4140_v58 = vor.u32 %v4873_v51, %v4139_v33  ;;  %v4283_v59 = vld [vmem:[#allocation3 + $0x288] sm:$0xf]  ;;  %584 = vst [vmem:[#allocation3 + $0x48] sm:$0xf] %v5517_v45  ;;  %v389_v41 = vmul.f32 %v5329_v3, %v5050_v27  ;;  %v4977_v3 = vld [vmem:[%s5981_s1 + $0x48] sm:$0xff] }
  0x56   : > { %v4909_v0 = vld [vmem:[#allocation3 + $0x2a8] sm:$0xf0]  ;;  %585 = vst [vmem:[#allocation3 + $0x6c] sm:$0xf] %v5528_v53  ;;  %v481_v56 = vmax.f32 %v449_v37, 0.0  ;;  %2950 = vmatpush.bf16.msrb.mxu1 %v4977_v3  ;;  %3218 = vmatpush.bf16.msrb.mxu0 %v5000_v16 }
  0x57   : > { %2888 = vmatmul.bf16.gmra.mxu1 %v4140_v58  ;;  %v4284_v4 = vor.u32 %v4909_v0, %v4283_v59  ;;  %v530_v5 = vld [vmem:[#allocation2 + $0x90] sm:$0xff]  ;;  %505 = vst [vmem:[#allocation2 + $0xf9] sm:$0xff] %v472_v39  ;;  %v425_v59 = vadd.f32 %v5340_v8, %v389_v41  ;;  %v426_v0 = vadd.f32 %v5340_v8, %v390_v47  ;;  %v5015_v47 = vld [vmem:[%s5981_s1 + $0x178] sm:$0xff] }
  0x58   : > { %v531_v10 = vld [vmem:[#allocation2 + $0x98] sm:$0xff]  ;;  %v5547_v11 = vpack.c.bf16 %v530_v5, %v530_v5  ;;  %512 = vst [vmem:[#allocation2 + $0x151] sm:$0xff] %v479_v46  ;;  %v4985_v46 = vld [vmem:[%s5981_s1 + $0x88] sm:$0xff] }
  0x59   : > { %v5551_v14 = vpack.c.bf16 %v531_v10, %v531_v10  ;;  %513 = vst [vmem:[#allocation2 + $0x159] sm:$0xff] %v480_v61  ;;  %v4427_v17 = vld [vmem:[#allocation3 + $0x3a8] sm:$0xf]  ;;  %3039 = vmatpush.bf16.msrb.mxu2 %v4985_v46  ;;  %v4992_v61 = vld [vmem:[%s5981_s1 + $0xc0] sm:$0xff]  ;;  %v5612_v15 = vmax.f32 %v425_v59, 0.0  ;;  %v934_v59 = vpack.c.bf16 %v5480_v52, %v5480_v52 }
  0x5a   : > { %594 = vst [vmem:[#allocation3 + $0x1b0] sm:$0xf] %v5547_v11  ;;  %v538_v1 = vld [vmem:[#allocation2 + $0xf0] sm:$0xff]  ;;  %3129 = vmatpush.bf16.msrb.mxu3 %v4992_v61  ;;  %2951 = vmatpush.bf16.msrb.mxu1 %v4976_v2  ;;  %v5031_v46 = vld [vmem:[%s5981_s1 + $0x1f8] sm:$0xff] }
  0x5b   : > { %2908 = vmatmul.bf16.gmra.mxu2 %v4284_v4  ;;  %v4945_v19 = vld [vmem:[#allocation3 + $0x3c8] sm:$0xf0]  ;;  %595 = vst [vmem:[#allocation3 + $0x1d4] sm:$0xf] %v5551_v14  ;;  %v570_v20 = vpack.c.bf16 %v538_v1, %v538_v1  ;;  %v5618_v1 = vmax.f32 %v426_v0, 0.0  ;;  %v713_v0 = vld [vmem:[#allocation2 + $0x22] sm:$0xff] }
  0x5c   : > { %v3995_v24 = vld [vmem:[#allocation3 + $0x48] sm:$0xf]  ;;  %488 = vst [vmem:[#allocation2 + $0x31] sm:$0xff] %v5543_v6  ;;  %v4428_v28 = vor.u32 %v4945_v19, %v4427_v17  ;;  %v614_v19 = vld [vmem:[#allocation2 + $0x1] sm:$0xff] }
  0x5d   : > { %v4837_v29 = vld [vmem:[#allocation3 + $0x68] sm:$0xf0]  ;;  %602 = vst [vmem:[#allocation3 + $0x2d0] sm:$0xf] %v570_v20  ;;  %3040 = vmatpush.bf16.msrb.mxu2 %v4984_v57 }
  0x5e   : > { %v3996_v32 = vor.u32 %v4837_v29, %v3995_v24  ;;  %v539_v33 = vld [vmem:[#allocation2 + $0xf8] sm:$0xff]  ;;  %489 = vst [vmem:[#allocation2 + $0x39] sm:$0xff] %v5556_v18  ;;  %v615_v24 = vld [vmem:[#allocation2 + $0x9] sm:$0xff]  ;;  %3478 = vmatpush.bf16.msra.mxu3 %v5031_v46  ;;  %3300 = vmatpush.bf16.msra.mxu1 %v5015_v47 }
  0x5f   : > { %v571_v34 = vpack.c.bf16 %v539_v33, %v539_v33  ;;  %v546_v35 = vld [vmem:[#allocation2 + $0x150] sm:$0xff]  ;;  %498 = vst [vmem:[#allocation2 + $0xa9] sm:$0xff] %v5559_v21  ;;  %v710_v29 = vld [vmem:[#allocation2 + $0x2] sm:$0xff] }
  0x60   : > { %2868 = vmatmul.bf16.gmra.mxu0 %v3996_v32  ;;  %v547_v38 = vld [vmem:[#allocation2 + $0x158] sm:$0xff]  ;;  %v578_v39 = vpack.c.bf16 %v546_v35, %v546_v35  ;;  %499 = vst [vmem:[#allocation2 + $0xb1] sm:$0xff] %v5564_v25  ;;  %v711_v33 = vld [vmem:[#allocation2 + $0xa] sm:$0xff]  ;;  %v647_v35 = vpack.c.bf16 %v615_v24, %v615_v24 }
  0x61   : > { %2928 = vmatmul.bf16.gmra.mxu3 %v4428_v28  ;;  %v4175_v42 = vld [vmem:[#allocation3 + $0x1b0] sm:$0xf]  ;;  %603 = vst [vmem:[#allocation3 + $0x2f4] sm:$0xf] %v571_v34  ;;  %v579_v43 = vpack.c.bf16 %v547_v38, %v547_v38  ;;  %v646_v28 = vpack.c.bf16 %v614_v19, %v614_v19  ;;  %v742_v38 = vpack.c.bf16 %v710_v29, %v710_v29  ;;  %v909_v46 = vld [vmem:[#allocation2 + $0x69] sm:$0xff] }
  0x62   : > { %v4882_v48 = vld [vmem:[#allocation3 + $0x1d0] sm:$0xf0]  ;;  %610 = vst [vmem:[#allocation3 + $0x3f0] sm:$0xf] %v578_v39  ;;  %v743_v41 = vpack.c.bf16 %v711_v33, %v711_v33 }
  0x63   : > { %v4176_v51 = vor.u32 %v4882_v48, %v4175_v42  ;;  %611 = vst [vmem:[#allocation3 + $0x414] sm:$0xf] %v579_v43  ;;  %v522_v54 = vld [vmem:[#allocation2 + $0x30] sm:$0xff]  ;;  %v5023_v43 = vld [vmem:[%s5981_s1 + $0x1b8] sm:$0xff] }
  0x64   : > { %v5591_v58 = vpack.c.bf16 %v522_v54, %v522_v54  ;;  %506 = vst [vmem:[#allocation2 + $0x109] sm:$0xff] %v473_v40  ;;  %v4319_v4 = vld [vmem:[#allocation3 + $0x2d0] sm:$0xf]  ;;  %3389 = vmatpush.bf16.msra.mxu2 %v5023_v43 }
  0x65   : > { %v523_v63 = vld [vmem:[#allocation2 + $0x38] sm:$0xff]  ;;  %507 = vst [vmem:[#allocation2 + $0x111] sm:$0xff] %v474_v44 }
  0x66   : > { %v5604_v5 = vpack.c.bf16 %v523_v63, %v523_v63  ;;  %586 = vst [vmem:[#allocation3 + $0x90] sm:$0xf] %v5591_v58  ;;  %v532_v7 = vld [vmem:[#allocation2 + $0xa8] sm:$0xff]  ;;  %v712_v63 = vld [vmem:[#allocation2 + $0x1a] sm:$0xff]  ;;  %v714_v6 = vld [vmem:[#allocation2 + $0x32] sm:$0xff] }
  0x67   : > { %2893 = vmatmul.bf16.gmra.mxu1 %v4176_v51  ;;  %v533_v9 = vld [vmem:[#allocation2 + $0xb0] sm:$0xff]  ;;  %v5607_v10 = vpack.c.bf16 %v532_v7, %v532_v7  ;;  %514 = vst [vmem:[#allocation2 + $0x169] sm:$0xff] %v481_v56  ;;  %v5039_v51 = vld [vmem:[%s5981_s1 + $0x238] sm:$0xff]  ;;  %v745_v7 = vpack.c.bf16 %v713_v0, %v713_v0  ;;  %v746_v24 = vpack.c.bf16 %v714_v6, %v714_v6  ;;  %v718_v0 = vld [vmem:[#allocation2 + $0x62] sm:$0xff] }
  0x68   : > { %v4918_v13 = vld [vmem:[#allocation3 + $0x2f0] sm:$0xf0]  ;;  %587 = vst [vmem:[#allocation3 + $0xb4] sm:$0xf] %v5604_v5  ;;  %v5610_v8 = vpack.c.bf16 %v533_v9, %v533_v9  ;;  %3567 = vmatpush.bf16.msra.mxu0 %v5039_v51 }
  0x69   : > { %v4320_v17 = vor.u32 %v4918_v13, %v4319_v4  ;;  %596 = vst [vmem:[#allocation3 + $0x1f8] sm:$0xf] %v5607_v10  ;;  %v4463_v20 = vld [vmem:[#allocation3 + $0x3f0] sm:$0xf]  ;;  %v744_v4 = vpack.c.bf16 %v712_v63, %v712_v63 }
  0x6a   : > { %v4954_v22 = vld [vmem:[#allocation3 + $0x410] sm:$0xf0]  ;;  %597 = vst [vmem:[#allocation3 + $0x21c] sm:$0xf] %v5610_v8 }
  0x6b   : > { %2913 = vmatmul.bf16.gmra.mxu2 %v4320_v17  ;;  %v540_v23 = vld [vmem:[#allocation2 + $0x108] sm:$0xff]  ;;  %515 = vst [vmem:[#allocation2 + $0x171] sm:$0xff] %v482_v12  ;;  %v4464_v30 = vor.u32 %v4954_v22, %v4463_v20 }
  0x6c   : > { %v541_v26 = vld [vmem:[#allocation2 + $0x110] sm:$0xff]  ;;  %v572_v27 = vpack.c.bf16 %v540_v23, %v540_v23  ;;  %490 = vst [vmem:[#allocation2 + $0x49] sm:$0xff] %v5612_v15  ;;  %v715_v23 = vld [vmem:[#allocation2 + $0x3a] sm:$0xff] }
  0x6d   : > { %v4031_v31 = vld [vmem:[#allocation3 + $0x90] sm:$0xf]  ;;  %v573_v32 = vpack.c.bf16 %v541_v26, %v541_v26  ;;  %491 = vst [vmem:[#allocation2 + $0x51] sm:$0xff] %v5618_v1  ;;  %v747_v26 = vpack.c.bf16 %v715_v23, %v715_v23 }
  0x6e   : > { %604 = vst [vmem:[#allocation3 + $0x318] sm:$0xf] %v572_v27  ;;  %v548_v34 = vld [vmem:[#allocation2 + $0x168] sm:$0xff] }
  0x6f   : > { %v4846_v36 = vld [vmem:[#allocation3 + $0xb0] sm:$0xf0]  ;;  %605 = vst [vmem:[#allocation3 + $0x33c] sm:$0xf] %v573_v32  ;;  %v580_v37 = vpack.c.bf16 %v548_v34, %v548_v34  ;;  %v5030_v34 = vld [vmem:[%s5981_s1 + $0x1f0] sm:$0xff] }
  0x70   : > { %v4032_v39 = vor.u32 %v4846_v36, %v4031_v31  ;;  %v4211_v40 = vld [vmem:[#allocation3 + $0x1f8] sm:$0xf]  ;;  %678 = vst [vmem:[#allocation3 + $0x4] sm:$0xf] %v646_v28  ;;  %3479 = vmatpush.bf16.msra.mxu3 %v5030_v34  ;;  %v912_v34 = vld [vmem:[#allocation2 + $0x91] sm:$0xff] }
  0x71   : > { %2933 = vmatmul.bf16.gmra.mxu3 %v4464_v30  ;;  %v4891_v42 = vld [vmem:[#allocation3 + $0x218] sm:$0xf0]  ;;  %612 = vst [vmem:[#allocation3 + $0x438] sm:$0xf] %v580_v37 }
  0x72   : > { %2873 = vmatmul.bf16.gmra.mxu0 %v4032_v39  ;;  %v549_v44 = vld [vmem:[#allocation2 + $0x170] sm:$0xff]  ;;  %679 = vst [vmem:[#allocation3 + $0x28] sm:$0xf] %v647_v35  ;;  %v4212_v48 = vor.u32 %v4891_v42, %v4211_v40  ;;  %v812_v40 = vld [vmem:[#allocation2 + $0x60] sm:$0xff] }
  0x73   : > { %v581_v49 = vpack.c.bf16 %v549_v44, %v549_v44  ;;  %v524_v50 = vld [vmem:[#allocation2 + $0x48] sm:$0xff]  ;;  %774 = vst [vmem:[#allocation3 + $0x8] sm:$0xf] %v742_v38  ;;  %v844_v42 = vpack.c.bf16 %v812_v40, %v812_v40 }
  0x74   : > { %v525_v54 = vld [vmem:[#allocation2 + $0x50] sm:$0xff]  ;;  %v556_v55 = vpack.c.bf16 %v524_v50, %v524_v50  ;;  %775 = vst [vmem:[#allocation3 + $0x2c] sm:$0xf] %v743_v41  ;;  %v813_v41 = vld [vmem:[#allocation2 + $0x68] sm:$0xff] }
  0x75   : > { %v4355_v56 = vld [vmem:[#allocation3 + $0x318] sm:$0xf]  ;;  %613 = vst [vmem:[#allocation3 + $0x45c] sm:$0xf] %v581_v49  ;;  %v557_v3 = vpack.c.bf16 %v525_v54, %v525_v54  ;;  %v717_v37 = vld [vmem:[#allocation2 + $0x52] sm:$0xff]  ;;  %v845_v43 = vpack.c.bf16 %v813_v41, %v813_v41  ;;  %v941_v49 = vpack.c.bf16 %v909_v46, %v909_v46 }
  0x76   : > { %v4927_v57 = vld [vmem:[#allocation3 + $0x338] sm:$0xf0]  ;;  %588 = vst [vmem:[#allocation3 + $0xd8] sm:$0xf] %v556_v55  ;;  %v749_v39 = vpack.c.bf16 %v717_v37, %v717_v37  ;;  %v908_v44 = vld [vmem:[#allocation2 + $0x61] sm:$0xff] }
  0x77   : > { %2898 = vmatmul.bf16.gmra.mxu1 %v4212_v48  ;;  %v4356_v61 = vor.u32 %v4927_v57, %v4355_v56  ;;  %589 = vst [vmem:[#allocation3 + $0xfc] sm:$0xf] %v557_v3  ;;  %v4824_v16 = vld [vmem:[#allocation3 + $0x4] sm:$0xf]  ;;  %v940_v48 = vpack.c.bf16 %v908_v44, %v908_v44 }
  0x78   : > { %870 = vst [vmem:[#allocation3 + $0xc] sm:$0xf] %v5517_v45  ;;  %v4499_v2 = vld [vmem:[#allocation3 + $0x438] sm:$0xf] }
  0x79   : > { %871 = vst [vmem:[#allocation3 + $0x30] sm:$0xf] %v5528_v53  ;;  %v937_v53 = vpack.c.bf16 %v5556_v18, %v5556_v18  ;;  %v3961_v17 = vld [vmem:[#allocation3 + $0x24] sm:$0xf0] }
  0x7a   : > { %966 = vst [vmem:[#allocation3 + $0x10] sm:$0xf] %v934_v59  ;;  %v3964_v19 = vor.u32 %v4824_v16, %v3961_v17  ;;  %v3967_v20 = vld [vmem:[#allocation3 + $0x8] sm:$0xf] }
  0x7b   : > { %2918 = vmatmul.bf16.gmra.mxu2 %v4356_v61  ;;  %967 = vst [vmem:[#allocation3 + $0x34] sm:$0xf] %v935_v62  ;;  %v4829_v22 = vld [vmem:[#allocation3 + $0x28] sm:$0xf0] }
  0x7c   : > { %v4963_v9 = vld [vmem:[#allocation3 + $0x458] sm:$0xf0]  ;;  %680 = vst [vmem:[#allocation3 + $0x4c] sm:$0xf] %v934_v59  ;;  %v3968_v18 = vor.u32 %v4829_v22, %v3967_v20 }
  0x7d   : > { %v4500_v52 = vor.u32 %v4963_v9, %v4499_v2  ;;  %v4067_v12 = vld [vmem:[#allocation3 + $0xd8] sm:$0xf]  ;;  %681 = vst [vmem:[#allocation3 + $0x70] sm:$0xf] %v935_v62 }
  0x7e   : > { %v4855_v13 = vld [vmem:[#allocation3 + $0xf8] sm:$0xf0]  ;;  %776 = vst [vmem:[#allocation3 + $0x50] sm:$0xf] %v744_v4  ;;  %v814_v4 = vld [vmem:[#allocation2 + $0x78] sm:$0xff] }
  0x7f   : > { %v4068_v45 = vor.u32 %v4855_v13, %v4067_v12  ;;  %777 = vst [vmem:[#allocation3 + $0x74] sm:$0xf] %v745_v7  ;;  %v4825_v27 = vld [vmem:[#allocation3 + $0xc] sm:$0xf]  ;;  %v719_v2 = vld [vmem:[#allocation2 + $0x6a] sm:$0xff]  ;;  %v750_v7 = vpack.c.bf16 %v718_v0, %v718_v0  ;;  %v846_v12 = vpack.c.bf16 %v814_v4, %v814_v4 }
  0x80   : > { %872 = vst [vmem:[#allocation3 + $0x54] sm:$0xf] %v5591_v58  ;;  %v938_v58 = vpack.c.bf16 %v5612_v15, %v5612_v15  ;;  %v3969_v28 = vld [vmem:[#allocation3 + $0x2c] sm:$0xf0]  ;;  %v751_v9 = vpack.c.bf16 %v719_v2, %v719_v2 }
  0x81   : > { %2938 = vmatmul.bf16.gmra.mxu3 %v4500_v52  ;;  %873 = vst [vmem:[#allocation3 + $0x78] sm:$0xf] %v5604_v5  ;;  %v939_v5 = vpack.c.bf16 %v5618_v1, %v5618_v1  ;;  %v3975_v29 = vld [vmem:[#allocation3 + $0x10] sm:$0xf]  ;;  %v3972_v31 = vor.u32 %v4825_v27, %v3969_v28  ;;  %v5022_v1 = vld [vmem:[%s5981_s1 + $0x1b0] sm:$0xff] }
  0x82   : > { %2878 = vmatmul.bf16.gmra.mxu0 %v4068_v45  ;;  %968 = vst [vmem:[#allocation3 + $0x58] sm:$0xf] %v936_v60  ;;  %v4830_v30 = vld [vmem:[#allocation3 + $0x30] sm:$0xf0]  ;;  %3390 = vmatpush.bf16.msra.mxu2 %v5022_v1 }
  0x83   : > { %969 = vst [vmem:[#allocation3 + $0x7c] sm:$0xf] %v937_v53  ;;  %v3976_v32 = vor.u32 %v4830_v30, %v3975_v29  ;;  %v4833_v15 = vld [vmem:[#allocation3 + $0x4c] sm:$0xf]  ;;  %v815_v52 = vld [vmem:[#allocation2 + $0x80] sm:$0xff]  ;;  %v5013_v30 = vld [vmem:[%s5981_s1 + $0x168] sm:$0xff] }
  0x84   : > { %682 = vst [vmem:[#allocation3 + $0x94] sm:$0xf] %v936_v60  ;;  %v3997_v33 = vld [vmem:[#allocation3 + $0x6c] sm:$0xf0]  ;;  %v847_v13 = vpack.c.bf16 %v815_v52, %v815_v52 }
  0x85   : > { %683 = vst [vmem:[#allocation3 + $0xb8] sm:$0xf] %v937_v53  ;;  %v4003_v35 = vld [vmem:[#allocation3 + $0x50] sm:$0xf] }
  0x86   : > { %874 = vst [vmem:[#allocation3 + $0x9c] sm:$0xf] %v556_v55  ;;  %v4838_v36 = vld [vmem:[#allocation3 + $0x70] sm:$0xf0]  ;;  %v910_v60 = vld [vmem:[#allocation2 + $0x79] sm:$0xff] }
  0x87   : > { %2952 = vmatmul.bf16.vlgmr.msrb.gmra.mxu1 %v3964_v19  ;;  %778 = vst [vmem:[#allocation3 + $0x98] sm:$0xf] %v746_v24  ;;  %v4004_v47 = vor.u32 %v4838_v36, %v4003_v35  ;;  %v4834_v50 = vld [vmem:[#allocation3 + $0x54] sm:$0xf]  ;;  %v942_v16 = vpack.c.bf16 %v910_v60, %v910_v60  ;;  %v944_v35 = vpack.c.bf16 %v912_v34, %v912_v34 }
  0x88   : > { %779 = vst [vmem:[#allocation3 + $0xbc] sm:$0xf] %v747_v26  ;;  %v4005_v51 = vld [vmem:[#allocation3 + $0x74] sm:$0xf0] }
  0x89   : > { %875 = vst [vmem:[#allocation3 + $0xc0] sm:$0xf] %v557_v3  ;;  %v4011_v54 = vld [vmem:[#allocation3 + $0x58] sm:$0xf]  ;;  %v4008_v56 = vor.u32 %v4834_v50, %v4005_v51 }
  0x8a   : > { %970 = vst [vmem:[#allocation3 + $0xa0] sm:$0xf] %v938_v58  ;;  %v4839_v55 = vld [vmem:[#allocation3 + $0x78] sm:$0xf0]  ;;  %v911_v45 = vld [vmem:[#allocation2 + $0x81] sm:$0xff] }
  0x8b   : > { %3041 = vmatmul.bf16.vlgmr.msrb.gmra.mxu2 %v3968_v18  ;;  %971 = vst [vmem:[#allocation3 + $0xc4] sm:$0xf] %v939_v5  ;;  %v4012_v3 = vor.u32 %v4839_v55, %v4011_v54  ;;  %v4842_v57 = vld [vmem:[#allocation3 + $0x94] sm:$0xf]  ;;  %v943_v17 = vpack.c.bf16 %v911_v45, %v911_v45  ;;  %v946_v55 = vpack.c.bf16 %v5559_v21, %v5559_v21 }
  0x8c   : > { %684 = vst [vmem:[#allocation3 + $0xdc] sm:$0xf] %v938_v58  ;;  %v4033_v59 = vld [vmem:[#allocation3 + $0xb4] sm:$0xf0] }
  0x8d   : > { %685 = vst [vmem:[#allocation3 + $0x100] sm:$0xf] %v939_v5  ;;  %v4036_v61 = vor.u32 %v4842_v57, %v4033_v59  ;;  %v4843_v19 = vld [vmem:[#allocation3 + $0x9c] sm:$0xf] }
  0x8e   : > { %880 = vst [vmem:[#allocation3 + $0x174] sm:$0xf] %v5547_v11  ;;  %v5014_v11 = vld [vmem:[%s5981_s1 + $0x170] sm:$0xff]  ;;  %v4039_v62 = vld [vmem:[#allocation3 + $0x98] sm:$0xf] }
  0x8f   : > { %881 = vst [vmem:[#allocation3 + $0x198] sm:$0xf] %v5551_v14  ;;  %v4000_v14 = vor.u32 %v4833_v15, %v3997_v33  ;;  %3301 = vmatpush.bf16.msra.mxu1 %v5014_v11  ;;  %v4847_v63 = vld [vmem:[#allocation3 + $0xb8] sm:$0xf0]  ;;  %v721_v15 = vld [vmem:[#allocation2 + $0x82] sm:$0xff]  ;;  %v913_v11 = vld [vmem:[#allocation2 + $0x99] sm:$0xff] }
  0x90   : > { %882 = vst [vmem:[#allocation3 + $0x1bc] sm:$0xf] %v5607_v10  ;;  %v5038_v10 = vld [vmem:[%s5981_s1 + $0x230] sm:$0xff]  ;;  %v4040_v53 = vor.u32 %v4847_v63, %v4039_v62  ;;  %v5021_v58 = vld [vmem:[%s5981_s1 + $0x1a8] sm:$0xff]  ;;  %v753_v1 = vpack.c.bf16 %v721_v15, %v721_v15 }
  0x91   : > { %3130 = vmatmul.bf16.vlgmr.msrb.gmra.mxu3 %v3972_v31  ;;  %883 = vst [vmem:[#allocation3 + $0x1e0] sm:$0xf] %v5610_v8  ;;  %v716_v8 = vld [vmem:[#allocation2 + $0x4a] sm:$0xff]  ;;  %3568 = vmatpush.bf16.msra.mxu0 %v5038_v10  ;;  %v945_v10 = vpack.c.bf16 %v913_v11, %v913_v11 }
  0x92   : > { %3219 = vmatmul.bf16.vlgmr.msrb.gmra.mxu0 %v3976_v32  ;;  %v748_v38 = vpack.c.bf16 %v716_v8, %v716_v8  ;;  %781 = vst [vmem:[#allocation3 + $0x104] sm:$0xf] %v749_v39  ;;  %v4041_v20 = vld [vmem:[#allocation3 + $0xbc] sm:$0xf0]  ;;  %v4848_v6 = vld [vmem:[#allocation3 + $0xc0] sm:$0xf0]  ;;  %3391 = vmatpush.bf16.msra.mxu2 %v5021_v58 }
  0x93   : > { %876 = vst [vmem:[#allocation3 + $0xe4] sm:$0xf] %v844_v42  ;;  %v4047_v22 = vld [vmem:[#allocation3 + $0xa0] sm:$0xf]  ;;  %v4044_v23 = vor.u32 %v4843_v19, %v4041_v20  ;;  %v4851_v26 = vld [vmem:[#allocation3 + $0xdc] sm:$0xf]  ;;  %3302 = vmatpush.bf16.msra.mxu1 %v5013_v30 }
  0x94   : > { %780 = vst [vmem:[#allocation3 + $0xe0] sm:$0xf] %v748_v38  ;;  %v4048_v24 = vor.u32 %v4848_v6, %v4047_v22  ;;  %v4069_v18 = vld [vmem:[#allocation3 + $0xfc] sm:$0xf0]  ;;  %v5029_v5 = vld [vmem:[%s5981_s1 + $0x1e8] sm:$0xff]  ;;  %v720_v32 = vld [vmem:[#allocation2 + $0x7a] sm:$0xff] }
  0x95   : > { %877 = vst [vmem:[#allocation3 + $0x108] sm:$0xf] %v845_v43  ;;  %v4072_v27 = vor.u32 %v4851_v26, %v4069_v18  ;;  %3480 = vmatpush.bf16.msra.mxu3 %v5029_v5  ;;  %v5037_v31 = vld [vmem:[%s5981_s1 + $0x228] sm:$0xff]  ;;  %v752_v33 = vpack.c.bf16 %v720_v32, %v720_v32  ;;  %v725_v19 = vld [vmem:[#allocation2 + $0xb2] sm:$0xff]  ;;  %v820_v6 = vld [vmem:[#allocation2 + $0xc0] sm:$0xff] }
  0x96   : > { %972 = vst [vmem:[#allocation3 + $0xe8] sm:$0xf] %v940_v48  ;;  %3569 = vmatpush.bf16.msra.mxu0 %v5037_v31  ;;  %v757_v22 = vpack.c.bf16 %v725_v19, %v725_v19  ;;  %v852_v26 = vpack.c.bf16 %v820_v6, %v820_v6  ;;  %v916_v58 = vld [vmem:[#allocation2 + $0xc1] sm:$0xff]  ;;  %v917_v5 = vld [vmem:[#allocation2 + $0xc9] sm:$0xff] }
  0x97   : > { %2957 = vmatmul.bf16.gmra.mxu1 %v4000_v14  ;;  %973 = vst [vmem:[#allocation3 + $0x10c] sm:$0xf] %v941_v49  ;;  %v949_v30 = vpack.c.bf16 %v917_v5, %v917_v5  ;;  %v4870_v31 = vld [vmem:[#allocation3 + $0x174] sm:$0xf]  ;;  %v4149_v32 = vld [vmem:[#allocation3 + $0x194] sm:$0xf0] }
  0x98   : > { %686 = vst [vmem:[#allocation3 + $0x124] sm:$0xf] %v940_v48  ;;  %v722_v48 = vld [vmem:[#allocation2 + $0x92] sm:$0xff]  ;;  %v728_v5 = vld [vmem:[#allocation2 + $0xda] sm:$0xff] }
  0x99   : > { %687 = vst [vmem:[#allocation3 + $0x148] sm:$0xf] %v941_v49  ;;  %v4856_v29 = vld [vmem:[#allocation3 + $0x100] sm:$0xf0]  ;;  %v723_v49 = vld [vmem:[#allocation2 + $0x9a] sm:$0xff]  ;;  %v754_v50 = vpack.c.bf16 %v722_v48, %v722_v48 }
  0x9a   : > { %782 = vst [vmem:[#allocation3 + $0x128] sm:$0xf] %v750_v7  ;;  %v4852_v36 = vld [vmem:[#allocation3 + $0xe4] sm:$0xf]  ;;  %v755_v51 = vpack.c.bf16 %v723_v49, %v723_v49  ;;  %v5020_v7 = vld [vmem:[%s5981_s1 + $0x1a0] sm:$0xff] }
  0x9b   : > { %3046 = vmatmul.bf16.gmra.mxu2 %v4004_v47  ;;  %783 = vst [vmem:[#allocation3 + $0x14c] sm:$0xf] %v751_v9  ;;  %v4075_v28 = vld [vmem:[#allocation3 + $0xe0] sm:$0xf]  ;;  %v5028_v9 = vld [vmem:[%s5981_s1 + $0x1e0] sm:$0xff] }
  0x9c   : > { %878 = vst [vmem:[#allocation3 + $0x12c] sm:$0xf] %v846_v12  ;;  %v4076_v14 = vor.u32 %v4856_v29, %v4075_v28  ;;  %v4077_v8 = vld [vmem:[#allocation3 + $0x104] sm:$0xf0]  ;;  %3392 = vmatpush.bf16.msra.mxu2 %v5020_v7  ;;  %3481 = vmatpush.bf16.msra.mxu3 %v5028_v9  ;;  %v5036_v28 = vld [vmem:[%s5981_s1 + $0x220] sm:$0xff]  ;;  %v948_v29 = vpack.c.bf16 %v916_v58, %v916_v58 }
  0x9d   : > { %879 = vst [vmem:[#allocation3 + $0x150] sm:$0xf] %v847_v13  ;;  %v4083_v37 = vld [vmem:[#allocation3 + $0xe8] sm:$0xf]  ;;  %v4080_v39 = vor.u32 %v4852_v36, %v4077_v8  ;;  %3570 = vmatpush.bf16.msra.mxu0 %v5036_v28  ;;  %v824_v28 = vld [vmem:[#allocation2 + $0xf0] sm:$0xff] }
  0x9e   : > { %974 = vst [vmem:[#allocation3 + $0x130] sm:$0xf] %v942_v16  ;;  %v4857_v38 = vld [vmem:[#allocation3 + $0x108] sm:$0xf0] }
  0x9f   : > { %975 = vst [vmem:[#allocation3 + $0x154] sm:$0xf] %v943_v17  ;;  %v4084_v40 = vor.u32 %v4857_v38, %v4083_v37  ;;  %v4860_v42 = vld [vmem:[#allocation3 + $0x124] sm:$0xf] }
  0xa0   : > { %688 = vst [vmem:[#allocation3 + $0x16c] sm:$0xf] %v942_v16  ;;  %v4105_v43 = vld [vmem:[#allocation3 + $0x144] sm:$0xf0]  ;;  %v5012_v16 = vld [vmem:[%s5981_s1 + $0x160] sm:$0xff] }
  0xa1   : > { %3135 = vmatmul.bf16.gmra.mxu3 %v4008_v56  ;;  %689 = vst [vmem:[#allocation3 + $0x190] sm:$0xf] %v943_v17  ;;  %v4108_v44 = vor.u32 %v4860_v42, %v4105_v43  ;;  %v4111_v46 = vld [vmem:[#allocation3 + $0x128] sm:$0xf]  ;;  %v947_v56 = vpack.c.bf16 %v5564_v25, %v5564_v25  ;;  %v724_v17 = vld [vmem:[#allocation2 + $0xaa] sm:$0xff]  ;;  %3303 = vmatpush.bf16.msra.mxu1 %v5012_v16  ;;  %v726_v43 = vld [vmem:[#allocation2 + $0xc2] sm:$0xff] }
  0xa2   : > { %3224 = vmatmul.bf16.gmra.mxu0 %v4012_v3  ;;  %784 = vst [vmem:[#allocation3 + $0x170] sm:$0xf] %v752_v33  ;;  %v4865_v47 = vld [vmem:[#allocation3 + $0x148] sm:$0xf0]  ;;  %v756_v20 = vpack.c.bf16 %v724_v17, %v724_v17  ;;  %v758_v48 = vpack.c.bf16 %v726_v43, %v726_v43 }
  0xa3   : > { %785 = vst [vmem:[#allocation3 + $0x194] sm:$0xf] %v753_v1  ;;  %v4112_v54 = vor.u32 %v4865_v47, %v4111_v46  ;;  %v4861_v57 = vld [vmem:[#allocation3 + $0x12c] sm:$0xf] }
  0xa4   : > { %976 = vst [vmem:[#allocation3 + $0x178] sm:$0xf] %v944_v35  ;;  %v4113_v59 = vld [vmem:[#allocation3 + $0x14c] sm:$0xf0]  ;;  %v822_v46 = vld [vmem:[#allocation2 + $0xd8] sm:$0xff] }
  0xa5   : > { %977 = vst [vmem:[#allocation3 + $0x19c] sm:$0xf] %v945_v10  ;;  %v4119_v62 = vld [vmem:[#allocation3 + $0x130] sm:$0xf]  ;;  %v4116_v0 = vor.u32 %v4861_v57, %v4113_v59 }
  0xa6   : > { %690 = vst [vmem:[#allocation3 + $0x1b4] sm:$0xf] %v944_v35  ;;  %v4866_v63 = vld [vmem:[#allocation3 + $0x150] sm:$0xf0] }
  0xa7   : > { %2962 = vmatmul.bf16.gmra.mxu1 %v4036_v61  ;;  %691 = vst [vmem:[#allocation3 + $0x1d8] sm:$0xf] %v945_v10  ;;  %v4120_v2 = vor.u32 %v4866_v63, %v4119_v62  ;;  %v4869_v4 = vld [vmem:[#allocation3 + $0x16c] sm:$0xf]  ;;  %v919_v57 = vld [vmem:[#allocation2 + $0xe1] sm:$0xff] }
  0xa8   : > { %786 = vst [vmem:[#allocation3 + $0x1b8] sm:$0xf] %v754_v50  ;;  %v4141_v25 = vld [vmem:[#allocation3 + $0x18c] sm:$0xf0]  ;;  %v951_v63 = vpack.c.bf16 %v919_v57, %v919_v57 }
  0xa9   : > { %787 = vst [vmem:[#allocation3 + $0x1dc] sm:$0xf] %v755_v51  ;;  %v4144_v12 = vor.u32 %v4869_v4, %v4141_v25  ;;  %v4147_v13 = vld [vmem:[#allocation3 + $0x170] sm:$0xf]  ;;  %v854_v51 = vpack.c.bf16 %v822_v46, %v822_v46 }
  0xaa   : > { %978 = vst [vmem:[#allocation3 + $0x1c0] sm:$0xf] %v946_v55  ;;  %v4874_v60 = vld [vmem:[#allocation3 + $0x190] sm:$0xf0] }
  0xab   : > { %3051 = vmatmul.bf16.gmra.mxu2 %v4040_v53  ;;  %v5679_v41 = vpop.f32.mrf.mxu1  ;;  %979 = vst [vmem:[#allocation3 + $0x1e4] sm:$0xf] %v947_v56  ;;  %v4155_v15 = vld [vmem:[#allocation3 + $0x178] sm:$0xf]  ;;  %v823_v50 = vld [vmem:[#allocation2 + $0xe0] sm:$0xff] }
  0xac   : > { %692 = vst [vmem:[#allocation3 + $0x1fc] sm:$0xf] %v946_v55  ;;  %v4875_v33 = vld [vmem:[#allocation3 + $0x198] sm:$0xf0]  ;;  %v855_v55 = vpack.c.bf16 %v823_v50, %v823_v50 }
  0xad   : > { %693 = vst [vmem:[#allocation3 + $0x220] sm:$0xf] %v947_v56  ;;  %v4156_v35 = vor.u32 %v4875_v33, %v4155_v15  ;;  %v4878_v36 = vld [vmem:[#allocation3 + $0x1b4] sm:$0xf]  ;;  %v918_v56 = vld [vmem:[#allocation2 + $0xd9] sm:$0xff]  ;;  %v856_v15 = vpack.c.bf16 %v824_v28, %v824_v28  ;;  %v922_v28 = vld [vmem:[#allocation2 + $0x109] sm:$0xff] }
  0xae   : > { %788 = vst [vmem:[#allocation3 + $0x200] sm:$0xf] %v756_v20  ;;  %v4177_v8 = vld [vmem:[#allocation3 + $0x1d4] sm:$0xf0]  ;;  %v950_v62 = vpack.c.bf16 %v918_v56, %v918_v56  ;;  %v5019_v20 = vld [vmem:[%s5981_s1 + $0x198] sm:$0xff] }
  0xaf   : > { %789 = vst [vmem:[#allocation3 + $0x224] sm:$0xf] %v757_v22  ;;  %v4180_v37 = vor.u32 %v4878_v36, %v4177_v8  ;;  %v4183_v38 = vld [vmem:[#allocation3 + $0x1b8] sm:$0xf]  ;;  %v5027_v22 = vld [vmem:[%s5981_s1 + $0x1d8] sm:$0xff]  ;;  %3393 = vmatpush.bf16.msra.mxu2 %v5019_v20 }
  0xb0   : > { %884 = vst [vmem:[#allocation3 + $0x204] sm:$0xf] %v852_v26  ;;  %3482 = vmatpush.bf16.msra.mxu3 %v5027_v22  ;;  %v921_v36 = vld [vmem:[#allocation2 + $0xf9] sm:$0xff] }
  0xb1   : > { %3140 = vmatmul.bf16.gmra.mxu3 %v4044_v23  ;;  %v821_v23 = vld [vmem:[#allocation2 + $0xc8] sm:$0xff]  ;;  %980 = vst [vmem:[#allocation3 + $0x208] sm:$0xf] %v948_v29  ;;  %v4191_v4 = vld [vmem:[#allocation3 + $0x1c0] sm:$0xf]  ;;  %v953_v43 = vpack.c.bf16 %v921_v36, %v921_v36 }
  0xb2   : > { %3229 = vmatmul.bf16.gmra.mxu0 %v4048_v24  ;;  %v853_v18 = vpack.c.bf16 %v821_v23, %v821_v23  ;;  %981 = vst [vmem:[#allocation3 + $0x22c] sm:$0xf] %v949_v30  ;;  %v4884_v25 = vld [vmem:[#allocation3 + $0x1e0] sm:$0xf0] }
  0xb3   : > { %v5687_v61 = vpop.f32.mrf.mxu1  ;;  %694 = vst [vmem:[#allocation3 + $0x244] sm:$0xf] %v948_v29  ;;  %v4887_v17 = vld [vmem:[#allocation3 + $0x1fc] sm:$0xf]  ;;  %v5011_v29 = vld [vmem:[%s5981_s1 + $0x158] sm:$0xff] }
  0xb4   : > { %885 = vst [vmem:[#allocation3 + $0x228] sm:$0xf] %v853_v18  ;;  %v4213_v19 = vld [vmem:[#allocation3 + $0x21c] sm:$0xf0]  ;;  %3304 = vmatpush.bf16.msra.mxu1 %v5011_v29 }
  0xb5   : > { %695 = vst [vmem:[#allocation3 + $0x268] sm:$0xf] %v949_v30  ;;  %v4216_v6 = vor.u32 %v4887_v17, %v4213_v19  ;;  %v4219_v23 = vld [vmem:[#allocation3 + $0x200] sm:$0xf]  ;;  %v760_v30 = vpack.c.bf16 %v728_v5, %v728_v5  ;;  %v731_v17 = vld [vmem:[#allocation2 + $0xfa] sm:$0xff]  ;;  %v826_v19 = vld [vmem:[#allocation2 + $0x108] sm:$0xff] }
  0xb6   : > { %790 = vst [vmem:[#allocation3 + $0x248] sm:$0xf] %v758_v48  ;;  %v4892_v26 = vld [vmem:[#allocation3 + $0x220] sm:$0xf0] }
  0xb7   : > { %2967 = vmatmul.bf16.gmra.mxu1 %v4072_v27  ;;  %v4148_v27 = vor.u32 %v4874_v60, %v4147_v13  ;;  %886 = vst [vmem:[#allocation3 + $0x24c] sm:$0xf] %v854_v51  ;;  %v4192_v13 = vor.u32 %v4884_v25, %v4191_v4  ;;  %v923_v29 = vld [vmem:[#allocation2 + $0x111] sm:$0xff] }
  0xb8   : > { %887 = vst [vmem:[#allocation3 + $0x270] sm:$0xf] %v855_v55  ;;  %v4227_v48 = vld [vmem:[#allocation3 + $0x208] sm:$0xf] }
  0xb9   : > { %982 = vst [vmem:[#allocation3 + $0x250] sm:$0xf] %v950_v62 }
  0xba   : > { %983 = vst [vmem:[#allocation3 + $0x274] sm:$0xf] %v951_v63 }
  0xbb   : > { %3056 = vmatmul.bf16.gmra.mxu2 %v4076_v14  ;;  %v4152_v14 = vor.u32 %v4870_v31, %v4149_v32  ;;  %696 = vst [vmem:[#allocation3 + $0x28c] sm:$0xf] %v950_v62  ;;  %v825_v32 = vld [vmem:[#allocation2 + $0xf8] sm:$0xff]  ;;  %v4896_v62 = vld [vmem:[#allocation3 + $0x244] sm:$0xf] }
  0xbc   : > { %697 = vst [vmem:[#allocation3 + $0x2b0] sm:$0xf] %v951_v63  ;;  %v4221_v46 = vld [vmem:[#allocation3 + $0x224] sm:$0xf0] }
  0xbd   : > { %792 = vst [vmem:[#allocation3 + $0x290] sm:$0xf] %v760_v30  ;;  %v4249_v63 = vld [vmem:[#allocation3 + $0x264] sm:$0xf0] }
  0xbe   : > { %888 = vst [vmem:[#allocation3 + $0x294] sm:$0xf] %v856_v15  ;;  %v955_v15 = vpack.c.bf16 %v923_v29, %v923_v29 }
  0xbf   : > { %985 = vst [vmem:[#allocation3 + $0x2bc] sm:$0xf] %v953_v43 }
  0xc0   : > { %699 = vst [vmem:[#allocation3 + $0x2f8] sm:$0xf] %v953_v43 }
  0xc1   : > { %3145 = vmatmul.bf16.gmra.mxu3 %v4080_v39  ;;  %v4883_v39 = vld [vmem:[#allocation3 + $0x1d8] sm:$0xf0]  ;;  %v4902_v36 = vld [vmem:[#allocation3 + $0x270] sm:$0xf0]  ;;  %987 = vst [vmem:[#allocation3 + $0x304] sm:$0xf] %v955_v15 }
  0xc2   : > { %3234 = vmatmul.bf16.gmra.mxu0 %v4084_v40  ;;  %v4184_v59 = vor.u32 %v4883_v39, %v4183_v38  ;;  %v5035_v38 = vld [vmem:[%s5981_s1 + $0x218] sm:$0xff]  ;;  %701 = vst [vmem:[#allocation3 + $0x340] sm:$0xf] %v955_v15  ;;  %v925_v15 = vld [vmem:[#allocation2 + $0x129] sm:$0xff] }
  0xc3   : > { %3571 = vmatpush.bf16.msra.mxu0 %v5035_v38 }
  0xc7   : > { %2972 = vmatmul.bf16.gmra.mxu1 %v4108_v44  ;;  %v727_v44 = vld [vmem:[#allocation2 + $0xca] sm:$0xff] }
  0xc8   : > { %v759_v49 = vpack.c.bf16 %v727_v44, %v727_v44  ;;  %v4888_v44 = vld [vmem:[#allocation3 + $0x204] sm:$0xf] }
  0xc9   : > { %v5685_v3 = vpop.f32.mrf.mxu0  ;;  %v4224_v55 = vor.u32 %v4888_v44, %v4221_v46 }
  0xca   : > { %791 = vst [vmem:[#allocation3 + $0x26c] sm:$0xf] %v759_v49  ;;  %v4893_v49 = vld [vmem:[#allocation3 + $0x228] sm:$0xf0] }
  0xcb   : > { %3061 = vmatmul.bf16.gmra.mxu2 %v4112_v54  ;;  %v4228_v56 = vor.u32 %v4893_v49, %v4227_v48 }
  0xce   : > { %v5689_v21 = vpop.f32.mrf.mxu2 }
  0xd1   : > { %3150 = vmatmul.bf16.gmra.mxu3 %v4116_v0  ;;  %v5697_v52 = vpop.f32.mrf.mxu0  ;;  %v4879_v0 = vld [vmem:[#allocation3 + $0x1bc] sm:$0xf]  ;;  %v4901_v4 = vld [vmem:[#allocation3 + $0x268] sm:$0xf0] }
  0xd2   : > { %3239 = vmatmul.bf16.gmra.mxu0 %v4120_v2  ;;  %v4185_v2 = vld [vmem:[#allocation3 + $0x1dc] sm:$0xf0] }
  0xd4   : > { %v5699_v45 = vpop.f32.mrf.mxu3  ;;  %v5701_v53 = vpop.f32.mrf.mxu1 }
  0xd6   : > { %v5706_v24 = vpop.f32.mrf.mxu2 }
  0xd7   : > { %2977 = vmatmul.bf16.gmra.mxu1 %v4144_v12  ;;  %v4188_v12 = vor.u32 %v4879_v0, %v4185_v2  ;;  %v4252_v0 = vor.u32 %v4896_v62, %v4249_v63  ;;  %v4255_v2 = vld [vmem:[#allocation3 + $0x248] sm:$0xf]  ;;  %v5018_v62 = vld [vmem:[%s5981_s1 + $0x190] sm:$0xff] }
  0xd8   : > { %v5026_v63 = vld [vmem:[%s5981_s1 + $0x1d0] sm:$0xff]  ;;  %3394 = vmatpush.bf16.msra.mxu2 %v5018_v62 }
  0xd9   : > { %3483 = vmatpush.bf16.msra.mxu3 %v5026_v63 }
  0xdb   : > { %3066 = vmatmul.bf16.gmra.mxu2 %v4148_v27  ;;  %v729_v27 = vld [vmem:[#allocation2 + $0xe2] sm:$0xff] }
  0xdc   : > { %v5711_v1 = vpop.f32.mrf.mxu3  ;;  %v5713_v34 = vpop.f32.mrf.mxu1  ;;  %v761_v31 = vpack.c.bf16 %v729_v27, %v729_v27 }
  0xdd   : > { %v5715_v11 = vpop.f32.mrf.mxu0 }
  0xde   : > { %v5717_v10 = vpop.f32.mrf.mxu2  ;;  %793 = vst [vmem:[#allocation3 + $0x2b4] sm:$0xf] %v761_v31  ;;  %v4256_v31 = vor.u32 %v4901_v4, %v4255_v2 }
  0xe1   : > { %3155 = vmatmul.bf16.gmra.mxu3 %v4152_v14  ;;  %v857_v14 = vpack.c.bf16 %v825_v32, %v825_v32  ;;  %v954_v32 = vpack.c.bf16 %v922_v28, %v922_v28 }
  0xe2   : > { %3244 = vmatmul.bf16.gmra.mxu0 %v4156_v35  ;;  %v920_v35 = vld [vmem:[#allocation2 + $0xf1] sm:$0xff] }
  0xe3   : > { %v952_v39 = vpack.c.bf16 %v920_v35, %v920_v35  ;;  %889 = vst [vmem:[#allocation3 + $0x2b8] sm:$0xf] %v857_v14  ;;  %v4897_v14 = vld [vmem:[#allocation3 + $0x24c] sm:$0xf]  ;;  %v4263_v35 = vld [vmem:[#allocation3 + $0x250] sm:$0xf] }
  0xe4   : > { %v5719_v40 = vpop.f32.mrf.mxu3  ;;  %v5721_v42 = vpop.f32.mrf.mxu1  ;;  %986 = vst [vmem:[#allocation3 + $0x2e0] sm:$0xf] %v954_v32  ;;  %v4264_v44 = vor.u32 %v4902_v36, %v4263_v35 }
  0xe5   : > { %v5723_v47 = vpop.f32.mrf.mxu0  ;;  %984 = vst [vmem:[#allocation3 + $0x298] sm:$0xf] %v952_v39  ;;  %v4910_v2 = vld [vmem:[#allocation3 + $0x2b0] sm:$0xf0] }
  0xe6   : > { %v5725_v54 = vpop.f32.mrf.mxu2  ;;  %698 = vst [vmem:[#allocation3 + $0x2d4] sm:$0xf] %v952_v39 }
  0xe7   : > { %2982 = vmatmul.bf16.gmra.mxu1 %v4180_v37  ;;  %v4220_v37 = vor.u32 %v4892_v26, %v4219_v23  ;;  %v827_v23 = vld [vmem:[#allocation2 + $0x110] sm:$0xff]  ;;  %v858_v26 = vpack.c.bf16 %v826_v19, %v826_v19  ;;  %700 = vst [vmem:[#allocation3 + $0x31c] sm:$0xf] %v954_v32  ;;  %v828_v19 = vld [vmem:[#allocation2 + $0x120] sm:$0xff] }
  0xe8   : > { %v859_v27 = vpack.c.bf16 %v827_v23, %v827_v23  ;;  %v860_v29 = vpack.c.bf16 %v828_v19, %v828_v19  ;;  %v924_v32 = vld [vmem:[#allocation2 + $0x121] sm:$0xff] }
  0xe9   : > { %890 = vst [vmem:[#allocation3 + $0x2dc] sm:$0xf] %v858_v26  ;;  %v956_v36 = vpack.c.bf16 %v924_v32, %v924_v32 }
  0xea   : > { %891 = vst [vmem:[#allocation3 + $0x300] sm:$0xf] %v859_v27  ;;  %v829_v27 = vld [vmem:[#allocation2 + $0x128] sm:$0xff] }
  0xeb   : > { %3071 = vmatmul.bf16.gmra.mxu2 %v4184_v59  ;;  %892 = vst [vmem:[#allocation3 + $0x324] sm:$0xf] %v860_v29 }
  0xec   : > { %v5727_v7 = vpop.f32.mrf.mxu3  ;;  %v5729_v9 = vpop.f32.mrf.mxu1  ;;  %988 = vst [vmem:[#allocation3 + $0x328] sm:$0xf] %v956_v36 }
  0xed   : > { %702 = vst [vmem:[#allocation3 + $0x364] sm:$0xf] %v956_v36  ;;  %v927_v36 = vld [vmem:[#allocation2 + $0x141] sm:$0xff] }
  0xee   : > { %v5731_v60 = vpop.f32.mrf.mxu2 }
  0xef   : > { %v5733_v16 = vpop.f32.mrf.mxu0 }
  0xf1   : > { %3160 = vmatmul.bf16.gmra.mxu3 %v4188_v12 }
  0xf2   : > { %3249 = vmatmul.bf16.gmra.mxu0 %v4192_v13  ;;  %v730_v13 = vld [vmem:[#allocation2 + $0xf2] sm:$0xff] }
  0xf3   : > { %v762_v22 = vpack.c.bf16 %v730_v13, %v730_v13  ;;  %v732_v13 = vld [vmem:[#allocation2 + $0x10a] sm:$0xff] }
  0xf4   : > { %v5741_v18 = vpop.f32.mrf.mxu3  ;;  %v5743_v58 = vpop.f32.mrf.mxu1  ;;  %v764_v23 = vpack.c.bf16 %v732_v13, %v732_v13  ;;  %v4914_v13 = vld [vmem:[#allocation3 + $0x2d4] sm:$0xf] }
  0xf5   : > { %794 = vst [vmem:[#allocation3 + $0x2d8] sm:$0xf] %v762_v22 }
  0xf6   : > { %v5748_v33 = vpop.f32.mrf.mxu2  ;;  %796 = vst [vmem:[#allocation3 + $0x320] sm:$0xf] %v764_v23 }
  0xf7   : > { %v5750_v8 = vpop.f32.mrf.mxu0  ;;  %2987 = vmatmul.bf16.gmra.mxu1 %v4216_v6  ;;  %v763_v6 = vpack.c.bf16 %v731_v17, %v731_v17  ;;  %v733_v17 = vld [vmem:[#allocation2 + $0x112] sm:$0xff] }
  0xf8   : > { %v765_v26 = vpack.c.bf16 %v733_v17, %v733_v17  ;;  %v4321_v17 = vld [vmem:[#allocation3 + $0x2f4] sm:$0xf0] }
  0xf9   : > { %795 = vst [vmem:[#allocation3 + $0x2fc] sm:$0xf] %v763_v6  ;;  %v5010_v6 = vld [vmem:[%s5981_s1 + $0x150] sm:$0xff]  ;;  %v4324_v19 = vor.u32 %v4914_v13, %v4321_v17 }
  0xfa   : > { %3305 = vmatpush.bf16.msra.mxu1 %v5010_v6  ;;  %797 = vst [vmem:[#allocation3 + $0x344] sm:$0xf] %v765_v26 }
  0xfb   : > { %3076 = vmatmul.bf16.gmra.mxu2 %v4220_v37 }
  0xfc   : > { %v5755_v50 = vpop.f32.mrf.mxu3  ;;  %v5757_v51 = vpop.f32.mrf.mxu1 }
  0xfe   : > { %v5759_v57 = vpop.f32.mrf.mxu2 }
  0xff   : > { %v5761_v59 = vpop.f32.mrf.mxu0 }
 0x100   : > { %v4919_v6 = vld [vmem:[#allocation3 + $0x2f8] sm:$0xf0] }
 0x101   : > { %3165 = vmatmul.bf16.gmra.mxu3 %v4224_v55  ;;  %v4905_v55 = vld [vmem:[#allocation3 + $0x28c] sm:$0xf] }
 0x102   : > { %3254 = vmatmul.bf16.gmra.mxu0 %v4228_v56  ;;  %v4285_v56 = vld [vmem:[#allocation3 + $0x2ac] sm:$0xf0] }
 0x104   : > { %v5763_v25 = vpop.f32.mrf.mxu3  ;;  %v2953_v12 = vpop.f32.mrf.mxu1 }
 0x105   : > { %v2954_v20 = vadd.f32 %v2953_v12, %v5685_v3  ;;  %v4257_v3 = vld [vmem:[#allocation3 + $0x26c] sm:$0xf0] }
 0x106   : > { %v5766_v5 = vpop.f32.mrf.mxu2  ;;  %v4260_v39 = vor.u32 %v4897_v14, %v4257_v3 }
 0x107   : > { %v5768_v30 = vpop.f32.mrf.mxu0  ;;  %2992 = vmatmul.bf16.gmra.mxu1 %v4252_v0  ;;  %v4288_v0 = vor.u32 %v4905_v55, %v4285_v56 }
 0x10b   : > { %3081 = vmatmul.bf16.gmra.mxu2 %v4256_v31  ;;  %v861_v31 = vpack.c.bf16 %v829_v27, %v829_v27  ;;  %v734_v27 = vld [vmem:[#allocation2 + $0x122] sm:$0xff] }
 0x10c   : > { %v5770_v37 = vpop.f32.mrf.mxu3  ;;  %v2955_v38 = vpop.f32.mrf.mxu1  ;;  %v766_v32 = vpack.c.bf16 %v734_v27, %v734_v27  ;;  %v5017_v27 = vld [vmem:[%s5981_s1 + $0x188] sm:$0xff] }
 0x10d   : > { %v2956_v43 = vadd.f32 %v2955_v38, %v5697_v52  ;;  %v4291_v52 = vld [vmem:[#allocation3 + $0x290] sm:$0xf]  ;;  %v957_v38 = vpack.c.bf16 %v925_v15, %v925_v15  ;;  %893 = vst [vmem:[#allocation3 + $0x348] sm:$0xf] %v861_v31  ;;  %3395 = vmatpush.bf16.msra.mxu2 %v5017_v27 }
 0x10e   : > { %v3042_v46 = vpop.f32.mrf.mxu2  ;;  %v4292_v35 = vor.u32 %v4910_v2, %v4291_v52  ;;  %v831_v15 = vld [vmem:[#allocation2 + $0x140] sm:$0xff]  ;;  %798 = vst [vmem:[#allocation3 + $0x368] sm:$0xf] %v766_v32 }
 0x10f   : > { %v3220_v48 = vpop.f32.mrf.mxu0  ;;  %v3043_v49 = vadd.f32 %v3042_v46, %v2954_v20  ;;  %v4293_v46 = vld [vmem:[#allocation3 + $0x2b4] sm:$0xf0]  ;;  %989 = vst [vmem:[#allocation3 + $0x34c] sm:$0xf] %v957_v38 }
 0x110   : > { %703 = vst [vmem:[#allocation3 + $0x388] sm:$0xf] %v957_v38 }
 0x111   : > { %3170 = vmatmul.bf16.gmra.mxu3 %v4260_v39 }
 0x112   : > { %3259 = vmatmul.bf16.gmra.mxu0 %v4264_v44  ;;  %v4906_v44 = vld [vmem:[#allocation3 + $0x294] sm:$0xf] }
 0x113   : > { %v4296_v63 = vor.u32 %v4906_v44, %v4293_v46 }
 0x114   : > { %v3131_v4 = vpop.f32.mrf.mxu3  ;;  %v2958_v12 = vpop.f32.mrf.mxu1 }
 0x115   : > { %v3132_v20 = vadd.f32 %v3131_v4, %v3043_v49  ;;  %v2959_v22 = vadd.f32 %v2958_v12, %v5715_v11  ;;  %v5034_v11 = vld [vmem:[%s5981_s1 + $0x210] sm:$0xff]  ;;  %v4911_v49 = vld [vmem:[#allocation3 + $0x2b8] sm:$0xf0] }
 0x116   : > { %v3044_v28 = vpop.f32.mrf.mxu2  ;;  %3572 = vmatpush.bf16.msra.mxu0 %v5034_v11  ;;  %v926_v11 = vld [vmem:[#allocation2 + $0x139] sm:$0xff] }
 0x117   : > { %v3222_v14 = vpop.f32.mrf.mxu0  ;;  %v3045_v3 = vadd.f32 %v3044_v28, %v2956_v43  ;;  %2997 = vmatmul.bf16.gmra.mxu1 %v4288_v0  ;;  %v5786_v39 = vadd.f32 %v3220_v48, %v3132_v20  ;;  %v4299_v43 = vld [vmem:[#allocation3 + $0x298] sm:$0xf] }
 0x118   : > { %v4300_v52 = vor.u32 %v4911_v49, %v4299_v43  ;;  %v4327_v20 = vld [vmem:[#allocation3 + $0x2d8] sm:$0xf]  ;;  %v958_v43 = vpack.c.bf16 %v926_v11, %v926_v11  ;;  %v959_v49 = vpack.c.bf16 %v927_v36, %v927_v36 }
 0x119   : > { %v735_v28 = vld [vmem:[#allocation2 + $0x12a] sm:$0xff]  ;;  %v4328_v46 = vor.u32 %v4919_v6, %v4327_v20 }
 0x11a   : > { %990 = vst [vmem:[#allocation3 + $0x370] sm:$0xf] %v958_v43  ;;  %v5009_v11 = vld [vmem:[%s5981_s1 + $0x148] sm:$0xff] }
 0x11b   : > { %3086 = vmatmul.bf16.gmra.mxu2 %v4292_v35  ;;  %v863_v35 = vpack.c.bf16 %v831_v15, %v831_v15  ;;  %991 = vst [vmem:[#allocation3 + $0x394] sm:$0xf] %v959_v49  ;;  %v737_v15 = vld [vmem:[#allocation2 + $0x142] sm:$0xff]  ;;  %3306 = vmatpush.bf16.msra.mxu1 %v5009_v11 }
 0x11c   : > { %v3133_v55 = vpop.f32.mrf.mxu3  ;;  %v2960_v56 = vpop.f32.mrf.mxu1  ;;  %704 = vst [vmem:[#allocation3 + $0x3ac] sm:$0xf] %v958_v43 }
 0x11d   : > { %v3134_v62 = vadd.f32 %v3133_v55, %v3045_v3  ;;  %v2961_v0 = vadd.f32 %v2960_v56, %v5723_v47  ;;  %v830_v47 = vld [vmem:[#allocation2 + $0x138] sm:$0xff]  ;;  %v4329_v56 = vld [vmem:[#allocation3 + $0x2fc] sm:$0xf0]  ;;  %895 = vst [vmem:[#allocation3 + $0x390] sm:$0xf] %v863_v35 }
 0x11e   : > { %v3047_v48 = vpop.f32.mrf.mxu2  ;;  %v862_v3 = vpack.c.bf16 %v830_v47, %v830_v47  ;;  %705 = vst [vmem:[#allocation3 + $0x3d0] sm:$0xf] %v959_v49  ;;  %v4363_v47 = vld [vmem:[#allocation3 + $0x320] sm:$0xf] }
 0x11f   : > { %v3225_v2 = vpop.f32.mrf.mxu0  ;;  %v3048_v4 = vadd.f32 %v3047_v48, %v2959_v22  ;;  %v5789_v12 = vadd.f32 %v3222_v14, %v3134_v62  ;;  %v767_v22 = vpack.c.bf16 %v735_v28, %v735_v28  ;;  %v4335_v62 = vld [vmem:[#allocation3 + $0x2e0] sm:$0xf] }
 0x120   : > { %894 = vst [vmem:[#allocation3 + $0x36c] sm:$0xf] %v862_v3 }
 0x121   : > { %3175 = vmatmul.bf16.gmra.mxu3 %v4296_v63  ;;  %799 = vst [vmem:[#allocation3 + $0x38c] sm:$0xf] %v767_v22  ;;  %v4920_v63 = vld [vmem:[#allocation3 + $0x300] sm:$0xf0]  ;;  %v736_v22 = vld [vmem:[#allocation2 + $0x13a] sm:$0xff] }
 0x122   : > { %3264 = vmatmul.bf16.gmra.mxu0 %v4300_v52  ;;  %v4336_v17 = vor.u32 %v4920_v63, %v4335_v62  ;;  %v768_v36 = vpack.c.bf16 %v736_v22, %v736_v22  ;;  %v4932_v22 = vld [vmem:[#allocation3 + $0x364] sm:$0xf] }
 0x124   : > { %v3136_v23 = vpop.f32.mrf.mxu3  ;;  %v2963_v26 = vpop.f32.mrf.mxu1  ;;  %800 = vst [vmem:[#allocation3 + $0x3b0] sm:$0xf] %v768_v36 }
 0x125   : > { %v3137_v29 = vadd.f32 %v3136_v23, %v3048_v4  ;;  %v2964_v31 = vadd.f32 %v2963_v26, %v5733_v16  ;;  %v4915_v16 = vld [vmem:[#allocation3 + $0x2dc] sm:$0xf]  ;;  %v4357_v26 = vld [vmem:[#allocation3 + $0x33c] sm:$0xf0] }
 0x126   : > { %v3049_v14 = vpop.f32.mrf.mxu2  ;;  %v4332_v4 = vor.u32 %v4915_v16, %v4329_v56  ;;  %v4923_v23 = vld [vmem:[#allocation3 + $0x31c] sm:$0xf]  ;;  %v928_v16 = vld [vmem:[#allocation2 + $0x151] sm:$0xff]  ;;  %v929_v56 = vld [vmem:[#allocation2 + $0x159] sm:$0xff] }
 0x127   : > { %v3227_v38 = vpop.f32.mrf.mxu0  ;;  %v3050_v44 = vadd.f32 %v3049_v14, %v2961_v0  ;;  %3002 = vmatmul.bf16.gmra.mxu1 %v4324_v19  ;;  %v5792_v55 = vadd.f32 %v3225_v2, %v3137_v29  ;;  %v4360_v28 = vor.u32 %v4923_v23, %v4357_v26  ;;  %v4928_v29 = vld [vmem:[#allocation3 + $0x340] sm:$0xf0] }
 0x128   : > { %v832_v14 = vld [vmem:[#allocation2 + $0x150] sm:$0xff]  ;;  %v4937_v11 = vld [vmem:[#allocation3 + $0x388] sm:$0xf0] }
 0x129   : > { %v864_v43 = vpack.c.bf16 %v832_v14, %v832_v14 }
 0x12b   : > { %3091 = vmatmul.bf16.gmra.mxu2 %v4328_v46  ;;  %896 = vst [vmem:[#allocation3 + $0x3b4] sm:$0xf] %v864_v43 }
 0x12c   : > { %v3138_v52 = vpop.f32.mrf.mxu3  ;;  %v2965_v48 = vpop.f32.mrf.mxu1 }
 0x12d   : > { %v3139_v0 = vadd.f32 %v3138_v52, %v3050_v44  ;;  %v2966_v13 = vadd.f32 %v2965_v48, %v5750_v8  ;;  %v5025_v8 = vld [vmem:[%s5981_s1 + $0x1c8] sm:$0xff]  ;;  %v833_v44 = vld [vmem:[#allocation2 + $0x158] sm:$0xff]  ;;  %v4364_v52 = vor.u32 %v4928_v29, %v4363_v47  ;;  %v960_v48 = vpack.c.bf16 %v928_v16, %v928_v16 }
 0x12e   : > { %v3052_v19 = vpop.f32.mrf.mxu2  ;;  %3484 = vmatpush.bf16.msra.mxu3 %v5025_v8  ;;  %v865_v49 = vpack.c.bf16 %v833_v44, %v833_v44  ;;  %v738_v44 = vld [vmem:[#allocation2 + $0x152] sm:$0xff] }
 0x12f   : > { %v3230_v2 = vpop.f32.mrf.mxu0  ;;  %v3053_v20 = vadd.f32 %v3052_v19, %v2964_v31  ;;  %v5795_v6 = vadd.f32 %v3227_v38, %v3139_v0  ;;  %v769_v38 = vpack.c.bf16 %v737_v15, %v737_v15  ;;  %v961_v0 = vpack.c.bf16 %v929_v56, %v929_v56  ;;  %v4365_v19 = vld [vmem:[#allocation3 + $0x344] sm:$0xf0]  ;;  %992 = vst [vmem:[#allocation3 + $0x3b8] sm:$0xf] %v960_v48 }
 0x130   : > { %897 = vst [vmem:[#allocation3 + $0x3d8] sm:$0xf] %v865_v49  ;;  %v4393_v15 = vld [vmem:[#allocation3 + $0x384] sm:$0xf0]  ;;  %v770_v49 = vpack.c.bf16 %v738_v44, %v738_v44 }
 0x131   : > { %3180 = vmatmul.bf16.gmra.mxu3 %v4332_v4  ;;  %801 = vst [vmem:[#allocation3 + $0x3d4] sm:$0xf] %v769_v38  ;;  %v4396_v14 = vor.u32 %v4932_v22, %v4393_v15  ;;  %v5198_v56 = vld [vmem:[%s5324_s7 + $0x78] sm:$0xff]   ;;  %v4401_v22 = vld [vmem:[#allocation3 + $0x38c] sm:$0xf0]  ;;  %s273_s7 = scalar_lea.vmem %s5986_s6, %s3955_s20 }
 0x132   : > { %3269 = vmatmul.bf16.gmra.mxu0 %v4336_v17  ;;  %v4924_v17 = vld [vmem:[#allocation3 + $0x324] sm:$0xf]  ;;  %993 = vst [vmem:[#allocation3 + $0x3dc] sm:$0xf] %v961_v0 }
 0x133   : > { %v4368_v8 = vor.u32 %v4924_v17, %v4365_v19  ;;  %706 = vst [vmem:[#allocation3 + $0x3f4] sm:$0xf] %v960_v48  ;;  %v931_v48 = vld [vmem:[#allocation2 + $0x171] sm:$0xff]  ;;  %v5103_v17 = vunpack.c.h.bf16 %v5198_v56 }
 0x134   : > { %v3141_v31 = vpop.f32.mrf.mxu3  ;;  %v2968_v32 = vpop.f32.mrf.mxu1  ;;  %707 = vst [vmem:[#allocation3 + $0x418] sm:$0xf] %v961_v0  ;;  %v5102_v0 = vunpack.c.l.bf16 %v5198_v56 }
 0x135   : > { %v3142_v3 = vadd.f32 %v3141_v31, %v3053_v20  ;;  %v2969_v35 = vadd.f32 %v2968_v32, %v5761_v59  ;;  %v5033_v59 = vld [vmem:[%s5981_s1 + $0x208] sm:$0xff]  ;;  %v4929_v20 = vld [vmem:[#allocation3 + $0x348] sm:$0xf0]  ;;  %802 = vst [vmem:[#allocation3 + $0x3f8] sm:$0xf] %v770_v49 }
 0x136   : > { %v3054_v46 = vpop.f32.mrf.mxu2  ;;  %3573 = vmatpush.bf16.msra.mxu0 %v5033_v59  ;;  %v930_v59 = vld [vmem:[#allocation2 + $0x169] sm:$0xff] }
 0x137   : > { %v3232_v62 = vpop.f32.mrf.mxu0  ;;  %v3055_v63 = vadd.f32 %v3054_v46, %v2966_v13  ;;  %3007 = vmatmul.bf16.gmra.mxu1 %v4360_v28  ;;  %v5810_v4 = vadd.f32 %v3230_v2, %v3142_v3  ;;  %v4371_v13 = vld [vmem:[#allocation3 + $0x328] sm:$0xf]  ;;  %v834_v46 = vld [vmem:[#allocation2 + $0x168] sm:$0xff] }
 0x138   : > { %v4372_v47 = vor.u32 %v4929_v20, %v4371_v13  ;;  %v4399_v3 = vld [vmem:[#allocation3 + $0x368] sm:$0xf] }
 0x139   : > { %v4400_v20 = vor.u32 %v4937_v11, %v4399_v3  ;;  %v4407_v3 = vld [vmem:[#allocation3 + $0x370] sm:$0xf]  ;;  %v4938_v11 = vld [vmem:[#allocation3 + $0x390] sm:$0xf0] }
 0x13b   : > { %3096 = vmatmul.bf16.gmra.mxu2 %v4364_v52 }
 0x13c   : > { %v3143_v23 = vpop.f32.mrf.mxu3  ;;  %v2970_v26 = vpop.f32.mrf.mxu1 }
 0x13d   : > { %v3144_v27 = vadd.f32 %v3143_v23, %v3055_v63  ;;  %v2971_v28 = vadd.f32 %v2970_v26, %v5768_v30  ;;  %v739_v30 = vld [vmem:[#allocation2 + $0x15a] sm:$0xff]  ;;  %v866_v63 = vpack.c.bf16 %v834_v46, %v834_v46  ;;  %v962_v23 = vpack.c.bf16 %v930_v59, %v930_v59 }
 0x13e   : > { %v3057_v2 = vpop.f32.mrf.mxu2  ;;  %v771_v16 = vpack.c.bf16 %v739_v30, %v739_v30  ;;  %v963_v26 = vpack.c.bf16 %v931_v48, %v931_v48  ;;  %v4429_v59 = vld [vmem:[#allocation3 + $0x3cc] sm:$0xf0] }
 0x13f   : > { %v3235_v29 = vpop.f32.mrf.mxu0  ;;  %v3058_v31 = vadd.f32 %v3057_v2, %v2969_v35  ;;  %v5813_v32 = vadd.f32 %v3232_v62, %v3144_v27  ;;  %v835_v35 = vld [vmem:[#allocation2 + $0x170] sm:$0xff]  ;;  %v5249_v27 = vld [vmem:[%s5982_s2] ss:$0 sm:$0xff]  ;;  %898 = vst [vmem:[#allocation3 + $0x3fc] sm:$0xf] %v866_v63 }
 0x140   : > { %v867_v52 = vpack.c.bf16 %v835_v35, %v835_v35  ;;  %803 = vst [vmem:[#allocation3 + $0x41c] sm:$0xf] %v771_v16  ;;  %v4408_v16 = vor.u32 %v4938_v11, %v4407_v3  ;;  %v5016_v48 = vld [vmem:[%s5981_s1 + $0x180] sm:$0xff] }
 0x141   : > { %3185 = vmatmul.bf16.gmra.mxu3 %v4368_v8  ;;  %v415_v8 = vmul.f32 %v5249_v27, %v5102_v0  ;;  %994 = vst [vmem:[#allocation3 + $0x400] sm:$0xf] %v962_v23  ;;  %v4435_v0 = vld [vmem:[#allocation3 + $0x3b0] sm:$0xf]  ;;  %3396 = vmatpush.bf16.msra.mxu2 %v5016_v48 }
 0x142   : > { %3274 = vmatmul.bf16.gmra.mxu0 %v4372_v47  ;;  %v416_v47 = vmul.f32 %v5249_v27, %v5103_v17  ;;  %899 = vst [vmem:[#allocation3 + $0x420] sm:$0xf] %v867_v52  ;;  %v4941_v52 = vld [vmem:[#allocation3 + $0x3ac] sm:$0xf]  ;;  %v5032_v3 = vld [vmem:[%s5981_s1 + $0x200] sm:$0xff] }
 0x143   : > { %995 = vst [vmem:[#allocation3 + $0x424] sm:$0xf] %v963_v26  ;;  %3574 = vmatpush.bf16.msra.mxu0 %v5032_v3 }
 0x144   : > { %v3146_v36 = vpop.f32.mrf.mxu3  ;;  %v2973_v38 = vpop.f32.mrf.mxu1  ;;  %708 = vst [vmem:[#allocation3 + $0x43c] sm:$0xf] %v962_v23  ;;  %v741_v23 = vld [vmem:[#allocation2 + $0x172] sm:$0xff] }
 0x145   : > { %v3147_v43 = vadd.f32 %v3146_v36, %v3058_v31  ;;  %v4933_v31 = vld [vmem:[#allocation3 + $0x36c] sm:$0xf]  ;;  %v2974_v46 = vadd.f32 %v2973_v38, %v5679_v41  ;;  %709 = vst [vmem:[#allocation3 + $0x460] sm:$0xf] %v963_v26  ;;  %v5024_v41 = vld [vmem:[%s5981_s1 + $0x1c0] sm:$0xff]  ;;  %v4432_v38 = vor.u32 %v4941_v52, %v4429_v59 }
 0x146   : > { %v3059_v62 = vpop.f32.mrf.mxu2  ;;  %3485 = vmatpush.bf16.msra.mxu3 %v5024_v41  ;;  %v4947_v52 = vld [vmem:[#allocation3 + $0x3d8] sm:$0xf0] }
 0x147   : > { %v3237_v19 = vpop.f32.mrf.mxu0  ;;  %v3060_v13 = vadd.f32 %v3059_v62, %v2971_v28  ;;  %3012 = vmatmul.bf16.gmra.mxu1 %v4396_v14  ;;  %v5819_v2 = vadd.f32 %v3235_v29, %v3147_v43  ;;  %v5250_v28 = vld [vmem:[%s5983_s3] ss:$0 sm:$0xff]  ;;  %v4404_v43 = vor.u32 %v4933_v31, %v4401_v22  ;;  %v773_v31 = vpack.c.bf16 %v741_v23, %v741_v23  ;;  %v4465_v23 = vld [vmem:[#allocation3 + $0x414] sm:$0xf0] }
 0x148   : > { %v451_v15 = vadd.f32 %v5250_v28, %v415_v8  ;;  %v452_v14 = vadd.f32 %v5250_v28, %v416_v47  ;;  %v5008_v8 = vld [vmem:[%s5981_s1 + $0x140] sm:$0xff] }
 0x149   : > { %3307 = vmatpush.bf16.msra.mxu1 %v5008_v8  ;;  %805 = vst [vmem:[#allocation3 + $0x464] sm:$0xf] %v773_v31  ;;  %v4955_v8 = vld [vmem:[#allocation3 + $0x418] sm:$0xf0] }
 0x14a   : > { %v483_v30 = vmax.f32 %v451_v15, 0.0  ;;  %v484_v49 = vmax.f32 %v452_v14, 0.0 }
 0x14b   : > { %3101 = vmatmul.bf16.gmra.mxu2 %v4400_v20  ;;  %v740_v20 = vld [vmem:[#allocation2 + $0x16a] sm:$0xff] }
 0x14c   : > { %v3148_v36 = vpop.f32.mrf.mxu3  ;;  %v2975_v44 = vpop.f32.mrf.mxu1  ;;  %516 = vst [vmem:[#allocation2 + $0x181] sm:$0xff] %v483_v30  ;;  %v772_v47 = vpack.c.bf16 %v740_v20, %v740_v20  ;;  %v4950_v20 = vld [vmem:[#allocation3 + $0x3f4] sm:$0xf] }
 0x14d   : > { %v3149_v29 = vadd.f32 %v3148_v36, %v3060_v13  ;;  %517 = vst [vmem:[#allocation2 + $0x189] sm:$0xff] %v484_v49  ;;  %v4946_v13 = vld [vmem:[#allocation3 + $0x3d0] sm:$0xf0]  ;;  %v2976_v27 = vadd.f32 %v2975_v44, %v5687_v61  ;;  %v964_v36 = vpack.c.bf16 %v483_v30, %v483_v30 }
 0x14e   : > { %v3062_v35 = vpop.f32.mrf.mxu2  ;;  %v4436_v14 = vor.u32 %v4946_v13, %v4435_v0  ;;  %804 = vst [vmem:[#allocation3 + $0x440] sm:$0xf] %v772_v47 }
 0x14f   : > { %v3240_v56 = vpop.f32.mrf.mxu0  ;;  %v3063_v62 = vadd.f32 %v3062_v35, %v2974_v46  ;;  %v5825_v63 = vadd.f32 %v3237_v19, %v3149_v29  ;;  %v965_v29 = vpack.c.bf16 %v484_v49, %v484_v49  ;;  %996 = vst [vmem:[#allocation3 + $0x448] sm:$0xf] %v964_v36  ;;  %v4437_v35 = vld [vmem:[#allocation3 + $0x3d4] sm:$0xf0]  ;;  %v1096_v36 = vld [vmem:[#allocation2 + $0x38] sm:$0xff] }
 0x151   : > { %3190 = vmatmul.bf16.gmra.mxu3 %v4404_v43  ;;  %997 = vst [vmem:[#allocation3 + $0x46c] sm:$0xf] %v965_v29 }
 0x152   : > { %3279 = vmatmul.bf16.gmra.mxu0 %v4408_v16  ;;  %v4942_v16 = vld [vmem:[#allocation3 + $0x3b4] sm:$0xf] }
 0x153   : > { %v836_v11 = vld [vmem:[#allocation2 + $0x180] sm:$0xff] }
 0x154   : > { %v3151_v17 = vpop.f32.mrf.mxu3  ;;  %v2978_v19 = vpop.f32.mrf.mxu1  ;;  %v837_v61 = vld [vmem:[#allocation2 + $0x188] sm:$0xff]  ;;  %v868_v44 = vpack.c.bf16 %v836_v11, %v836_v11 }
 0x155   : > { %v3152_v26 = vadd.f32 %v3151_v17, %v3063_v62  ;;  %v869_v43 = vpack.c.bf16 %v837_v61, %v837_v61  ;;  %v4443_v62 = vld [vmem:[#allocation3 + $0x3b8] sm:$0xf]  ;;  %v2979_v41 = vadd.f32 %v2978_v19, %v5701_v53  ;;  %v1192_v61 = vld [vmem:[#allocation2 + $0x39] sm:$0xff] }
 0x156   : > { %v3064_v22 = vpop.f32.mrf.mxu2  ;;  %900 = vst [vmem:[#allocation3 + $0x444] sm:$0xf] %v868_v44  ;;  %v4444_v49 = vor.u32 %v4947_v52, %v4443_v62 }
 0x157   : > { %v3242_v28 = vpop.f32.mrf.mxu0  ;;  %v3065_v15 = vadd.f32 %v3064_v22, %v2976_v27  ;;  %3017 = vmatmul.bf16.gmra.mxu1 %v4432_v38  ;;  %v5840_v46 = vadd.f32 %v3240_v56, %v3152_v26  ;;  %901 = vst [vmem:[#allocation3 + $0x468] sm:$0xf] %v869_v43  ;;  %v4440_v38 = vor.u32 %v4942_v16, %v4437_v35  ;;  %v4471_v27 = vld [vmem:[#allocation3 + $0x3f8] sm:$0xf]  ;;  %v998_v22 = vld [vmem:[#allocation2 + $0x1a] sm:$0xff]  ;;  %v1287_v16 = vld [vmem:[#allocation2 + $0x32] sm:$0xff] }
 0x158   : > { %v4468_v26 = vor.u32 %v4950_v20, %v4465_v23  ;;  %v1030_v3 = vpack.c.bf16 %v998_v22, %v998_v22  ;;  %v1128_v43 = vpack.c.bf16 %v1096_v36, %v1096_v36  ;;  %v4472_v52 = vor.u32 %v4955_v8, %v4471_v27  ;;  %v4956_v20 = vld [vmem:[#allocation3 + $0x420] sm:$0xf0]  ;;  %v4507_v36 = vld [vmem:[#allocation3 + $0x440] sm:$0xf] }
 0x15a   : > { %1062 = vst [vmem:[#allocation3 + $0x14] sm:$0xf] %v1030_v3  ;;  %v4501_v3 = vld [vmem:[#allocation3 + $0x45c] sm:$0xf0] }
 0x15b   : > { %3106 = vmatmul.bf16.gmra.mxu2 %v4436_v14  ;;  %v1095_v14 = vld [vmem:[#allocation2 + $0x30] sm:$0xff]  ;;  %1160 = vst [vmem:[#allocation3 + $0x3c] sm:$0xf] %v1128_v43 }
 0x15c   : > { %v3153_v59 = vpop.f32.mrf.mxu3  ;;  %v2980_v48 = vpop.f32.mrf.mxu1  ;;  %v1127_v29 = vpack.c.bf16 %v1095_v14, %v1095_v14 }
 0x15d   : > { %v3154_v30 = vadd.f32 %v3153_v59, %v3065_v15  ;;  %v999_v15 = vld [vmem:[#allocation2 + $0x22] sm:$0xff]  ;;  %v2981_v19 = vadd.f32 %v2980_v48, %v5713_v34  ;;  %v1319_v34 = vpack.c.bf16 %v1287_v16, %v1287_v16  ;;  %v4951_v48 = vld [vmem:[#allocation3 + $0x3fc] sm:$0xf] }
 0x15e   : > { %v3067_v56 = vpop.f32.mrf.mxu2  ;;  %v1031_v11 = vpack.c.bf16 %v999_v15, %v999_v15  ;;  %1159 = vst [vmem:[#allocation3 + $0x18] sm:$0xf] %v1127_v29 }
 0x15f   : > { %v3245_v0 = vpop.f32.mrf.mxu0  ;;  %v3068_v17 = vadd.f32 %v3067_v56, %v2979_v41  ;;  %v5843_v13 = vadd.f32 %v3242_v28, %v3154_v30  ;;  %v1191_v28 = vld [vmem:[#allocation2 + $0x31] sm:$0xff]  ;;  %v1288_v30 = vld [vmem:[#allocation2 + $0x3a] sm:$0xff]  ;;  %v1224_v41 = vpack.c.bf16 %v1192_v61, %v1192_v61  ;;  %1351 = vst [vmem:[#allocation3 + $0x20] sm:$0xf] %v1319_v34 }
 0x160   : > { %v1223_v59 = vpack.c.bf16 %v1191_v28, %v1191_v28  ;;  %1063 = vst [vmem:[#allocation3 + $0x38] sm:$0xf] %v1031_v11  ;;  %v1320_v56 = vpack.c.bf16 %v1288_v30, %v1288_v30 }
 0x161   : > { %3195 = vmatmul.bf16.gmra.mxu3 %v4440_v38  ;;  %1256 = vst [vmem:[#allocation3 + $0x40] sm:$0xf] %v1224_v41 }
 0x162   : > { %3284 = vmatmul.bf16.gmra.mxu0 %v4444_v49  ;;  %v4473_v49 = vld [vmem:[#allocation3 + $0x41c] sm:$0xf0]  ;;  %1255 = vst [vmem:[#allocation3 + $0x1c] sm:$0xf] %v1223_v59 }
 0x163   : > { %1352 = vst [vmem:[#allocation3 + $0x44] sm:$0xf] %v1320_v56 }
 0x164   : > { %v3156_v47 = vpop.f32.mrf.mxu3  ;;  %v2983_v31 = vpop.f32.mrf.mxu1  ;;  %1064 = vst [vmem:[#allocation3 + $0x5c] sm:$0xf] %v1319_v34  ;;  %v1289_v34 = vld [vmem:[#allocation2 + $0x4a] sm:$0xff] }
 0x165   : > { %v3157_v53 = vadd.f32 %v3156_v47, %v3068_v17  ;;  %v4479_v17 = vld [vmem:[#allocation3 + $0x400] sm:$0xf]  ;;  %v2984_v8 = vadd.f32 %v2983_v31, %v5721_v42  ;;  %v4476_v47 = vor.u32 %v4951_v48, %v4473_v49  ;;  %1065 = vst [vmem:[#allocation3 + $0x80] sm:$0xf] %v1320_v56  ;;  %v4964_v42 = vld [vmem:[#allocation3 + $0x460] sm:$0xf0] }
 0x166   : > { %v3069_v44 = vpop.f32.mrf.mxu2  ;;  %v1097_v31 = vld [vmem:[#allocation2 + $0x48] sm:$0xff]  ;;  %v1290_v48 = vld [vmem:[#allocation2 + $0x52] sm:$0xff] }
 0x167   : > { %v3247_v35 = vpop.f32.mrf.mxu0  ;;  %v3070_v62 = vadd.f32 %v3069_v44, %v2981_v19  ;;  %3022 = vmatmul.bf16.gmra.mxu1 %v4468_v26  ;;  %v5846_v38 = vadd.f32 %v3245_v0, %v3157_v53  ;;  %v4480_v0 = vor.u32 %v4956_v20, %v4479_v17  ;;  %v4959_v19 = vld [vmem:[#allocation3 + $0x43c] sm:$0xf]  ;;  %v1098_v44 = vld [vmem:[#allocation2 + $0x50] sm:$0xff]  ;;  %v1129_v16 = vpack.c.bf16 %v1097_v31, %v1097_v31  ;;  %v4826_v31 = vld [vmem:[#allocation3 + $0x14] sm:$0xf] }
 0x168   : > { %v4504_v11 = vor.u32 %v4959_v19, %v4501_v3  ;;  %v4508_v17 = vor.u32 %v4964_v42, %v4507_v36  ;;  %v1321_v20 = vpack.c.bf16 %v1289_v34, %v1289_v34 }
 0x169   : > { %1161 = vst [vmem:[#allocation3 + $0x60] sm:$0xf] %v1129_v16  ;;  %v4831_v16 = vld [vmem:[#allocation3 + $0x38] sm:$0xf0] }
 0x16a   : > { %1353 = vst [vmem:[#allocation3 + $0x68] sm:$0xf] %v1321_v20 }
 0x16b   : > { %3111 = vmatmul.bf16.gmra.mxu2 %v4472_v52  ;;  %v1193_v52 = vld [vmem:[#allocation2 + $0x49] sm:$0xff]  ;;  %1066 = vst [vmem:[#allocation3 + $0xa4] sm:$0xf] %v1321_v20 }
 0x16c   : > { %v3158_v23 = vpop.f32.mrf.mxu3  ;;  %v2985_v26 = vpop.f32.mrf.mxu1  ;;  %v1225_v30 = vpack.c.bf16 %v1193_v52, %v1193_v52  ;;  %v1291_v20 = vld [vmem:[#allocation2 + $0x62] sm:$0xff] }
 0x16d   : > { %v3159_v27 = vadd.f32 %v3158_v23, %v3070_v62  ;;  %v2986_v43 = vadd.f32 %v2985_v26, %v5729_v9  ;;  %v1130_v62 = vpack.c.bf16 %v1098_v44, %v1098_v44  ;;  %v1322_v23 = vpack.c.bf16 %v1290_v48, %v1290_v48  ;;  %v4960_v9 = vld [vmem:[#allocation3 + $0x444] sm:$0xf]  ;;  %v4509_v26 = vld [vmem:[#allocation3 + $0x464] sm:$0xf0]  ;;  %v3977_v44 = vld [vmem:[#allocation3 + $0x34] sm:$0xf0] }
 0x16e   : > { %v3072_v22 = vpop.f32.mrf.mxu2  ;;  %1257 = vst [vmem:[#allocation3 + $0x64] sm:$0xf] %v1225_v30  ;;  %v4512_v3 = vor.u32 %v4960_v9, %v4509_v26  ;;  %v1196_v48 = vld [vmem:[#allocation2 + $0x69] sm:$0xff] }
 0x16f   : > { %v3250_v15 = vpop.f32.mrf.mxu0  ;;  %v3073_v14 = vadd.f32 %v3072_v22, %v2984_v8  ;;  %v5849_v53 = vadd.f32 %v3247_v35, %v3159_v27  ;;  %v1194_v35 = vld [vmem:[#allocation2 + $0x51] sm:$0xff]  ;;  %1162 = vst [vmem:[#allocation3 + $0x84] sm:$0xf] %v1130_v62 }
 0x170   : > { %v1226_v41 = vpack.c.bf16 %v1194_v35, %v1194_v35  ;;  %v4515_v8 = vld [vmem:[#allocation3 + $0x448] sm:$0xf]  ;;  %1354 = vst [vmem:[#allocation3 + $0x8c] sm:$0xf] %v1322_v23  ;;  %v1099_v35 = vld [vmem:[#allocation2 + $0x60] sm:$0xff] }
 0x171   : > { %3200 = vmatmul.bf16.gmra.mxu3 %v4476_v47  ;;  %v4965_v47 = vld [vmem:[#allocation3 + $0x468] sm:$0xf0]  ;;  %1067 = vst [vmem:[#allocation3 + $0xc8] sm:$0xf] %v1322_v23  ;;  %v1292_v23 = vld [vmem:[#allocation2 + $0x6a] sm:$0xff] }
 0x172   : > { %3289 = vmatmul.bf16.gmra.mxu0 %v4480_v0  ;;  %1258 = vst [vmem:[#allocation3 + $0x88] sm:$0xf] %v1226_v41  ;;  %v1131_v41 = vpack.c.bf16 %v1099_v35, %v1099_v35  ;;  %v4835_v35 = vld [vmem:[#allocation3 + $0x5c] sm:$0xf] }
 0x174   : > { %v3161_v28 = vpop.f32.mrf.mxu3  ;;  %v2988_v61 = vpop.f32.mrf.mxu1  ;;  %1163 = vst [vmem:[#allocation3 + $0xa8] sm:$0xf] %v1131_v41 }
 0x175   : > { %v3162_v29 = vadd.f32 %v3161_v28, %v3073_v14  ;;  %v2989_v19 = vadd.f32 %v2988_v61, %v5743_v58  ;;  %v1100_v58 = vld [vmem:[#allocation2 + $0x68] sm:$0xff] }
 0x176   : > { %v3074_v59 = vpop.f32.mrf.mxu2  ;;  %v1195_v61 = vld [vmem:[#allocation2 + $0x61] sm:$0xff]  ;;  %v1132_v34 = vpack.c.bf16 %v1100_v58, %v1100_v58  ;;  %v4013_v58 = vld [vmem:[#allocation3 + $0x7c] sm:$0xf0] }
 0x177   : > { %v3252_v49 = vpop.f32.mrf.mxu0  ;;  %v3075_v56 = vadd.f32 %v3074_v59, %v2986_v43  ;;  %3027 = vmatmul.bf16.gmra.mxu1 %v4504_v11  ;;  %v5852_v27 = vadd.f32 %v3250_v15, %v3162_v29  ;;  %v4516_v11 = vor.u32 %v4965_v47, %v4515_v8  ;;  %v3980_v29 = vor.u32 %v4826_v31, %v3977_v44  ;;  %v3983_v43 = vld [vmem:[#allocation3 + $0x18] sm:$0xf] }
 0x178   : > { %v3984_v8 = vor.u32 %v4831_v16, %v3983_v43  ;;  %v1323_v47 = vpack.c.bf16 %v1291_v20, %v1291_v20  ;;  %1164 = vst [vmem:[#allocation3 + $0xcc] sm:$0xf] %v1132_v34 }
 0x17a   : > { %1355 = vst [vmem:[#allocation3 + $0xb0] sm:$0xf] %v1323_v47 }
 0x17b   : > { %3116 = vmatmul.bf16.gmra.mxu2 %v4508_v17  ;;  %v1228_v17 = vpack.c.bf16 %v1196_v48, %v1196_v48  ;;  %1068 = vst [vmem:[#allocation3 + $0xec] sm:$0xf] %v1323_v47  ;;  %v1101_v48 = vld [vmem:[#allocation2 + $0x78] sm:$0xff] }
 0x17c   : > { %v3163_v0 = vpop.f32.mrf.mxu3  ;;  %v2990_v22 = vpop.f32.mrf.mxu1  ;;  %v1293_v47 = vld [vmem:[#allocation2 + $0x7a] sm:$0xff] }
 0x17d   : > { %v3164_v14 = vadd.f32 %v3163_v0, %v3075_v56  ;;  %v2991_v30 = vadd.f32 %v2990_v22, %v5757_v51  ;;  %v1227_v56 = vpack.c.bf16 %v1195_v61, %v1195_v61  ;;  %v1324_v0 = vpack.c.bf16 %v1292_v23, %v1292_v23  ;;  %v4827_v51 = vld [vmem:[#allocation3 + $0x1c] sm:$0xf]  ;;  %v3985_v22 = vld [vmem:[#allocation3 + $0x3c] sm:$0xf0]  ;;  %1260 = vst [vmem:[#allocation3 + $0xd0] sm:$0xf] %v1228_v17 }
 0x17e   : > { %v3077_v36 = vpop.f32.mrf.mxu2  ;;  %v3988_v44 = vor.u32 %v4827_v51, %v3985_v22  ;;  %v4016_v61 = vor.u32 %v4835_v35, %v4013_v58  ;;  %v1133_v17 = vpack.c.bf16 %v1101_v48, %v1101_v48  ;;  %v1198_v23 = vld [vmem:[#allocation2 + $0x81] sm:$0xff]  ;;  %v4844_v48 = vld [vmem:[#allocation3 + $0xa4] sm:$0xf] }
 0x17f   : > { %v3255_v15 = vpop.f32.mrf.mxu0  ;;  %v3078_v28 = vadd.f32 %v3077_v36, %v2989_v19  ;;  %v5855_v42 = vadd.f32 %v3252_v49, %v3164_v14  ;;  %1259 = vst [vmem:[#allocation3 + $0xac] sm:$0xf] %v1227_v56  ;;  %v3991_v19 = vld [vmem:[#allocation3 + $0x20] sm:$0xf] }
 0x180   : > { %1356 = vst [vmem:[#allocation3 + $0xd4] sm:$0xf] %v1324_v0 }
 0x181   : > { %3205 = vmatmul.bf16.gmra.mxu3 %v4512_v3  ;;  %v4832_v3 = vld [vmem:[#allocation3 + $0x40] sm:$0xf0]  ;;  %1069 = vst [vmem:[#allocation3 + $0x110] sm:$0xf] %v1324_v0  ;;  %v1294_v0 = vld [vmem:[#allocation2 + $0x82] sm:$0xff] }
 0x182   : > { %3294 = vmatmul.bf16.gmra.mxu0 %v4516_v11  ;;  %1165 = vst [vmem:[#allocation3 + $0xf0] sm:$0xf] %v1133_v17 }
 0x184   : > { %v3166_v62 = vpop.f32.mrf.mxu3  ;;  %v2993_v52 = vpop.f32.mrf.mxu1 }
 0x185   : > { %v3167_v59 = vadd.f32 %v3166_v62, %v3078_v28  ;;  %v2994_v31 = vadd.f32 %v2993_v52, %v5689_v21  ;;  %v1102_v21 = vld [vmem:[#allocation2 + $0x80] sm:$0xff] }
 0x186   : > { %v3079_v49 = vpop.f32.mrf.mxu2  ;;  %v1197_v52 = vld [vmem:[#allocation2 + $0x79] sm:$0xff]  ;;  %v1134_v20 = vpack.c.bf16 %v1102_v21, %v1102_v21 }
 0x187   : > { %v3257_v9 = vpop.f32.mrf.mxu0  ;;  %v3080_v26 = vadd.f32 %v3079_v49, %v2991_v30  ;;  %3308 = vmatmul.bf16.vlgmr.msra.gmra.mxu1 %v3980_v29  ;;  %v5858_v14 = vadd.f32 %v3255_v15, %v3167_v59  ;;  %v3992_v29 = vor.u32 %v4832_v3, %v3991_v19  ;;  %v4019_v59 = vld [vmem:[#allocation3 + $0x60] sm:$0xf]  ;;  %v4840_v30 = vld [vmem:[#allocation3 + $0x80] sm:$0xf0]  ;;  %v1325_v3 = vpack.c.bf16 %v1293_v47, %v1293_v47  ;;  %v4049_v21 = vld [vmem:[#allocation3 + $0xc4] sm:$0xf0] }
 0x188   : > { %v4020_v19 = vor.u32 %v4840_v30, %v4019_v59  ;;  %1166 = vst [vmem:[#allocation3 + $0x114] sm:$0xf] %v1134_v20 }
 0x189   : > { %1357 = vst [vmem:[#allocation3 + $0xf8] sm:$0xf] %v1325_v3 }
 0x18a   : > { %1070 = vst [vmem:[#allocation3 + $0x134] sm:$0xf] %v1325_v3  ;;  %v1295_v3 = vld [vmem:[#allocation2 + $0x92] sm:$0xff] }
 0x18b   : > { %3397 = vmatmul.bf16.vlgmr.msra.gmra.mxu2 %v3984_v8  ;;  %v1230_v8 = vpack.c.bf16 %v1198_v23, %v1198_v23  ;;  %v1103_v23 = vld [vmem:[#allocation2 + $0x90] sm:$0xff] }
 0x18c   : > { %v3168_v11 = vpop.f32.mrf.mxu3  ;;  %v2995_v36 = vpop.f32.mrf.mxu1 }
 0x18d   : > { %v3169_v28 = vadd.f32 %v3168_v11, %v3080_v26  ;;  %v2996_v56 = vadd.f32 %v2995_v36, %v5706_v24  ;;  %v1229_v26 = vpack.c.bf16 %v1197_v52, %v1197_v52  ;;  %v1326_v11 = vpack.c.bf16 %v1294_v0, %v1294_v0  ;;  %v4836_v24 = vld [vmem:[#allocation3 + $0x64] sm:$0xf]  ;;  %v4021_v36 = vld [vmem:[#allocation3 + $0x84] sm:$0xf0]  ;;  %1262 = vst [vmem:[#allocation3 + $0x118] sm:$0xf] %v1230_v8 }
 0x18e   : > { %v3082_v43 = vpop.f32.mrf.mxu2  ;;  %v4024_v58 = vor.u32 %v4836_v24, %v4021_v36  ;;  %v4052_v52 = vor.u32 %v4844_v48, %v4049_v21  ;;  %v1135_v8 = vpack.c.bf16 %v1103_v23, %v1103_v23  ;;  %v1200_v0 = vld [vmem:[#allocation2 + $0x99] sm:$0xff] }
 0x18f   : > { %v3260_v15 = vpop.f32.mrf.mxu0  ;;  %v3083_v16 = vadd.f32 %v3082_v43, %v2994_v31  ;;  %v5861_v62 = vadd.f32 %v3257_v9, %v3169_v28  ;;  %1261 = vst [vmem:[#allocation3 + $0xf4] sm:$0xf] %v1229_v26  ;;  %v4027_v31 = vld [vmem:[#allocation3 + $0x68] sm:$0xf]  ;;  %v4853_v23 = vld [vmem:[#allocation3 + $0xec] sm:$0xf] }
 0x190   : > { %1358 = vst [vmem:[#allocation3 + $0x11c] sm:$0xf] %v1326_v11 }
 0x191   : > { %3486 = vmatmul.bf16.vlgmr.msra.gmra.mxu3 %v3988_v44  ;;  %v4841_v44 = vld [vmem:[#allocation3 + $0x88] sm:$0xf0]  ;;  %1071 = vst [vmem:[#allocation3 + $0x158] sm:$0xf] %v1326_v11 }
 0x192   : > { %3575 = vmatmul.bf16.vlgmr.msra.gmra.mxu0 %v3992_v29  ;;  %v1296_v11 = vld [vmem:[#allocation2 + $0x9a] sm:$0xff]  ;;  %1167 = vst [vmem:[#allocation3 + $0x138] sm:$0xf] %v1135_v8 }
 0x194   : > { %v3171_v41 = vpop.f32.mrf.mxu3  ;;  %v2998_v34 = vpop.f32.mrf.mxu1 }
 0x195   : > { %v3172_v49 = vadd.f32 %v3171_v41, %v3083_v16  ;;  %v2999_v35 = vadd.f32 %v2998_v34, %v5717_v10  ;;  %v1104_v10 = vld [vmem:[#allocation2 + $0x98] sm:$0xff] }
 0x196   : > { %v3084_v9 = vpop.f32.mrf.mxu2  ;;  %v1199_v34 = vld [vmem:[#allocation2 + $0x91] sm:$0xff]  ;;  %v1136_v47 = vpack.c.bf16 %v1104_v10, %v1104_v10  ;;  %v4085_v10 = vld [vmem:[#allocation3 + $0x10c] sm:$0xf0] }
 0x197   : > { %v3262_v51 = vpop.f32.mrf.mxu0  ;;  %v3085_v22 = vadd.f32 %v3084_v9, %v2996_v56  ;;  %3313 = vmatmul.bf16.gmra.mxu1 %v4016_v61  ;;  %v5864_v28 = vadd.f32 %v3260_v15, %v3172_v49  ;;  %v4028_v61 = vor.u32 %v4841_v44, %v4027_v31  ;;  %v4055_v49 = vld [vmem:[#allocation3 + $0xa8] sm:$0xf]  ;;  %v4849_v56 = vld [vmem:[#allocation3 + $0xc8] sm:$0xf0]  ;;  %v1327_v44 = vpack.c.bf16 %v1295_v3, %v1295_v3 }
 0x198   : > { %v4056_v31 = vor.u32 %v4849_v56, %v4055_v49  ;;  %1168 = vst [vmem:[#allocation3 + $0x15c] sm:$0xf] %v1136_v47 }
 0x199   : > { %1359 = vst [vmem:[#allocation3 + $0x140] sm:$0xf] %v1327_v44 }
 0x19a   : > { %1072 = vst [vmem:[#allocation3 + $0x17c] sm:$0xf] %v1327_v44  ;;  %v1297_v44 = vld [vmem:[#allocation2 + $0xaa] sm:$0xff] }
 0x19b   : > { %3402 = vmatmul.bf16.gmra.mxu2 %v4020_v19  ;;  %v1232_v19 = vpack.c.bf16 %v1200_v0, %v1200_v0  ;;  %v1105_v0 = vld [vmem:[#allocation2 + $0xa8] sm:$0xff] }
 0x19c   : > { %v3173_v29 = vpop.f32.mrf.mxu3  ;;  %v3000_v43 = vpop.f32.mrf.mxu1 }
 0x19d   : > { %v3174_v16 = vadd.f32 %v3173_v29, %v3085_v22  ;;  %v3001_v26 = vadd.f32 %v3000_v43, %v5725_v54  ;;  %v1231_v22 = vpack.c.bf16 %v1199_v34, %v1199_v34  ;;  %v1328_v29 = vpack.c.bf16 %v1296_v11, %v1296_v11  ;;  %v4845_v54 = vld [vmem:[#allocation3 + $0xac] sm:$0xf]  ;;  %v4057_v43 = vld [vmem:[#allocation3 + $0xcc] sm:$0xf0]  ;;  %1264 = vst [vmem:[#allocation3 + $0x160] sm:$0xf] %v1232_v19 }
 0x19e   : > { %v3087_v59 = vpop.f32.mrf.mxu2  ;;  %v4060_v21 = vor.u32 %v4845_v54, %v4057_v43  ;;  %v4088_v34 = vor.u32 %v4853_v23, %v4085_v10  ;;  %v1137_v19 = vpack.c.bf16 %v1105_v0, %v1105_v0  ;;  %v1202_v11 = vld [vmem:[#allocation2 + $0xb1] sm:$0xff]  ;;  %v4862_v0 = vld [vmem:[#allocation3 + $0x134] sm:$0xf] }
 0x19f   : > { %v3265_v15 = vpop.f32.mrf.mxu0  ;;  %v3088_v30 = vadd.f32 %v3087_v59, %v2999_v35  ;;  %v5867_v41 = vadd.f32 %v3262_v51, %v3174_v16  ;;  %1263 = vst [vmem:[#allocation3 + $0x13c] sm:$0xf] %v1231_v22  ;;  %v4063_v35 = vld [vmem:[#allocation3 + $0xb0] sm:$0xf] }
 0x1a0   : > { %1360 = vst [vmem:[#allocation3 + $0x164] sm:$0xf] %v1328_v29 }
 0x1a1   : > { %3491 = vmatmul.bf16.gmra.mxu3 %v4024_v58  ;;  %v4850_v58 = vld [vmem:[#allocation3 + $0xd0] sm:$0xf0]  ;;  %1073 = vst [vmem:[#allocation3 + $0x1a0] sm:$0xf] %v1328_v29  ;;  %v1298_v29 = vld [vmem:[#allocation2 + $0xb2] sm:$0xff] }
 0x1a2   : > { %3580 = vmatmul.bf16.gmra.mxu0 %v4028_v61  ;;  %1169 = vst [vmem:[#allocation3 + $0x180] sm:$0xf] %v1137_v19 }
 0x1a4   : > { %v3176_v17 = vpop.f32.mrf.mxu3  ;;  %v3003_v20 = vpop.f32.mrf.mxu1 }
 0x1a5   : > { %v3177_v9 = vadd.f32 %v3176_v17, %v3088_v30  ;;  %v3004_v48 = vadd.f32 %v3003_v20, %v5731_v60  ;;  %v1106_v60 = vld [vmem:[#allocation2 + $0xb0] sm:$0xff] }
 0x1a6   : > { %v3089_v51 = vpop.f32.mrf.mxu2  ;;  %v1201_v20 = vld [vmem:[#allocation2 + $0xa9] sm:$0xff]  ;;  %v1138_v3 = vpack.c.bf16 %v1106_v60, %v1106_v60 }
 0x1a7   : > { %v3267_v24 = vpop.f32.mrf.mxu0  ;;  %v3090_v36 = vadd.f32 %v3089_v51, %v3001_v26  ;;  %3318 = vmatmul.bf16.gmra.mxu1 %v4052_v52  ;;  %v5870_v16 = vadd.f32 %v3265_v15, %v3177_v9  ;;  %v4064_v52 = vor.u32 %v4850_v58, %v4063_v35  ;;  %v4091_v9 = vld [vmem:[#allocation3 + $0xf0] sm:$0xf]  ;;  %v4858_v26 = vld [vmem:[#allocation3 + $0x110] sm:$0xf0]  ;;  %v1329_v58 = vpack.c.bf16 %v1297_v44, %v1297_v44  ;;  %v4121_v60 = vld [vmem:[#allocation3 + $0x154] sm:$0xf0] }
 0x1a8   : > { %v4092_v35 = vor.u32 %v4858_v26, %v4091_v9  ;;  %1170 = vst [vmem:[#allocation3 + $0x1a4] sm:$0xf] %v1138_v3 }
 0x1a9   : > { %1361 = vst [vmem:[#allocation3 + $0x188] sm:$0xf] %v1329_v58 }
 0x1aa   : > { %1074 = vst [vmem:[#allocation3 + $0x1c4] sm:$0xf] %v1329_v58  ;;  %v1299_v58 = vld [vmem:[#allocation2 + $0xc2] sm:$0xff] }
 0x1ab   : > { %3407 = vmatmul.bf16.gmra.mxu2 %v4056_v31  ;;  %v1234_v31 = vpack.c.bf16 %v1202_v11, %v1202_v11  ;;  %v1107_v11 = vld [vmem:[#allocation2 + $0xc0] sm:$0xff] }
 0x1ac   : > { %v3178_v61 = vpop.f32.mrf.mxu3  ;;  %v3005_v59 = vpop.f32.mrf.mxu1 }
 0x1ad   : > { %v3179_v30 = vadd.f32 %v3178_v61, %v3090_v36  ;;  %v3006_v22 = vadd.f32 %v3005_v59, %v5748_v33  ;;  %v1233_v36 = vpack.c.bf16 %v1201_v20, %v1201_v20  ;;  %v1330_v61 = vpack.c.bf16 %v1298_v29, %v1298_v29  ;;  %v4854_v33 = vld [vmem:[#allocation3 + $0xf4] sm:$0xf]  ;;  %v4093_v59 = vld [vmem:[#allocation3 + $0x114] sm:$0xf0]  ;;  %1266 = vst [vmem:[#allocation3 + $0x1a8] sm:$0xf] %v1234_v31 }
 0x1ae   : > { %v3092_v49 = vpop.f32.mrf.mxu2  ;;  %v4096_v10 = vor.u32 %v4854_v33, %v4093_v59  ;;  %v4124_v20 = vor.u32 %v4862_v0, %v4121_v60  ;;  %v1139_v31 = vpack.c.bf16 %v1107_v11, %v1107_v11  ;;  %v1204_v29 = vld [vmem:[#allocation2 + $0xc9] sm:$0xff] }
 0x1af   : > { %v3270_v15 = vpop.f32.mrf.mxu0  ;;  %v3093_v56 = vadd.f32 %v3092_v49, %v3004_v48  ;;  %v5873_v17 = vadd.f32 %v3267_v24, %v3179_v30  ;;  %1265 = vst [vmem:[#allocation3 + $0x184] sm:$0xf] %v1233_v36  ;;  %v4099_v48 = vld [vmem:[#allocation3 + $0xf8] sm:$0xf]  ;;  %v4871_v11 = vld [vmem:[#allocation3 + $0x17c] sm:$0xf] }
 0x1b0   : > { %1362 = vst [vmem:[#allocation3 + $0x1ac] sm:$0xf] %v1330_v61 }
 0x1b1   : > { %3496 = vmatmul.bf16.gmra.mxu3 %v4060_v21  ;;  %v4859_v21 = vld [vmem:[#allocation3 + $0x118] sm:$0xf0]  ;;  %1075 = vst [vmem:[#allocation3 + $0x1e8] sm:$0xf] %v1330_v61 }
 0x1b2   : > { %3585 = vmatmul.bf16.gmra.mxu0 %v4064_v52  ;;  %v1300_v61 = vld [vmem:[#allocation2 + $0xca] sm:$0xff]  ;;  %1171 = vst [vmem:[#allocation3 + $0x1c8] sm:$0xf] %v1139_v31 }
 0x1b4   : > { %v3181_v8 = vpop.f32.mrf.mxu3  ;;  %v3008_v47 = vpop.f32.mrf.mxu1 }
 0x1b5   : > { %v3182_v51 = vadd.f32 %v3181_v8, %v3093_v56  ;;  %v3009_v23 = vadd.f32 %v3008_v47, %v5759_v57  ;;  %v1108_v57 = vld [vmem:[#allocation2 + $0xc8] sm:$0xff] }
 0x1b6   : > { %v3094_v24 = vpop.f32.mrf.mxu2  ;;  %v1203_v47 = vld [vmem:[#allocation2 + $0xc1] sm:$0xff]  ;;  %v1140_v44 = vpack.c.bf16 %v1108_v57, %v1108_v57  ;;  %v4157_v57 = vld [vmem:[#allocation3 + $0x19c] sm:$0xf0] }
 0x1b7   : > { %v3272_v54 = vpop.f32.mrf.mxu0  ;;  %v3095_v43 = vadd.f32 %v3094_v24, %v3006_v22  ;;  %3323 = vmatmul.bf16.gmra.mxu1 %v4088_v34  ;;  %v5876_v30 = vadd.f32 %v3270_v15, %v3182_v51  ;;  %v4100_v34 = vor.u32 %v4859_v21, %v4099_v48  ;;  %v4127_v51 = vld [vmem:[#allocation3 + $0x138] sm:$0xf]  ;;  %v4867_v22 = vld [vmem:[#allocation3 + $0x158] sm:$0xf0]  ;;  %v1331_v21 = vpack.c.bf16 %v1299_v58, %v1299_v58 }
 0x1b8   : > { %v4128_v48 = vor.u32 %v4867_v22, %v4127_v51  ;;  %1172 = vst [vmem:[#allocation3 + $0x1ec] sm:$0xf] %v1140_v44 }
 0x1b9   : > { %1363 = vst [vmem:[#allocation3 + $0x1d0] sm:$0xf] %v1331_v21 }
 0x1ba   : > { %1076 = vst [vmem:[#allocation3 + $0x20c] sm:$0xf] %v1331_v21  ;;  %v1301_v21 = vld [vmem:[#allocation2 + $0xda] sm:$0xff] }
 0x1bb   : > { %3412 = vmatmul.bf16.gmra.mxu2 %v4092_v35  ;;  %v1236_v35 = vpack.c.bf16 %v1204_v29, %v1204_v29  ;;  %v1109_v29 = vld [vmem:[#allocation2 + $0xd8] sm:$0xff] }
 0x1bc   : > { %v3183_v52 = vpop.f32.mrf.mxu3  ;;  %v3010_v49 = vpop.f32.mrf.mxu1 }
 0x1bd   : > { %v3184_v56 = vadd.f32 %v3183_v52, %v3095_v43  ;;  %v3011_v36 = vadd.f32 %v3010_v49, %v5766_v5  ;;  %v1235_v43 = vpack.c.bf16 %v1203_v47, %v1203_v47  ;;  %v1332_v52 = vpack.c.bf16 %v1300_v61, %v1300_v61  ;;  %v4863_v5 = vld [vmem:[#allocation3 + $0x13c] sm:$0xf]  ;;  %v4129_v49 = vld [vmem:[#allocation3 + $0x15c] sm:$0xf0]  ;;  %1268 = vst [vmem:[#allocation3 + $0x1f0] sm:$0xf] %v1236_v35 }
 0x1be   : > { %v3097_v9 = vpop.f32.mrf.mxu2  ;;  %v4132_v60 = vor.u32 %v4863_v5, %v4129_v49  ;;  %v4160_v47 = vor.u32 %v4871_v11, %v4157_v57  ;;  %v1141_v35 = vpack.c.bf16 %v1109_v29, %v1109_v29  ;;  %v1206_v61 = vld [vmem:[#allocation2 + $0xe1] sm:$0xff]  ;;  %v4880_v29 = vld [vmem:[#allocation3 + $0x1c4] sm:$0xf] }
 0x1bf   : > { %v3275_v15 = vpop.f32.mrf.mxu0  ;;  %v3098_v26 = vadd.f32 %v3097_v9, %v3009_v23  ;;  %v5879_v8 = vadd.f32 %v3272_v54, %v3184_v56  ;;  %1267 = vst [vmem:[#allocation3 + $0x1cc] sm:$0xf] %v1235_v43  ;;  %v4135_v23 = vld [vmem:[#allocation3 + $0x140] sm:$0xf] }
 0x1c0   : > { %1364 = vst [vmem:[#allocation3 + $0x1f4] sm:$0xf] %v1332_v52 }
 0x1c1   : > { %3501 = vmatmul.bf16.gmra.mxu3 %v4096_v10  ;;  %v4868_v10 = vld [vmem:[#allocation3 + $0x160] sm:$0xf0]  ;;  %1077 = vst [vmem:[#allocation3 + $0x230] sm:$0xf] %v1332_v52  ;;  %v1302_v52 = vld [vmem:[#allocation2 + $0xe2] sm:$0xff] }
 0x1c2   : > { %3590 = vmatmul.bf16.gmra.mxu0 %v4100_v34  ;;  %1173 = vst [vmem:[#allocation3 + $0x210] sm:$0xf] %v1141_v35 }
 0x1c4   : > { %v3186_v19 = vpop.f32.mrf.mxu3  ;;  %v3013_v3 = vpop.f32.mrf.mxu1 }
 0x1c5   : > { %v3187_v24 = vadd.f32 %v3186_v19, %v3098_v26  ;;  %v3014_v0 = vadd.f32 %v3013_v3, %v5699_v45  ;;  %v1110_v45 = vld [vmem:[#allocation2 + $0xe0] sm:$0xff] }
 0x1c6   : > { %v3099_v54 = vpop.f32.mrf.mxu2  ;;  %v1205_v3 = vld [vmem:[#allocation2 + $0xd9] sm:$0xff]  ;;  %v1142_v58 = vpack.c.bf16 %v1110_v45, %v1110_v45 }
 0x1c7   : > { %v3277_v33 = vpop.f32.mrf.mxu0  ;;  %v3100_v59 = vadd.f32 %v3099_v54, %v3011_v36  ;;  %3328 = vmatmul.bf16.gmra.mxu1 %v4124_v20  ;;  %v5882_v56 = vadd.f32 %v3275_v15, %v3187_v24  ;;  %v4136_v20 = vor.u32 %v4868_v10, %v4135_v23  ;;  %v4163_v24 = vld [vmem:[#allocation3 + $0x180] sm:$0xf]  ;;  %v4876_v36 = vld [vmem:[#allocation3 + $0x1a0] sm:$0xf0]  ;;  %v1333_v10 = vpack.c.bf16 %v1301_v21, %v1301_v21  ;;  %v4193_v45 = vld [vmem:[#allocation3 + $0x1e4] sm:$0xf0] }
 0x1c8   : > { %v4164_v23 = vor.u32 %v4876_v36, %v4163_v24  ;;  %1174 = vst [vmem:[#allocation3 + $0x234] sm:$0xf] %v1142_v58 }
 0x1c9   : > { %1365 = vst [vmem:[#allocation3 + $0x218] sm:$0xf] %v1333_v10 }
 0x1ca   : > { %1078 = vst [vmem:[#allocation3 + $0x254] sm:$0xf] %v1333_v10  ;;  %v1303_v10 = vld [vmem:[#allocation2 + $0xf2] sm:$0xff] }
 0x1cb   : > { %3417 = vmatmul.bf16.gmra.mxu2 %v4128_v48  ;;  %v1238_v48 = vpack.c.bf16 %v1206_v61, %v1206_v61  ;;  %v1111_v61 = vld [vmem:[#allocation2 + $0xf0] sm:$0xff] }
 0x1cc   : > { %v3188_v34 = vpop.f32.mrf.mxu3  ;;  %v3015_v9 = vpop.f32.mrf.mxu1 }
 0x1cd   : > { %v3189_v26 = vadd.f32 %v3188_v34, %v3100_v59  ;;  %v3016_v43 = vadd.f32 %v3015_v9, %v5711_v1  ;;  %v1237_v59 = vpack.c.bf16 %v1205_v3, %v1205_v3  ;;  %v1334_v34 = vpack.c.bf16 %v1302_v52, %v1302_v52  ;;  %v4872_v1 = vld [vmem:[#allocation3 + $0x184] sm:$0xf]  ;;  %v4165_v9 = vld [vmem:[#allocation3 + $0x1a4] sm:$0xf0]  ;;  %1270 = vst [vmem:[#allocation3 + $0x238] sm:$0xf] %v1238_v48 }
 0x1ce   : > { %v3102_v51 = vpop.f32.mrf.mxu2  ;;  %v4168_v57 = vor.u32 %v4872_v1, %v4165_v9  ;;  %v4196_v3 = vor.u32 %v4880_v29, %v4193_v45  ;;  %v1143_v48 = vpack.c.bf16 %v1111_v61, %v1111_v61  ;;  %v1208_v52 = vld [vmem:[#allocation2 + $0xf9] sm:$0xff] }
 0x1cf   : > { %v3280_v15 = vpop.f32.mrf.mxu0  ;;  %v3103_v22 = vadd.f32 %v3102_v51, %v3014_v0  ;;  %v5885_v19 = vadd.f32 %v3277_v33, %v3189_v26  ;;  %1269 = vst [vmem:[#allocation3 + $0x214] sm:$0xf] %v1237_v59  ;;  %v4171_v0 = vld [vmem:[#allocation3 + $0x188] sm:$0xf]  ;;  %v4889_v61 = vld [vmem:[#allocation3 + $0x20c] sm:$0xf] }
 0x1d0   : > { %1366 = vst [vmem:[#allocation3 + $0x23c] sm:$0xf] %v1334_v34 }
 0x1d1   : > { %3506 = vmatmul.bf16.gmra.mxu3 %v4132_v60  ;;  %v4877_v60 = vld [vmem:[#allocation3 + $0x1a8] sm:$0xf0]  ;;  %1079 = vst [vmem:[#allocation3 + $0x278] sm:$0xf] %v1334_v34 }
 0x1d2   : > { %3595 = vmatmul.bf16.gmra.mxu0 %v4136_v20  ;;  %v1304_v34 = vld [vmem:[#allocation2 + $0xfa] sm:$0xff]  ;;  %1175 = vst [vmem:[#allocation3 + $0x258] sm:$0xf] %v1143_v48 }
 0x1d4   : > { %v3191_v31 = vpop.f32.mrf.mxu3  ;;  %v3018_v44 = vpop.f32.mrf.mxu1 }
 0x1d5   : > { %v3192_v54 = vadd.f32 %v3191_v31, %v3103_v22  ;;  %v3019_v11 = vadd.f32 %v3018_v44, %v5719_v40  ;;  %v1112_v40 = vld [vmem:[#allocation2 + $0xf8] sm:$0xff] }
 0x1d6   : > { %v3104_v33 = vpop.f32.mrf.mxu2  ;;  %v1207_v44 = vld [vmem:[#allocation2 + $0xf1] sm:$0xff]  ;;  %v1144_v21 = vpack.c.bf16 %v1112_v40, %v1112_v40  ;;  %v4229_v40 = vld [vmem:[#allocation3 + $0x22c] sm:$0xf0] }
 0x1d7   : > { %v3282_v5 = vpop.f32.mrf.mxu0  ;;  %v3105_v49 = vadd.f32 %v3104_v33, %v3016_v43  ;;  %3333 = vmatmul.bf16.gmra.mxu1 %v4160_v47  ;;  %v5888_v26 = vadd.f32 %v3280_v15, %v3192_v54  ;;  %v4172_v47 = vor.u32 %v4877_v60, %v4171_v0  ;;  %v4199_v54 = vld [vmem:[#allocation3 + $0x1c8] sm:$0xf]  ;;  %v4885_v43 = vld [vmem:[#allocation3 + $0x1e8] sm:$0xf0]  ;;  %v1335_v60 = vpack.c.bf16 %v1303_v10, %v1303_v10 }
 0x1d8   : > { %v4200_v0 = vor.u32 %v4885_v43, %v4199_v54  ;;  %1176 = vst [vmem:[#allocation3 + $0x27c] sm:$0xf] %v1144_v21 }
 0x1d9   : > { %1367 = vst [vmem:[#allocation3 + $0x260] sm:$0xf] %v1335_v60 }
 0x1da   : > { %1080 = vst [vmem:[#allocation3 + $0x29c] sm:$0xf] %v1335_v60  ;;  %v1305_v60 = vld [vmem:[#allocation2 + $0x10a] sm:$0xff] }
 0x1db   : > { %3422 = vmatmul.bf16.gmra.mxu2 %v4164_v23  ;;  %v1240_v23 = vpack.c.bf16 %v1208_v52, %v1208_v52  ;;  %v1113_v52 = vld [vmem:[#allocation2 + $0x108] sm:$0xff] }
 0x1dc   : > { %v3193_v20 = vpop.f32.mrf.mxu3  ;;  %v3020_v51 = vpop.f32.mrf.mxu1 }
 0x1dd   : > { %v3194_v22 = vadd.f32 %v3193_v20, %v3105_v49  ;;  %v3021_v59 = vadd.f32 %v3020_v51, %v5727_v7  ;;  %v1239_v49 = vpack.c.bf16 %v1207_v44, %v1207_v44  ;;  %v1336_v20 = vpack.c.bf16 %v1304_v34, %v1304_v34  ;;  %v4881_v7 = vld [vmem:[#allocation3 + $0x1cc] sm:$0xf]  ;;  %v4201_v51 = vld [vmem:[#allocation3 + $0x1ec] sm:$0xf0]  ;;  %1272 = vst [vmem:[#allocation3 + $0x280] sm:$0xf] %v1240_v23 }
 0x1de   : > { %v3107_v24 = vpop.f32.mrf.mxu2  ;;  %v4204_v45 = vor.u32 %v4881_v7, %v4201_v51  ;;  %v4232_v44 = vor.u32 %v4889_v61, %v4229_v40  ;;  %v1145_v23 = vpack.c.bf16 %v1113_v52, %v1113_v52  ;;  %v1210_v34 = vld [vmem:[#allocation2 + $0x111] sm:$0xff]  ;;  %v4898_v52 = vld [vmem:[#allocation3 + $0x254] sm:$0xf] }
 0x1df   : > { %v3285_v15 = vpop.f32.mrf.mxu0  ;;  %v3108_v36 = vadd.f32 %v3107_v24, %v3019_v11  ;;  %v5891_v31 = vadd.f32 %v3282_v5, %v3194_v22  ;;  %1271 = vst [vmem:[#allocation3 + $0x25c] sm:$0xf] %v1239_v49  ;;  %v4207_v11 = vld [vmem:[#allocation3 + $0x1d0] sm:$0xf] }
 0x1e0   : > { %1368 = vst [vmem:[#allocation3 + $0x284] sm:$0xf] %v1336_v20 }
 0x1e1   : > { %3511 = vmatmul.bf16.gmra.mxu3 %v4168_v57  ;;  %v4886_v57 = vld [vmem:[#allocation3 + $0x1f0] sm:$0xf0]  ;;  %1081 = vst [vmem:[#allocation3 + $0x2c0] sm:$0xf] %v1336_v20  ;;  %v1306_v20 = vld [vmem:[#allocation2 + $0x112] sm:$0xff] }
 0x1e2   : > { %3600 = vmatmul.bf16.gmra.mxu0 %v4172_v47  ;;  %1177 = vst [vmem:[#allocation3 + $0x2a0] sm:$0xf] %v1145_v23 }
 0x1e4   : > { %v3196_v35 = vpop.f32.mrf.mxu3  ;;  %v3023_v58 = vpop.f32.mrf.mxu1 }
 0x1e5   : > { %v3197_v33 = vadd.f32 %v3196_v35, %v3108_v36  ;;  %v3024_v29 = vadd.f32 %v3023_v58, %v5741_v18  ;;  %v1114_v18 = vld [vmem:[#allocation2 + $0x110] sm:$0xff] }
 0x1e6   : > { %v3109_v5 = vpop.f32.mrf.mxu2  ;;  %v1209_v58 = vld [vmem:[#allocation2 + $0x109] sm:$0xff]  ;;  %v1146_v10 = vpack.c.bf16 %v1114_v18, %v1114_v18 }
 0x1e7   : > { %v3287_v1 = vpop.f32.mrf.mxu0  ;;  %v3110_v9 = vadd.f32 %v3109_v5, %v3021_v59  ;;  %3338 = vmatmul.bf16.gmra.mxu1 %v4196_v3  ;;  %v5894_v22 = vadd.f32 %v3285_v15, %v3197_v33  ;;  %v4208_v3 = vor.u32 %v4886_v57, %v4207_v11  ;;  %v4235_v33 = vld [vmem:[#allocation3 + $0x210] sm:$0xf]  ;;  %v4894_v59 = vld [vmem:[#allocation3 + $0x230] sm:$0xf0]  ;;  %v1337_v57 = vpack.c.bf16 %v1305_v60, %v1305_v60  ;;  %v4265_v18 = vld [vmem:[#allocation3 + $0x274] sm:$0xf0] }
 0x1e8   : > { %v4236_v11 = vor.u32 %v4894_v59, %v4235_v33  ;;  %1178 = vst [vmem:[#allocation3 + $0x2c4] sm:$0xf] %v1146_v10 }
 0x1e9   : > { %1369 = vst [vmem:[#allocation3 + $0x2a8] sm:$0xf] %v1337_v57 }
 0x1ea   : > { %1082 = vst [vmem:[#allocation3 + $0x2e4] sm:$0xf] %v1337_v57  ;;  %v1307_v57 = vld [vmem:[#allocation2 + $0x122] sm:$0xff] }
 0x1eb   : > { %3427 = vmatmul.bf16.gmra.mxu2 %v4200_v0  ;;  %v1242_v0 = vpack.c.bf16 %v1210_v34, %v1210_v34  ;;  %v1115_v34 = vld [vmem:[#allocation2 + $0x120] sm:$0xff] }
 0x1ec   : > { %v3198_v47 = vpop.f32.mrf.mxu3  ;;  %v3025_v24 = vpop.f32.mrf.mxu1 }
 0x1ed   : > { %v3199_v36 = vadd.f32 %v3198_v47, %v3110_v9  ;;  %v3026_v49 = vadd.f32 %v3025_v24, %v5755_v50  ;;  %v1241_v9 = vpack.c.bf16 %v1209_v58, %v1209_v58  ;;  %v1338_v47 = vpack.c.bf16 %v1306_v20, %v1306_v20  ;;  %v4890_v50 = vld [vmem:[#allocation3 + $0x214] sm:$0xf]  ;;  %v4237_v24 = vld [vmem:[#allocation3 + $0x234] sm:$0xf0]  ;;  %1274 = vst [vmem:[#allocation3 + $0x2c8] sm:$0xf] %v1242_v0 }
 0x1ee   : > { %v3112_v54 = vpop.f32.mrf.mxu2  ;;  %v4240_v40 = vor.u32 %v4890_v50, %v4237_v24  ;;  %v4268_v58 = vor.u32 %v4898_v52, %v4265_v18  ;;  %v1147_v0 = vpack.c.bf16 %v1115_v34, %v1115_v34  ;;  %v1212_v20 = vld [vmem:[#allocation2 + $0x129] sm:$0xff] }
 0x1ef   : > { %v3290_v15 = vpop.f32.mrf.mxu0  ;;  %v3113_v43 = vadd.f32 %v3112_v54, %v3024_v29  ;;  %v5897_v35 = vadd.f32 %v3287_v1, %v3199_v36  ;;  %1273 = vst [vmem:[#allocation3 + $0x2a4] sm:$0xf] %v1241_v9  ;;  %v4243_v29 = vld [vmem:[#allocation3 + $0x218] sm:$0xf] }
 0x1f0   : > { %1370 = vst [vmem:[#allocation3 + $0x2cc] sm:$0xf] %v1338_v47 }
 0x1f1   : > { %3516 = vmatmul.bf16.gmra.mxu3 %v4204_v45  ;;  %v4895_v45 = vld [vmem:[#allocation3 + $0x238] sm:$0xf0]  ;;  %1083 = vst [vmem:[#allocation3 + $0x308] sm:$0xf] %v1338_v47 }
 0x1f2   : > { %3605 = vmatmul.bf16.gmra.mxu0 %v4208_v3  ;;  %v1308_v47 = vld [vmem:[#allocation2 + $0x12a] sm:$0xff]  ;;  %1179 = vst [vmem:[#allocation3 + $0x2e8] sm:$0xf] %v1147_v0 }
 0x1f4   : > { %v3201_v48 = vpop.f32.mrf.mxu3  ;;  %v3028_v21 = vpop.f32.mrf.mxu1 }
 0x1f5   : > { %v3202_v5 = vadd.f32 %v3201_v48, %v3113_v43  ;;  %v3029_v61 = vadd.f32 %v3028_v21, %v5763_v25  ;;  %v1116_v25 = vld [vmem:[#allocation2 + $0x128] sm:$0xff] }
 0x1f6   : > { %v3114_v1 = vpop.f32.mrf.mxu2  ;;  %v1211_v21 = vld [vmem:[#allocation2 + $0x121] sm:$0xff]  ;;  %v1148_v60 = vpack.c.bf16 %v1116_v25, %v1116_v25 }
 0x1f7   : > { %v3292_v7 = vpop.f32.mrf.mxu0  ;;  %v3115_v51 = vadd.f32 %v3114_v1, %v3026_v49  ;;  %3343 = vmatmul.bf16.gmra.mxu1 %v4232_v44  ;;  %v5900_v36 = vadd.f32 %v3290_v15, %v3202_v5  ;;  %v4244_v44 = vor.u32 %v4895_v45, %v4243_v29  ;;  %v4271_v5 = vld [vmem:[#allocation3 + $0x258] sm:$0xf]  ;;  %v4903_v49 = vld [vmem:[#allocation3 + $0x278] sm:$0xf0]  ;;  %v1339_v45 = vpack.c.bf16 %v1307_v57, %v1307_v57 }
 0x1f8   : > { %v4272_v29 = vor.u32 %v4903_v49, %v4271_v5  ;;  %1180 = vst [vmem:[#allocation3 + $0x30c] sm:$0xf] %v1148_v60  ;;  %v4907_v49 = vld [vmem:[#allocation3 + $0x29c] sm:$0xf] }
 0x1f9   : > { %1371 = vst [vmem:[#allocation3 + $0x2f0] sm:$0xf] %v1339_v45 }
 0x1fa   : > { %1084 = vst [vmem:[#allocation3 + $0x32c] sm:$0xf] %v1339_v45 }
 0x1fb   : > { %3432 = vmatmul.bf16.gmra.mxu2 %v4236_v11  ;;  %v1244_v11 = vpack.c.bf16 %v1212_v20, %v1212_v20  ;;  %v1117_v20 = vld [vmem:[#allocation2 + $0x138] sm:$0xff] }
 0x1fc   : > { %v3203_v3 = vpop.f32.mrf.mxu3  ;;  %v3030_v54 = vpop.f32.mrf.mxu1 }
 0x1fd   : > { %v3204_v43 = vadd.f32 %v3203_v3, %v3115_v51  ;;  %v3031_v9 = vadd.f32 %v3030_v54, %v5770_v37  ;;  %v1243_v51 = vpack.c.bf16 %v1211_v21, %v1211_v21  ;;  %v1340_v3 = vpack.c.bf16 %v1308_v47, %v1308_v47  ;;  %v4899_v37 = vld [vmem:[#allocation3 + $0x25c] sm:$0xf]  ;;  %v4273_v54 = vld [vmem:[#allocation3 + $0x27c] sm:$0xf0]  ;;  %1276 = vst [vmem:[#allocation3 + $0x310] sm:$0xf] %v1244_v11 }
 0x1fe   : > { %v3117_v33 = vpop.f32.mrf.mxu2  ;;  %v4276_v52 = vor.u32 %v4899_v37, %v4273_v54  ;;  %v4307_v21 = vld [vmem:[#allocation3 + $0x2a0] sm:$0xf]  ;;  %v1149_v11 = vpack.c.bf16 %v1117_v20, %v1117_v20  ;;  %v1214_v47 = vld [vmem:[#allocation2 + $0x141] sm:$0xff] }
 0x1ff   : > { %v3295_v15 = vpop.f32.mrf.mxu0  ;;  %v3118_v59 = vadd.f32 %v3117_v33, %v3029_v61  ;;  %v5903_v48 = vadd.f32 %v3292_v7, %v3204_v43  ;;  %1275 = vst [vmem:[#allocation3 + $0x2ec] sm:$0xf] %v1243_v51  ;;  %v4279_v61 = vld [vmem:[#allocation3 + $0x260] sm:$0xf]  ;;  %v1213_v51 = vld [vmem:[#allocation2 + $0x139] sm:$0xff] }
 0x200   : > { %1372 = vst [vmem:[#allocation3 + $0x314] sm:$0xf] %v1340_v3 }
 0x201   : > { %3521 = vmatmul.bf16.gmra.mxu3 %v4240_v40  ;;  %v4904_v40 = vld [vmem:[#allocation3 + $0x280] sm:$0xf0]  ;;  %1085 = vst [vmem:[#allocation3 + $0x350] sm:$0xf] %v1340_v3 }
 0x202   : > { %3610 = vmatmul.bf16.gmra.mxu0 %v4244_v44  ;;  %v4280_v18 = vor.u32 %v4904_v40, %v4279_v61  ;;  %1181 = vst [vmem:[#allocation3 + $0x330] sm:$0xf] %v1149_v11 }
 0x204   : > { %v3206_v23 = vpop.f32.mrf.mxu3  ;;  %v3309_v10 = vpop.f32.mrf.mxu1 }
 0x205   : > { %v3207_v1 = vadd.f32 %v3206_v23, %v3118_v59  ;;  %v4301_v23 = vld [vmem:[#allocation3 + $0x2bc] sm:$0xf0]  ;;  %v3310_v34 = vadd.f32 %v3309_v10, %v5786_v39  ;;  %v1245_v10 = vpack.c.bf16 %v1213_v51, %v1213_v51 }
 0x206   : > { %v3119_v7 = vpop.f32.mrf.mxu2  ;;  %v4304_v25 = vor.u32 %v4907_v49, %v4301_v23 }
 0x207   : > { %v3297_v50 = vpop.f32.mrf.mxu0  ;;  %v3120_v24 = vadd.f32 %v3119_v7, %v3031_v9  ;;  %3348 = vmatmul.bf16.gmra.mxu1 %v4268_v58  ;;  %v5906_v43 = vadd.f32 %v3295_v15, %v3207_v1  ;;  %v4912_v1 = vld [vmem:[#allocation3 + $0x2c0] sm:$0xf0]  ;;  %v1118_v7 = vld [vmem:[#allocation2 + $0x140] sm:$0xff]  ;;  %1277 = vst [vmem:[#allocation3 + $0x334] sm:$0xf] %v1245_v10 }
 0x208   : > { %v1150_v57 = vpack.c.bf16 %v1118_v7, %v1118_v7  ;;  %v4308_v37 = vor.u32 %v4912_v1, %v4307_v21  ;;  %v4337_v7 = vld [vmem:[#allocation3 + $0x304] sm:$0xf0]  ;;  %v4921_v10 = vld [vmem:[#allocation3 + $0x308] sm:$0xf0] }
 0x20a   : > { %1182 = vst [vmem:[#allocation3 + $0x354] sm:$0xf] %v1150_v57 }
 0x20b   : > { %3437 = vmatmul.bf16.gmra.mxu2 %v4272_v29  ;;  %v1310_v29 = vld [vmem:[#allocation2 + $0x142] sm:$0xff] }
 0x20c   : > { %v3208_v44 = vpop.f32.mrf.mxu3  ;;  %v3311_v33 = vpop.f32.mrf.mxu1  ;;  %v1342_v40 = vpack.c.bf16 %v1310_v29, %v1310_v29  ;;  %v1119_v29 = vld [vmem:[#allocation2 + $0x150] sm:$0xff] }
 0x20d   : > { %v3209_v59 = vadd.f32 %v3208_v44, %v3120_v24  ;;  %v1309_v24 = vld [vmem:[#allocation2 + $0x13a] sm:$0xff]  ;;  %v3312_v45 = vadd.f32 %v3311_v33, %v5789_v12 }
 0x20e   : > { %v3398_v58 = vpop.f32.mrf.mxu2  ;;  %v1341_v54 = vpack.c.bf16 %v1309_v24, %v1309_v24  ;;  %1374 = vst [vmem:[#allocation3 + $0x35c] sm:$0xf] %v1342_v40 }
 0x20f   : > { %v3576_v5 = vpop.f32.mrf.mxu0  ;;  %v5908_v15 = vadd.f32 %v3297_v50, %v3209_v59  ;;  %v3399_v9 = vadd.f32 %v3398_v58, %v3310_v34  ;;  %v1246_v50 = vpack.c.bf16 %v1214_v47, %v1214_v47  ;;  %v4908_v59 = vld [vmem:[#allocation3 + $0x2a4] sm:$0xf]  ;;  %v4913_v58 = vld [vmem:[#allocation3 + $0x2c8] sm:$0xf0]  ;;  %1087 = vst [vmem:[#allocation3 + $0x398] sm:$0xf] %v1342_v40 }
 0x210   : > { %1373 = vst [vmem:[#allocation3 + $0x338] sm:$0xf] %v1341_v54  ;;  %v1216_v40 = vld [vmem:[#allocation2 + $0x159] sm:$0xff] }
 0x211   : > { %3526 = vmatmul.bf16.gmra.mxu3 %v4276_v52  ;;  %v4309_v52 = vld [vmem:[#allocation3 + $0x2c4] sm:$0xf0]  ;;  %1278 = vst [vmem:[#allocation3 + $0x358] sm:$0xf] %v1246_v50 }
 0x212   : > { %3615 = vmatmul.bf16.gmra.mxu0 %v4280_v18  ;;  %v4315_v18 = vld [vmem:[#allocation3 + $0x2a8] sm:$0xf]  ;;  %v4312_v34 = vor.u32 %v4908_v59, %v4309_v52  ;;  %1086 = vst [vmem:[#allocation3 + $0x374] sm:$0xf] %v1341_v54  ;;  %v1151_v54 = vpack.c.bf16 %v1119_v29, %v1119_v29 }
 0x214   : > { %v3487_v0 = vpop.f32.mrf.mxu3  ;;  %v3314_v60 = vpop.f32.mrf.mxu1  ;;  %1183 = vst [vmem:[#allocation3 + $0x378] sm:$0xf] %v1151_v54 }
 0x215   : > { %v3488_v61 = vadd.f32 %v3487_v0, %v3399_v9  ;;  %v3315_v9 = vadd.f32 %v3314_v60, %v5792_v55  ;;  %v4343_v60 = vld [vmem:[#allocation3 + $0x2e8] sm:$0xf] }
 0x216   : > { %v3400_v39 = vpop.f32.mrf.mxu2  ;;  %v4344_v59 = vor.u32 %v4921_v10, %v4343_v60 }
 0x217   : > { %v3578_v3 = vpop.f32.mrf.mxu0  ;;  %3353 = vmatmul.bf16.gmra.mxu1 %v4304_v25  ;;  %v3401_v44 = vadd.f32 %v3400_v39, %v3312_v45  ;;  %v3577_v12 = vadd.f32 %v3576_v5, %v3488_v61  ;;  %v4316_v25 = vor.u32 %v4913_v58, %v4315_v18  ;;  %v4916_v5 = vld [vmem:[#allocation3 + $0x2e4] sm:$0xf]  ;;  %v1120_v45 = vld [vmem:[#allocation2 + $0x158] sm:$0xff]  ;;  %v1248_v18 = vpack.c.bf16 %v1216_v40, %v1216_v40 }
 0x218   : > { %v4340_v55 = vor.u32 %v4916_v5, %v4337_v7  ;;  %v1152_v61 = vpack.c.bf16 %v1120_v45, %v1120_v45  ;;  %v1311_v58 = vld [vmem:[#allocation2 + $0x152] sm:$0xff]  ;;  %v4917_v5 = vld [vmem:[#allocation3 + $0x2ec] sm:$0xf]  ;;  %v4345_v7 = vld [vmem:[#allocation3 + $0x30c] sm:$0xf0] }
 0x219   : > { %v3757_v20 = vmul.f32 %v3577_v12, %v3577_v12  ;;  %1280 = vst [vmem:[#allocation3 + $0x3a0] sm:$0xf] %v1248_v18  ;;  %v4925_v45 = vld [vmem:[#allocation3 + $0x32c] sm:$0xf] }
 0x21a   : > { %1184 = vst [vmem:[#allocation3 + $0x39c] sm:$0xf] %v1152_v61 }
 0x21b   : > { %3442 = vmatmul.bf16.gmra.mxu2 %v4308_v37 }
 0x21c   : > { %v3489_v33 = vpop.f32.mrf.mxu3  ;;  %v3316_v49 = vpop.f32.mrf.mxu1 }
 0x21d   : > { %v3490_v23 = vadd.f32 %v3489_v33, %v3401_v44 }
 0x21e   : > { %v3403_v21 = vpop.f32.mrf.mxu2 }
 0x21f   : > { %v3579_v1 = vadd.f32 %v3578_v3, %v3490_v23  ;;  %v3581_v0 = vpop.f32.mrf.mxu0  ;;  %v3404_v47 = vadd.f32 %v3403_v21, %v3315_v9  ;;  %v1215_v3 = vld [vmem:[#allocation2 + $0x151] sm:$0xff]  ;;  %v3317_v23 = vadd.f32 %v3316_v49, %v5795_v6 }
 0x220   : > { %v1247_v52 = vpack.c.bf16 %v1215_v3, %v1215_v3 }
 0x221   : > { %v5107_v51 = vpack.c.bf16 %v3579_v1, %v3577_v12  ;;  %v3720_v11 = vadd.f32 %v3579_v1, %v3577_v12  ;;  %v3758_v57 = vmul.f32 %v3579_v1, %v3579_v1  ;;  %3531 = vmatmul.bf16.gmra.mxu3 %v4312_v34  ;;  %v1312_v12 = vld [vmem:[#allocation2 + $0x15a] sm:$0xff] }
 0x222   : > { %3620 = vmatmul.bf16.gmra.mxu0 %v4316_v25  ;;  %v1343_v25 = vpack.c.bf16 %v1311_v58, %v1311_v58  ;;  %v1344_v21 = vpack.c.bf16 %v1312_v12, %v1312_v12  ;;  %1279 = vst [vmem:[#allocation3 + $0x37c] sm:$0xf] %v1247_v52  ;;  %v4930_v52 = vld [vmem:[#allocation3 + $0x350] sm:$0xf0]  ;;  %v1121_v12 = vld [vmem:[#allocation2 + $0x168] sm:$0xff] }
 0x223   : > { %5108 = vst [vmem:[%s5923_s19] sm:$0xff] %v5107_v51   ;;  %v3789_v39 = vadd.f32 %v3758_v57, %v3757_v20  ;;  %v4351_v57 = vld [vmem:[#allocation3 + $0x2f0] sm:$0xf] }
 0x224   : > { %v3492_v50 = vpop.f32.mrf.mxu3  ;;  %v3319_v24 = vpop.f32.mrf.mxu1  ;;  %1375 = vst [vmem:[#allocation3 + $0x380] sm:$0xf] %v1343_v25 }
 0x225   : > { %v3493_v37 = vadd.f32 %v3492_v50, %v3404_v47  ;;  %v4922_v47 = vld [vmem:[#allocation3 + $0x310] sm:$0xf0]  ;;  %1376 = vst [vmem:[#allocation3 + $0x3a4] sm:$0xf] %v1344_v21  ;;  %v3320_v50 = vadd.f32 %v3319_v24, %v5810_v4  ;;  %v1217_v4 = vld [vmem:[#allocation2 + $0x169] sm:$0xff] }
 0x226   : > { %v3405_v44 = vpop.f32.mrf.mxu2  ;;  %1088 = vst [vmem:[#allocation3 + $0x3bc] sm:$0xf] %v1343_v25  ;;  %v4352_v60 = vor.u32 %v4922_v47, %v4351_v57 }
 0x227   : > { %v3582_v33 = vadd.f32 %v3581_v0, %v3493_v37  ;;  %v3583_v34 = vpop.f32.mrf.mxu0  ;;  %3358 = vmatmul.bf16.gmra.mxu1 %v4340_v55  ;;  %v3406_v20 = vadd.f32 %v3405_v44, %v3317_v23  ;;  %v4348_v55 = vor.u32 %v4917_v5, %v4345_v7  ;;  %1089 = vst [vmem:[#allocation3 + $0x3e0] sm:$0xf] %v1344_v21  ;;  %v1122_v23 = vld [vmem:[#allocation2 + $0x170] sm:$0xff] }
 0x228   : > { %v1154_v25 = vpack.c.bf16 %v1122_v23, %v1122_v23  ;;  %v1218_v21 = vld [vmem:[#allocation2 + $0x171] sm:$0xff] }
 0x229   : > { %v3721_v1 = vadd.f32 %v3720_v11, %v3582_v33  ;;  %v3759_v9 = vmul.f32 %v3582_v33, %v3582_v33  ;;  %v1313_v5 = vld [vmem:[#allocation2 + $0x16a] sm:$0xff]  ;;  %v1314_v7 = vld [vmem:[#allocation2 + $0x172] sm:$0xff] }
 0x22a   : > { %1186 = vst [vmem:[#allocation3 + $0x3e4] sm:$0xf] %v1154_v25 }
 0x22b   : > { %v3790_v51 = vadd.f32 %v3789_v39, %v3759_v9  ;;  %3447 = vmatmul.bf16.gmra.mxu2 %v4344_v59  ;;  %v4373_v39 = vld [vmem:[#allocation3 + $0x34c] sm:$0xf0]  ;;  %v1249_v9 = vpack.c.bf16 %v1217_v4, %v1217_v4 }
 0x22c   : > { %v3494_v0 = vpop.f32.mrf.mxu3  ;;  %v3321_v6 = vpop.f32.mrf.mxu1  ;;  %v4376_v44 = vor.u32 %v4925_v45, %v4373_v39  ;;  %v4379_v59 = vld [vmem:[#allocation3 + $0x330] sm:$0xf]  ;;  %v4387_v39 = vld [vmem:[#allocation3 + $0x338] sm:$0xf] }
 0x22d   : > { %v3495_v49 = vadd.f32 %v3494_v0, %v3406_v20  ;;  %v1250_v20 = vpack.c.bf16 %v1218_v21, %v1218_v21  ;;  %v1345_v0 = vpack.c.bf16 %v1313_v5, %v1313_v5  ;;  %1281 = vst [vmem:[#allocation3 + $0x3c4] sm:$0xf] %v1249_v9  ;;  %v4415_v21 = vld [vmem:[#allocation3 + $0x378] sm:$0xf] }
 0x22e   : > { %v3408_v11 = vpop.f32.mrf.mxu2  ;;  %v1124_v5 = vld [vmem:[#allocation2 + $0x188] sm:$0xff] }
 0x22f   : > { %v3584_v10 = vadd.f32 %v3583_v34, %v3495_v49  ;;  %v3586_v29 = vpop.f32.mrf.mxu0  ;;  %v3409_v61 = vadd.f32 %v3408_v11, %v3320_v50  ;;  %v1153_v34 = vpack.c.bf16 %v1121_v12, %v1121_v12  ;;  %v1346_v49 = vpack.c.bf16 %v1314_v7, %v1314_v7  ;;  %v4381_v50 = vld [vmem:[#allocation3 + $0x354] sm:$0xf0]  ;;  %1282 = vst [vmem:[#allocation3 + $0x3e8] sm:$0xf] %v1250_v20  ;;  %v1123_v20 = vld [vmem:[#allocation2 + $0x180] sm:$0xff] }
 0x230   : > { %1377 = vst [vmem:[#allocation3 + $0x3c8] sm:$0xf] %v1345_v0  ;;  %v1155_v7 = vpack.c.bf16 %v1123_v20, %v1123_v20 }
 0x231   : > { %v5112_v3 = vpack.c.bf16 %v3584_v10, %v3582_v33  ;;  %v3722_v37 = vadd.f32 %v3721_v1, %v3584_v10  ;;  %v3760_v54 = vmul.f32 %v3584_v10, %v3584_v10  ;;  %3536 = vmatmul.bf16.gmra.mxu3 %v4348_v55  ;;  %v4380_v1 = vor.u32 %v4930_v52, %v4379_v59  ;;  %v4926_v10 = vld [vmem:[#allocation3 + $0x334] sm:$0xf] }
 0x232   : > { %3625 = vmatmul.bf16.gmra.mxu0 %v4352_v60  ;;  %1185 = vst [vmem:[#allocation3 + $0x3c0] sm:$0xf] %v1153_v34 }
 0x233   : > { %5199 = vst [vmem:[%s5923_s19 + $0x8] sm:$0xff] %v5112_v3   ;;  %v3791_v40 = vadd.f32 %v3790_v51, %v3760_v54  ;;  %v3322_v51 = vadd.f32 %v3321_v6, %v5813_v32  ;;  %v4931_v3 = vld [vmem:[#allocation3 + $0x358] sm:$0xf0]  ;;  %v4384_v54 = vor.u32 %v4926_v10, %v4381_v50 }
 0x234   : > { %v3497_v18 = vpop.f32.mrf.mxu3  ;;  %v3324_v58 = vpop.f32.mrf.mxu1  ;;  %1378 = vst [vmem:[#allocation3 + $0x3ec] sm:$0xf] %v1346_v49 }
 0x235   : > { %v3498_v24 = vadd.f32 %v3497_v18, %v3409_v61  ;;  %1090 = vst [vmem:[#allocation3 + $0x404] sm:$0xf] %v1345_v0  ;;  %v4388_v61 = vor.u32 %v4931_v3, %v4387_v39  ;;  %v3325_v59 = vadd.f32 %v3324_v58, %v5819_v2  ;;  %v4934_v18 = vld [vmem:[#allocation3 + $0x374] sm:$0xf] }
 0x236   : > { %v3410_v33 = vpop.f32.mrf.mxu2  ;;  %1091 = vst [vmem:[#allocation3 + $0x428] sm:$0xf] %v1346_v49  ;;  %v1219_v2 = vld [vmem:[#allocation2 + $0x181] sm:$0xff] }
 0x237   : > { %v3587_v57 = vadd.f32 %v3586_v29, %v3498_v24  ;;  %v3588_v47 = vpop.f32.mrf.mxu0  ;;  %3363 = vmatmul.bf16.gmra.mxu1 %v4376_v44  ;;  %v3411_v11 = vadd.f32 %v3410_v33, %v3322_v51  ;;  %v4939_v33 = vld [vmem:[#allocation3 + $0x398] sm:$0xf0]  ;;  %v1156_v51 = vpack.c.bf16 %v1124_v5, %v1124_v5  ;;  %v1251_v49 = vpack.c.bf16 %v1219_v2, %v1219_v2 }
 0x238   : > { %v4416_v0 = vor.u32 %v4939_v33, %v4415_v21  ;;  %1187 = vst [vmem:[#allocation3 + $0x408] sm:$0xf] %v1155_v7  ;;  %v4943_v21 = vld [vmem:[#allocation3 + $0x3bc] sm:$0xf] }
 0x239   : > { %v3723_v55 = vadd.f32 %v3722_v37, %v3587_v57  ;;  %v3761_v60 = vmul.f32 %v3587_v57, %v3587_v57  ;;  %1188 = vst [vmem:[#allocation3 + $0x42c] sm:$0xf] %v1156_v51  ;;  %v4451_v7 = vld [vmem:[#allocation3 + $0x3c0] sm:$0xf]  ;;  %v4948_v51 = vld [vmem:[#allocation3 + $0x3e0] sm:$0xf0] }
 0x23a   : > { %1283 = vst [vmem:[#allocation3 + $0x40c] sm:$0xf] %v1251_v49  ;;  %v1221_v49 = vld [vmem:[#allocation2 + $0x199] sm:$0xff] }
 0x23b   : > { %v3792_v45 = vadd.f32 %v3791_v40, %v3761_v60  ;;  %3452 = vmatmul.bf16.gmra.mxu2 %v4380_v1  ;;  %v4409_v40 = vld [vmem:[#allocation3 + $0x394] sm:$0xf0] }
 0x23c   : > { %v3499_v29 = vpop.f32.mrf.mxu3  ;;  %v3326_v32 = vpop.f32.mrf.mxu1  ;;  %v4412_v25 = vor.u32 %v4934_v18, %v4409_v40  ;;  %v1315_v60 = vld [vmem:[#allocation2 + $0x182] sm:$0xff]  ;;  %v4940_v18 = vld [vmem:[#allocation3 + $0x3a0] sm:$0xf0] }
 0x23d   : > { %v3500_v6 = vadd.f32 %v3499_v29, %v3411_v11  ;;  %v1316_v11 = vld [vmem:[#allocation2 + $0x18a] sm:$0xff]  ;;  %v3327_v50 = vadd.f32 %v3326_v32, %v5825_v63  ;;  %v1347_v39 = vpack.c.bf16 %v1315_v60, %v1315_v60 }
 0x23e   : > { %v3413_v37 = vpop.f32.mrf.mxu2  ;;  %v1348_v3 = vpack.c.bf16 %v1316_v11, %v1316_v11  ;;  %v5251_v60 = vld [vmem:[#allocation2 + $0x8] sm:$0xff] }
 0x23f   : > { %v3589_v44 = vadd.f32 %v3588_v47, %v3500_v6  ;;  %v3591_v52 = vpop.f32.mrf.mxu0  ;;  %v3414_v24 = vadd.f32 %v3413_v37, %v3325_v59  ;;  %v1220_v47 = vld [vmem:[#allocation2 + $0x189] sm:$0xff]  ;;  %1379 = vst [vmem:[#allocation3 + $0x410] sm:$0xf] %v1347_v39  ;;  %v1158_v11 = vpack.c.bf16 %v5251_v60, %v5251_v60 }
 0x240   : > { %v4417_v37 = vld [vmem:[#allocation3 + $0x39c] sm:$0xf0]  ;;  %1380 = vst [vmem:[#allocation3 + $0x434] sm:$0xf] %v1348_v3  ;;  %v4957_v60 = vld [vmem:[#allocation3 + $0x428] sm:$0xf0] }
 0x241   : > { %v5117_v12 = vpack.c.bf16 %v3589_v44, %v3587_v57  ;;  %v3724_v23 = vadd.f32 %v3723_v55, %v3589_v44  ;;  %v3762_v4 = vmul.f32 %v3589_v44, %v3589_v44  ;;  %3541 = vmatmul.bf16.gmra.mxu3 %v4384_v54  ;;  %v1252_v55 = vpack.c.bf16 %v1220_v47, %v1220_v47  ;;  %v4423_v59 = vld [vmem:[#allocation3 + $0x380] sm:$0xf] }
 0x242   : > { %3630 = vmatmul.bf16.gmra.mxu0 %v4388_v61  ;;  %v4935_v61 = vld [vmem:[#allocation3 + $0x37c] sm:$0xf]  ;;  %1092 = vst [vmem:[#allocation3 + $0x44c] sm:$0xf] %v1347_v39 }
 0x243   : > { %5200 = vst [vmem:[%s5923_s19 + $0x10] sm:$0xff] %v5117_v12   ;;  %v3793_v34 = vadd.f32 %v3792_v45, %v3762_v4  ;;  %v4420_v40 = vor.u32 %v4935_v61, %v4417_v37  ;;  %v4424_v12 = vor.u32 %v4940_v18, %v4423_v59 }
 0x244   : > { %v3502_v1 = vpop.f32.mrf.mxu3  ;;  %v3329_v9 = vpop.f32.mrf.mxu1  ;;  %1284 = vst [vmem:[#allocation3 + $0x430] sm:$0xf] %v1252_v55 }
 0x245   : > { %v3503_v58 = vadd.f32 %v3502_v1, %v3414_v24  ;;  %v3330_v24 = vadd.f32 %v3329_v9, %v5840_v46  ;;  %1093 = vst [vmem:[#allocation3 + $0x470] sm:$0xf] %v1348_v3  ;;  %v1222_v46 = vld [vmem:[#allocation2 + $0x1a1] sm:$0xff] }
 0x246   : > { %v3415_v57 = vpop.f32.mrf.mxu2  ;;  %v1254_v39 = vpack.c.bf16 %v1222_v46, %v1222_v46  ;;  %v1317_v3 = vld [vmem:[#allocation2 + $0x19a] sm:$0xff]  ;;  %1190 = vst [vmem:[#allocation3 + $0x474] sm:$0xf] %v1158_v11 }
 0x247   : > { %v3592_v10 = vadd.f32 %v3591_v52, %v3503_v58  ;;  %v3593_v45 = vpop.f32.mrf.mxu0  ;;  %3368 = vmatmul.bf16.gmra.mxu1 %v4412_v25  ;;  %v3416_v54 = vadd.f32 %v3415_v57, %v3327_v50  ;;  %v4452_v50 = vor.u32 %v4948_v51, %v4451_v7  ;;  %v1349_v37 = vpack.c.bf16 %v1317_v3, %v1317_v3 }
 0x248   : > { %1286 = vst [vmem:[#allocation3 + $0x478] sm:$0xf] %v1254_v39 }
 0x249   : > { %v3725_v29 = vadd.f32 %v3724_v23, %v3592_v10  ;;  %v3763_v6 = vmul.f32 %v3592_v10, %v3592_v10  ;;  %1381 = vst [vmem:[#allocation3 + $0x458] sm:$0xf] %v1349_v37  ;;  %v4495_v37 = vld [vmem:[#allocation3 + $0x410] sm:$0xf] }
 0x24b   : > { %v3794_v44 = vadd.f32 %v3793_v34, %v3763_v6  ;;  %3457 = vmatmul.bf16.gmra.mxu2 %v4416_v0  ;;  %v4445_v34 = vld [vmem:[#allocation3 + $0x3dc] sm:$0xf0]  ;;  %v1125_v0 = vld [vmem:[#allocation2 + $0x198] sm:$0xff] }
 0x24c   : > { %v3504_v52 = vpop.f32.mrf.mxu3  ;;  %v3331_v63 = vpop.f32.mrf.mxu1  ;;  %v4448_v58 = vor.u32 %v4943_v21, %v4445_v34  ;;  %v1157_v55 = vpack.c.bf16 %v1125_v0, %v1125_v0 }
 0x24d   : > { %v3505_v32 = vadd.f32 %v3504_v52, %v3416_v54  ;;  %v3332_v54 = vadd.f32 %v3331_v63, %v5843_v13 }
 0x24e   : > { %v3418_v23 = vpop.f32.mrf.mxu2  ;;  %1189 = vst [vmem:[#allocation3 + $0x450] sm:$0xf] %v1157_v55  ;;  %v4487_v55 = vld [vmem:[#allocation3 + $0x408] sm:$0xf] }
 0x24f   : > { %v3594_v4 = vadd.f32 %v3593_v45, %v3505_v32  ;;  %v3596_v25 = vpop.f32.mrf.mxu0  ;;  %v3419_v5 = vadd.f32 %v3418_v23, %v3330_v24  ;;  %v1253_v45 = vpack.c.bf16 %v1221_v49, %v1221_v49  ;;  %v4944_v32 = vld [vmem:[#allocation3 + $0x3c4] sm:$0xf]  ;;  %v4459_v23 = vld [vmem:[#allocation3 + $0x3c8] sm:$0xf] }
 0x251   : > { %v5122_v33 = vpack.c.bf16 %v3594_v4, %v3592_v10  ;;  %v3726_v1 = vadd.f32 %v3725_v29, %v3594_v4  ;;  %v3764_v20 = vmul.f32 %v3594_v4, %v3594_v4  ;;  %3546 = vmatmul.bf16.gmra.mxu3 %v4420_v40  ;;  %v1318_v29 = vld [vmem:[#allocation2 + $0x1a2] sm:$0xff]  ;;  %1285 = vst [vmem:[#allocation3 + $0x454] sm:$0xf] %v1253_v45  ;;  %v4453_v40 = vld [vmem:[#allocation3 + $0x3e4] sm:$0xf0] }
 0x252   : > { %3635 = vmatmul.bf16.gmra.mxu0 %v4424_v12  ;;  %v4949_v4 = vld [vmem:[#allocation3 + $0x3e8] sm:$0xf0]  ;;  %v4488_v45 = vor.u32 %v4957_v60, %v4487_v55 }
 0x253   : > { %5201 = vst [vmem:[%s5923_s19 + $0x18] sm:$0xff] %v5122_v33   ;;  %v3795_v2 = vadd.f32 %v3794_v44, %v3764_v20  ;;  %v1350_v44 = vpack.c.bf16 %v1318_v29, %v1318_v29  ;;  %v4460_v21 = vor.u32 %v4949_v4, %v4459_v23 }
 0x254   : > { %v3507_v47 = vpop.f32.mrf.mxu3  ;;  %v3334_v57 = vpop.f32.mrf.mxu1 }
 0x255   : > { %v3508_v9 = vadd.f32 %v3507_v47, %v3419_v5  ;;  %1382 = vst [vmem:[#allocation3 + $0x47c] sm:$0xf] %v1350_v44  ;;  %v4952_v5 = vld [vmem:[#allocation3 + $0x404] sm:$0xf]  ;;  %v4958_v44 = vld [vmem:[#allocation3 + $0x430] sm:$0xf0] }
 0x256   : > { %v3420_v10 = vpop.f32.mrf.mxu2 }
 0x257   : > { %v3597_v6 = vadd.f32 %v3596_v25, %v3508_v9  ;;  %v3598_v61 = vpop.f32.mrf.mxu0  ;;  %3373 = vmatmul.bf16.gmra.mxu1 %v4448_v58  ;;  %v3421_v52 = vadd.f32 %v3420_v10, %v3332_v54  ;;  %v4456_v25 = vor.u32 %v4944_v32, %v4453_v40  ;;  %v4481_v58 = vld [vmem:[#allocation3 + $0x424] sm:$0xf0]  ;;  %v4489_v54 = vld [vmem:[#allocation3 + $0x42c] sm:$0xf0]  ;;  %v4496_v40 = vor.u32 %v4958_v44, %v4495_v37 }
 0x258   : > { %v4484_v49 = vor.u32 %v4952_v5, %v4481_v58  ;;  %v4523_v58 = vld [vmem:[#allocation3 + $0x450] sm:$0xf]  ;;  %v4962_v60 = vld [vmem:[#allocation3 + $0x454] sm:$0xf] }
 0x259   : > { %v3727_v59 = vadd.f32 %v3726_v1, %v3597_v6  ;;  %v3765_v18 = vmul.f32 %v3597_v6, %v3597_v6  ;;  %v3335_v1 = vadd.f32 %v3334_v57, %v5846_v38 }
 0x25b   : > { %v3796_v12 = vadd.f32 %v3795_v2, %v3765_v18  ;;  %3462 = vmatmul.bf16.gmra.mxu2 %v4452_v50 }
 0x25c   : > { %v3509_v24 = vpop.f32.mrf.mxu3  ;;  %v3336_v13 = vpop.f32.mrf.mxu1 }
 0x25d   : > { %v3510_v63 = vadd.f32 %v3509_v24, %v3421_v52  ;;  %v3337_v38 = vadd.f32 %v3336_v13, %v5849_v53  ;;  %v4961_v24 = vld [vmem:[#allocation3 + $0x44c] sm:$0xf]  ;;  %v4517_v13 = vld [vmem:[#allocation3 + $0x46c] sm:$0xf0] }
 0x25e   : > { %v3423_v34 = vpop.f32.mrf.mxu2 }
 0x25f   : > { %v3599_v33 = vadd.f32 %v3598_v61, %v3510_v63  ;;  %v3601_v20 = vpop.f32.mrf.mxu0  ;;  %v3424_v47 = vadd.f32 %v3423_v34, %v3335_v1  ;;  %v4520_v1 = vor.u32 %v4961_v24, %v4517_v13 }
 0x261   : > { %v5127_v7 = vpack.c.bf16 %v3599_v33, %v3597_v6  ;;  %v3728_v2 = vadd.f32 %v3727_v59, %v3599_v33  ;;  %v3766_v51 = vmul.f32 %v3599_v33, %v3599_v33  ;;  %3551 = vmatmul.bf16.gmra.mxu3 %v4456_v25  ;;  %v4953_v6 = vld [vmem:[#allocation3 + $0x40c] sm:$0xf] }
 0x262   : > { %3640 = vmatmul.bf16.gmra.mxu0 %v4460_v21  ;;  %v4492_v32 = vor.u32 %v4953_v6, %v4489_v54 }
 0x263   : > { %5202 = vst [vmem:[%s5923_s19 + $0x20] sm:$0xff] %v5127_v7   ;;  %v3797_v0 = vadd.f32 %v3796_v12, %v3766_v51  ;;  %v4966_v7 = vld [vmem:[#allocation3 + $0x470] sm:$0xf0] }
 0x264   : > { %v3512_v46 = vpop.f32.mrf.mxu3  ;;  %v3339_v9 = vpop.f32.mrf.mxu1 }
 0x265   : > { %v3513_v11 = vadd.f32 %v3512_v46, %v3424_v47  ;;  %v3340_v23 = vadd.f32 %v3339_v9, %v5852_v27 }
 0x266   : > { %v3425_v10 = vpop.f32.mrf.mxu2 }
 0x267   : > { %v3602_v50 = vadd.f32 %v3601_v20, %v3513_v11  ;;  %v3603_v57 = vpop.f32.mrf.mxu0  ;;  %3378 = vmatmul.bf16.gmra.mxu1 %v4484_v49  ;;  %v3426_v29 = vadd.f32 %v3425_v10, %v3337_v38  ;;  %v4524_v49 = vor.u32 %v4966_v7, %v4523_v58  ;;  %v4525_v11 = vld [vmem:[#allocation3 + $0x474] sm:$0xf0]  ;;  %v4967_v38 = vld [vmem:[#allocation3 + $0x478] sm:$0xf0] }
 0x269   : > { %v3729_v39 = vadd.f32 %v3728_v2, %v3602_v50  ;;  %v3767_v3 = vmul.f32 %v3602_v50, %v3602_v50 }
 0x26b   : > { %v3798_v61 = vadd.f32 %v3797_v0, %v3767_v3  ;;  %3467 = vmatmul.bf16.gmra.mxu2 %v4488_v45  ;;  %v4528_v3 = vor.u32 %v4962_v60, %v4525_v11 }
 0x26c   : > { %v3514_v59 = vpop.f32.mrf.mxu3  ;;  %v3341_v18 = vpop.f32.mrf.mxu1 }
 0x26d   : > { %v3515_v52 = vadd.f32 %v3514_v59, %v3426_v29  ;;  %v3342_v27 = vadd.f32 %v3341_v18, %v5855_v42 }
 0x26e   : > { %v3428_v12 = vpop.f32.mrf.mxu2 }
 0x26f   : > { %v3604_v53 = vadd.f32 %v3603_v57, %v3515_v52  ;;  %v3606_v4 = vpop.f32.mrf.mxu0  ;;  %v3429_v34 = vadd.f32 %v3428_v12, %v3340_v23 }
 0x271   : > { %v5132_v63 = vpack.c.bf16 %v3604_v53, %v3602_v50  ;;  %v3730_v25 = vadd.f32 %v3729_v39, %v3604_v53  ;;  %v3768_v21 = vmul.f32 %v3604_v53, %v3604_v53  ;;  %3556 = vmatmul.bf16.gmra.mxu3 %v4492_v32  ;;  %v4531_v50 = vld [vmem:[#allocation3 + $0x458] sm:$0xf] }
 0x272   : > { %3645 = vmatmul.bf16.gmra.mxu0 %v4496_v40  ;;  %v4532_v29 = vor.u32 %v4967_v38, %v4531_v50 }
 0x273   : > { %5203 = vst [vmem:[%s5923_s19 + $0x28] sm:$0xff] %v5132_v63   ;;  %v3799_v33 = vadd.f32 %v3798_v61, %v3768_v21 }
 0x274   : > { %v3517_v20 = vpop.f32.mrf.mxu3  ;;  %v3344_v5 = vpop.f32.mrf.mxu1 }
 0x275   : > { %v3518_v2 = vadd.f32 %v3517_v20, %v3429_v34  ;;  %v3345_v54 = vadd.f32 %v3344_v5, %v5858_v14 }
 0x276   : > { %v3430_v51 = vpop.f32.mrf.mxu2 }
 0x277   : > { %v3607_v47 = vadd.f32 %v3606_v4, %v3518_v2  ;;  %v3608_v0 = vpop.f32.mrf.mxu0  ;;  %3383 = vmatmul.bf16.gmra.mxu1 %v4520_v1  ;;  %v3431_v55 = vadd.f32 %v3430_v51, %v3342_v27 }
 0x279   : > { %v3731_v46 = vadd.f32 %v3730_v25, %v3607_v47  ;;  %v3769_v9 = vmul.f32 %v3607_v47, %v3607_v47 }
 0x27b   : > { %v3800_v10 = vadd.f32 %v3799_v33, %v3769_v9  ;;  %3472 = vmatmul.bf16.gmra.mxu2 %v4524_v49 }
 0x27c   : > { %v3519_v57 = vpop.f32.mrf.mxu3  ;;  %v3346_v45 = vpop.f32.mrf.mxu1 }
 0x27d   : > { %v3520_v39 = vadd.f32 %v3519_v57, %v3431_v55  ;;  %v3347_v4 = vadd.f32 %v3346_v45, %v5861_v62 }
 0x27e   : > { %v3433_v6 = vpop.f32.mrf.mxu2 }
 0x27f   : > { %v3609_v42 = vadd.f32 %v3608_v0, %v3520_v39  ;;  %v3611_v61 = vpop.f32.mrf.mxu0  ;;  %v3434_v18 = vadd.f32 %v3433_v6, %v3345_v54 }
 0x281   : > { %v5137_v37 = vpack.c.bf16 %v3609_v42, %v3607_v47  ;;  %v3732_v44 = vadd.f32 %v3731_v46, %v3609_v42  ;;  %v3770_v59 = vmul.f32 %v3609_v42, %v3609_v42  ;;  %3561 = vmatmul.bf16.gmra.mxu3 %v4528_v3 }
 0x282   : > { %3650 = vmatmul.bf16.gmra.mxu0 %v4532_v29 }
 0x283   : > { %5204 = vst [vmem:[%s5923_s19 + $0x30] sm:$0xff] %v5137_v37   ;;  %v3801_v52 = vadd.f32 %v3800_v10, %v3770_v59 }
 0x284   : > { %v3522_v32 = vpop.f32.mrf.mxu3  ;;  %v3349_v40 = vpop.f32.mrf.mxu1 }
 0x285   : > { %v3523_v12 = vadd.f32 %v3522_v32, %v3434_v18  ;;  %v3350_v5 = vadd.f32 %v3349_v40, %v5864_v28 }
 0x286   : > { %v3435_v53 = vpop.f32.mrf.mxu2 }
 0x287   : > { %v3612_v23 = vadd.f32 %v3611_v61, %v3523_v12  ;;  %v3613_v24 = vpop.f32.mrf.mxu0  ;;  %v3436_v63 = vadd.f32 %v3435_v53, %v3347_v4 }
 0x289   : > { %v3733_v13 = vadd.f32 %v3732_v44, %v3612_v23  ;;  %v3771_v14 = vmul.f32 %v3612_v23, %v3612_v23 }
 0x28b   : > { %v3802_v25 = vadd.f32 %v3801_v52, %v3771_v14 }
 0x28c   : > { %v3524_v21 = vpop.f32.mrf.mxu3  ;;  %v3351_v34 = vpop.f32.mrf.mxu1 }
 0x28d   : > { %v3525_v33 = vadd.f32 %v3524_v21, %v3436_v63  ;;  %v3352_v55 = vadd.f32 %v3351_v34, %v5867_v41 }
 0x28e   : > { %v3438_v1 = vpop.f32.mrf.mxu2 }
 0x28f   : > { %v3614_v20 = vadd.f32 %v3613_v24, %v3525_v33  ;;  %v3616_v58 = vpop.f32.mrf.mxu0  ;;  %v3439_v47 = vadd.f32 %v3438_v1, %v3350_v5 }
 0x291   : > { %v5142_v7 = vpack.c.bf16 %v3614_v20, %v3612_v23  ;;  %v3734_v2 = vadd.f32 %v3733_v13, %v3614_v20  ;;  %v3772_v51 = vmul.f32 %v3614_v20, %v3614_v20 }
 0x293   : > { %5205 = vst [vmem:[%s5923_s19 + $0x38] sm:$0xff] %v5142_v7   ;;  %v3803_v62 = vadd.f32 %v3802_v25, %v3772_v51 }
 0x294   : > { %v3527_v27 = vpop.f32.mrf.mxu3  ;;  %v3354_v0 = vpop.f32.mrf.mxu1 }
 0x295   : > { %v3528_v49 = vadd.f32 %v3527_v27, %v3439_v47  ;;  %v3355_v29 = vadd.f32 %v3354_v0, %v5870_v16 }
 0x296   : > { %v3440_v46 = vpop.f32.mrf.mxu2 }
 0x297   : > { %v3617_v9 = vadd.f32 %v3616_v58, %v3528_v49  ;;  %v3618_v60 = vpop.f32.mrf.mxu0  ;;  %v3441_v50 = vadd.f32 %v3440_v46, %v3352_v55 }
 0x299   : > { %v3735_v11 = vadd.f32 %v3734_v2, %v3617_v9  ;;  %v3773_v10 = vmul.f32 %v3617_v9, %v3617_v9 }
 0x29b   : > { %v3804_v28 = vadd.f32 %v3803_v62, %v3773_v10 }
 0x29c   : > { %v3529_v38 = vpop.f32.mrf.mxu3  ;;  %v3356_v57 = vpop.f32.mrf.mxu1 }
 0x29d   : > { %v3530_v45 = vadd.f32 %v3529_v38, %v3441_v50  ;;  %v3357_v40 = vadd.f32 %v3356_v57, %v5873_v17 }
 0x29e   : > { %v3443_v39 = vpop.f32.mrf.mxu2 }
 0x29f   : > { %v3619_v3 = vadd.f32 %v3618_v60, %v3530_v45  ;;  %v3621_v6 = vpop.f32.mrf.mxu0  ;;  %v3444_v37 = vadd.f32 %v3443_v39, %v3355_v29 }
 0x2a1   : > { %v5147_v42 = vpack.c.bf16 %v3619_v3, %v3617_v9  ;;  %v3736_v54 = vadd.f32 %v3735_v11, %v3619_v3  ;;  %v3774_v61 = vmul.f32 %v3619_v3, %v3619_v3 }
 0x2a3   : > { %5206 = vst [vmem:[%s5923_s19 + $0x40] sm:$0xff] %v5147_v42   ;;  %v3805_v41 = vadd.f32 %v3804_v28, %v3774_v61 }
 0x2a4   : > { %v3532_v44 = vpop.f32.mrf.mxu3  ;;  %v3359_v59 = vpop.f32.mrf.mxu1 }
 0x2a5   : > { %v3533_v18 = vadd.f32 %v3532_v44, %v3444_v37  ;;  %v3360_v21 = vadd.f32 %v3359_v59, %v5876_v30 }
 0x2a6   : > { %v3445_v52 = vpop.f32.mrf.mxu2 }
 0x2a7   : > { %v3622_v32 = vadd.f32 %v3621_v6, %v3533_v18  ;;  %v3623_v12 = vpop.f32.mrf.mxu0  ;;  %v3446_v4 = vadd.f32 %v3445_v52, %v3357_v40 }
 0x2a9   : > { %v3737_v53 = vadd.f32 %v3736_v54, %v3622_v32  ;;  %v3775_v23 = vmul.f32 %v3622_v32, %v3622_v32 }
 0x2ab   : > { %v3806_v16 = vadd.f32 %v3805_v41, %v3775_v23 }
 0x2ac   : > { %v3534_v24 = vpop.f32.mrf.mxu3  ;;  %v3361_v13 = vpop.f32.mrf.mxu1 }
 0x2ad   : > { %v3535_v14 = vadd.f32 %v3534_v24, %v3446_v4  ;;  %v3362_v62 = vadd.f32 %v3361_v13, %v5879_v8 }
 0x2ae   : > { %v3448_v63 = vpop.f32.mrf.mxu2 }
 0x2af   : > { %v3624_v25 = vadd.f32 %v3623_v12, %v3535_v14  ;;  %v3626_v34 = vpop.f32.mrf.mxu0  ;;  %v3449_v5 = vadd.f32 %v3448_v63, %v3360_v21 }
 0x2b1   : > { %v5152_v33 = vpack.c.bf16 %v3624_v25, %v3622_v32  ;;  %v3738_v1 = vadd.f32 %v3737_v53, %v3624_v25  ;;  %v3776_v20 = vmul.f32 %v3624_v25, %v3624_v25 }
 0x2b3   : > { %5207 = vst [vmem:[%s5923_s19 + $0x48] sm:$0xff] %v5152_v33   ;;  %v3807_v17 = vadd.f32 %v3806_v16, %v3776_v20 }
 0x2b4   : > { %v3537_v58 = vpop.f32.mrf.mxu3  ;;  %v3364_v7 = vpop.f32.mrf.mxu1 }
 0x2b5   : > { %v3538_v2 = vadd.f32 %v3537_v58, %v3449_v5  ;;  %v3365_v50 = vadd.f32 %v3364_v7, %v5882_v56 }
 0x2b6   : > { %v3450_v51 = vpop.f32.mrf.mxu2 }
 0x2b7   : > { %v3627_v47 = vadd.f32 %v3626_v34, %v3538_v2  ;;  %v3628_v27 = vpop.f32.mrf.mxu0  ;;  %v3451_v46 = vadd.f32 %v3450_v51, %v3362_v62 }
 0x2b9   : > { %v3739_v0 = vadd.f32 %v3738_v1, %v3627_v47  ;;  %v3777_v49 = vmul.f32 %v3627_v47, %v3627_v47 }
 0x2bb   : > { %v3808_v30 = vadd.f32 %v3807_v17, %v3777_v49 }
 0x2bc   : > { %v3539_v9 = vpop.f32.mrf.mxu3  ;;  %v3366_v55 = vpop.f32.mrf.mxu1 }
 0x2bd   : > { %v3540_v60 = vadd.f32 %v3539_v9, %v3451_v46  ;;  %v3367_v61 = vadd.f32 %v3366_v55, %v5885_v19 }
 0x2be   : > { %v3453_v11 = vpop.f32.mrf.mxu2 }
 0x2bf   : > { %v3629_v10 = vadd.f32 %v3628_v27, %v3540_v60  ;;  %v3631_v28 = vpop.f32.mrf.mxu0  ;;  %v3454_v39 = vadd.f32 %v3453_v11, %v3365_v50 }
 0x2c1   : > { %v5157_v38 = vpack.c.bf16 %v3629_v10, %v3627_v47  ;;  %v3740_v57 = vadd.f32 %v3739_v0, %v3629_v10  ;;  %v3778_v45 = vmul.f32 %v3629_v10, %v3629_v10 }
 0x2c3   : > { %5208 = vst [vmem:[%s5923_s19 + $0x50] sm:$0xff] %v5157_v38   ;;  %v3809_v8 = vadd.f32 %v3808_v30, %v3778_v45 }
 0x2c4   : > { %v3542_v3 = vpop.f32.mrf.mxu3  ;;  %v3369_v29 = vpop.f32.mrf.mxu1 }
 0x2c5   : > { %v3543_v6 = vadd.f32 %v3542_v3, %v3454_v39  ;;  %v3370_v53 = vadd.f32 %v3369_v29, %v5888_v26 }
 0x2c6   : > { %v3455_v42 = vpop.f32.mrf.mxu2 }
 0x2c7   : > { %v3632_v54 = vadd.f32 %v3631_v28, %v3543_v6  ;;  %v3633_v37 = vpop.f32.mrf.mxu0  ;;  %v3456_v59 = vadd.f32 %v3455_v42, %v3367_v61 }
 0x2c9   : > { %v3741_v41 = vadd.f32 %v3740_v57, %v3632_v54  ;;  %v3779_v44 = vmul.f32 %v3632_v54, %v3632_v54 }
 0x2cb   : > { %v3810_v56 = vadd.f32 %v3809_v8, %v3779_v44 }
 0x2cc   : > { %v3544_v18 = vpop.f32.mrf.mxu3  ;;  %v3371_v52 = vpop.f32.mrf.mxu1 }
 0x2cd   : > { %v3545_v32 = vadd.f32 %v3544_v18, %v3456_v59  ;;  %v3372_v33 = vadd.f32 %v3371_v52, %v5891_v31 }
 0x2ce   : > { %v3458_v40 = vpop.f32.mrf.mxu2 }
 0x2cf   : > { %v3634_v12 = vadd.f32 %v3633_v37, %v3545_v32  ;;  %v3636_v23 = vpop.f32.mrf.mxu0  ;;  %v3459_v13 = vadd.f32 %v3458_v40, %v3370_v53 }
 0x2d1   : > { %v5162_v4 = vpack.c.bf16 %v3634_v12, %v3632_v54  ;;  %v3742_v16 = vadd.f32 %v3741_v41, %v3634_v12  ;;  %v3780_v24 = vmul.f32 %v3634_v12, %v3634_v12 }
 0x2d3   : > { %5209 = vst [vmem:[%s5923_s19 + $0x58] sm:$0xff] %v5162_v4   ;;  %v3811_v19 = vadd.f32 %v3810_v56, %v3780_v24 }
 0x2d4   : > { %v3547_v14 = vpop.f32.mrf.mxu3  ;;  %v3374_v63 = vpop.f32.mrf.mxu1 }
 0x2d5   : > { %v3548_v25 = vadd.f32 %v3547_v14, %v3459_v13  ;;  %v3375_v62 = vadd.f32 %v3374_v63, %v5894_v22 }
 0x2d6   : > { %v3460_v21 = vpop.f32.mrf.mxu2 }
 0x2d7   : > { %v3637_v34 = vadd.f32 %v3636_v23, %v3548_v25  ;;  %v3638_v1 = vpop.f32.mrf.mxu0  ;;  %v3461_v17 = vadd.f32 %v3460_v21, %v3372_v33 }
 0x2d9   : > { %v3743_v20 = vadd.f32 %v3742_v16, %v3637_v34  ;;  %v3781_v5 = vmul.f32 %v3637_v34, %v3637_v34 }
 0x2db   : > { %v3812_v26 = vadd.f32 %v3811_v19, %v3781_v5 }
 0x2dc   : > { %v3549_v58 = vpop.f32.mrf.mxu3  ;;  %v3376_v7 = vpop.f32.mrf.mxu1 }
 0x2dd   : > { %v3550_v2 = vadd.f32 %v3549_v58, %v3461_v17  ;;  %v3377_v50 = vadd.f32 %v3376_v7, %v5897_v35 }
 0x2de   : > { %v3463_v51 = vpop.f32.mrf.mxu2 }
 0x2df   : > { %v3639_v47 = vadd.f32 %v3638_v1, %v3550_v2  ;;  %v3641_v27 = vpop.f32.mrf.mxu0  ;;  %v3464_v30 = vadd.f32 %v3463_v51, %v3375_v62 }
 0x2e1   : > { %v5167_v0 = vpack.c.bf16 %v3639_v47, %v3637_v34  ;;  %v3744_v49 = vadd.f32 %v3743_v20, %v3639_v47  ;;  %v3782_v46 = vmul.f32 %v3639_v47, %v3639_v47 }
 0x2e3   : > { %5210 = vst [vmem:[%s5923_s19 + $0x60] sm:$0xff] %v5167_v0   ;;  %v3813_v31 = vadd.f32 %v3812_v26, %v3782_v46 }
 0x2e4   : > { %v3552_v9 = vpop.f32.mrf.mxu3  ;;  %v3379_v60 = vpop.f32.mrf.mxu1 }
 0x2e5   : > { %v3553_v55 = vadd.f32 %v3552_v9, %v3464_v30  ;;  %v3380_v6 = vadd.f32 %v3379_v60, %v5900_v36 }
 0x2e6   : > { %v3465_v11 = vpop.f32.mrf.mxu2 }
 0x2e7   : > { %v3642_v10 = vadd.f32 %v3641_v27, %v3553_v55  ;;  %v3643_v28 = vpop.f32.mrf.mxu0  ;;  %v3466_v45 = vadd.f32 %v3465_v11, %v3377_v50 }
 0x2e9   : > { %v3745_v38 = vadd.f32 %v3744_v49, %v3642_v10  ;;  %v3783_v57 = vmul.f32 %v3642_v10, %v3642_v10 }
 0x2eb   : > { %v3814_v22 = vadd.f32 %v3813_v31, %v3783_v57 }
 0x2ec   : > { %v3554_v39 = vpop.f32.mrf.mxu3  ;;  %v3381_v42 = vpop.f32.mrf.mxu1 }
 0x2ed   : > { %v3555_v8 = vadd.f32 %v3554_v39, %v3466_v45  ;;  %v3382_v32 = vadd.f32 %v3381_v42, %v5903_v48 }
 0x2ee   : > { %v3468_v3 = vpop.f32.mrf.mxu2 }
 0x2ef   : > { %v3644_v29 = vadd.f32 %v3643_v28, %v3555_v8  ;;  %v3646_v54 = vpop.f32.mrf.mxu0  ;;  %v3469_v44 = vadd.f32 %v3468_v3, %v3380_v6 }
 0x2f1   : > { %v5172_v61 = vpack.c.bf16 %v3644_v29, %v3642_v10  ;;  %v3746_v37 = vadd.f32 %v3745_v38, %v3644_v29  ;;  %v3784_v41 = vmul.f32 %v3644_v29, %v3644_v29 }
 0x2f3   : > { %5211 = vst [vmem:[%s5923_s19 + $0x68] sm:$0xff] %v5172_v61   ;;  %v3815_v35 = vadd.f32 %v3814_v22, %v3784_v41 }
 0x2f4   : > { %v3557_v59 = vpop.f32.mrf.mxu3  ;;  %v3384_v23 = vpop.f32.mrf.mxu1 }
 0x2f5   : > { %v3558_v56 = vadd.f32 %v3557_v59, %v3469_v44  ;;  %v3385_v14 = vadd.f32 %v3384_v23, %v5906_v43 }
 0x2f6   : > { %v3470_v18 = vpop.f32.mrf.mxu2 }
 0x2f7   : > { %v3647_v52 = vadd.f32 %v3646_v54, %v3558_v56  ;;  %v3471_v53 = vadd.f32 %v3470_v18, %v3382_v32  ;;  %v3648_v36 = vpop.f32.mrf.mxu0 }
 0x2f9   : > { %v3747_v40 = vadd.f32 %v3746_v37, %v3647_v52  ;;  %v3785_v12 = vmul.f32 %v3647_v52, %v3647_v52 }
 0x2fb   : > { %v3816_v4 = vadd.f32 %v3815_v35, %v3785_v12 }
 0x2fc   : > { %v3559_v16 = vpop.f32.mrf.mxu3  ;;  %v3386_v48 = vpop.f32.mrf.mxu1 }
 0x2fd   : > { %v3560_v24 = vadd.f32 %v3559_v16, %v3471_v53  ;;  %v3387_v58 = vadd.f32 %v3386_v48, %v5908_v15 }
 0x2fe   : > { %v3473_v13 = vpop.f32.mrf.mxu2 }
 0x2ff   : > { %v3649_v19 = vadd.f32 %v3648_v36, %v3560_v24  ;;  %v3474_v34 = vadd.f32 %v3473_v13, %v3385_v14  ;;  %v3651_v1 = vpop.f32.mrf.mxu0 }
 0x301   : > { %v5177_v63 = vpack.c.bf16 %v3649_v19, %v3647_v52  ;;  %v3748_v25 = vadd.f32 %v3747_v40, %v3649_v19  ;;  %v3786_v21 = vmul.f32 %v3649_v19, %v3649_v19 }
 0x303   : > { %5212 = vst [vmem:[%s5923_s19 + $0x70] sm:$0xff] %v5177_v63   ;;  %v3817_v33 = vadd.f32 %v3816_v4, %v3786_v21 }
 0x304   : > { %v3562_v20 = vpop.f32.mrf.mxu3 }
 0x305   : > { %v3563_v5 = vadd.f32 %v3562_v20, %v3474_v34 }
 0x306   : > { %v3475_v17 = vpop.f32.mrf.mxu2 }
 0x307   : > { %v3652_v26 = vadd.f32 %v3651_v1, %v3563_v5  ;;  %v3476_v51 = vadd.f32 %v3475_v17, %v3387_v58  ;;  %v3653_v27 = vpop.f32.mrf.mxu0 }
 0x309   : > { %v3749_v7 = vadd.f32 %v3748_v25, %v3652_v26  ;;  %v3787_v2 = vmul.f32 %v3652_v26, %v3652_v26 }
 0x30b   : > { %v3818_v43 = vadd.f32 %v3817_v33, %v3787_v2 }
 0x30c   : > { %v3564_v47 = vpop.f32.mrf.mxu3 }
 0x30d   : > { %v3565_v62 = vadd.f32 %v3564_v47, %v3476_v51 }
 0x30f   : > { %v3654_v0 = vadd.f32 %v3653_v27, %v3565_v62 }
 0x311   : > { %v5182_v49 = vpack.c.bf16 %v3654_v0, %v3652_v26  ;;  %v3750_v46 = vadd.f32 %v3749_v7, %v3654_v0  ;;  %v3788_v30 = vmul.f32 %v3654_v0, %v3654_v0 }
 0x313   : > { %5213 = vst [vmem:[%s5923_s19 + $0x78] sm:$0xff] %v5182_v49   ;;  %v3751_v31 = vrot.slane %v3750_v46, 4  ;;  %v3819_v9 = vadd.f32 %v3818_v43, %v3788_v30 }
 0x315   : > { %v3752_v55 = vadd.f32 %v3751_v31, %v3750_v46  ;;  %v3820_v60 = vrot.slane %v3819_v9, 4 }
 0x317   : > { %v3753_v11 = vrot.slane %v3752_v55, 2  ;;  %v3821_v10 = vadd.f32 %v3820_v60, %v3819_v9 }
 0x319   : > { %v3754_v15 = vadd.f32 %v3753_v11, %v3752_v55  ;;  %v3822_v50 = vrot.slane %v3821_v10, 2 }
 0x31b   : > { %v3755_v28 = vrot.slane %v3754_v15, 1  ;;  %v3823_v38 = vadd.f32 %v3822_v50, %v3821_v10 }
 0x31d   : > { %v3756_v57 = vadd.f32 %v3755_v28, %v3754_v15  ;;  %v3824_v45 = vrot.slane %v3823_v38, 1 }
 0x31f   : > { %v3825_v22 = vadd.f32 %v3824_v45, %v3823_v38  ;;  %3826 = vst [vmem:[%s269_s25] sm:$0xff] %v3756_v57 }
 0x321   : > { %3827 = vst [vmem:[%s273_s7] sm:$0xff] %v3825_v22 }
 0x322 PF: > { %s17_s21 = sadd.s32 1, %s5258_s21  }
 0x323   : > { %p14_p5 = scmp.ge.s32.totalorder %s17_s21, 4  }
 0x325   :  { %16 = sbr.rel (!%p14_p5) target bundleno = 1 (0x1), region = 93 }

</bundles_post_ra>
